<compile_context>
chip_gen: v6e
topology: v6e:2x2x1
jax: 0.10.0
libtpu: 0.0.40
codegen_flags: <defaults>
</compile_context>

<pallas_src>
import functools
import numpy as np
import jax
import jax.numpy as jnp
from jax.experimental import pallas as pl
from jax.experimental.pallas import tpu as pltpu


def _zero_border(pad_ref, H, W):
    """Zero only the 1-pixel halo border of a (H+2, W+2, C) padded scratch buffer.

    The interior is fully overwritten every grid step, so full-buffer zeroing (two big
    VPU+store passes per step in v1) is unnecessary.  Re-zeroed every step so megacore
    splitting of the batch axis (per-core scratch) stays correct.
    """
    C = pad_ref.shape[-1]
    dt = pad_ref.dtype
    pad_ref[0:1, :, :] = jnp.zeros((1, W + 2, C), dt)
    pad_ref[H + 1:H + 2, :, :] = jnp.zeros((1, W + 2, C), dt)
    pad_ref[:, 0:1, :] = jnp.zeros((H + 2, 1, C), dt)
    pad_ref[:, W + 1:W + 2, :] = jnp.zeros((H + 2, 1, C), dt)


def _conv3x3(xpad_ref, w_ref, patch_ref, H, W, C, Cout):
    """3x3 / stride-1 / pad-1 conv on a zero-halo-padded bf16 activation ref.

    C < 128 : im2col into the shared bf16 scratch, one K=9*C MXU matmul.
    C >= 128: nine accumulated K=C matmuls straight from the padded ref
              (contraction is already full per tap; no patch materialisation).
    Returns (H*W, Cout) f32.
    """
    if C < 128:
        for k in range(9):
            dy, dx = divmod(k, 3)
            # ref-slice -> ref-slice copy (bf16 -> bf16, no cast, no big live value)
            patch_ref[:, :, k * C:(k + 1) * C] = xpad_ref[dy:dy + H, dx:dx + W, :]
        p = patch_ref[:, :, :9 * C].reshape(H * W, 9 * C)
        return jnp.dot(p, w_ref[...], preferred_element_type=jnp.float32)
    acc = jnp.zeros((H * W, Cout), jnp.float32)
    for k in range(9):
        dy, dx = divmod(k, 3)
        tap = xpad_ref[dy:dy + H, dx:dx + W, :].reshape(H * W, C)
        acc = acc + jnp.dot(tap, w_ref[k * C:(k + 1) * C, :],
                            preferred_element_type=jnp.float32)
    return acc


def _store_out(o_ref, res, H, W, Cout, lane_dense):
    if lane_dense:
        # lane-dense (H, W*Cout) store slab: avoids masked vst partial stores when Cout<128
        o_ref[0] = res.reshape(H, W * Cout)
    else:
        o_ref[0] = res


def _block_kernel_ident(x_ref, w1_ref, s1_ref, b1_ref, w2_ref, s2_ref, b2_ref,
                        o_ref, xpad_ref, hpad_ref, patch_ref,
                        *, H, W, lane_dense):
    """Identity-shortcut variant: no 1x1 projection matmul, no extra weight DMA."""
    C = w1_ref.shape[-1]
    x = x_ref[0]                                              # (H, W, C) f32

    _zero_border(xpad_ref, H, W)
    xpad_ref[1:H + 1, 1:W + 1, :] = x.astype(jnp.bfloat16)    # single cast pass

    h = _conv3x3(xpad_ref, w1_ref, patch_ref, H, W, C, C)     # (H*W, C) f32
    h = jnp.maximum(h * s1_ref[...] + b1_ref[...], 0.0)       # folded BN1 + ReLU (f32 VPU)

    # intermediate activation stays in VMEM (no HBM round trip)
    _zero_border(hpad_ref, H, W)
    hpad_ref[1:H + 1, 1:W + 1, :] = h.reshape(H, W, C).astype(jnp.bfloat16)

    acc = _conv3x3(hpad_ref, w2_ref, patch_ref, H, W, C, C)
    acc = acc * s2_ref[...] + b2_ref[...]                     # folded BN2

    res = jnp.maximum(acc + x.reshape(H * W, C), 0.0)         # exact f32 identity add
    _store_out(o_ref, res, H, W, C, lane_dense)


def _block_kernel_proj(x_ref, w1_ref, s1_ref, b1_ref, w2_ref, s2_ref, b2_ref,
                       ws_ref, ss_ref, bs_ref,
                       o_ref, xpad_ref, hpad_ref, patch_ref,
                       *, H, W, lane_dense):
    """Projection-shortcut variant: 1x1 conv + folded BN on the identity path."""
    Cin = x_ref.shape[-1]
    Cout = w1_ref.shape[-1]
    x = x_ref[0]                                              # (H, W, Cin) f32

    _zero_border(xpad_ref, H, W)
    xpad_ref[1:H + 1, 1:W + 1, :] = x.astype(jnp.bfloat16)

    h = _conv3x3(xpad_ref, w1_ref, patch_ref, H, W, Cin, Cout)
    h = jnp.maximum(h * s1_ref[...] + b1_ref[...], 0.0)

    _zero_border(hpad_ref, H, W)
    hpad_ref[1:H + 1, 1:W + 1, :] = h.reshape(H, W, Cout).astype(jnp.bfloat16)

    acc = _conv3x3(hpad_ref, w2_ref, patch_ref, H, W, Cout, Cout)
    acc = acc * s2_ref[...] + b2_ref[...]

    ident = jnp.dot(x.reshape(H * W, Cin).astype(jnp.bfloat16), ws_ref[...],
                    preferred_element_type=jnp.float32)
    ident = ident * ss_ref[...] + bs_ref[...]

    res = jnp.maximum(acc + ident, 0.0)
    _store_out(o_ref, res, H, W, Cout, lane_dense)


def _fold_bn(gamma, beta, mean, var, eps=1e-5):
    scale = gamma / jnp.sqrt(var + eps)
    bias = beta - mean * scale
    return (scale.reshape(1, -1).astype(jnp.float32),
            bias.reshape(1, -1).astype(jnp.float32))


def basic_block_resnet(x_nchw, params, eps=1e-5):
    """Forward pass of BasicBlockResnet (stride=1). x_nchw: (N, Cin, H, W) float32."""
    x = jnp.transpose(x_nchw, (0, 2, 3, 1)).astype(jnp.float32)   # -> NHWC
    N, H, W, Cin = x.shape
    w1 = params["w1"]                       # (3,3,Cin,Cout)  HWIO
    w2 = params["w2"]                       # (3,3,Cout,Cout) HWIO
    Cout = w1.shape[-1]

    s1, b1 = _fold_bn(params["g1"], params["be1"], params["m1"], params["v1"], eps)
    s2, b2 = _fold_bn(params["g2"], params["be2"], params["m2"], params["v2"], eps)

    # im2col weight layout (tap-major, channel-minor), bf16 for the MXU.
    w1f = w1.reshape(9 * Cin, Cout).astype(jnp.bfloat16)
    w2f = w2.reshape(9 * Cout, Cout).astype(jnp.bfloat16)

    bcast = lambda n: (0, 0)
    in_specs = [
        pl.BlockSpec((1, H, W, Cin), lambda n: (n, 0, 0, 0)),
        pl.BlockSpec((9 * Cin, Cout), bcast),
        pl.BlockSpec((1, Cout), bcast),
        pl.BlockSpec((1, Cout), bcast),
        pl.BlockSpec((9 * Cout, Cout), bcast),
        pl.BlockSpec((1, Cout), bcast),
        pl.BlockSpec((1, Cout), bcast),
    ]

    # Shared bf16 im2col scratch: only as wide as the widest conv that actually uses
    # im2col; a tiny dummy if neither does (C >= 128 path never touches it).
    im2col_cs = [c for c in (Cin, Cout) if c < 128]
    patch_shape = (H, W, 9 * max(im2col_cs)) if im2col_cs else (8, 128)
    scratch_shapes = [
        pltpu.VMEM((H + 2, W + 2, Cin), jnp.bfloat16),    # zero-halo padded input (bf16)
        pltpu.VMEM((H + 2, W + 2, Cout), jnp.bfloat16),   # zero-halo padded hidden act
        pltpu.VMEM(patch_shape, jnp.bfloat16),            # shared im2col patches (bf16)
    ]

    if "ws" in params:      # projection shortcut (in_channels != out_channels)
        ws = params["ws"].astype(jnp.bfloat16)                     # (Cin, Cout)
        ss, bs = _fold_bn(params["gs"], params["bes"], params["ms"], params["vs"], eps)
        kernel_fn = _block_kernel_proj
        in_specs = in_specs + [pl.BlockSpec((Cin, Cout), bcast),
                               pl.BlockSpec((1, Cout), bcast),
                               pl.BlockSpec((1, Cout), bcast)]
        args = (x, w1f, s1, b1, w2f, s2, b2, ws, ss, bs)
    else:                   # identity shortcut
        assert Cin == Cout, "identity shortcut requires in_channels == out_channels"
        kernel_fn = _block_kernel_ident
        args = (x, w1f, s1, b1, w2f, s2, b2)

    def call(lane_dense):
        if lane_dense:
            out_shape = jax.ShapeDtypeStruct((N, H, W * Cout), jnp.float32)
            out_spec = pl.BlockSpec((1, H, W * Cout), lambda n: (n, 0, 0))
        else:
            out_shape = jax.ShapeDtypeStruct((N, H * W, Cout), jnp.float32)
            out_spec = pl.BlockSpec((1, H * W, Cout), lambda n: (n, 0, 0))
        return pl.pallas_call(
            functools.partial(kernel_fn, H=H, W=W, lane_dense=lane_dense),
            out_shape=out_shape,
            grid=(N,),
            in_specs=in_specs,
            out_specs=out_spec,
            scratch_shapes=scratch_shapes,
            compiler_params=pltpu.CompilerParams(
                dimension_semantics=("parallel",),
                vmem_limit_bytes=32 * 1024 * 1024,   # explicit budget; fits v7x's 64 MiB
            ),
        )(*args)

    if Cout < 128:
        try:
            out_flat = call(True)        # lane-dense (H, W*Cout) output slab
        except Exception:
            # TODO(synk): fallback if this Mosaic build rejects the minor-dim reshape.
            out_flat = call(False)
    else:
        out_flat = call(False)           # last dim already >= 128 lanes; keep natural layout

    out = out_flat.reshape(N, H, W, Cout)        # free row-major reshape
    return jnp.transpose(out, (0, 3, 1, 2))      # back to NCHW


def _reference(x_nchw, params, eps=1e-5):
    """Pure-JAX reference (lax conv, f32) for correctness checking."""
    x = jnp.transpose(x_nchw, (0, 2, 3, 1)).astype(jnp.float32)

    def conv(a, w):
        return jax.lax.conv_general_dilated(
            a, w, (1, 1), "SAME", dimension_numbers=("NHWC", "HWIO", "NHWC"))

    def bn(a, g, b, m, v):
        return (a - m) / jnp.sqrt(v + eps) * g + b

    out = jax.nn.relu(bn(conv(x, params["w1"]),
                         params["g1"], params["be1"], params["m1"], params["v1"]))
    out = bn(conv(out, params["w2"]),
             params["g2"], params["be2"], params["m2"], params["v2"])
    if "ws" in params:
        ws4 = params["ws"].reshape(1, 1, *params["ws"].shape)
        ident = bn(conv(x, ws4), params["gs"], params["bes"], params["ms"], params["vs"])
    else:
        ident = x
    out = jax.nn.relu(out + ident)
    return jnp.transpose(out, (0, 3, 1, 2))


if __name__ == "__main__":
    key = jax.random.PRNGKey(0)
    ks = jax.random.split(key, 32)

    # ---- case 1: projection shortcut (in_channels != out_channels) ----
    N, Cin, Cout, H, W = 2, 4, 8, 16, 16
    x = jax.random.normal(ks[0], (N, Cin, H, W), jnp.float32)   # NCHW like PyTorch
    params = {
        "w1":  0.2 * jax.random.normal(ks[1], (3, 3, Cin, Cout), jnp.float32),
        "g1":  1.0 + 0.1 * jax.random.normal(ks[2], (Cout,), jnp.float32),
        "be1": 0.1 * jax.random.normal(ks[3], (Cout,), jnp.float32),
        "m1":  0.05 * jax.random.normal(ks[4], (Cout,), jnp.float32),
        "v1":  jax.random.uniform(ks[5], (Cout,), jnp.float32, 0.5, 1.5),
        "w2":  0.2 * jax.random.normal(ks[6], (3, 3, Cout, Cout), jnp.float32),
        "g2":  1.0 + 0.1 * jax.random.normal(ks[7], (Cout,), jnp.float32),
        "be2": 0.1 * jax.random.normal(ks[8], (Cout,), jnp.float32),
        "m2":  0.05 * jax.random.normal(ks[9], (Cout,), jnp.float32),
        "v2":  jax.random.uniform(ks[10], (Cout,), jnp.float32, 0.5, 1.5),
        "ws":  0.2 * jax.random.normal(ks[11], (Cin, Cout), jnp.float32),
        "gs":  1.0 + 0.1 * jax.random.normal(ks[12], (Cout,), jnp.float32),
        "bes": 0.1 * jax.random.normal(ks[13], (Cout,), jnp.float32),
        "ms":  0.05 * jax.random.normal(ks[14], (Cout,), jnp.float32),
        "vs":  jax.random.uniform(ks[15], (Cout,), jnp.float32, 0.5, 1.5),
    }
    out = jax.block_until_ready(basic_block_resnet(x, params))
    assert out.shape == (N, Cout, H, W)
    np.testing.assert_allclose(np.asarray(out), np.asarray(_reference(x, params)),
                               atol=5e-2, rtol=5e-2)   # tolerance reflects bf16 MXU matmuls

    # ---- case 2: identity shortcut (in_channels == out_channels) ----
    C = 8
    x2 = jax.random.normal(ks[16], (N, C, H, W), jnp.float32)
    params2 = {
        "w1":  0.2 * jax.random.normal(ks[17], (3, 3, C, C), jnp.float32),
        "g1":  1.0 + 0.1 * jax.random.normal(ks[18], (C,), jnp.float32),
        "be1": 0.1 * jax.random.normal(ks[19], (C,), jnp.float32),
        "m1":  0.05 * jax.random.normal(ks[20], (C,), jnp.float32),
        "v1":  jax.random.uniform(ks[21], (C,), jnp.float32, 0.5, 1.5),
        "w2":  0.2 * jax.random.normal(ks[22], (3, 3, C, C), jnp.float32),
        "g2":  1.0 + 0.1 * jax.random.normal(ks[23], (C,), jnp.float32),
        "be2": 0.1 * jax.random.normal(ks[24], (C,), jnp.float32),
        "m2":  0.05 * jax.random.normal(ks[25], (C,), jnp.float32),
        "v2":  jax.random.uniform(ks[26], (C,), jnp.float32, 0.5, 1.5),
    }
    out2 = jax.block_until_ready(basic_block_resnet(x2, params2))
    assert out2.shape == (N, C, H, W)
    np.testing.assert_allclose(np.asarray(out2), np.asarray(_reference(x2, params2)),
                               atol=5e-2, rtol=5e-2)

    print("KERNEL_OK")
</pallas_src>

<mosaic_0001>
module attributes {stable_mosaic.version = 11 : i64} {
  func.func @_block_kernel_proj(%arg0: i32, %arg1: memref<1x16x16x4xf32, #tpu.memory_space<vmem>>, %arg2: memref<36x8xbf16, #tpu.memory_space<vmem>>, %arg3: memref<1x8xf32, #tpu.memory_space<vmem>>, %arg4: memref<1x8xf32, #tpu.memory_space<vmem>>, %arg5: memref<72x8xbf16, #tpu.memory_space<vmem>>, %arg6: memref<1x8xf32, #tpu.memory_space<vmem>>, %arg7: memref<1x8xf32, #tpu.memory_space<vmem>>, %arg8: memref<4x8xbf16, #tpu.memory_space<vmem>>, %arg9: memref<1x8xf32, #tpu.memory_space<vmem>>, %arg10: memref<1x8xf32, #tpu.memory_space<vmem>>, %arg11: memref<1x16x128xf32, #tpu.memory_space<vmem>>, %arg12: memref<18x18x4xbf16, #tpu.memory_space<vmem>>, %arg13: memref<18x18x8xbf16, #tpu.memory_space<vmem>>, %arg14: memref<16x16x72xbf16, #tpu.memory_space<vmem>>) attributes {dimension_semantics = [#tpu.dimension_semantics<parallel>], iteration_bounds = array<i64: 2>, scalar_prefetch = 0 : i64, scratch_operands = 3 : i64, tpu.core_type = #tpu.core_type<tc>, window_params = [{transform_indices = @transform_0, window_bounds = array<i64: 1, 16, 16, 4>}, {pipeline_mode = #tpu.pipeline_mode<synchronous>, transform_indices = @transform_1, window_bounds = array<i64: 36, 8>}, {pipeline_mode = #tpu.pipeline_mode<synchronous>, transform_indices = @transform_2, window_bounds = array<i64: 1, 8>}, {pipeline_mode = #tpu.pipeline_mode<synchronous>, transform_indices = @transform_3, window_bounds = array<i64: 1, 8>}, {pipeline_mode = #tpu.pipeline_mode<synchronous>, transform_indices = @transform_4, window_bounds = array<i64: 72, 8>}, {pipeline_mode = #tpu.pipeline_mode<synchronous>, transform_indices = @transform_5, window_bounds = array<i64: 1, 8>}, {pipeline_mode = #tpu.pipeline_mode<synchronous>, transform_indices = @transform_6, window_bounds = array<i64: 1, 8>}, {pipeline_mode = #tpu.pipeline_mode<synchronous>, transform_indices = @transform_7, window_bounds = array<i64: 4, 8>}, {pipeline_mode = #tpu.pipeline_mode<synchronous>, transform_indices = @transform_8, window_bounds = array<i64: 1, 8>}, {pipeline_mode = #tpu.pipeline_mode<synchronous>, transform_indices = @transform_9, window_bounds = array<i64: 1, 8>}, {transform_indices = @transform_10, window_bounds = array<i64: 1, 16, 128>}]} {
    %c0 = arith.constant 0 : index
    %c0_0 = arith.constant 0 : index
    %c0_1 = arith.constant 0 : index
    %c0_2 = arith.constant 0 : index
    %0 = vector.load %arg1[%c0, %c0_0, %c0_1, %c0_2] : memref<1x16x16x4xf32, #tpu.memory_space<vmem>>, vector<1x16x16x4xf32>
    %1 = vector.shape_cast %0 : vector<1x16x16x4xf32> to vector<16x16x4xf32>
    %cst = arith.constant 0.000000e+00 : bf16
    %2 = vector.broadcast %cst : bf16 to vector<1x18x4xbf16>
    %c0_3 = arith.constant 0 : index
    %c0_4 = arith.constant 0 : index
    %c0_5 = arith.constant 0 : index
    %3 = vector.load %arg12[%c0_3, %c0_4, %c0_5] : memref<18x18x4xbf16, #tpu.memory_space<vmem>>, vector<1x18x4xbf16>
    tpu.vector_store %arg12[%c0_3, %c0_4, %c0_5], %2 {strides = array<i32>} : memref<18x18x4xbf16, #tpu.memory_space<vmem>>, vector<1x18x4xbf16>,
    %cst_6 = arith.constant 0.000000e+00 : bf16
    %4 = vector.broadcast %cst_6 : bf16 to vector<1x18x4xbf16>
    %c17 = arith.constant 17 : index
    %c0_7 = arith.constant 0 : index
    %c0_8 = arith.constant 0 : index
    %5 = vector.load %arg12[%c17, %c0_7, %c0_8] : memref<18x18x4xbf16, #tpu.memory_space<vmem>>, vector<1x18x4xbf16>
    tpu.vector_store %arg12[%c17, %c0_7, %c0_8], %4 {strides = array<i32>} : memref<18x18x4xbf16, #tpu.memory_space<vmem>>, vector<1x18x4xbf16>,
    %cst_9 = arith.constant 0.000000e+00 : bf16
    %6 = vector.broadcast %cst_9 : bf16 to vector<18x1x4xbf16>
    %c0_10 = arith.constant 0 : index
    %c0_11 = arith.constant 0 : index
    %c0_12 = arith.constant 0 : index
    %7 = vector.load %arg12[%c0_10, %c0_11, %c0_12] : memref<18x18x4xbf16, #tpu.memory_space<vmem>>, vector<18x1x4xbf16>
    tpu.vector_store %arg12[%c0_10, %c0_11, %c0_12], %6 {strides = array<i32>} : memref<18x18x4xbf16, #tpu.memory_space<vmem>>, vector<18x1x4xbf16>,
    %cst_13 = arith.constant 0.000000e+00 : bf16
    %8 = vector.broadcast %cst_13 : bf16 to vector<18x1x4xbf16>
    %c0_14 = arith.constant 0 : index
    %c17_15 = arith.constant 17 : index
    %c0_16 = arith.constant 0 : index
    %9 = vector.load %arg12[%c0_14, %c17_15, %c0_16] : memref<18x18x4xbf16, #tpu.memory_space<vmem>>, vector<18x1x4xbf16>
    tpu.vector_store %arg12[%c0_14, %c17_15, %c0_16], %8 {strides = array<i32>} : memref<18x18x4xbf16, #tpu.memory_space<vmem>>, vector<18x1x4xbf16>,
    %10 = arith.truncf %1 : vector<16x16x4xf32> to vector<16x16x4xbf16>
    %c1 = arith.constant 1 : index
    %c1_17 = arith.constant 1 : index
    %c0_18 = arith.constant 0 : index
    %11 = vector.load %arg12[%c1, %c1_17, %c0_18] : memref<18x18x4xbf16, #tpu.memory_space<vmem>>, vector<16x16x4xbf16>
    tpu.vector_store %arg12[%c1, %c1_17, %c0_18], %10 {strides = array<i32>} : memref<18x18x4xbf16, #tpu.memory_space<vmem>>, vector<16x16x4xbf16>,
    %c0_19 = arith.constant 0 : index
    %c0_20 = arith.constant 0 : index
    %c0_21 = arith.constant 0 : index
    %12 = vector.load %arg12[%c0_19, %c0_20, %c0_21] : memref<18x18x4xbf16, #tpu.memory_space<vmem>>, vector<16x16x4xbf16>
    %c0_22 = arith.constant 0 : index
    %c0_23 = arith.constant 0 : index
    %c0_24 = arith.constant 0 : index
    %13 = vector.load %arg14[%c0_22, %c0_23, %c0_24] : memref<16x16x72xbf16, #tpu.memory_space<vmem>>, vector<16x16x4xbf16>
    tpu.vector_store %arg14[%c0_22, %c0_23, %c0_24], %12 {strides = array<i32>} : memref<16x16x72xbf16, #tpu.memory_space<vmem>>, vector<16x16x4xbf16>,
    %c0_25 = arith.constant 0 : index
    %c1_26 = arith.constant 1 : index
    %c0_27 = arith.constant 0 : index
    %14 = vector.load %arg12[%c0_25, %c1_26, %c0_27] : memref<18x18x4xbf16, #tpu.memory_space<vmem>>, vector<16x16x4xbf16>
    %c0_28 = arith.constant 0 : index
    %c0_29 = arith.constant 0 : index
    %c4 = arith.constant 4 : index
    %15 = vector.load %arg14[%c0_28, %c0_29, %c4] : memref<16x16x72xbf16, #tpu.memory_space<vmem>>, vector<16x16x4xbf16>
    tpu.vector_store %arg14[%c0_28, %c0_29, %c4], %14 {strides = array<i32>} : memref<16x16x72xbf16, #tpu.memory_space<vmem>>, vector<16x16x4xbf16>,
    %c0_30 = arith.constant 0 : index
    %c2 = arith.constant 2 : index
    %c0_31 = arith.constant 0 : index
    %16 = vector.load %arg12[%c0_30, %c2, %c0_31] : memref<18x18x4xbf16, #tpu.memory_space<vmem>>, vector<16x16x4xbf16>
    %c0_32 = arith.constant 0 : index
    %c0_33 = arith.constant 0 : index
    %c8 = arith.constant 8 : index
    %17 = vector.load %arg14[%c0_32, %c0_33, %c8] : memref<16x16x72xbf16, #tpu.memory_space<vmem>>, vector<16x16x4xbf16>
    tpu.vector_store %arg14[%c0_32, %c0_33, %c8], %16 {strides = array<i32>} : memref<16x16x72xbf16, #tpu.memory_space<vmem>>, vector<16x16x4xbf16>,
    %c1_34 = arith.constant 1 : index
    %c0_35 = arith.constant 0 : index
    %c0_36 = arith.constant 0 : index
    %18 = vector.load %arg12[%c1_34, %c0_35, %c0_36] : memref<18x18x4xbf16, #tpu.memory_space<vmem>>, vector<16x16x4xbf16>
    %c0_37 = arith.constant 0 : index
    %c0_38 = arith.constant 0 : index
    %c12 = arith.constant 12 : index
    %19 = vector.load %arg14[%c0_37, %c0_38, %c12] : memref<16x16x72xbf16, #tpu.memory_space<vmem>>, vector<16x16x4xbf16>
    tpu.vector_store %arg14[%c0_37, %c0_38, %c12], %18 {strides = array<i32>} : memref<16x16x72xbf16, #tpu.memory_space<vmem>>, vector<16x16x4xbf16>,
    %c1_39 = arith.constant 1 : index
    %c1_40 = arith.constant 1 : index
    %c0_41 = arith.constant 0 : index
    %20 = vector.load %arg12[%c1_39, %c1_40, %c0_41] : memref<18x18x4xbf16, #tpu.memory_space<vmem>>, vector<16x16x4xbf16>
    %c0_42 = arith.constant 0 : index
    %c0_43 = arith.constant 0 : index
    %c16 = arith.constant 16 : index
    %21 = vector.load %arg14[%c0_42, %c0_43, %c16] : memref<16x16x72xbf16, #tpu.memory_space<vmem>>, vector<16x16x4xbf16>
    tpu.vector_store %arg14[%c0_42, %c0_43, %c16], %20 {strides = array<i32>} : memref<16x16x72xbf16, #tpu.memory_space<vmem>>, vector<16x16x4xbf16>,
    %c1_44 = arith.constant 1 : index
    %c2_45 = arith.constant 2 : index
    %c0_46 = arith.constant 0 : index
    %22 = vector.load %arg12[%c1_44, %c2_45, %c0_46] : memref<18x18x4xbf16, #tpu.memory_space<vmem>>, vector<16x16x4xbf16>
    %c0_47 = arith.constant 0 : index
    %c0_48 = arith.constant 0 : index
    %c20 = arith.constant 20 : index
    %23 = vector.load %arg14[%c0_47, %c0_48, %c20] : memref<16x16x72xbf16, #tpu.memory_space<vmem>>, vector<16x16x4xbf16>
    tpu.vector_store %arg14[%c0_47, %c0_48, %c20], %22 {strides = array<i32>} : memref<16x16x72xbf16, #tpu.memory_space<vmem>>, vector<16x16x4xbf16>,
    %c2_49 = arith.constant 2 : index
    %c0_50 = arith.constant 0 : index
    %c0_51 = arith.constant 0 : index
    %24 = vector.load %arg12[%c2_49, %c0_50, %c0_51] : memref<18x18x4xbf16, #tpu.memory_space<vmem>>, vector<16x16x4xbf16>
    %c0_52 = arith.constant 0 : index
    %c0_53 = arith.constant 0 : index
    %c24 = arith.constant 24 : index
    %25 = vector.load %arg14[%c0_52, %c0_53, %c24] : memref<16x16x72xbf16, #tpu.memory_space<vmem>>, vector<16x16x4xbf16>
    tpu.vector_store %arg14[%c0_52, %c0_53, %c24], %24 {strides = array<i32>} : memref<16x16x72xbf16, #tpu.memory_space<vmem>>, vector<16x16x4xbf16>,
    %c2_54 = arith.constant 2 : index
    %c1_55 = arith.constant 1 : index
    %c0_56 = arith.constant 0 : index
    %26 = vector.load %arg12[%c2_54, %c1_55, %c0_56] : memref<18x18x4xbf16, #tpu.memory_space<vmem>>, vector<16x16x4xbf16>
    %c0_57 = arith.constant 0 : index
    %c0_58 = arith.constant 0 : index
    %c28 = arith.constant 28 : index
    %27 = vector.load %arg14[%c0_57, %c0_58, %c28] : memref<16x16x72xbf16, #tpu.memory_space<vmem>>, vector<16x16x4xbf16>
    tpu.vector_store %arg14[%c0_57, %c0_58, %c28], %26 {strides = array<i32>} : memref<16x16x72xbf16, #tpu.memory_space<vmem>>, vector<16x16x4xbf16>,
    %c2_59 = arith.constant 2 : index
    %c2_60 = arith.constant 2 : index
    %c0_61 = arith.constant 0 : index
    %28 = vector.load %arg12[%c2_59, %c2_60, %c0_61] : memref<18x18x4xbf16, #tpu.memory_space<vmem>>, vector<16x16x4xbf16>
    %c0_62 = arith.constant 0 : index
    %c0_63 = arith.constant 0 : index
    %c32 = arith.constant 32 : index
    %29 = vector.load %arg14[%c0_62, %c0_63, %c32] : memref<16x16x72xbf16, #tpu.memory_space<vmem>>, vector<16x16x4xbf16>
    tpu.vector_store %arg14[%c0_62, %c0_63, %c32], %28 {strides = array<i32>} : memref<16x16x72xbf16, #tpu.memory_space<vmem>>, vector<16x16x4xbf16>,
    %c0_64 = arith.constant 0 : index
    %c0_65 = arith.constant 0 : index
    %c0_66 = arith.constant 0 : index
    %30 = vector.load %arg14[%c0_64, %c0_65, %c0_66] : memref<16x16x72xbf16, #tpu.memory_space<vmem>>, vector<16x16x36xbf16>
    %31 = vector.shape_cast %30 : vector<16x16x36xbf16> to vector<256x36xbf16>
    %c0_67 = arith.constant 0 : index
    %c0_68 = arith.constant 0 : index
    %32 = vector.load %arg2[%c0_67, %c0_68] : memref<36x8xbf16, #tpu.memory_space<vmem>>, vector<36x8xbf16>
    %cst_69 = arith.constant dense<0.000000e+00> : vector<256x8xf32>
    %33 = tpu.matmul %31, %32, %cst_69 {dimension_numbers = #tpu.dot_dimension_numbers<[1], [0], [0], [1], [0, 0, 1, 1], [], []>} : vector<256x36xbf16>, vector<36x8xbf16>, vector<256x8xf32> -> vector<256x8xf32>
    %c0_70 = arith.constant 0 : index
    %c0_71 = arith.constant 0 : index
    %34 = vector.load %arg3[%c0_70, %c0_71] : memref<1x8xf32, #tpu.memory_space<vmem>>, vector<1x8xf32>
    %35 = vector.broadcast %34 : vector<1x8xf32> to vector<256x8xf32>
    %36 = arith.mulf %33, %35 : vector<256x8xf32>
    %c0_72 = arith.constant 0 : index
    %c0_73 = arith.constant 0 : index
    %37 = vector.load %arg4[%c0_72, %c0_73] : memref<1x8xf32, #tpu.memory_space<vmem>>, vector<1x8xf32>
    %38 = vector.broadcast %37 : vector<1x8xf32> to vector<256x8xf32>
    %39 = arith.addf %36, %38 : vector<256x8xf32>
    %cst_74 = arith.constant 0.000000e+00 : f32
    %40 = vector.broadcast %cst_74 : f32 to vector<256x8xf32>
    %41 = arith.maximumf %39, %40 : vector<256x8xf32>
    %cst_75 = arith.constant 0.000000e+00 : bf16
    %42 = vector.broadcast %cst_75 : bf16 to vector<1x18x8xbf16>
    %c0_76 = arith.constant 0 : index
    %c0_77 = arith.constant 0 : index
    %c0_78 = arith.constant 0 : index
    %43 = vector.load %arg13[%c0_76, %c0_77, %c0_78] : memref<18x18x8xbf16, #tpu.memory_space<vmem>>, vector<1x18x8xbf16>
    tpu.vector_store %arg13[%c0_76, %c0_77, %c0_78], %42 {strides = array<i32>} : memref<18x18x8xbf16, #tpu.memory_space<vmem>>, vector<1x18x8xbf16>,
    %cst_79 = arith.constant 0.000000e+00 : bf16
    %44 = vector.broadcast %cst_79 : bf16 to vector<1x18x8xbf16>
    %c17_80 = arith.constant 17 : index
    %c0_81 = arith.constant 0 : index
    %c0_82 = arith.constant 0 : index
    %45 = vector.load %arg13[%c17_80, %c0_81, %c0_82] : memref<18x18x8xbf16, #tpu.memory_space<vmem>>, vector<1x18x8xbf16>
    tpu.vector_store %arg13[%c17_80, %c0_81, %c0_82], %44 {strides = array<i32>} : memref<18x18x8xbf16, #tpu.memory_space<vmem>>, vector<1x18x8xbf16>,
    %cst_83 = arith.constant 0.000000e+00 : bf16
    %46 = vector.broadcast %cst_83 : bf16 to vector<18x1x8xbf16>
    %c0_84 = arith.constant 0 : index
    %c0_85 = arith.constant 0 : index
    %c0_86 = arith.constant 0 : index
    %47 = vector.load %arg13[%c0_84, %c0_85, %c0_86] : memref<18x18x8xbf16, #tpu.memory_space<vmem>>, vector<18x1x8xbf16>
    tpu.vector_store %arg13[%c0_84, %c0_85, %c0_86], %46 {strides = array<i32>} : memref<18x18x8xbf16, #tpu.memory_space<vmem>>, vector<18x1x8xbf16>,
    %cst_87 = arith.constant 0.000000e+00 : bf16
    %48 = vector.broadcast %cst_87 : bf16 to vector<18x1x8xbf16>
    %c0_88 = arith.constant 0 : index
    %c17_89 = arith.constant 17 : index
    %c0_90 = arith.constant 0 : index
    %49 = vector.load %arg13[%c0_88, %c17_89, %c0_90] : memref<18x18x8xbf16, #tpu.memory_space<vmem>>, vector<18x1x8xbf16>
    tpu.vector_store %arg13[%c0_88, %c17_89, %c0_90], %48 {strides = array<i32>} : memref<18x18x8xbf16, #tpu.memory_space<vmem>>, vector<18x1x8xbf16>,
    %50 = vector.shape_cast %41 : vector<256x8xf32> to vector<16x16x8xf32>
    %51 = arith.truncf %50 : vector<16x16x8xf32> to vector<16x16x8xbf16>
    %c1_91 = arith.constant 1 : index
    %c1_92 = arith.constant 1 : index
    %c0_93 = arith.constant 0 : index
    %52 = vector.load %arg13[%c1_91, %c1_92, %c0_93] : memref<18x18x8xbf16, #tpu.memory_space<vmem>>, vector<16x16x8xbf16>
    tpu.vector_store %arg13[%c1_91, %c1_92, %c0_93], %51 {strides = array<i32>} : memref<18x18x8xbf16, #tpu.memory_space<vmem>>, vector<16x16x8xbf16>,
    %c0_94 = arith.constant 0 : index
    %c0_95 = arith.constant 0 : index
    %c0_96 = arith.constant 0 : index
    %53 = vector.load %arg13[%c0_94, %c0_95, %c0_96] : memref<18x18x8xbf16, #tpu.memory_space<vmem>>, vector<16x16x8xbf16>
    %c0_97 = arith.constant 0 : index
    %c0_98 = arith.constant 0 : index
    %c0_99 = arith.constant 0 : index
    %54 = vector.load %arg14[%c0_97, %c0_98, %c0_99] : memref<16x16x72xbf16, #tpu.memory_space<vmem>>, vector<16x16x8xbf16>
    tpu.vector_store %arg14[%c0_97, %c0_98, %c0_99], %53 {strides = array<i32>} : memref<16x16x72xbf16, #tpu.memory_space<vmem>>, vector<16x16x8xbf16>,
    %c0_100 = arith.constant 0 : index
    %c1_101 = arith.constant 1 : index
    %c0_102 = arith.constant 0 : index
    %55 = vector.load %arg13[%c0_100, %c1_101, %c0_102] : memref<18x18x8xbf16, #tpu.memory_space<vmem>>, vector<16x16x8xbf16>
    %c0_103 = arith.constant 0 : index
    %c0_104 = arith.constant 0 : index
    %c8_105 = arith.constant 8 : index
    %56 = vector.load %arg14[%c0_103, %c0_104, %c8_105] : memref<16x16x72xbf16, #tpu.memory_space<vmem>>, vector<16x16x8xbf16>
    tpu.vector_store %arg14[%c0_103, %c0_104, %c8_105], %55 {strides = array<i32>} : memref<16x16x72xbf16, #tpu.memory_space<vmem>>, vector<16x16x8xbf16>,
    %c0_106 = arith.constant 0 : index
    %c2_107 = arith.constant 2 : index
    %c0_108 = arith.constant 0 : index
    %57 = vector.load %arg13[%c0_106, %c2_107, %c0_108] : memref<18x18x8xbf16, #tpu.memory_space<vmem>>, vector<16x16x8xbf16>
    %c0_109 = arith.constant 0 : index
    %c0_110 = arith.constant 0 : index
    %c16_111 = arith.constant 16 : index
    %58 = vector.load %arg14[%c0_109, %c0_110, %c16_111] : memref<16x16x72xbf16, #tpu.memory_space<vmem>>, vector<16x16x8xbf16>
    tpu.vector_store %arg14[%c0_109, %c0_110, %c16_111], %57 {strides = array<i32>} : memref<16x16x72xbf16, #tpu.memory_space<vmem>>, vector<16x16x8xbf16>,
    %c1_112 = arith.constant 1 : index
    %c0_113 = arith.constant 0 : index
    %c0_114 = arith.constant 0 : index
    %59 = vector.load %arg13[%c1_112, %c0_113, %c0_114] : memref<18x18x8xbf16, #tpu.memory_space<vmem>>, vector<16x16x8xbf16>
    %c0_115 = arith.constant 0 : index
    %c0_116 = arith.constant 0 : index
    %c24_117 = arith.constant 24 : index
    %60 = vector.load %arg14[%c0_115, %c0_116, %c24_117] : memref<16x16x72xbf16, #tpu.memory_space<vmem>>, vector<16x16x8xbf16>
    tpu.vector_store %arg14[%c0_115, %c0_116, %c24_117], %59 {strides = array<i32>} : memref<16x16x72xbf16, #tpu.memory_space<vmem>>, vector<16x16x8xbf16>,
    %c1_118 = arith.constant 1 : index
    %c1_119 = arith.constant 1 : index
    %c0_120 = arith.constant 0 : index
    %61 = vector.load %arg13[%c1_118, %c1_119, %c0_120] : memref<18x18x8xbf16, #tpu.memory_space<vmem>>, vector<16x16x8xbf16>
    %c0_121 = arith.constant 0 : index
    %c0_122 = arith.constant 0 : index
    %c32_123 = arith.constant 32 : index
    %62 = vector.load %arg14[%c0_121, %c0_122, %c32_123] : memref<16x16x72xbf16, #tpu.memory_space<vmem>>, vector<16x16x8xbf16>
    tpu.vector_store %arg14[%c0_121, %c0_122, %c32_123], %61 {strides = array<i32>} : memref<16x16x72xbf16, #tpu.memory_space<vmem>>, vector<16x16x8xbf16>,
    %c1_124 = arith.constant 1 : index
    %c2_125 = arith.constant 2 : index
    %c0_126 = arith.constant 0 : index
    %63 = vector.load %arg13[%c1_124, %c2_125, %c0_126] : memref<18x18x8xbf16, #tpu.memory_space<vmem>>, vector<16x16x8xbf16>
    %c0_127 = arith.constant 0 : index
    %c0_128 = arith.constant 0 : index
    %c40 = arith.constant 40 : index
    %64 = vector.load %arg14[%c0_127, %c0_128, %c40] : memref<16x16x72xbf16, #tpu.memory_space<vmem>>, vector<16x16x8xbf16>
    tpu.vector_store %arg14[%c0_127, %c0_128, %c40], %63 {strides = array<i32>} : memref<16x16x72xbf16, #tpu.memory_space<vmem>>, vector<16x16x8xbf16>,
    %c2_129 = arith.constant 2 : index
    %c0_130 = arith.constant 0 : index
    %c0_131 = arith.constant 0 : index
    %65 = vector.load %arg13[%c2_129, %c0_130, %c0_131] : memref<18x18x8xbf16, #tpu.memory_space<vmem>>, vector<16x16x8xbf16>
    %c0_132 = arith.constant 0 : index
    %c0_133 = arith.constant 0 : index
    %c48 = arith.constant 48 : index
    %66 = vector.load %arg14[%c0_132, %c0_133, %c48] : memref<16x16x72xbf16, #tpu.memory_space<vmem>>, vector<16x16x8xbf16>
    tpu.vector_store %arg14[%c0_132, %c0_133, %c48], %65 {strides = array<i32>} : memref<16x16x72xbf16, #tpu.memory_space<vmem>>, vector<16x16x8xbf16>,
    %c2_134 = arith.constant 2 : index
    %c1_135 = arith.constant 1 : index
    %c0_136 = arith.constant 0 : index
    %67 = vector.load %arg13[%c2_134, %c1_135, %c0_136] : memref<18x18x8xbf16, #tpu.memory_space<vmem>>, vector<16x16x8xbf16>
    %c0_137 = arith.constant 0 : index
    %c0_138 = arith.constant 0 : index
    %c56 = arith.constant 56 : index
    %68 = vector.load %arg14[%c0_137, %c0_138, %c56] : memref<16x16x72xbf16, #tpu.memory_space<vmem>>, vector<16x16x8xbf16>
    tpu.vector_store %arg14[%c0_137, %c0_138, %c56], %67 {strides = array<i32>} : memref<16x16x72xbf16, #tpu.memory_space<vmem>>, vector<16x16x8xbf16>,
    %c2_139 = arith.constant 2 : index
    %c2_140 = arith.constant 2 : index
    %c0_141 = arith.constant 0 : index
    %69 = vector.load %arg13[%c2_139, %c2_140, %c0_141] : memref<18x18x8xbf16, #tpu.memory_space<vmem>>, vector<16x16x8xbf16>
    %c0_142 = arith.constant 0 : index
    %c0_143 = arith.constant 0 : index
    %c64 = arith.constant 64 : index
    %70 = vector.load %arg14[%c0_142, %c0_143, %c64] : memref<16x16x72xbf16, #tpu.memory_space<vmem>>, vector<16x16x8xbf16>
    tpu.vector_store %arg14[%c0_142, %c0_143, %c64], %69 {strides = array<i32>} : memref<16x16x72xbf16, #tpu.memory_space<vmem>>, vector<16x16x8xbf16>,
    %c0_144 = arith.constant 0 : index
    %c0_145 = arith.constant 0 : index
    %c0_146 = arith.constant 0 : index
    %71 = vector.load %arg14[%c0_144, %c0_145, %c0_146] : memref<16x16x72xbf16, #tpu.memory_space<vmem>>, vector<16x16x72xbf16>
    %72 = vector.shape_cast %71 : vector<16x16x72xbf16> to vector<256x72xbf16>
    %c0_147 = arith.constant 0 : index
    %c0_148 = arith.constant 0 : index
    %73 = vector.load %arg5[%c0_147, %c0_148] : memref<72x8xbf16, #tpu.memory_space<vmem>>, vector<72x8xbf16>
    %cst_149 = arith.constant dense<0.000000e+00> : vector<256x8xf32>
    %74 = tpu.matmul %72, %73, %cst_149 {dimension_numbers = #tpu.dot_dimension_numbers<[1], [0], [0], [1], [0, 0, 1, 1], [], []>} : vector<256x72xbf16>, vector<72x8xbf16>, vector<256x8xf32> -> vector<256x8xf32>
    %c0_150 = arith.constant 0 : index
    %c0_151 = arith.constant 0 : index
    %75 = vector.load %arg6[%c0_150, %c0_151] : memref<1x8xf32, #tpu.memory_space<vmem>>, vector<1x8xf32>
    %76 = vector.broadcast %75 : vector<1x8xf32> to vector<256x8xf32>
    %77 = arith.mulf %74, %76 : vector<256x8xf32>
    %c0_152 = arith.constant 0 : index
    %c0_153 = arith.constant 0 : index
    %78 = vector.load %arg7[%c0_152, %c0_153] : memref<1x8xf32, #tpu.memory_space<vmem>>, vector<1x8xf32>
    %79 = vector.broadcast %78 : vector<1x8xf32> to vector<256x8xf32>
    %80 = arith.addf %77, %79 : vector<256x8xf32>
    %81 = vector.shape_cast %1 : vector<16x16x4xf32> to vector<256x4xf32>
    %82 = arith.truncf %81 : vector<256x4xf32> to vector<256x4xbf16>
    %c0_154 = arith.constant 0 : index
    %c0_155 = arith.constant 0 : index
    %83 = vector.load %arg8[%c0_154, %c0_155] : memref<4x8xbf16, #tpu.memory_space<vmem>>, vector<4x8xbf16>
    %cst_156 = arith.constant dense<0.000000e+00> : vector<256x8xf32>
    %84 = tpu.matmul %82, %83, %cst_156 {dimension_numbers = #tpu.dot_dimension_numbers<[1], [0], [0], [1], [0, 0, 1, 1], [], []>} : vector<256x4xbf16>, vector<4x8xbf16>, vector<256x8xf32> -> vector<256x8xf32>
    %c0_157 = arith.constant 0 : index
    %c0_158 = arith.constant 0 : index
    %85 = vector.load %arg9[%c0_157, %c0_158] : memref<1x8xf32, #tpu.memory_space<vmem>>, vector<1x8xf32>
    %86 = vector.broadcast %85 : vector<1x8xf32> to vector<256x8xf32>
    %87 = arith.mulf %84, %86 : vector<256x8xf32>
    %c0_159 = arith.constant 0 : index
    %c0_160 = arith.constant 0 : index
    %88 = vector.load %arg10[%c0_159, %c0_160] : memref<1x8xf32, #tpu.memory_space<vmem>>, vector<1x8xf32>
    %89 = vector.broadcast %88 : vector<1x8xf32> to vector<256x8xf32>
    %90 = arith.addf %87, %89 : vector<256x8xf32>
    %91 = arith.addf %80, %90 : vector<256x8xf32>
    %cst_161 = arith.constant 0.000000e+00 : f32
    %92 = vector.broadcast %cst_161 : f32 to vector<256x8xf32>
    %93 = arith.maximumf %91, %92 : vector<256x8xf32>
    %94 = vector.shape_cast %93 : vector<256x8xf32> to vector<16x128xf32>
    %c0_162 = arith.constant 0 : index
    %c0_163 = arith.constant 0 : index
    %c0_164 = arith.constant 0 : index
    %95 = vector.load %arg11[%c0_162, %c0_163, %c0_164] : memref<1x16x128xf32, #tpu.memory_space<vmem>>, vector<1x16x128xf32>
    %96 = vector.shape_cast %95 : vector<1x16x128xf32> to vector<16x128xf32>
    %97 = vector.shape_cast %94 : vector<16x128xf32> to vector<1x16x128xf32>
    tpu.vector_store %arg11[%c0_162, %c0_163, %c0_164], %97 {strides = array<i32>} : memref<1x16x128xf32, #tpu.memory_space<vmem>>, vector<1x16x128xf32>,
    return
  }
  func.func @transform_0(%arg0: i32) -> (i32, i32, i32, i32) {
    %c0_i32 = arith.constant 0 : i32
    %c0_i32_0 = arith.constant 0 : i32
    %c0_i32_1 = arith.constant 0 : i32
    %c0_i32_2 = arith.constant 0 : i32
    return %arg0, %c0_i32, %c0_i32_0, %c0_i32_1 : i32, i32, i32, i32
  }
  func.func @transform_1(%arg0: i32) -> (i32, i32) {
    %c0_i32 = arith.constant 0 : i32
    %c0_i32_0 = arith.constant 0 : i32
    %c0_i32_1 = arith.constant 0 : i32
    return %c0_i32, %c0_i32_0 : i32, i32
  }
  func.func @transform_2(%arg0: i32) -> (i32, i32) {
    %c0_i32 = arith.constant 0 : i32
    %c0_i32_0 = arith.constant 0 : i32
    %c0_i32_1 = arith.constant 0 : i32
    return %c0_i32, %c0_i32_0 : i32, i32
  }
  func.func @transform_3(%arg0: i32) -> (i32, i32) {
    %c0_i32 = arith.constant 0 : i32
    %c0_i32_0 = arith.constant 0 : i32
    %c0_i32_1 = arith.constant 0 : i32
    return %c0_i32, %c0_i32_0 : i32, i32
  }
  func.func @transform_4(%arg0: i32) -> (i32, i32) {
    %c0_i32 = arith.constant 0 : i32
    %c0_i32_0 = arith.constant 0 : i32
    %c0_i32_1 = arith.constant 0 : i32
    return %c0_i32, %c0_i32_0 : i32, i32
  }
  func.func @transform_5(%arg0: i32) -> (i32, i32) {
    %c0_i32 = arith.constant 0 : i32
    %c0_i32_0 = arith.constant 0 : i32
    %c0_i32_1 = arith.constant 0 : i32
    return %c0_i32, %c0_i32_0 : i32, i32
  }
  func.func @transform_6(%arg0: i32) -> (i32, i32) {
    %c0_i32 = arith.constant 0 : i32
    %c0_i32_0 = arith.constant 0 : i32
    %c0_i32_1 = arith.constant 0 : i32
    return %c0_i32, %c0_i32_0 : i32, i32
  }
  func.func @transform_7(%arg0: i32) -> (i32, i32) {
    %c0_i32 = arith.constant 0 : i32
    %c0_i32_0 = arith.constant 0 : i32
    %c0_i32_1 = arith.constant 0 : i32
    return %c0_i32, %c0_i32_0 : i32, i32
  }
  func.func @transform_8(%arg0: i32) -> (i32, i32) {
    %c0_i32 = arith.constant 0 : i32
    %c0_i32_0 = arith.constant 0 : i32
    %c0_i32_1 = arith.constant 0 : i32
    return %c0_i32, %c0_i32_0 : i32, i32
  }
  func.func @transform_9(%arg0: i32) -> (i32, i32) {
    %c0_i32 = arith.constant 0 : i32
    %c0_i32_0 = arith.constant 0 : i32
    %c0_i32_1 = arith.constant 0 : i32
    return %c0_i32, %c0_i32_0 : i32, i32
  }
  func.func @transform_10(%arg0: i32) -> (i32, i32, i32) {
    %c0_i32 = arith.constant 0 : i32
    %c0_i32_0 = arith.constant 0 : i32
    %c0_i32_1 = arith.constant 0 : i32
    return %arg0, %c0_i32, %c0_i32_0 : i32, i32, i32
  }
}

module attributes {stable_mosaic.version = 11 : i64} {
  func.func @_block_kernel_proj(%arg0: i32, %arg1: memref<1x16x16x4xf32, #tpu.memory_space<vmem>>, %arg2: memref<36x8xbf16, #tpu.memory_space<vmem>>, %arg3: memref<1x8xf32, #tpu.memory_space<vmem>>, %arg4: memref<1x8xf32, #tpu.memory_space<vmem>>, %arg5: memref<72x8xbf16, #tpu.memory_space<vmem>>, %arg6: memref<1x8xf32, #tpu.memory_space<vmem>>, %arg7: memref<1x8xf32, #tpu.memory_space<vmem>>, %arg8: memref<4x8xbf16, #tpu.memory_space<vmem>>, %arg9: memref<1x8xf32, #tpu.memory_space<vmem>>, %arg10: memref<1x8xf32, #tpu.memory_space<vmem>>, %arg11: memref<1x256x8xf32, #tpu.memory_space<vmem>>, %arg12: memref<18x18x4xbf16, #tpu.memory_space<vmem>>, %arg13: memref<18x18x8xbf16, #tpu.memory_space<vmem>>, %arg14: memref<16x16x72xbf16, #tpu.memory_space<vmem>>) attributes {dimension_semantics = [#tpu.dimension_semantics<parallel>], iteration_bounds = array<i64: 2>, scalar_prefetch = 0 : i64, scratch_operands = 3 : i64, tpu.core_type = #tpu.core_type<tc>, window_params = [{transform_indices = @transform_0, window_bounds = array<i64: 1, 16, 16, 4>}, {pipeline_mode = #tpu.pipeline_mode<synchronous>, transform_indices = @transform_1, window_bounds = array<i64: 36, 8>}, {pipeline_mode = #tpu.pipeline_mode<synchronous>, transform_indices = @transform_2, window_bounds = array<i64: 1, 8>}, {pipeline_mode = #tpu.pipeline_mode<synchronous>, transform_indices = @transform_3, window_bounds = array<i64: 1, 8>}, {pipeline_mode = #tpu.pipeline_mode<synchronous>, transform_indices = @transform_4, window_bounds = array<i64: 72, 8>}, {pipeline_mode = #tpu.pipeline_mode<synchronous>, transform_indices = @transform_5, window_bounds = array<i64: 1, 8>}, {pipeline_mode = #tpu.pipeline_mode<synchronous>, transform_indices = @transform_6, window_bounds = array<i64: 1, 8>}, {pipeline_mode = #tpu.pipeline_mode<synchronous>, transform_indices = @transform_7, window_bounds = array<i64: 4, 8>}, {pipeline_mode = #tpu.pipeline_mode<synchronous>, transform_indices = @transform_8, window_bounds = array<i64: 1, 8>}, {pipeline_mode = #tpu.pipeline_mode<synchronous>, transform_indices = @transform_9, window_bounds = array<i64: 1, 8>}, {transform_indices = @transform_10, window_bounds = array<i64: 1, 256, 8>}]} {
    %c0 = arith.constant 0 : index
    %c0_0 = arith.constant 0 : index
    %c0_1 = arith.constant 0 : index
    %c0_2 = arith.constant 0 : index
    %0 = vector.load %arg1[%c0, %c0_0, %c0_1, %c0_2] : memref<1x16x16x4xf32, #tpu.memory_space<vmem>>, vector<1x16x16x4xf32>
    %1 = vector.shape_cast %0 : vector<1x16x16x4xf32> to vector<16x16x4xf32>
    %cst = arith.constant 0.000000e+00 : bf16
    %2 = vector.broadcast %cst : bf16 to vector<1x18x4xbf16>
    %c0_3 = arith.constant 0 : index
    %c0_4 = arith.constant 0 : index
    %c0_5 = arith.constant 0 : index
    %3 = vector.load %arg12[%c0_3, %c0_4, %c0_5] : memref<18x18x4xbf16, #tpu.memory_space<vmem>>, vector<1x18x4xbf16>
    tpu.vector_store %arg12[%c0_3, %c0_4, %c0_5], %2 {strides = array<i32>} : memref<18x18x4xbf16, #tpu.memory_space<vmem>>, vector<1x18x4xbf16>,
    %cst_6 = arith.constant 0.000000e+00 : bf16
    %4 = vector.broadcast %cst_6 : bf16 to vector<1x18x4xbf16>
    %c17 = arith.constant 17 : index
    %c0_7 = arith.constant 0 : index
    %c0_8 = arith.constant 0 : index
    %5 = vector.load %arg12[%c17, %c0_7, %c0_8] : memref<18x18x4xbf16, #tpu.memory_space<vmem>>, vector<1x18x4xbf16>
    tpu.vector_store %arg12[%c17, %c0_7, %c0_8], %4 {strides = array<i32>} : memref<18x18x4xbf16, #tpu.memory_space<vmem>>, vector<1x18x4xbf16>,
    %cst_9 = arith.constant 0.000000e+00 : bf16
    %6 = vector.broadcast %cst_9 : bf16 to vector<18x1x4xbf16>
    %c0_10 = arith.constant 0 : index
    %c0_11 = arith.constant 0 : index
    %c0_12 = arith.constant 0 : index
    %7 = vector.load %arg12[%c0_10, %c0_11, %c0_12] : memref<18x18x4xbf16, #tpu.memory_space<vmem>>, vector<18x1x4xbf16>
    tpu.vector_store %arg12[%c0_10, %c0_11, %c0_12], %6 {strides = array<i32>} : memref<18x18x4xbf16, #tpu.memory_space<vmem>>, vector<18x1x4xbf16>,
    %cst_13 = arith.constant 0.000000e+00 : bf16
    %8 = vector.broadcast %cst_13 : bf16 to vector<18x1x4xbf16>
    %c0_14 = arith.constant 0 : index
    %c17_15 = arith.constant 17 : index
    %c0_16 = arith.constant 0 : index
    %9 = vector.load %arg12[%c0_14, %c17_15, %c0_16] : memref<18x18x4xbf16, #tpu.memory_space<vmem>>, vector<18x1x4xbf16>
    tpu.vector_store %arg12[%c0_14, %c17_15, %c0_16], %8 {strides = array<i32>} : memref<18x18x4xbf16, #tpu.memory_space<vmem>>, vector<18x1x4xbf16>,
    %10 = arith.truncf %1 : vector<16x16x4xf32> to vector<16x16x4xbf16>
    %c1 = arith.constant 1 : index
    %c1_17 = arith.constant 1 : index
    %c0_18 = arith.constant 0 : index
    %11 = vector.load %arg12[%c1, %c1_17, %c0_18] : memref<18x18x4xbf16, #tpu.memory_space<vmem>>, vector<16x16x4xbf16>
    tpu.vector_store %arg12[%c1, %c1_17, %c0_18], %10 {strides = array<i32>} : memref<18x18x4xbf16, #tpu.memory_space<vmem>>, vector<16x16x4xbf16>,
    %c0_19 = arith.constant 0 : index
    %c0_20 = arith.constant 0 : index
    %c0_21 = arith.constant 0 : index
    %12 = vector.load %arg12[%c0_19, %c0_20, %c0_21] : memref<18x18x4xbf16, #tpu.memory_space<vmem>>, vector<16x16x4xbf16>
    %c0_22 = arith.constant 0 : index
    %c0_23 = arith.constant 0 : index
    %c0_24 = arith.constant 0 : index
    %13 = vector.load %arg14[%c0_22, %c0_23, %c0_24] : memref<16x16x72xbf16, #tpu.memory_space<vmem>>, vector<16x16x4xbf16>
    tpu.vector_store %arg14[%c0_22, %c0_23, %c0_24], %12 {strides = array<i32>} : memref<16x16x72xbf16, #tpu.memory_space<vmem>>, vector<16x16x4xbf16>,
    %c0_25 = arith.constant 0 : index
    %c1_26 = arith.constant 1 : index
    %c0_27 = arith.constant 0 : index
    %14 = vector.load %arg12[%c0_25, %c1_26, %c0_27] : memref<18x18x4xbf16, #tpu.memory_space<vmem>>, vector<16x16x4xbf16>
    %c0_28 = arith.constant 0 : index
    %c0_29 = arith.constant 0 : index
    %c4 = arith.constant 4 : index
    %15 = vector.load %arg14[%c0_28, %c0_29, %c4] : memref<16x16x72xbf16, #tpu.memory_space<vmem>>, vector<16x16x4xbf16>
    tpu.vector_store %arg14[%c0_28, %c0_29, %c4], %14 {strides = array<i32>} : memref<16x16x72xbf16, #tpu.memory_space<vmem>>, vector<16x16x4xbf16>,
    %c0_30 = arith.constant 0 : index
    %c2 = arith.constant 2 : index
    %c0_31 = arith.constant 0 : index
    %16 = vector.load %arg12[%c0_30, %c2, %c0_31] : memref<18x18x4xbf16, #tpu.memory_space<vmem>>, vector<16x16x4xbf16>
    %c0_32 = arith.constant 0 : index
    %c0_33 = arith.constant 0 : index
    %c8 = arith.constant 8 : index
    %17 = vector.load %arg14[%c0_32, %c0_33, %c8] : memref<16x16x72xbf16, #tpu.memory_space<vmem>>, vector<16x16x4xbf16>
    tpu.vector_store %arg14[%c0_32, %c0_33, %c8], %16 {strides = array<i32>} : memref<16x16x72xbf16, #tpu.memory_space<vmem>>, vector<16x16x4xbf16>,
    %c1_34 = arith.constant 1 : index
    %c0_35 = arith.constant 0 : index
    %c0_36 = arith.constant 0 : index
    %18 = vector.load %arg12[%c1_34, %c0_35, %c0_36] : memref<18x18x4xbf16, #tpu.memory_space<vmem>>, vector<16x16x4xbf16>
    %c0_37 = arith.constant 0 : index
    %c0_38 = arith.constant 0 : index
    %c12 = arith.constant 12 : index
    %19 = vector.load %arg14[%c0_37, %c0_38, %c12] : memref<16x16x72xbf16, #tpu.memory_space<vmem>>, vector<16x16x4xbf16>
    tpu.vector_store %arg14[%c0_37, %c0_38, %c12], %18 {strides = array<i32>} : memref<16x16x72xbf16, #tpu.memory_space<vmem>>, vector<16x16x4xbf16>,
    %c1_39 = arith.constant 1 : index
    %c1_40 = arith.constant 1 : index
    %c0_41 = arith.constant 0 : index
    %20 = vector.load %arg12[%c1_39, %c1_40, %c0_41] : memref<18x18x4xbf16, #tpu.memory_space<vmem>>, vector<16x16x4xbf16>
    %c0_42 = arith.constant 0 : index
    %c0_43 = arith.constant 0 : index
    %c16 = arith.constant 16 : index
    %21 = vector.load %arg14[%c0_42, %c0_43, %c16] : memref<16x16x72xbf16, #tpu.memory_space<vmem>>, vector<16x16x4xbf16>
    tpu.vector_store %arg14[%c0_42, %c0_43, %c16], %20 {strides = array<i32>} : memref<16x16x72xbf16, #tpu.memory_space<vmem>>, vector<16x16x4xbf16>,
    %c1_44 = arith.constant 1 : index
    %c2_45 = arith.constant 2 : index
    %c0_46 = arith.constant 0 : index
    %22 = vector.load %arg12[%c1_44, %c2_45, %c0_46] : memref<18x18x4xbf16, #tpu.memory_space<vmem>>, vector<16x16x4xbf16>
    %c0_47 = arith.constant 0 : index
    %c0_48 = arith.constant 0 : index
    %c20 = arith.constant 20 : index
    %23 = vector.load %arg14[%c0_47, %c0_48, %c20] : memref<16x16x72xbf16, #tpu.memory_space<vmem>>, vector<16x16x4xbf16>
    tpu.vector_store %arg14[%c0_47, %c0_48, %c20], %22 {strides = array<i32>} : memref<16x16x72xbf16, #tpu.memory_space<vmem>>, vector<16x16x4xbf16>,
    %c2_49 = arith.constant 2 : index
    %c0_50 = arith.constant 0 : index
    %c0_51 = arith.constant 0 : index
    %24 = vector.load %arg12[%c2_49, %c0_50, %c0_51] : memref<18x18x4xbf16, #tpu.memory_space<vmem>>, vector<16x16x4xbf16>
    %c0_52 = arith.constant 0 : index
    %c0_53 = arith.constant 0 : index
    %c24 = arith.constant 24 : index
    %25 = vector.load %arg14[%c0_52, %c0_53, %c24] : memref<16x16x72xbf16, #tpu.memory_space<vmem>>, vector<16x16x4xbf16>
    tpu.vector_store %arg14[%c0_52, %c0_53, %c24], %24 {strides = array<i32>} : memref<16x16x72xbf16, #tpu.memory_space<vmem>>, vector<16x16x4xbf16>,
    %c2_54 = arith.constant 2 : index
    %c1_55 = arith.constant 1 : index
    %c0_56 = arith.constant 0 : index
    %26 = vector.load %arg12[%c2_54, %c1_55, %c0_56] : memref<18x18x4xbf16, #tpu.memory_space<vmem>>, vector<16x16x4xbf16>
    %c0_57 = arith.constant 0 : index
    %c0_58 = arith.constant 0 : index
    %c28 = arith.constant 28 : index
    %27 = vector.load %arg14[%c0_57, %c0_58, %c28] : memref<16x16x72xbf16, #tpu.memory_space<vmem>>, vector<16x16x4xbf16>
    tpu.vector_store %arg14[%c0_57, %c0_58, %c28], %26 {strides = array<i32>} : memref<16x16x72xbf16, #tpu.memory_space<vmem>>, vector<16x16x4xbf16>,
    %c2_59 = arith.constant 2 : index
    %c2_60 = arith.constant 2 : index
    %c0_61 = arith.constant 0 : index
    %28 = vector.load %arg12[%c2_59, %c2_60, %c0_61] : memref<18x18x4xbf16, #tpu.memory_space<vmem>>, vector<16x16x4xbf16>
    %c0_62 = arith.constant 0 : index
    %c0_63 = arith.constant 0 : index
    %c32 = arith.constant 32 : index
    %29 = vector.load %arg14[%c0_62, %c0_63, %c32] : memref<16x16x72xbf16, #tpu.memory_space<vmem>>, vector<16x16x4xbf16>
    tpu.vector_store %arg14[%c0_62, %c0_63, %c32], %28 {strides = array<i32>} : memref<16x16x72xbf16, #tpu.memory_space<vmem>>, vector<16x16x4xbf16>,
    %c0_64 = arith.constant 0 : index
    %c0_65 = arith.constant 0 : index
    %c0_66 = arith.constant 0 : index
    %30 = vector.load %arg14[%c0_64, %c0_65, %c0_66] : memref<16x16x72xbf16, #tpu.memory_space<vmem>>, vector<16x16x36xbf16>
    %31 = vector.shape_cast %30 : vector<16x16x36xbf16> to vector<256x36xbf16>
    %c0_67 = arith.constant 0 : index
    %c0_68 = arith.constant 0 : index
    %32 = vector.load %arg2[%c0_67, %c0_68] : memref<36x8xbf16, #tpu.memory_space<vmem>>, vector<36x8xbf16>
    %cst_69 = arith.constant dense<0.000000e+00> : vector<256x8xf32>
    %33 = tpu.matmul %31, %32, %cst_69 {dimension_numbers = #tpu.dot_dimension_numbers<[1], [0], [0], [1], [0, 0, 1, 1], [], []>} : vector<256x36xbf16>, vector<36x8xbf16>, vector<256x8xf32> -> vector<256x8xf32>
    %c0_70 = arith.constant 0 : index
    %c0_71 = arith.constant 0 : index
    %34 = vector.load %arg3[%c0_70, %c0_71] : memref<1x8xf32, #tpu.memory_space<vmem>>, vector<1x8xf32>
    %35 = vector.broadcast %34 : vector<1x8xf32> to vector<256x8xf32>
    %36 = arith.mulf %33, %35 : vector<256x8xf32>
    %c0_72 = arith.constant 0 : index
    %c0_73 = arith.constant 0 : index
    %37 = vector.load %arg4[%c0_72, %c0_73] : memref<1x8xf32, #tpu.memory_space<vmem>>, vector<1x8xf32>
    %38 = vector.broadcast %37 : vector<1x8xf32> to vector<256x8xf32>
    %39 = arith.addf %36, %38 : vector<256x8xf32>
    %cst_74 = arith.constant 0.000000e+00 : f32
    %40 = vector.broadcast %cst_74 : f32 to vector<256x8xf32>
    %41 = arith.maximumf %39, %40 : vector<256x8xf32>
    %cst_75 = arith.constant 0.000000e+00 : bf16
    %42 = vector.broadcast %cst_75 : bf16 to vector<1x18x8xbf16>
    %c0_76 = arith.constant 0 : index
    %c0_77 = arith.constant 0 : index
    %c0_78 = arith.constant 0 : index
    %43 = vector.load %arg13[%c0_76, %c0_77, %c0_78] : memref<18x18x8xbf16, #tpu.memory_space<vmem>>, vector<1x18x8xbf16>
    tpu.vector_store %arg13[%c0_76, %c0_77, %c0_78], %42 {strides = array<i32>} : memref<18x18x8xbf16, #tpu.memory_space<vmem>>, vector<1x18x8xbf16>,
    %cst_79 = arith.constant 0.000000e+00 : bf16
    %44 = vector.broadcast %cst_79 : bf16 to vector<1x18x8xbf16>
    %c17_80 = arith.constant 17 : index
    %c0_81 = arith.constant 0 : index
    %c0_82 = arith.constant 0 : index
    %45 = vector.load %arg13[%c17_80, %c0_81, %c0_82] : memref<18x18x8xbf16, #tpu.memory_space<vmem>>, vector<1x18x8xbf16>
    tpu.vector_store %arg13[%c17_80, %c0_81, %c0_82], %44 {strides = array<i32>} : memref<18x18x8xbf16, #tpu.memory_space<vmem>>, vector<1x18x8xbf16>,
    %cst_83 = arith.constant 0.000000e+00 : bf16
    %46 = vector.broadcast %cst_83 : bf16 to vector<18x1x8xbf16>
    %c0_84 = arith.constant 0 : index
    %c0_85 = arith.constant 0 : index
    %c0_86 = arith.constant 0 : index
    %47 = vector.load %arg13[%c0_84, %c0_85, %c0_86] : memref<18x18x8xbf16, #tpu.memory_space<vmem>>, vector<18x1x8xbf16>
    tpu.vector_store %arg13[%c0_84, %c0_85, %c0_86], %46 {strides = array<i32>} : memref<18x18x8xbf16, #tpu.memory_space<vmem>>, vector<18x1x8xbf16>,
    %cst_87 = arith.constant 0.000000e+00 : bf16
    %48 = vector.broadcast %cst_87 : bf16 to vector<18x1x8xbf16>
    %c0_88 = arith.constant 0 : index
    %c17_89 = arith.constant 17 : index
    %c0_90 = arith.constant 0 : index
    %49 = vector.load %arg13[%c0_88, %c17_89, %c0_90] : memref<18x18x8xbf16, #tpu.memory_space<vmem>>, vector<18x1x8xbf16>
    tpu.vector_store %arg13[%c0_88, %c17_89, %c0_90], %48 {strides = array<i32>} : memref<18x18x8xbf16, #tpu.memory_space<vmem>>, vector<18x1x8xbf16>,
    %50 = vector.shape_cast %41 : vector<256x8xf32> to vector<16x16x8xf32>
    %51 = arith.truncf %50 : vector<16x16x8xf32> to vector<16x16x8xbf16>
    %c1_91 = arith.constant 1 : index
    %c1_92 = arith.constant 1 : index
    %c0_93 = arith.constant 0 : index
    %52 = vector.load %arg13[%c1_91, %c1_92, %c0_93] : memref<18x18x8xbf16, #tpu.memory_space<vmem>>, vector<16x16x8xbf16>
    tpu.vector_store %arg13[%c1_91, %c1_92, %c0_93], %51 {strides = array<i32>} : memref<18x18x8xbf16, #tpu.memory_space<vmem>>, vector<16x16x8xbf16>,
    %c0_94 = arith.constant 0 : index
    %c0_95 = arith.constant 0 : index
    %c0_96 = arith.constant 0 : index
    %53 = vector.load %arg13[%c0_94, %c0_95, %c0_96] : memref<18x18x8xbf16, #tpu.memory_space<vmem>>, vector<16x16x8xbf16>
    %c0_97 = arith.constant 0 : index
    %c0_98 = arith.constant 0 : index
    %c0_99 = arith.constant 0 : index
    %54 = vector.load %arg14[%c0_97, %c0_98, %c0_99] : memref<16x16x72xbf16, #tpu.memory_space<vmem>>, vector<16x16x8xbf16>
    tpu.vector_store %arg14[%c0_97, %c0_98, %c0_99], %53 {strides = array<i32>} : memref<16x16x72xbf16, #tpu.memory_space<vmem>>, vector<16x16x8xbf16>,
    %c0_100 = arith.constant 0 : index
    %c1_101 = arith.constant 1 : index
    %c0_102 = arith.constant 0 : index
    %55 = vector.load %arg13[%c0_100, %c1_101, %c0_102] : memref<18x18x8xbf16, #tpu.memory_space<vmem>>, vector<16x16x8xbf16>
    %c0_103 = arith.constant 0 : index
    %c0_104 = arith.constant 0 : index
    %c8_105 = arith.constant 8 : index
    %56 = vector.load %arg14[%c0_103, %c0_104, %c8_105] : memref<16x16x72xbf16, #tpu.memory_space<vmem>>, vector<16x16x8xbf16>
    tpu.vector_store %arg14[%c0_103, %c0_104, %c8_105], %55 {strides = array<i32>} : memref<16x16x72xbf16, #tpu.memory_space<vmem>>, vector<16x16x8xbf16>,
    %c0_106 = arith.constant 0 : index
    %c2_107 = arith.constant 2 : index
    %c0_108 = arith.constant 0 : index
    %57 = vector.load %arg13[%c0_106, %c2_107, %c0_108] : memref<18x18x8xbf16, #tpu.memory_space<vmem>>, vector<16x16x8xbf16>
    %c0_109 = arith.constant 0 : index
    %c0_110 = arith.constant 0 : index
    %c16_111 = arith.constant 16 : index
    %58 = vector.load %arg14[%c0_109, %c0_110, %c16_111] : memref<16x16x72xbf16, #tpu.memory_space<vmem>>, vector<16x16x8xbf16>
    tpu.vector_store %arg14[%c0_109, %c0_110, %c16_111], %57 {strides = array<i32>} : memref<16x16x72xbf16, #tpu.memory_space<vmem>>, vector<16x16x8xbf16>,
    %c1_112 = arith.constant 1 : index
    %c0_113 = arith.constant 0 : index
    %c0_114 = arith.constant 0 : index
    %59 = vector.load %arg13[%c1_112, %c0_113, %c0_114] : memref<18x18x8xbf16, #tpu.memory_space<vmem>>, vector<16x16x8xbf16>
    %c0_115 = arith.constant 0 : index
    %c0_116 = arith.constant 0 : index
    %c24_117 = arith.constant 24 : index
    %60 = vector.load %arg14[%c0_115, %c0_116, %c24_117] : memref<16x16x72xbf16, #tpu.memory_space<vmem>>, vector<16x16x8xbf16>
    tpu.vector_store %arg14[%c0_115, %c0_116, %c24_117], %59 {strides = array<i32>} : memref<16x16x72xbf16, #tpu.memory_space<vmem>>, vector<16x16x8xbf16>,
    %c1_118 = arith.constant 1 : index
    %c1_119 = arith.constant 1 : index
    %c0_120 = arith.constant 0 : index
    %61 = vector.load %arg13[%c1_118, %c1_119, %c0_120] : memref<18x18x8xbf16, #tpu.memory_space<vmem>>, vector<16x16x8xbf16>
    %c0_121 = arith.constant 0 : index
    %c0_122 = arith.constant 0 : index
    %c32_123 = arith.constant 32 : index
    %62 = vector.load %arg14[%c0_121, %c0_122, %c32_123] : memref<16x16x72xbf16, #tpu.memory_space<vmem>>, vector<16x16x8xbf16>
    tpu.vector_store %arg14[%c0_121, %c0_122, %c32_123], %61 {strides = array<i32>} : memref<16x16x72xbf16, #tpu.memory_space<vmem>>, vector<16x16x8xbf16>,
    %c1_124 = arith.constant 1 : index
    %c2_125 = arith.constant 2 : index
    %c0_126 = arith.constant 0 : index
    %63 = vector.load %arg13[%c1_124, %c2_125, %c0_126] : memref<18x18x8xbf16, #tpu.memory_space<vmem>>, vector<16x16x8xbf16>
    %c0_127 = arith.constant 0 : index
    %c0_128 = arith.constant 0 : index
    %c40 = arith.constant 40 : index
    %64 = vector.load %arg14[%c0_127, %c0_128, %c40] : memref<16x16x72xbf16, #tpu.memory_space<vmem>>, vector<16x16x8xbf16>
    tpu.vector_store %arg14[%c0_127, %c0_128, %c40], %63 {strides = array<i32>} : memref<16x16x72xbf16, #tpu.memory_space<vmem>>, vector<16x16x8xbf16>,
    %c2_129 = arith.constant 2 : index
    %c0_130 = arith.constant 0 : index
    %c0_131 = arith.constant 0 : index
    %65 = vector.load %arg13[%c2_129, %c0_130, %c0_131] : memref<18x18x8xbf16, #tpu.memory_space<vmem>>, vector<16x16x8xbf16>
    %c0_132 = arith.constant 0 : index
    %c0_133 = arith.constant 0 : index
    %c48 = arith.constant 48 : index
    %66 = vector.load %arg14[%c0_132, %c0_133, %c48] : memref<16x16x72xbf16, #tpu.memory_space<vmem>>, vector<16x16x8xbf16>
    tpu.vector_store %arg14[%c0_132, %c0_133, %c48], %65 {strides = array<i32>} : memref<16x16x72xbf16, #tpu.memory_space<vmem>>, vector<16x16x8xbf16>,
    %c2_134 = arith.constant 2 : index
    %c1_135 = arith.constant 1 : index
    %c0_136 = arith.constant 0 : index
    %67 = vector.load %arg13[%c2_134, %c1_135, %c0_136] : memref<18x18x8xbf16, #tpu.memory_space<vmem>>, vector<16x16x8xbf16>
    %c0_137 = arith.constant 0 : index
    %c0_138 = arith.constant 0 : index
    %c56 = arith.constant 56 : index
    %68 = vector.load %arg14[%c0_137, %c0_138, %c56] : memref<16x16x72xbf16, #tpu.memory_space<vmem>>, vector<16x16x8xbf16>
    tpu.vector_store %arg14[%c0_137, %c0_138, %c56], %67 {strides = array<i32>} : memref<16x16x72xbf16, #tpu.memory_space<vmem>>, vector<16x16x8xbf16>,
    %c2_139 = arith.constant 2 : index
    %c2_140 = arith.constant 2 : index
    %c0_141 = arith.constant 0 : index
    %69 = vector.load %arg13[%c2_139, %c2_140, %c0_141] : memref<18x18x8xbf16, #tpu.memory_space<vmem>>, vector<16x16x8xbf16>
    %c0_142 = arith.constant 0 : index
    %c0_143 = arith.constant 0 : index
    %c64 = arith.constant 64 : index
    %70 = vector.load %arg14[%c0_142, %c0_143, %c64] : memref<16x16x72xbf16, #tpu.memory_space<vmem>>, vector<16x16x8xbf16>
    tpu.vector_store %arg14[%c0_142, %c0_143, %c64], %69 {strides = array<i32>} : memref<16x16x72xbf16, #tpu.memory_space<vmem>>, vector<16x16x8xbf16>,
    %c0_144 = arith.constant 0 : index
    %c0_145 = arith.constant 0 : index
    %c0_146 = arith.constant 0 : index
    %71 = vector.load %arg14[%c0_144, %c0_145, %c0_146] : memref<16x16x72xbf16, #tpu.memory_space<vmem>>, vector<16x16x72xbf16>
    %72 = vector.shape_cast %71 : vector<16x16x72xbf16> to vector<256x72xbf16>
    %c0_147 = arith.constant 0 : index
    %c0_148 = arith.constant 0 : index
    %73 = vector.load %arg5[%c0_147, %c0_148] : memref<72x8xbf16, #tpu.memory_space<vmem>>, vector<72x8xbf16>
    %cst_149 = arith.constant dense<0.000000e+00> : vector<256x8xf32>
    %74 = tpu.matmul %72, %73, %cst_149 {dimension_numbers = #tpu.dot_dimension_numbers<[1], [0], [0], [1], [0, 0, 1, 1], [], []>} : vector<256x72xbf16>, vector<72x8xbf16>, vector<256x8xf32> -> vector<256x8xf32>
    %c0_150 = arith.constant 0 : index
    %c0_151 = arith.constant 0 : index
    %75 = vector.load %arg6[%c0_150, %c0_151] : memref<1x8xf32, #tpu.memory_space<vmem>>, vector<1x8xf32>
    %76 = vector.broadcast %75 : vector<1x8xf32> to vector<256x8xf32>
    %77 = arith.mulf %74, %76 : vector<256x8xf32>
    %c0_152 = arith.constant 0 : index
    %c0_153 = arith.constant 0 : index
    %78 = vector.load %arg7[%c0_152, %c0_153] : memref<1x8xf32, #tpu.memory_space<vmem>>, vector<1x8xf32>
    %79 = vector.broadcast %78 : vector<1x8xf32> to vector<256x8xf32>
    %80 = arith.addf %77, %79 : vector<256x8xf32>
    %81 = vector.shape_cast %1 : vector<16x16x4xf32> to vector<256x4xf32>
    %82 = arith.truncf %81 : vector<256x4xf32> to vector<256x4xbf16>
    %c0_154 = arith.constant 0 : index
    %c0_155 = arith.constant 0 : index
    %83 = vector.load %arg8[%c0_154, %c0_155] : memref<4x8xbf16, #tpu.memory_space<vmem>>, vector<4x8xbf16>
    %cst_156 = arith.constant dense<0.000000e+00> : vector<256x8xf32>
    %84 = tpu.matmul %82, %83, %cst_156 {dimension_numbers = #tpu.dot_dimension_numbers<[1], [0], [0], [1], [0, 0, 1, 1], [], []>} : vector<256x4xbf16>, vector<4x8xbf16>, vector<256x8xf32> -> vector<256x8xf32>
    %c0_157 = arith.constant 0 : index
    %c0_158 = arith.constant 0 : index
    %85 = vector.load %arg9[%c0_157, %c0_158] : memref<1x8xf32, #tpu.memory_space<vmem>>, vector<1x8xf32>
    %86 = vector.broadcast %85 : vector<1x8xf32> to vector<256x8xf32>
    %87 = arith.mulf %84, %86 : vector<256x8xf32>
    %c0_159 = arith.constant 0 : index
    %c0_160 = arith.constant 0 : index
    %88 = vector.load %arg10[%c0_159, %c0_160] : memref<1x8xf32, #tpu.memory_space<vmem>>, vector<1x8xf32>
    %89 = vector.broadcast %88 : vector<1x8xf32> to vector<256x8xf32>
    %90 = arith.addf %87, %89 : vector<256x8xf32>
    %91 = arith.addf %80, %90 : vector<256x8xf32>
    %cst_161 = arith.constant 0.000000e+00 : f32
    %92 = vector.broadcast %cst_161 : f32 to vector<256x8xf32>
    %93 = arith.maximumf %91, %92 : vector<256x8xf32>
    %c0_162 = arith.constant 0 : index
    %c0_163 = arith.constant 0 : index
    %c0_164 = arith.constant 0 : index
    %94 = vector.load %arg11[%c0_162, %c0_163, %c0_164] : memref<1x256x8xf32, #tpu.memory_space<vmem>>, vector<1x256x8xf32>
    %95 = vector.shape_cast %94 : vector<1x256x8xf32> to vector<256x8xf32>
    %96 = vector.shape_cast %93 : vector<256x8xf32> to vector<1x256x8xf32>
    tpu.vector_store %arg11[%c0_162, %c0_163, %c0_164], %96 {strides = array<i32>} : memref<1x256x8xf32, #tpu.memory_space<vmem>>, vector<1x256x8xf32>,
    return
  }
  func.func @transform_0(%arg0: i32) -> (i32, i32, i32, i32) {
    %c0_i32 = arith.constant 0 : i32
    %c0_i32_0 = arith.constant 0 : i32
    %c0_i32_1 = arith.constant 0 : i32
    %c0_i32_2 = arith.constant 0 : i32
    return %arg0, %c0_i32, %c0_i32_0, %c0_i32_1 : i32, i32, i32, i32
  }
  func.func @transform_1(%arg0: i32) -> (i32, i32) {
    %c0_i32 = arith.constant 0 : i32
    %c0_i32_0 = arith.constant 0 : i32
    %c0_i32_1 = arith.constant 0 : i32
    return %c0_i32, %c0_i32_0 : i32, i32
  }
  func.func @transform_2(%arg0: i32) -> (i32, i32) {
    %c0_i32 = arith.constant 0 : i32
    %c0_i32_0 = arith.constant 0 : i32
    %c0_i32_1 = arith.constant 0 : i32
    return %c0_i32, %c0_i32_0 : i32, i32
  }
  func.func @transform_3(%arg0: i32) -> (i32, i32) {
    %c0_i32 = arith.constant 0 : i32
    %c0_i32_0 = arith.constant 0 : i32
    %c0_i32_1 = arith.constant 0 : i32
    return %c0_i32, %c0_i32_0 : i32, i32
  }
  func.func @transform_4(%arg0: i32) -> (i32, i32) {
    %c0_i32 = arith.constant 0 : i32
    %c0_i32_0 = arith.constant 0 : i32
    %c0_i32_1 = arith.constant 0 : i32
    return %c0_i32, %c0_i32_0 : i32, i32
  }
  func.func @transform_5(%arg0: i32) -> (i32, i32) {
    %c0_i32 = arith.constant 0 : i32
    %c0_i32_0 = arith.constant 0 : i32
    %c0_i32_1 = arith.constant 0 : i32
    return %c0_i32, %c0_i32_0 : i32, i32
  }
  func.func @transform_6(%arg0: i32) -> (i32, i32) {
    %c0_i32 = arith.constant 0 : i32
    %c0_i32_0 = arith.constant 0 : i32
    %c0_i32_1 = arith.constant 0 : i32
    return %c0_i32, %c0_i32_0 : i32, i32
  }
  func.func @transform_7(%arg0: i32) -> (i32, i32) {
    %c0_i32 = arith.constant 0 : i32
    %c0_i32_0 = arith.constant 0 : i32
    %c0_i32_1 = arith.constant 0 : i32
    return %c0_i32, %c0_i32_0 : i32, i32
  }
  func.func @transform_8(%arg0: i32) -> (i32, i32) {
    %c0_i32 = arith.constant 0 : i32
    %c0_i32_0 = arith.constant 0 : i32
    %c0_i32_1 = arith.constant 0 : i32
    return %c0_i32, %c0_i32_0 : i32, i32
  }
  func.func @transform_9(%arg0: i32) -> (i32, i32) {
    %c0_i32 = arith.constant 0 : i32
    %c0_i32_0 = arith.constant 0 : i32
    %c0_i32_1 = arith.constant 0 : i32
    return %c0_i32, %c0_i32_0 : i32, i32
  }
  func.func @transform_10(%arg0: i32) -> (i32, i32, i32) {
    %c0_i32 = arith.constant 0 : i32
    %c0_i32_0 = arith.constant 0 : i32
    %c0_i32_1 = arith.constant 0 : i32
    return %arg0, %c0_i32, %c0_i32_0 : i32, i32, i32
  }
}

</mosaic_0001>

<bundles_post_ra>
// kernel: tpu_custom_call.1
= control target key start
LH: loop header
LB: loop body
LE: loop exit
PB: predicated region body
PF: predicated region fallthrough
CT: control target
= control target key end

     0   :  { %s10017_s13 = smov 0   ;;  %s13037_s0 = inlined_call_operand.vmem [shape: f32[2,16,16,4], index: 0, kind: input, shape index: {}]   ;;  %s13038_s1 = inlined_call_operand.vmem [shape: bf16[36,8], index: 1, kind: input, shape index: {}]   ;;  %s13039_s2 = inlined_call_operand.vmem [shape: f32[1,8], index: 2, kind: input, shape index: {}]   ;;  %s13040_s3 = inlined_call_operand.vmem [shape: f32[1,8], index: 3, kind: input, shape index: {}]   ;;  %s13041_s4 = inlined_call_operand.vmem [shape: bf16[72,8], index: 4, kind: input, shape index: {}]   ;;  %s13042_s5 = inlined_call_operand.vmem [shape: f32[1,8], index: 5, kind: input, shape index: {}]   ;;  %s13043_s6 = inlined_call_operand.vmem [shape: f32[1,8], index: 6, kind: input, shape index: {}]   ;;  %s13044_s7 = inlined_call_operand.vmem [shape: bf16[4,8], index: 7, kind: input, shape index: {}]   ;;  %s13045_s8 = inlined_call_operand.vmem [shape: f32[1,8], index: 8, kind: input, shape index: {}]   ;;  %s13046_s9 = inlined_call_operand.vmem [shape: f32[1,8], index: 9, kind: input, shape index: {}]   ;;  %s13047_s10 = inlined_call_operand.vmem [shape: f32[2,256,8], index: 10, kind: output, shape index: {}]  }
   0x1 LB: > { %s9335_s14 = sadd.s32 4294967295, %s9947_s13   ;;  %p9339_p0 = scmp.ge.s32.totalorder %s9947_s13, 1  ;;  %s9947_s13 = sphi %s10017_s13, %s20_s13  }
   0x2   : > { %p312_p1 = scmp.lt.s32.totalorder %s9947_s13, 3 }
   0x4   : > { %p313_p2 = pnand %p9339_p0, %p312_p1 }
   0x5   : > { %p350_p3 = scmp.lt.s32.totalorder (!%p313_p2), %s9335_s14, 1  ;;  %s9950_s19 = smov (!%p313_p2), 4  }
   0x6   : > { %316 = sbr.rel (%p313_p2) target bundleno = 1763 (0x6e3), region = 60  ;;  %s9951_s20 = smov (!%p313_p2), 8  }
   0x7   : > { %s9952_s21 = smov (!%p313_p2), 12   ;;  %s9953_s22 = smov (!%p313_p2), 16  }
   0x8   : > { %s9954_s23 = smov (!%p313_p2), 20   ;;  %s9955_s24 = smov (!%p313_p2), 24  }
   0x9   : > { %s9956_s29 = smov (!%p313_p2), 28   ;;  %s9957_s12 = smov (!%p313_p2), 32  }
   0xa   : > { %s9960_s16 = smov (!%p313_p2), 56   ;;  %s9961_s25 = smov (!%p313_p2), 64  }
   0xb   : > { %vm393_vm0 = vcmask 27648   ;;  %vm396_vm1 = vcmask 24576   ;;  %vm403_vm2 = vsmask.f32 256  ;;  %v9949_v0 = vmov 0   ;;  %s13067_s14 = smov (!%p350_p3, %s9335_s14), 1 }
   0xc   : > { %395 = vst.msk [vmem:[#allocation2 + $0x4] sm:$0xf] %vm393_vm0, %v9949_v0  ;;  %vm10027_vm3 = vmand %vm396_vm1, %vm403_vm2  ;;  %vm459_vm4 = vsmask.f32 7938  ;;  %vm4655_vm6 = vcmask 60416   ;;  %vm4658_vm7 = vcmask 57344  }
   0xd   : > { %397 = vst.msk [vmem:[#allocation2 + $0x8] sm:$0x1] %vm396_vm1, %v9949_v0  ;;  %401 = vst.msk [vmem:[#allocation2 + $0xd4] sm:$0x1] %vm396_vm1, %v9949_v0  ;;  %v408_v3 = vld [vmem:[#allocation2 + $0xc] sm:$0x1] }
   0xe   : > { %394 = vst.msk [vmem:[#allocation2] sm:$0xf] %vm393_vm0, %v9949_v0  ;;  %399 = vst.msk [vmem:[#allocation2 + $0xcc] sm:$0xf] %vm393_vm0, %v9949_v0  ;;  %v409_v4 = vsel %vm10027_vm3, 0, %v408_v3  ;;  %s9600_s15 = sshll.u32 %s13067_s14, 8 }
   0xf   : > { %400 = vst.msk [vmem:[#allocation2 + $0xd0] sm:$0xf] %vm393_vm0, %v9949_v0  ;;  %vm10035_vm5 = vmand %vm396_vm1, %vm459_vm4  ;;  %v464_v5 = vld [vmem:[#allocation2 + $0x14] sm:$0x1]  ;;  %vm611_vm8 = vsmask.f32 4368  ;;  %s10069_s18 = scalar_lea.vmem %s13037_s0, %s9600_s15 }
  0x10   : > { %4656 = vst.msk [vmem:[#allocation3] sm:$0xf] %vm4655_vm6, %v9949_v0  ;;  %4657 = vst.msk [vmem:[#allocation3 + $0x4] sm:$0xf] %vm4655_vm6, %v9949_v0  ;;  %v465_v6 = vsel %vm10035_vm5, 0, %v464_v5  ;;  %v361_v21 = vld [vmem:[%s10069_s18] sm:$0xff] }
  0x11   : > { %4659 = vst.msk [vmem:[#allocation3 + $0x8] sm:$0x1] %vm4658_vm7, %v9949_v0  ;;  %4663 = vst.msk [vmem:[#allocation3 + $0xd4] sm:$0x1] %vm4658_vm7, %v9949_v0  ;;  %v411_v7 = vld [vmem:[#allocation2 + $0x18] sm:$0x1]  ;;  %v9602_v27 = vpack.c.bf16 %v361_v21, %v361_v21 }
  0x12   : > { %4661 = vst.msk [vmem:[#allocation3 + $0xcc] sm:$0xf] %vm4655_vm6, %v9949_v0  ;;  %4662 = vst.msk [vmem:[#allocation3 + $0xd0] sm:$0xf] %vm4655_vm6, %v9949_v0  ;;  %v467_v8 = vld [vmem:[#allocation2 + $0x20] sm:$0x1] }
  0x13   : > { %410 = vst [vmem:[#allocation2 + $0xc] sm:$0x1] %v409_v4  ;;  %466 = vst [vmem:[#allocation2 + $0x14] sm:$0x1] %v465_v6  ;;  %v412_v9 = vsel %vm10027_vm3, 0, %v411_v7  ;;  %v468_v10 = vsel %vm10035_vm5, 0, %v467_v8 }
  0x14   : > { %v414_v11 = vld [vmem:[#allocation2 + $0x24] sm:$0x1]  ;;  %v470_v12 = vld [vmem:[#allocation2 + $0x2c] sm:$0x1]  ;;  %413 = vst [vmem:[#allocation2 + $0x18] sm:$0x1] %v412_v9  ;;  %vm10094_vm11 = vmand %vm393_vm0, %vm459_vm4 }
  0x15   : > { %469 = vst [vmem:[#allocation2 + $0x20] sm:$0x1] %v468_v10  ;;  %v415_v13 = vsel %vm10027_vm3, 0, %v414_v11  ;;  %v471_v14 = vsel %vm10035_vm5, 0, %v470_v12  ;;  %v417_v15 = vld [vmem:[#allocation2 + $0x30] sm:$0x1]  ;;  %vm10100_vm12 = vmor %vm403_vm2, %vm611_vm8 }
  0x16   : > { %416 = vst [vmem:[#allocation2 + $0x24] sm:$0x1] %v415_v13  ;;  %472 = vst [vmem:[#allocation2 + $0x2c] sm:$0x1] %v471_v14  ;;  %v418_v16 = vsel %vm10027_vm3, 0, %v417_v15  ;;  %v362_v26 = vld [vmem:[%s10069_s18 + $0x8] sm:$0xff] }
  0x17   : > { %v473_v17 = vld [vmem:[#allocation2 + $0x38] sm:$0x1]  ;;  %v420_v18 = vld [vmem:[#allocation2 + $0x3c] sm:$0x1]  ;;  %v461_v19 = vld [vmem:[#allocation2 + $0x8] sm:$0x1]  ;;  %v9603_v29 = vpack.c.bf16 %v362_v26, %v362_v26 }
  0x18   : > { %v1113_v20 = vld [vmem:[#allocation2 + $0x4] sm:$0xf]  ;;  %vm1160_vm9 = vsmask.f32 3328  ;;  %vm1161_vm10 = vsmask.f32 7440 }
  0x19   : > { %419 = vst [vmem:[#allocation2 + $0x30] sm:$0x1] %v418_v16  ;;  %v474_v22 = vsel %vm10035_vm5, 0, %v473_v17  ;;  %v462_v23 = vsel %vm10035_vm5, 0, %v461_v19  ;;  %v1173_v24 = vshll.u32 %v1113_v20, 16  ;;  %v1177_v25 = vshrl.u32 %v1113_v20, 16  ;;  %vm10113_vm13 = vmor %vm1160_vm9, %vm1161_vm10 }
  0x1a   : > { %v405_v28 = vld [vmem:[#allocation2] sm:$0x1]  ;;  %475 = vst [vmem:[#allocation2 + $0x38] sm:$0x1] %v474_v22  ;;  %463 = vst [vmem:[#allocation2 + $0x8] sm:$0x1] %v462_v23 }
  0x1b   : > { %v406_v30 = vsel %vm10027_vm3, 0, %v405_v28  ;;  %v363_v31 = vld [vmem:[%s10069_s18 + $0x10] sm:$0xff]  ;;  %v364_v32 = vld [vmem:[%s10069_s18 + $0x18] sm:$0xff]  ;;  %v365_v33 = vld [vmem:[%s10069_s18 + $0x20] sm:$0xff]  ;;  %v421_v34 = vsel %vm10027_vm3, 0, %v420_v18  ;;  %v10086_v35 = vrot.slane %v1173_v24, 5 }
  0x1c   : > { %v1179_v36 = vrot.slane %v1177_v25, 4  ;;  %v614_v37 = vshrl.u32 %v9602_v27, 16  ;;  %v617_v38 = vshll.u32 %v9602_v27, 16  ;;  %407 = vst [vmem:[#allocation2] sm:$0x1] %v406_v30  ;;  %v622_v39 = vshrl.u32 %v9603_v29, 16  ;;  %vm11085_vm10 = vmand %vm4658_vm7, %vm403_vm2 }
  0x1d   : > { %422 = vst [vmem:[#allocation2 + $0x3c] sm:$0x1] %v421_v34  ;;  %v625_v40 = vshll.u32 %v9603_v29, 16  ;;  %v9604_v41 = vpack.c.bf16 %v363_v31, %v363_v31  ;;  %v9605_v42 = vpack.c.bf16 %v364_v32, %v364_v32  ;;  %v366_v43 = vld [vmem:[%s10069_s18 + $0x28] sm:$0xff]  ;;  %v9606_v46 = vpack.c.bf16 %v365_v33, %v365_v33  ;;  %v940_v58 = vld [vmem:[#allocation2 + $0x14] sm:$0x1] }
  0x1e   : > { %v1180_v44 = vor.u32 %v1179_v36, %v10086_v35  ;;  %v616_v45 = vrot.slane %v614_v37, 7  ;;  %v10090_v47 = vpack.c.bf16 %v366_v43, %v366_v43  ;;  %v624_v49 = vrot.slane %v622_v39, 7  ;;  %v936_v50 = vld [vmem:[#allocation2 + $0xc] sm:$0xf]  ;;  %v943_v0 = vld [vmem:[#allocation2 + $0x18] sm:$0xf] }
  0x1f   : > { %v631_v51 = vshrl.u32 %v9604_v41, 16  ;;  %v634_v52 = vshll.u32 %v9604_v41, 16  ;;  %v639_v53 = vshrl.u32 %v9605_v42, 16  ;;  %v642_v59 = vshll.u32 %v9605_v42, 16  ;;  %v947_v18 = vld [vmem:[#allocation2 + $0x20] sm:$0x1] }
  0x20   : > { %v1181_v54 = vrot.slane %v1180_v44, 4  ;;  %v619_v56 = vor.u32 %v617_v38, %v616_v45  ;;  %v620_v57 = vrot.slane %v616_v45, 4  ;;  %v627_v60 = vor.u32 %v625_v40, %v624_v49  ;;  %v950_v23 = vld [vmem:[#allocation2 + $0x24] sm:$0xf]  ;;  %v367_v24 = vld [vmem:[%s10069_s18 + $0x30] sm:$0xff]  ;;  %v368_v29 = vld [vmem:[%s10069_s18 + $0x38] sm:$0xff] }
  0x21   : > { %v629_v61 = vrot.slane %v624_v49, 4  ;;  %v633_v62 = vrot.slane %v631_v51, 7  ;;  %v641_v63 = vrot.slane %v639_v53, 7  ;;  %v1114_v3 = vld [vmem:[#allocation2 + $0x8] sm:$0x1]  ;;  %v648_v5 = vshrl.u32 %v9606_v46, 16 }
  0x22   : > { %v937_v4 = vsel %vm10094_vm11, %v619_v56, %v936_v50  ;;  %v651_v6 = vshll.u32 %v9606_v46, 16  ;;  %v656_v7 = vshrl.u32 %v10090_v47, 16  ;;  %v1183_v8 = vshll.u32 %v1114_v3, 16  ;;  %v369_v30 = vld [vmem:[%s10069_s18 + $0x40] sm:$0xff]  ;;  %v370_v31 = vld [vmem:[%s10069_s18 + $0x48] sm:$0xff]  ;;  %v371_v42 = vld [vmem:[%s10069_s18 + $0x50] sm:$0xff] }
  0x23   : > { %v628_v9 = vsel %vm10100_vm12, %v620_v57, %v627_v60  ;;  %938 = vst [vmem:[#allocation2 + $0xc] sm:$0xf] %v937_v4  ;;  %v1112_v10 = vld [vmem:[#allocation2] sm:$0xf]  ;;  %v941_v11 = vsel %vm10027_vm3, %v629_v61, %v940_v58  ;;  %v636_v12 = vor.u32 %v634_v52, %v633_v62  ;;  %v637_v16 = vrot.slane %v633_v62, 4  ;;  %v372_v43 = vld [vmem:[%s10069_s18 + $0x58] sm:$0xff] }
  0x24   : > { %939 = vst.msk [vmem:[#allocation2 + $0x10] sm:$0xf] %vm393_vm0, %v628_v9  ;;  %v1164_v14 = vshrl.u32 %v1112_v10, 16  ;;  %v1167_v15 = vshll.u32 %v1112_v10, 16  ;;  %942 = vst [vmem:[#allocation2 + $0x14] sm:$0x1] %v941_v11  ;;  %v644_v17 = vor.u32 %v642_v59, %v641_v63  ;;  %v10133_v41 = vpack.c.bf16 %v367_v24, %v367_v24 }
  0x25   : > { %v1185_v19 = vrot.slane %v1183_v8, 5  ;;  %v944_v20 = vsel %vm10094_vm11, %v636_v12, %v943_v0  ;;  %v646_v21 = vrot.slane %v641_v63, 4  ;;  %v650_v22 = vrot.slane %v648_v5, 7  ;;  %v954_v37 = vld [vmem:[#allocation2 + $0x2c] sm:$0x1] }
  0x26   : > { %v1166_v25 = vrot.slane %v1164_v14, 4  ;;  %v1169_v26 = vrot.slane %v1167_v15, 5  ;;  %v645_v27 = vsel %vm10100_vm12, %v637_v16, %v644_v17  ;;  %945 = vst [vmem:[#allocation2 + $0x18] sm:$0xf] %v944_v20  ;;  %v658_v28 = vrot.slane %v656_v7, 7 }
  0x27   : > { %v1186_v32 = vsel %vm10113_vm13, %v1181_v54, %v1185_v19  ;;  %946 = vst.msk [vmem:[#allocation2 + $0x1c] sm:$0xf] %vm393_vm0, %v645_v27  ;;  %v948_v33 = vsel %vm10027_vm3, %v646_v21, %v947_v18  ;;  %v653_v34 = vor.u32 %v651_v6, %v650_v22  ;;  %v654_v36 = vrot.slane %v650_v22, 4 }
  0x28   : > { %1549 = vrot.lane.b32.xlu0 %v1186_v32, %s9950_s19  ;;  %v1170_v38 = vor.u32 %v1169_v26, %v1166_v25  ;;  %949 = vst [vmem:[#allocation2 + $0x20] sm:$0x1] %v948_v33  ;;  %v659_v39 = vshll.u32 %v10090_v47, 16  ;;  %v663_v40 = vrot.slane %v658_v28, 4  ;;  %v10139_v45 = vpack.c.bf16 %v368_v29, %v368_v29 }
  0x29   : > { %v951_v44 = vsel %vm10094_vm11, %v653_v34, %v950_v23  ;;  %v10141_v46 = vpack.c.bf16 %v369_v30, %v369_v30  ;;  %v10143_v49 = vpack.c.bf16 %v370_v31, %v370_v31  ;;  %v665_v53 = vshrl.u32 %v10133_v41, 16 }
  0x2a   : > { %v1115_v50 = vld [vmem:[#allocation2 + $0xc] sm:$0xf]  ;;  %v1171_v51 = vrot.slane %v1170_v38, 4  ;;  %v661_v52 = vor.u32 %v659_v39, %v658_v28  ;;  %952 = vst [vmem:[#allocation2 + $0x24] sm:$0xf] %v951_v44  ;;  %v955_v47 = vsel %vm10027_vm3, %v663_v40, %v954_v37  ;;  %v10148_v59 = vpack.c.bf16 %v371_v42, %v371_v42 }
  0x2b   : > { %v1116_v54 = vld [vmem:[#allocation2 + $0x10] sm:$0xf]  ;;  %v1188_v56 = vshrl.u32 %v1115_v50, 16  ;;  %v1191_v57 = vshll.u32 %v1115_v50, 16  ;;  %v1117_v58 = vld [vmem:[#allocation2 + $0x14] sm:$0x1]  ;;  %v10150_v60 = vpack.c.bf16 %v372_v43, %v372_v43 }
  0x2c   : > { %956 = vst [vmem:[#allocation2 + $0x2c] sm:$0x1] %v955_v47  ;;  %v1197_v61 = vshll.u32 %v1116_v54, 16  ;;  %v1201_v62 = vshrl.u32 %v1116_v54, 16  ;;  %v1176_v63 = vsel %vm10113_vm13, %v1171_v51, %v10086_v35  ;;  %v1207_v0 = vshll.u32 %v1117_v58, 16 }
  0x2d   : > { %v1190_v3 = vrot.slane %v1188_v56, 4  ;;  %v1193_v4 = vrot.slane %v1191_v57, 5  ;;  %1547 = vrot.lane.b32.xlu0 %v1176_v63, %s9950_s19  ;;  %v1118_v5 = vld [vmem:[#allocation2 + $0x18] sm:$0xf]  ;;  %v662_v6 = vsel %vm10100_vm12, %v654_v36, %v661_v52  ;;  %v10158_v7 = vrot.slane %v665_v53, 7 }
  0x2e   : > { %v1199_v8 = vrot.slane %v1197_v61, 5  ;;  %v1203_v9 = vrot.slane %v1201_v62, 4  ;;  %v1209_v10 = vrot.slane %v1207_v0, 5  ;;  %v1119_v11 = vld [vmem:[#allocation2 + $0x1c] sm:$0xf]  ;;  %v1212_v12 = vshrl.u32 %v1118_v5, 16 }
  0x2f   : > { %953 = vst.msk [vmem:[#allocation2 + $0x28] sm:$0xf] %vm393_vm0, %v662_v6  ;;  %v1194_v14 = vor.u32 %v1193_v4, %v1190_v3  ;;  %v1215_v35 = vshll.u32 %v1118_v5, 16  ;;  %v1221_v15 = vshll.u32 %v1119_v11, 16  ;;  %v1225_v16 = vshrl.u32 %v1119_v11, 16 }
  0x30   : > { %v1120_v17 = vld [vmem:[#allocation2 + $0x20] sm:$0x1]  ;;  %v1204_v18 = vor.u32 %v1203_v9, %v1199_v8  ;;  %v1214_v19 = vrot.slane %v1212_v12, 4  ;;  %v668_v21 = vshll.u32 %v10133_v41, 16  ;;  %v957_v41 = vld [vmem:[#allocation2 + $0x30] sm:$0xf] }
  0x31   : > { %v1231_v20 = vshll.u32 %v1120_v17, 16  ;;  %v1195_v22 = vrot.slane %v1194_v14, 4  ;;  %v1217_v23 = vrot.slane %v1215_v35, 5  ;;  %v1223_v24 = vrot.slane %v1221_v15, 5  ;;  %v1121_v26 = vld [vmem:[#allocation2 + $0x24] sm:$0xf] }
  0x32   : > { %v1227_v25 = vrot.slane %v1225_v16, 4  ;;  %v1205_v27 = vrot.slane %v1204_v18, 4  ;;  %v1236_v29 = vshrl.u32 %v1121_v26, 16  ;;  %v1239_v30 = vshll.u32 %v1121_v26, 16  ;;  %v476_v62 = vld [vmem:[#allocation2 + $0x44] sm:$0x1] }
  0x33   : > { %v1233_v28 = vrot.slane %v1231_v20, 5  ;;  %v1123_v31 = vld [vmem:[#allocation2 + $0x2c] sm:$0x1]  ;;  %v1200_v32 = vsel %vm10113_vm13, %v1195_v22, %v1199_v8  ;;  %v1218_v33 = vor.u32 %v1217_v23, %v1214_v19  ;;  %v670_v40 = vor.u32 %v668_v21, %v10158_v7  ;;  %v423_v5 = vld [vmem:[#allocation2 + $0x48] sm:$0x1]  ;;  %v373_v26 = vld [vmem:[%s10069_s18 + $0x60] sm:$0xff] }
  0x34   : > { %v1228_v34 = vor.u32 %v1227_v25, %v1223_v24  ;;  %v1255_v36 = vshll.u32 %v1123_v31, 16  ;;  %1551 = vrot.lane.b32.xlu1 %v1200_v32, %s9950_s19  ;;  %v1210_v37 = vsel %vm10113_vm13, %v1205_v27, %v1209_v10  ;;  %v1238_v38 = vrot.slane %v1236_v29, 4  ;;  %v961_v6 = vld [vmem:[#allocation2 + $0x38] sm:$0x1]  ;;  %v964_v19 = vld [vmem:[#allocation2 + $0x3c] sm:$0xf] }
  0x35   : > { %v1241_v39 = vrot.slane %v1239_v30, 5  ;;  %v1219_v42 = vrot.slane %v1218_v33, 4  ;;  %v671_v51 = vrot.slane %v10158_v7, 4  ;;  %v673_v54 = vshrl.u32 %v10139_v45, 16  ;;  %v479_v21 = vld [vmem:[#allocation2 + $0x50] sm:$0x1] }
  0x36   : > { %v1229_v43 = vrot.slane %v1228_v34, 4  ;;  %v1122_v44 = vld [vmem:[#allocation2 + $0x28] sm:$0xf]  ;;  %v1257_v50 = vrot.slane %v1255_v36, 5  ;;  %v676_v58 = vshll.u32 %v10139_v45, 16  ;;  %v958_v61 = vsel %vm10094_vm11, %v670_v40, %v957_v41 }
  0x37   : > { %v1242_v52 = vor.u32 %v1241_v39, %v1238_v38  ;;  %v1245_v47 = vshll.u32 %v1122_v44, 16  ;;  %v1249_v53 = vshrl.u32 %v1122_v44, 16  ;;  %v1224_v56 = vsel %vm10113_vm13, %v1219_v42, %v1223_v24  ;;  %959 = vst [vmem:[#allocation2 + $0x30] sm:$0xf] %v958_v61  ;;  %v426_v27 = vld [vmem:[#allocation2 + $0x54] sm:$0x1] }
  0x38   : > { %v1234_v57 = vsel %vm10113_vm13, %v1229_v43, %v1233_v28  ;;  %1553 = vrot.lane.b32.xlu1 %v1210_v37, %s9950_s19  ;;  %1555 = vrot.lane.b32.xlu0 %v1224_v56, %s9950_s19  ;;  %v675_v4 = vrot.slane %v673_v54, 7  ;;  %v682_v7 = vshrl.u32 %v10141_v46, 16  ;;  %v685_v8 = vshll.u32 %v10141_v46, 16  ;;  %v374_v32 = vld [vmem:[%s10069_s18 + $0x68] sm:$0xff]  ;;  %v482_v33 = vld [vmem:[#allocation2 + $0x5c] sm:$0x1] }
  0x39   : > { %v1243_v63 = vrot.slane %v1242_v52, 4  ;;  %v1247_v0 = vrot.slane %v1245_v47, 5  ;;  %v1251_v3 = vrot.slane %v1249_v53, 4  ;;  %v690_v45 = vshrl.u32 %v10143_v49, 16  ;;  %v429_v40 = vld [vmem:[#allocation2 + $0x60] sm:$0x1] }
  0x3a   : > { %v693_v9 = vshll.u32 %v10143_v49, 16  ;;  %v678_v12 = vor.u32 %v676_v58, %v675_v4  ;;  %v680_v14 = vrot.slane %v675_v4, 4  ;;  %v684_v35 = vrot.slane %v682_v7, 7  ;;  %v375_v44 = vld [vmem:[%s10069_s18 + $0x70] sm:$0xff] }
  0x3b   : > { %v1248_v10 = vsel %vm10113_vm13, %v1243_v63, %v1247_v0  ;;  %v1252_v11 = vor.u32 %v1251_v3, %v1247_v0  ;;  %v10185_v15 = vrot.slane %v690_v45, 7  ;;  %v477_v16 = vsel %vm10035_vm5, 0, %v476_v62  ;;  %v376_v45 = vld [vmem:[%s10069_s18 + $0x78] sm:$0xff]  ;;  %v2772_v1 = vld [vmem:[#allocation2 + $0x14] sm:$0x1] }
  0x3c   : > { %v424_v17 = vsel %vm10027_vm3, 0, %v423_v5  ;;  %1557 = vrot.lane.b32.xlu1 %v1234_v57, %s9950_s19  ;;  %1559 = vrot.lane.b32.xlu0 %v1248_v10, %s9950_s19  ;;  %v679_v49 = vsel %vm10100_vm12, %v671_v51, %v678_v12  ;;  %v962_v18 = vsel %vm10027_vm3, %v680_v14, %v961_v6  ;;  %478 = vst [vmem:[#allocation2 + $0x44] sm:$0x1] %v477_v16  ;;  %v699_v20 = vshrl.u32 %v10148_v59, 16  ;;  %v377_v14 = vld [vmem:[%s10069_s18 + $0x80] sm:$0xff] }
  0x3d   : > { %v1253_v46 = vrot.slane %v1252_v11, 4  ;;  %425 = vst [vmem:[#allocation2 + $0x48] sm:$0x1] %v424_v17  ;;  %960 = vst.msk [vmem:[#allocation2 + $0x34] sm:$0xf] %vm393_vm0, %v679_v49  ;;  %v687_v22 = vor.u32 %v685_v8, %v684_v35  ;;  %v688_v23 = vrot.slane %v684_v35, 4  ;;  %v695_v24 = vor.u32 %v693_v9, %v10185_v15 }
  0x3e   : > { %963 = vst [vmem:[#allocation2 + $0x38] sm:$0x1] %v962_v18  ;;  %v697_v25 = vrot.slane %v10185_v15, 4  ;;  %v701_v29 = vrot.slane %v699_v20, 7  ;;  %v702_v30 = vshll.u32 %v10148_v59, 16  ;;  %v707_v31 = vshrl.u32 %v10150_v60, 16 }
  0x3f   : > { %v1258_v28 = vsel %vm10113_vm13, %v1253_v46, %v1257_v50  ;;  %v1124_v34 = vld [vmem:[#allocation2 + $0x30] sm:$0xf]  ;;  %v696_v36 = vsel %vm10100_vm12, %v688_v23, %v695_v24  ;;  %v965_v37 = vsel %vm10094_vm11, %v687_v22, %v964_v19  ;;  %v710_v38 = vshll.u32 %v10150_v60, 16 }
  0x40   : > { %v480_v39 = vsel %vm10035_vm5, 0, %v479_v21  ;;  %1561 = vrot.lane.b32.xlu1 %v1258_v28, %s9950_s19  ;;  %v1260_v59 = vshrl.u32 %v1124_v34, 16  ;;  %v1263_v41 = vshll.u32 %v1124_v34, 16  ;;  %966 = vst [vmem:[#allocation2 + $0x3c] sm:$0xf] %v965_v37  ;;  %v704_v42 = vor.u32 %v702_v30, %v701_v29 }
  0x41   : > { %967 = vst.msk [vmem:[#allocation2 + $0x40] sm:$0xf] %vm393_vm0, %v696_v36  ;;  %v705_v43 = vrot.slane %v701_v29, 4  ;;  %481 = vst [vmem:[#allocation2 + $0x50] sm:$0x1] %v480_v39  ;;  %v709_v50 = vrot.slane %v707_v31, 7  ;;  %v9614_v60 = vpack.c.bf16 %v373_v26, %v373_v26  ;;  %v10219_v52 = vpack.c.bf16 %v374_v32, %v374_v32 }
  0x42   : > { %v427_v51 = vsel %vm10027_vm3, 0, %v426_v27  ;;  %v1262_v47 = vrot.slane %v1260_v59, 4  ;;  %v1265_v53 = vrot.slane %v1263_v41, 5  ;;  %v483_v54 = vsel %vm10035_vm5, 0, %v482_v33 }
  0x43   : > { %428 = vst [vmem:[#allocation2 + $0x54] sm:$0x1] %v427_v51  ;;  %v430_v56 = vsel %vm10027_vm3, 0, %v429_v40  ;;  %v968_v57 = vld [vmem:[#allocation2 + $0x44] sm:$0x1]  ;;  %v712_v58 = vor.u32 %v710_v38, %v709_v50  ;;  %v714_v62 = vrot.slane %v709_v50, 4  ;;  %v10225_v0 = vpack.c.bf16 %v375_v44, %v375_v44 }
  0x44   : > { %v971_v61 = vld [vmem:[#allocation2 + $0x48] sm:$0xf]  ;;  %v716_v63 = vshrl.u32 %v9614_v60, 16  ;;  %484 = vst [vmem:[#allocation2 + $0x5c] sm:$0x1] %v483_v54  ;;  %v1266_v4 = vor.u32 %v1265_v53, %v1262_v47  ;;  %v969_v6 = vsel %vm10027_vm3, %v697_v25, %v968_v57  ;;  %v719_v8 = vshll.u32 %v9614_v60, 16 }
  0x45   : > { %431 = vst [vmem:[#allocation2 + $0x60] sm:$0x1] %v430_v56  ;;  %v1125_v3 = vld [vmem:[#allocation2 + $0x34] sm:$0xf]  ;;  %v1126_v5 = vld [vmem:[#allocation2 + $0x38] sm:$0x1]  ;;  %v972_v7 = vsel %vm10094_vm11, %v704_v42, %v971_v61  ;;  %v713_v12 = vsel %vm10100_vm12, %v705_v43, %v712_v58  ;;  %v10238_v20 = vpack.c.bf16 %v376_v45, %v376_v45  ;;  %v10240_v26 = vpack.c.bf16 %v377_v14, %v377_v14 }
  0x46   : > { %v1269_v9 = vshll.u32 %v1125_v3, 16  ;;  %v1273_v10 = vshrl.u32 %v1125_v3, 16  ;;  %v1279_v11 = vshll.u32 %v1126_v5, 16  ;;  %970 = vst [vmem:[#allocation2 + $0x44] sm:$0x1] %v969_v6  ;;  %v1267_v35 = vrot.slane %v1266_v4, 4 }
  0x47   : > { %973 = vst [vmem:[#allocation2 + $0x48] sm:$0xf] %v972_v7  ;;  %974 = vst.msk [vmem:[#allocation2 + $0x4c] sm:$0xf] %vm393_vm0, %v713_v12  ;;  %v718_v15 = vrot.slane %v716_v63, 7  ;;  %v724_v16 = vshrl.u32 %v10219_v52, 16 }
  0x48   : > { %v727_v17 = vshll.u32 %v10219_v52, 16  ;;  %v1271_v46 = vrot.slane %v1269_v9, 5  ;;  %v1275_v49 = vrot.slane %v1273_v10, 4  ;;  %v1281_v18 = vrot.slane %v1279_v11, 5  ;;  %v1127_v19 = vld [vmem:[#allocation2 + $0x3c] sm:$0xf] }
  0x49   : > { %v1128_v21 = vld [vmem:[#allocation2 + $0x40] sm:$0xf]  ;;  %v1284_v22 = vshrl.u32 %v1127_v19, 16  ;;  %v1287_v23 = vshll.u32 %v1127_v19, 16  ;;  %v975_v24 = vld [vmem:[#allocation2 + $0x50] sm:$0x1]  ;;  %v721_v25 = vor.u32 %v719_v8, %v718_v15 }
  0x4a   : > { %v1272_v27 = vsel %vm10113_vm13, %v1267_v35, %v1271_v46  ;;  %v1276_v28 = vor.u32 %v1275_v49, %v1271_v46  ;;  %v1293_v29 = vshll.u32 %v1128_v21, 16  ;;  %v1297_v30 = vshrl.u32 %v1128_v21, 16  ;;  %v978_v31 = vld [vmem:[#allocation2 + $0x54] sm:$0xf]  ;;  %v485_v11 = vld [vmem:[#allocation2 + $0x68] sm:$0x1] }
  0x4b   : > { %1563 = vrot.lane.b32.xlu0 %v1272_v27, %s9950_s19  ;;  %v1286_v32 = vrot.slane %v1284_v22, 4  ;;  %v1289_v33 = vrot.slane %v1287_v23, 5  ;;  %v976_v34 = vsel %vm10027_vm3, %v714_v62, %v975_v24  ;;  %v722_v36 = vrot.slane %v718_v15, 4  ;;  %v982_v7 = vld [vmem:[#allocation2 + $0x5c] sm:$0x1]  ;;  %v378_v46 = vld [vmem:[%s10069_s18 + $0x88] sm:$0xff] }
  0x4c   : > { %v1277_v37 = vrot.slane %v1276_v28, 4  ;;  %v1295_v38 = vrot.slane %v1293_v29, 5  ;;  %v1299_v39 = vrot.slane %v1297_v30, 4  ;;  %977 = vst [vmem:[#allocation2 + $0x50] sm:$0x1] %v976_v34  ;;  %v726_v40 = vrot.slane %v724_v16, 7 }
  0x4d   : > { %v1290_v59 = vor.u32 %v1289_v33, %v1286_v32  ;;  %v1129_v41 = vld [vmem:[#allocation2 + $0x44] sm:$0x1]  ;;  %v979_v43 = vsel %vm10094_vm11, %v721_v25, %v978_v31  ;;  %v733_v44 = vshrl.u32 %v10225_v0, 16  ;;  %v736_v50 = vshll.u32 %v10225_v0, 16  ;;  %v432_v22 = vld [vmem:[#allocation2 + $0x6c] sm:$0x1] }
  0x4e   : > { %v1130_v42 = vld [vmem:[#allocation2 + $0x48] sm:$0xf]  ;;  %v1282_v51 = vsel %vm10113_vm13, %v1277_v37, %v1281_v18  ;;  %v1300_v60 = vor.u32 %v1299_v39, %v1295_v38  ;;  %v1303_v52 = vshll.u32 %v1129_v41, 16  ;;  %v1131_v47 = vld [vmem:[#allocation2 + $0x4c] sm:$0xf]  ;;  %v729_v3 = vor.u32 %v727_v17, %v726_v40  ;;  %v379_v33 = vld [vmem:[%s10069_s18 + $0x90] sm:$0xff] }
  0x4f   : > { %v1308_v53 = vshrl.u32 %v1130_v42, 16  ;;  %980 = vst [vmem:[#allocation2 + $0x54] sm:$0xf] %v979_v43  ;;  %1565 = vrot.lane.b32.xlu1 %v1282_v51, %s9950_s19  ;;  %v1291_v54 = vrot.slane %v1290_v59, 4  ;;  %v1311_v56 = vshll.u32 %v1130_v42, 16  ;;  %v1317_v57 = vshll.u32 %v1131_v47, 16 }
  0x50   : > { %v1321_v58 = vshrl.u32 %v1131_v47, 16  ;;  %v1301_v61 = vrot.slane %v1300_v60, 4  ;;  %v1305_v62 = vrot.slane %v1303_v52, 5  ;;  %v730_v45 = vsel %vm10100_vm12, %v722_v36, %v729_v3  ;;  %v985_v17 = vld [vmem:[#allocation2 + $0x60] sm:$0xf] }
  0x51   : > { %v1310_v63 = vrot.slane %v1308_v53, 4  ;;  %v1296_v0 = vsel %vm10113_vm13, %v1291_v54, %v1295_v38  ;;  %v1313_v4 = vrot.slane %v1311_v56, 5  ;;  %v1319_v5 = vrot.slane %v1317_v57, 5  ;;  %981 = vst.msk [vmem:[#allocation2 + $0x58] sm:$0xf] %vm393_vm0, %v730_v45  ;;  %v380_v53 = vld [vmem:[%s10069_s18 + $0x98] sm:$0xff] }
  0x52   : > { %v1323_v6 = vrot.slane %v1321_v58, 4  ;;  %1567 = vrot.lane.b32.xlu0 %v1296_v0, %s9950_s19  ;;  %v1306_v8 = vsel %vm10113_vm13, %v1301_v61, %v1305_v62  ;;  %v731_v9 = vrot.slane %v726_v40, 4  ;;  %v735_v10 = vrot.slane %v733_v44, 7  ;;  %v488_v23 = vld [vmem:[#allocation2 + $0x74] sm:$0x1] }
  0x53   : > { %1569 = vrot.lane.b32.xlu1 %v1306_v8, %s9950_s19  ;;  %v1314_v12 = vor.u32 %v1313_v4, %v1310_v63  ;;  %v1132_v14 = vld [vmem:[#allocation2 + $0x50] sm:$0x1]  ;;  %v741_v15 = vshrl.u32 %v10238_v20, 16  ;;  %v744_v16 = vshll.u32 %v10238_v20, 16  ;;  %v486_v29 = vsel %vm10035_vm5, 0, %v485_v11 }
  0x54   : > { %v1324_v35 = vor.u32 %v1323_v6, %v1319_v5  ;;  %v1327_v49 = vshll.u32 %v1132_v14, 16  ;;  %v983_v18 = vsel %vm10027_vm3, %v731_v9, %v982_v7  ;;  %v738_v19 = vor.u32 %v736_v50, %v735_v10  ;;  %487 = vst [vmem:[#allocation2 + $0x68] sm:$0x1] %v486_v29  ;;  %v435_v34 = vld [vmem:[#allocation2 + $0x78] sm:$0x1] }
  0x55   : > { %v739_v21 = vrot.slane %v735_v10, 4  ;;  %v1315_v24 = vrot.slane %v1314_v12, 4  ;;  %984 = vst [vmem:[#allocation2 + $0x5c] sm:$0x1] %v983_v18  ;;  %v743_v28 = vrot.slane %v741_v15, 7  ;;  %v433_v39 = vsel %vm10027_vm3, 0, %v432_v22 }
  0x56   : > { %v1325_v25 = vrot.slane %v1324_v35, 4  ;;  %v1133_v27 = vld [vmem:[#allocation2 + $0x54] sm:$0xf]  ;;  %v1329_v20 = vrot.slane %v1327_v49, 5  ;;  %v986_v32 = vsel %vm10094_vm11, %v738_v19, %v985_v17  ;;  %v491_v40 = vld [vmem:[#allocation2 + $0x80] sm:$0x1]  ;;  %v9619_v50 = vpack.c.bf16 %v378_v46, %v378_v46 }
  0x57   : > { %v1332_v30 = vshrl.u32 %v1133_v27, 16  ;;  %v1335_v31 = vshll.u32 %v1133_v27, 16  ;;  %v1320_v36 = vsel %vm10113_vm13, %v1315_v24, %v1319_v5  ;;  %v746_v37 = vor.u32 %v744_v16, %v743_v28  ;;  %987 = vst [vmem:[#allocation2 + $0x60] sm:$0xf] %v986_v32  ;;  %v1049_v59 = vld [vmem:[#allocation2 + $0x4] sm:$0xf] }
  0x58   : > { %v748_v38 = vrot.slane %v743_v28, 4  ;;  %v1050_v41 = vld [vmem:[#allocation2 + $0xc] sm:$0xf]  ;;  %1571 = vrot.lane.b32.xlu0 %v1320_v36, %s9950_s19  ;;  %v1330_v42 = vsel %vm10113_vm13, %v1325_v25, %v1329_v20  ;;  %434 = vst [vmem:[#allocation2 + $0x6c] sm:$0x1] %v433_v39  ;;  %v750_v60 = vshrl.u32 %v10240_v26, 16  ;;  %v9620_v0 = vpack.c.bf16 %v379_v33, %v379_v33 }
  0x59   : > { %v1334_v43 = vrot.slane %v1332_v30, 4  ;;  %v1337_v44 = vrot.slane %v1335_v31, 5  ;;  %1081 = vst.msk [vmem:[#allocation4 + $0x4] sm:$0xf] %vm393_vm0, %v1049_v59  ;;  %1082 = vst.msk [vmem:[#allocation4 + $0x8] sm:$0xf] %vm393_vm0, %v1050_v41  ;;  %1573 = vrot.lane.b32.xlu1 %v1330_v42, %s9950_s19  ;;  %v747_v51 = vsel %vm10100_vm12, %v739_v21, %v746_v37  ;;  %v10293_v6 = vpack.c.bf16 %v380_v53, %v380_v53 }
  0x5a   : > { %v753_v52 = vshll.u32 %v10240_v26, 16  ;;  %v489_v47 = vsel %vm10035_vm5, 0, %v488_v23  ;;  %v1134_v54 = vld [vmem:[#allocation2 + $0x58] sm:$0xf]  ;;  %988 = vst.msk [vmem:[#allocation2 + $0x64] sm:$0xf] %vm393_vm0, %v747_v51 }
  0x5b   : > { %v1338_v56 = vor.u32 %v1337_v44, %v1334_v43  ;;  %v758_v57 = vshrl.u32 %v9619_v50, 16  ;;  %v761_v58 = vshll.u32 %v9619_v50, 16  ;;  %490 = vst [vmem:[#allocation2 + $0x74] sm:$0x1] %v489_v47  ;;  %v436_v61 = vsel %vm10027_vm3, 0, %v435_v34  ;;  %v381_v17 = vld [vmem:[%s10069_s18 + $0xa0] sm:$0xff] }
  0x5c   : > { %v1341_v62 = vshll.u32 %v1134_v54, 16  ;;  %v1345_v63 = vshrl.u32 %v1134_v54, 16  ;;  %v752_v3 = vrot.slane %v750_v60, 7  ;;  %437 = vst [vmem:[#allocation2 + $0x78] sm:$0x1] %v436_v61  ;;  %v492_v7 = vsel %vm10035_vm5, 0, %v491_v40 }
  0x5d   : > { %v1339_v26 = vrot.slane %v1338_v56, 4  ;;  %v1135_v4 = vld [vmem:[#allocation2 + $0x5c] sm:$0x1]  ;;  %v760_v5 = vrot.slane %v758_v57, 7  ;;  %v989_v10 = vld [vmem:[#allocation2 + $0x68] sm:$0x1]  ;;  %v9622_v33 = vpack.c.bf16 %v381_v17, %v381_v17 }
  0x5e   : > { %v1343_v8 = vrot.slane %v1341_v62, 5  ;;  %v1347_v45 = vrot.slane %v1345_v63, 4  ;;  %v1351_v9 = vshll.u32 %v1135_v4, 16  ;;  %v755_v11 = vor.u32 %v753_v52, %v752_v3  ;;  %493 = vst [vmem:[#allocation2 + $0x80] sm:$0x1] %v492_v7  ;;  %v382_v46 = vld [vmem:[%s10069_s18 + $0xa8] sm:$0xff] }
  0x5f   : > { %v1136_v12 = vld [vmem:[#allocation2 + $0x60] sm:$0xf]  ;;  %v990_v14 = vsel %vm10027_vm3, %v748_v38, %v989_v10  ;;  %v756_v35 = vrot.slane %v752_v3, 4  ;;  %v763_v15 = vor.u32 %v761_v58, %v760_v5  ;;  %v765_v16 = vrot.slane %v760_v5, 4  ;;  %v992_v22 = vld [vmem:[#allocation2 + $0x6c] sm:$0xf] }
  0x60   : > { %v1344_v49 = vsel %vm10113_vm13, %v1339_v26, %v1343_v8  ;;  %v1348_v18 = vor.u32 %v1347_v45, %v1343_v8  ;;  %v1353_v19 = vrot.slane %v1351_v9, 5  ;;  %v1356_v21 = vshrl.u32 %v1136_v12, 16  ;;  %991 = vst [vmem:[#allocation2 + $0x68] sm:$0x1] %v990_v14  ;;  %v1048_v28 = vld [vmem:[#allocation2] sm:$0xf] }
  0x61   : > { %1575 = vrot.lane.b32.xlu0 %v1344_v49, %s9950_s19  ;;  %v1359_v23 = vshll.u32 %v1136_v12, 16  ;;  %v764_v24 = vsel %vm10100_vm12, %v756_v35, %v763_v15  ;;  %v993_v25 = vsel %vm10094_vm11, %v755_v11, %v992_v22  ;;  %v767_v27 = vshrl.u32 %v9620_v0, 16  ;;  %v1051_v29 = vld [vmem:[#allocation2 + $0x10] sm:$0xf]  ;;  %v1137_v30 = vld [vmem:[#allocation2 + $0x64] sm:$0xf] }
  0x62   : > { %v1349_v20 = vrot.slane %v1348_v18, 4  ;;  %v1358_v31 = vrot.slane %v1356_v21, 4  ;;  %994 = vst [vmem:[#allocation2 + $0x6c] sm:$0xf] %v993_v25  ;;  %995 = vst.msk [vmem:[#allocation2 + $0x70] sm:$0xf] %vm393_vm0, %v764_v24  ;;  %v10309_v34 = vpack.c.bf16 %v382_v46, %v382_v46 }
  0x63   : > { %v996_v32 = vld [vmem:[#allocation2 + $0x74] sm:$0x1]  ;;  %1080 = vst.msk [vmem:[#allocation4] sm:$0xf] %vm393_vm0, %v1048_v28  ;;  %1083 = vst.msk [vmem:[#allocation4 + $0xc] sm:$0xf] %vm393_vm0, %v1051_v29 }
  0x64   : > { %v1361_v36 = vrot.slane %v1359_v23, 5  ;;  %v1365_v37 = vshll.u32 %v1137_v30, 16  ;;  %v1369_v38 = vshrl.u32 %v1137_v30, 16  ;;  %v997_v39 = vsel %vm10027_vm3, %v765_v16, %v996_v32  ;;  %v438_v40 = vld [vmem:[#allocation2 + $0x84] sm:$0x1]  ;;  %v383_v57 = vld [vmem:[%s10069_s18 + $0xb0] sm:$0xff] }
  0x65   : > { %v1354_v59 = vsel %vm10113_vm13, %v1349_v20, %v1353_v19  ;;  %998 = vst [vmem:[#allocation2 + $0x74] sm:$0x1] %v997_v39  ;;  %v769_v41 = vrot.slane %v767_v27, 7  ;;  %v770_v42 = vshll.u32 %v9620_v0, 16  ;;  %v775_v43 = vshrl.u32 %v10293_v6, 16  ;;  %v384_v29 = vld [vmem:[%s10069_s18 + $0xb8] sm:$0xff] }
  0x66   : > { %1577 = vrot.lane.b32.xlu1 %v1354_v59, %s9950_s19  ;;  %v1362_v44 = vor.u32 %v1361_v36, %v1358_v31  ;;  %v1367_v50 = vrot.slane %v1365_v37, 5  ;;  %v1371_v51 = vrot.slane %v1369_v38, 4  ;;  %v778_v60 = vshll.u32 %v10293_v6, 16  ;;  %v999_v52 = vld [vmem:[#allocation2 + $0x78] sm:$0xf] }
  0x67   : > { %v772_v47 = vor.u32 %v770_v42, %v769_v41  ;;  %v773_v53 = vrot.slane %v769_v41, 4  ;;  %v777_v54 = vrot.slane %v775_v43, 7  ;;  %v439_v56 = vsel %vm10027_vm3, 0, %v438_v40  ;;  %v1052_v58 = vld [vmem:[#allocation2 + $0x18] sm:$0xf] }
  0x68   : > { %v1363_v61 = vrot.slane %v1362_v44, 4  ;;  %v1138_v62 = vld [vmem:[#allocation2 + $0x68] sm:$0x1]  ;;  %v1372_v63 = vor.u32 %v1371_v51, %v1367_v50  ;;  %440 = vst [vmem:[#allocation2 + $0x84] sm:$0x1] %v439_v56  ;;  %v784_v3 = vshrl.u32 %v9622_v33, 16  ;;  %v10330_v14 = vpack.c.bf16 %v383_v57, %v383_v57 }
  0x69   : > { %v787_v0 = vshll.u32 %v9622_v33, 16  ;;  %1084 = vst.msk [vmem:[#allocation4 + $0x10] sm:$0xf] %vm393_vm0, %v1052_v58  ;;  %v1375_v26 = vshll.u32 %v1138_v62, 16  ;;  %v780_v4 = vor.u32 %v778_v60, %v777_v54  ;;  %v1000_v5 = vsel %vm10094_vm11, %v772_v47, %v999_v52  ;;  %v1003_v7 = vld [vmem:[#allocation2 + $0x80] sm:$0x1] }
  0x6a   : > { %v782_v6 = vrot.slane %v777_v54, 4  ;;  %v1053_v8 = vld [vmem:[#allocation2 + $0x1c] sm:$0xf]  ;;  %v1368_v45 = vsel %vm10113_vm13, %v1363_v61, %v1367_v50  ;;  %v1373_v9 = vrot.slane %v1372_v63, 4  ;;  %v1139_v10 = vld [vmem:[#allocation2 + $0x6c] sm:$0xf]  ;;  %v9625_v51 = vpack.c.bf16 %v384_v29, %v384_v29 }
  0x6b   : > { %v1140_v11 = vld [vmem:[#allocation2 + $0x70] sm:$0xf]  ;;  %1001 = vst [vmem:[#allocation2 + $0x78] sm:$0xf] %v1000_v5  ;;  %v10328_v12 = vrot.slane %v784_v3, 7  ;;  %1579 = vrot.lane.b32.xlu0 %v1368_v45, %s9950_s19  ;;  %v1377_v35 = vrot.slane %v1375_v26, 5  ;;  %v781_v19 = vsel %vm10100_vm12, %v773_v53, %v780_v4 }
  0x6c   : > { %1085 = vst.msk [vmem:[#allocation4 + $0x14] sm:$0xf] %vm393_vm0, %v1053_v8  ;;  %v1380_v15 = vshrl.u32 %v1139_v10, 16  ;;  %v1383_v16 = vshll.u32 %v1139_v10, 16  ;;  %v1389_v17 = vshll.u32 %v1140_v11, 16  ;;  %v1393_v49 = vshrl.u32 %v1140_v11, 16 }
  0x6d   : > { %v494_v46 = vld [vmem:[#allocation2 + $0x8c] sm:$0x1]  ;;  %v1141_v18 = vld [vmem:[#allocation2 + $0x74] sm:$0x1]  ;;  %v1004_v21 = vsel %vm10027_vm3, %v782_v6, %v1003_v7  ;;  %v789_v22 = vor.u32 %v787_v0, %v10328_v12  ;;  %v441_v23 = vld [vmem:[#allocation2 + $0x90] sm:$0x1]  ;;  %v1378_v24 = vsel %vm10113_vm13, %v1373_v9, %v1377_v35 }
  0x6e   : > { %v1382_v25 = vrot.slane %v1380_v15, 4  ;;  %v1385_v27 = vrot.slane %v1383_v16, 5  ;;  %v1391_v28 = vrot.slane %v1389_v17, 5  ;;  %1002 = vst.msk [vmem:[#allocation2 + $0x7c] sm:$0xf] %vm393_vm0, %v781_v19  ;;  %1581 = vrot.lane.b32.xlu1 %v1378_v24, %s9950_s19  ;;  %v1395_v20 = vrot.slane %v1393_v49, 4 }
  0x6f   : > { %1005 = vst [vmem:[#allocation2 + $0x80] sm:$0x1] %v1004_v21  ;;  %v1399_v30 = vshll.u32 %v1141_v18, 16  ;;  %v790_v31 = vrot.slane %v10328_v12, 4  ;;  %v792_v32 = vshrl.u32 %v10309_v34, 16  ;;  %v795_v37 = vshll.u32 %v10309_v34, 16 }
  0x70   : > { %v1054_v33 = vld [vmem:[#allocation2 + $0x24] sm:$0xf]  ;;  %v1386_v36 = vor.u32 %v1385_v27, %v1382_v25  ;;  %v495_v39 = vsel %vm10035_vm5, 0, %v494_v46  ;;  %v442_v40 = vsel %vm10027_vm3, 0, %v441_v23  ;;  %v1396_v59 = vor.u32 %v1395_v20, %v1391_v28  ;;  %v1055_v44 = vld [vmem:[#allocation2 + $0x28] sm:$0xf] }
  0x71   : > { %v1006_v38 = vld [vmem:[#allocation2 + $0x84] sm:$0xf]  ;;  %1086 = vst.msk [vmem:[#allocation4 + $0x18] sm:$0xf] %vm393_vm0, %v1054_v33  ;;  %v1401_v41 = vrot.slane %v1399_v30, 5  ;;  %v794_v42 = vrot.slane %v792_v32, 7 }
  0x72   : > { %v1007_v43 = vsel %vm10094_vm11, %v789_v22, %v1006_v38  ;;  %496 = vst [vmem:[#allocation2 + $0x8c] sm:$0x1] %v495_v39  ;;  %443 = vst [vmem:[#allocation2 + $0x90] sm:$0x1] %v442_v40  ;;  %v1387_v50 = vrot.slane %v1386_v36, 4  ;;  %v801_v60 = vshrl.u32 %v10330_v14, 16 }
  0x73   : > { %v1142_v34 = vld [vmem:[#allocation2 + $0x78] sm:$0xf]  ;;  %1008 = vst [vmem:[#allocation2 + $0x84] sm:$0xf] %v1007_v43  ;;  %v804_v52 = vshll.u32 %v10330_v14, 16  ;;  %v1397_v47 = vrot.slane %v1396_v59, 4  ;;  %v797_v56 = vor.u32 %v795_v37, %v794_v42 }
  0x74   : > { %1087 = vst.msk [vmem:[#allocation4 + $0x1c] sm:$0xf] %vm393_vm0, %v1055_v44  ;;  %v1404_v53 = vshrl.u32 %v1142_v34, 16  ;;  %v1407_v54 = vshll.u32 %v1142_v34, 16  ;;  %v1392_v57 = vsel %vm10113_vm13, %v1387_v50, %v1391_v28  ;;  %v799_v58 = vrot.slane %v794_v42, 4  ;;  %v385_v10 = vld [vmem:[%s10069_s18 + $0xc0] sm:$0xff] }
  0x75   : > { %v803_v61 = vrot.slane %v801_v60, 7  ;;  %v809_v62 = vshrl.u32 %v9625_v51, 16  ;;  %v497_v63 = vld [vmem:[#allocation2 + $0x98] sm:$0x1]  ;;  %1583 = vrot.lane.b32.xlu0 %v1392_v57, %s9950_s19  ;;  %v1402_v3 = vsel %vm10113_vm13, %v1397_v47, %v1401_v41  ;;  %v1143_v0 = vld [vmem:[#allocation2 + $0x7c] sm:$0xf]  ;;  %v798_v6 = vsel %vm10100_vm12, %v790_v31, %v797_v56 }
  0x76   : > { %v1406_v26 = vrot.slane %v1404_v53, 4  ;;  %v1409_v4 = vrot.slane %v1407_v54, 5  ;;  %v1144_v5 = vld [vmem:[#allocation2 + $0x80] sm:$0x1]  ;;  %1585 = vrot.lane.b32.xlu1 %v1402_v3, %s9950_s19  ;;  %v1413_v7 = vshll.u32 %v1143_v0, 16  ;;  %v1417_v8 = vshrl.u32 %v1143_v0, 16 }
  0x77   : > { %v1423_v45 = vshll.u32 %v1144_v5, 16  ;;  %1009 = vst.msk [vmem:[#allocation2 + $0x88] sm:$0xf] %vm393_vm0, %v798_v6  ;;  %v806_v9 = vor.u32 %v804_v52, %v803_v61  ;;  %v807_v12 = vrot.slane %v803_v61, 4  ;;  %v10367_v14 = vrot.slane %v809_v62, 7  ;;  %v386_v15 = vld [vmem:[%s10069_s18 + $0xc8] sm:$0xff] }
  0x78   : > { %v1410_v11 = vor.u32 %v1409_v4, %v1406_v26  ;;  %v812_v35 = vshll.u32 %v9625_v51, 16  ;;  %v444_v16 = vld [vmem:[#allocation2 + $0x9c] sm:$0x1]  ;;  %v1415_v17 = vrot.slane %v1413_v7, 5  ;;  %v1419_v46 = vrot.slane %v1417_v8, 4  ;;  %v387_v44 = vld [vmem:[%s10069_s18 + $0xd0] sm:$0xff] }
  0x79   : > { %v1425_v49 = vrot.slane %v1423_v45, 5  ;;  %v1010_v18 = vld [vmem:[#allocation2 + $0x8c] sm:$0x1]  ;;  %v498_v19 = vsel %vm10035_vm5, 0, %v497_v63  ;;  %v500_v21 = vld [vmem:[#allocation2 + $0xa4] sm:$0x1]  ;;  %v9626_v39 = vpack.c.bf16 %v385_v10, %v385_v10  ;;  %v9627_v43 = vpack.c.bf16 %v386_v15, %v386_v15 }
  0x7a   : > { %v1411_v22 = vrot.slane %v1410_v11, 4  ;;  %v1145_v23 = vld [vmem:[#allocation2 + $0x84] sm:$0xf]  ;;  %v1011_v24 = vsel %vm10027_vm3, %v799_v58, %v1010_v18  ;;  %v814_v25 = vor.u32 %v812_v35, %v10367_v14  ;;  %v1013_v27 = vld [vmem:[#allocation2 + $0x90] sm:$0xf]  ;;  %v816_v28 = vrot.slane %v10367_v14, 4 }
  0x7b   : > { %499 = vst [vmem:[#allocation2 + $0x98] sm:$0x1] %v498_v19  ;;  %v1420_v29 = vor.u32 %v1419_v46, %v1415_v17  ;;  %v1428_v20 = vshrl.u32 %v1145_v23, 16  ;;  %v1431_v30 = vshll.u32 %v1145_v23, 16  ;;  %1012 = vst [vmem:[#allocation2 + $0x8c] sm:$0x1] %v1011_v24  ;;  %v1014_v31 = vsel %vm10094_vm11, %v806_v9, %v1013_v27 }
  0x7c   : > { %v447_v32 = vld [vmem:[#allocation2 + $0xa8] sm:$0x1]  ;;  %v1056_v33 = vld [vmem:[#allocation2 + $0x30] sm:$0xf]  ;;  %v1416_v36 = vsel %vm10113_vm13, %v1411_v22, %v1415_v17  ;;  %v815_v37 = vsel %vm10100_vm12, %v807_v12, %v814_v25  ;;  %1015 = vst [vmem:[#allocation2 + $0x90] sm:$0xf] %v1014_v31  ;;  %v9628_v3 = vpack.c.bf16 %v387_v44, %v387_v44 }
  0x7d   : > { %v445_v38 = vsel %vm10027_vm3, 0, %v444_v16  ;;  %1088 = vst.msk [vmem:[#allocation4 + $0x20] sm:$0xf] %vm393_vm0, %v1056_v33  ;;  %v1057_v40 = vld [vmem:[#allocation2 + $0x34] sm:$0xf]  ;;  %1587 = vrot.lane.b32.xlu0 %v1416_v36, %s9950_s19  ;;  %v1421_v59 = vrot.slane %v1420_v29, 4 }
  0x7e   : > { %v1430_v41 = vrot.slane %v1428_v20, 4  ;;  %v1433_v42 = vrot.slane %v1431_v30, 5  ;;  %1016 = vst.msk [vmem:[#allocation2 + $0x94] sm:$0xf] %vm393_vm0, %v815_v37  ;;  %446 = vst [vmem:[#allocation2 + $0x9c] sm:$0x1] %v445_v38 }
  0x7f   : > { %v388_v50 = vld [vmem:[%s10069_s18 + $0xd8] sm:$0xff]  ;;  %1089 = vst.msk [vmem:[#allocation4 + $0x24] sm:$0xf] %vm393_vm0, %v1057_v40  ;;  %v1146_v34 = vld [vmem:[#allocation2 + $0x88] sm:$0xf]  ;;  %v818_v51 = vshrl.u32 %v9626_v39, 16  ;;  %v1426_v53 = vsel %vm10113_vm13, %v1421_v59, %v1425_v49 }
  0x80   : > { %v821_v60 = vshll.u32 %v9626_v39, 16  ;;  %v501_v52 = vsel %vm10035_vm5, 0, %v500_v21  ;;  %v448_v47 = vsel %vm10027_vm3, 0, %v447_v32  ;;  %v1434_v54 = vor.u32 %v1433_v42, %v1430_v41  ;;  %v1058_v58 = vld [vmem:[#allocation2 + $0x3c] sm:$0xf]  ;;  %1589 = vrot.lane.b32.xlu1 %v1426_v53, %s9950_s19  ;;  %v389_v8 = vld [vmem:[%s10069_s18 + $0xe0] sm:$0xff] }
  0x81   : > { %v1437_v56 = vshll.u32 %v1146_v34, 16  ;;  %v1441_v57 = vshrl.u32 %v1146_v34, 16  ;;  %502 = vst [vmem:[#allocation2 + $0xa4] sm:$0x1] %v501_v52  ;;  %449 = vst [vmem:[#allocation2 + $0xa8] sm:$0x1] %v448_v47  ;;  %v10398_v7 = vpack.c.bf16 %v388_v50, %v388_v50  ;;  %v10407_v22 = vpack.c.bf16 %v389_v8, %v389_v8 }
  0x82   : > { %v820_v61 = vrot.slane %v818_v51, 7  ;;  %v826_v62 = vshrl.u32 %v9627_v43, 16  ;;  %v829_v63 = vshll.u32 %v9627_v43, 16  ;;  %1090 = vst.msk [vmem:[#allocation4 + $0x28] sm:$0xf] %vm393_vm0, %v1058_v58  ;;  %v1435_v26 = vrot.slane %v1434_v54, 4 }
  0x83   : > { %v1059_v0 = vld [vmem:[#allocation2 + $0x40] sm:$0xf]  ;;  %v1439_v4 = vrot.slane %v1437_v56, 5  ;;  %v1443_v5 = vrot.slane %v1441_v57, 4  ;;  %v1017_v6 = vld [vmem:[#allocation2 + $0x98] sm:$0x1] }
  0x84   : > { %1091 = vst.msk [vmem:[#allocation4 + $0x2c] sm:$0xf] %vm393_vm0, %v1059_v0  ;;  %v1147_v45 = vld [vmem:[#allocation2 + $0x8c] sm:$0x1]  ;;  %v1018_v9 = vsel %vm10027_vm3, %v816_v28, %v1017_v6  ;;  %v823_v10 = vor.u32 %v821_v60, %v820_v61  ;;  %v824_v11 = vrot.slane %v820_v61, 4  ;;  %v828_v12 = vrot.slane %v826_v62, 7 }
  0x85   : > { %v1440_v14 = vsel %vm10113_vm13, %v1435_v26, %v1439_v4  ;;  %v1444_v35 = vor.u32 %v1443_v5, %v1439_v4  ;;  %v1447_v15 = vshll.u32 %v1147_v45, 16  ;;  %v1148_v16 = vld [vmem:[#allocation2 + $0x90] sm:$0xf]  ;;  %1019 = vst [vmem:[#allocation2 + $0x98] sm:$0x1] %v1018_v9  ;;  %v835_v17 = vshrl.u32 %v9628_v3, 16 }
  0x86   : > { %1591 = vrot.lane.b32.xlu0 %v1440_v14, %s9950_s19  ;;  %v1149_v46 = vld [vmem:[#allocation2 + $0x94] sm:$0xf]  ;;  %v1452_v49 = vshrl.u32 %v1148_v16, 16  ;;  %v1455_v18 = vshll.u32 %v1148_v16, 16  ;;  %v831_v19 = vor.u32 %v829_v63, %v828_v12  ;;  %v1020_v21 = vld [vmem:[#allocation2 + $0x9c] sm:$0xf] }
  0x87   : > { %v1445_v23 = vrot.slane %v1444_v35, 4  ;;  %v1449_v24 = vrot.slane %v1447_v15, 5  ;;  %v1461_v25 = vshll.u32 %v1149_v46, 16  ;;  %v1465_v27 = vshrl.u32 %v1149_v46, 16  ;;  %v503_v32 = vld [vmem:[#allocation2 + $0xb0] sm:$0x1] }
  0x88   : > { %v1454_v28 = vrot.slane %v1452_v49, 4  ;;  %v1457_v29 = vrot.slane %v1455_v18, 5  ;;  %v832_v20 = vsel %vm10100_vm12, %v824_v11, %v831_v19  ;;  %v1021_v30 = vsel %vm10094_vm11, %v823_v10, %v1020_v21  ;;  %v1024_v31 = vld [vmem:[#allocation2 + $0xa4] sm:$0x1]  ;;  %v450_v39 = vld [vmem:[#allocation2 + $0xb4] sm:$0x1] }
  0x89   : > { %v1450_v33 = vsel %vm10113_vm13, %v1445_v23, %v1449_v24  ;;  %v1463_v36 = vrot.slane %v1461_v25, 5  ;;  %v1467_v37 = vrot.slane %v1465_v27, 4  ;;  %1022 = vst [vmem:[#allocation2 + $0x9c] sm:$0xf] %v1021_v30  ;;  %1023 = vst.msk [vmem:[#allocation2 + $0xa0] sm:$0xf] %vm393_vm0, %v832_v20 }
  0x8a   : > { %v833_v38 = vrot.slane %v828_v12, 4  ;;  %1593 = vrot.lane.b32.xlu1 %v1450_v33, %s9950_s19  ;;  %v1458_v40 = vor.u32 %v1457_v29, %v1454_v28  ;;  %v837_v59 = vrot.slane %v835_v17, 7  ;;  %v838_v41 = vshll.u32 %v9628_v3, 16  ;;  %v1027_v43 = vld [vmem:[#allocation2 + $0xa8] sm:$0xf] }
  0x8b   : > { %v843_v42 = vshrl.u32 %v10398_v7, 16  ;;  %v390_v44 = vld [vmem:[%s10069_s18 + $0xe8] sm:$0xff]  ;;  %v1468_v50 = vor.u32 %v1467_v37, %v1463_v36  ;;  %v846_v51 = vshll.u32 %v10398_v7, 16  ;;  %v504_v60 = vsel %vm10035_vm5, 0, %v503_v32  ;;  %v506_v0 = vld [vmem:[#allocation2 + $0xbc] sm:$0x1] }
  0x8c   : > { %v1025_v34 = vsel %vm10027_vm3, %v833_v38, %v1024_v31  ;;  %v1060_v52 = vld [vmem:[#allocation2 + $0x48] sm:$0xf]  ;;  %v1061_v47 = vld [vmem:[#allocation2 + $0x4c] sm:$0xf]  ;;  %v1459_v53 = vrot.slane %v1458_v40, 4  ;;  %v840_v56 = vor.u32 %v838_v41, %v837_v59  ;;  %v841_v57 = vrot.slane %v837_v59, 4 }
  0x8d   : > { %v1150_v54 = vld [vmem:[#allocation2 + $0x98] sm:$0x1]  ;;  %1026 = vst [vmem:[#allocation2 + $0xa4] sm:$0x1] %v1025_v34  ;;  %v845_v58 = vrot.slane %v843_v42, 7  ;;  %v1469_v61 = vrot.slane %v1468_v50, 4  ;;  %v9631_v3 = vpack.c.bf16 %v390_v44, %v390_v44 }
  0x8e   : > { %505 = vst [vmem:[#allocation2 + $0xb0] sm:$0x1] %v504_v60  ;;  %1092 = vst.msk [vmem:[#allocation4 + $0x30] sm:$0xf] %vm393_vm0, %v1060_v52  ;;  %v1471_v62 = vshll.u32 %v1150_v54, 16  ;;  %v451_v63 = vsel %vm10027_vm3, 0, %v450_v39  ;;  %v1464_v26 = vsel %vm10113_vm13, %v1459_v53, %v1463_v36  ;;  %v1028_v5 = vsel %vm10094_vm11, %v840_v56, %v1027_v43 }
  0x8f   : > { %1093 = vst.msk [vmem:[#allocation4 + $0x34] sm:$0xf] %vm393_vm0, %v1061_v47  ;;  %v848_v4 = vor.u32 %v846_v51, %v845_v58  ;;  %v850_v6 = vrot.slane %v845_v58, 4  ;;  %452 = vst [vmem:[#allocation2 + $0xb4] sm:$0x1] %v451_v63  ;;  %1595 = vrot.lane.b32.xlu0 %v1464_v26, %s9950_s19  ;;  %v852_v8 = vshrl.u32 %v10407_v22, 16 }
  0x90   : > { %v1473_v7 = vrot.slane %v1471_v62, 5  ;;  %1029 = vst [vmem:[#allocation2 + $0xa8] sm:$0xf] %v1028_v5  ;;  %v855_v45 = vshll.u32 %v10407_v22, 16  ;;  %v860_v9 = vshrl.u32 %v9631_v3, 16  ;;  %v863_v35 = vshll.u32 %v9631_v3, 16 }
  0x91   : > { %v1062_v10 = vld [vmem:[#allocation2 + $0x54] sm:$0xf]  ;;  %v1151_v11 = vld [vmem:[#allocation2 + $0x9c] sm:$0xf]  ;;  %v1152_v12 = vld [vmem:[#allocation2 + $0xa0] sm:$0xf]  ;;  %v849_v14 = vsel %vm10100_vm12, %v841_v57, %v848_v4 }
  0x92   : > { %v507_v15 = vsel %vm10035_vm5, 0, %v506_v0  ;;  %1094 = vst.msk [vmem:[#allocation4 + $0x38] sm:$0xf] %vm393_vm0, %v1062_v10  ;;  %v1474_v16 = vsel %vm10113_vm13, %v1469_v61, %v1473_v7  ;;  %v1476_v17 = vshrl.u32 %v1151_v11, 16  ;;  %v1479_v46 = vshll.u32 %v1151_v11, 16 }
  0x93   : > { %v1485_v49 = vshll.u32 %v1152_v12, 16  ;;  %1030 = vst.msk [vmem:[#allocation2 + $0xac] sm:$0xf] %vm393_vm0, %v849_v14  ;;  %508 = vst [vmem:[#allocation2 + $0xbc] sm:$0x1] %v507_v15  ;;  %1597 = vrot.lane.b32.xlu1 %v1474_v16, %s9950_s19  ;;  %v1489_v18 = vshrl.u32 %v1152_v12, 16 }
  0x94   : > { %v854_v19 = vrot.slane %v852_v8, 7  ;;  %v862_v21 = vrot.slane %v860_v9, 7  ;;  %v1478_v22 = vrot.slane %v1476_v17, 4  ;;  %v1481_v23 = vrot.slane %v1479_v46, 5  ;;  %v1153_v25 = vld [vmem:[#allocation2 + $0xa4] sm:$0x1] }
  0x95   : > { %v1487_v24 = vrot.slane %v1485_v49, 5  ;;  %v1491_v27 = vrot.slane %v1489_v18, 4  ;;  %v1495_v28 = vshll.u32 %v1153_v25, 16  ;;  %v1031_v29 = vld [vmem:[#allocation2 + $0xb0] sm:$0x1]  ;;  %vm1772_vm14 = vcmask 1042432  }
  0x96   : > { %v857_v20 = vor.u32 %v855_v45, %v854_v19  ;;  %v858_v30 = vrot.slane %v854_v19, 4  ;;  %v1482_v31 = vor.u32 %v1481_v23, %v1478_v22  ;;  %v1032_v32 = vsel %vm10027_vm3, %v850_v6, %v1031_v29  ;;  %v1034_v36 = vld [vmem:[#allocation2 + $0xb4] sm:$0xf]  ;;  %v1063_v50 = vld [vmem:[#allocation2 + $0x58] sm:$0xf] }
  0x97   : > { %v865_v33 = vor.u32 %v863_v35, %v862_v21  ;;  %v1492_v37 = vor.u32 %v1491_v27, %v1487_v24  ;;  %v1497_v38 = vrot.slane %v1495_v28, 5  ;;  %v1154_v39 = vld [vmem:[#allocation2 + $0xa8] sm:$0xf]  ;;  %1033 = vst [vmem:[#allocation2 + $0xb0] sm:$0x1] %v1032_v32  ;;  %v867_v59 = vrot.slane %v862_v21, 4 }
  0x98   : > { %v1035_v40 = vsel %vm10094_vm11, %v857_v20, %v1034_v36  ;;  %v1483_v41 = vrot.slane %v1482_v31, 4  ;;  %v1500_v42 = vshrl.u32 %v1154_v39, 16  ;;  %v1503_v43 = vshll.u32 %v1154_v39, 16  ;;  %1095 = vst.msk [vmem:[#allocation4 + $0x3c] sm:$0xf] %vm393_vm0, %v1063_v50 }
  0x99   : > { %v866_v44 = vsel %vm10100_vm12, %v858_v30, %v865_v33  ;;  %1036 = vst [vmem:[#allocation2 + $0xb4] sm:$0xf] %v1035_v40  ;;  %v1493_v34 = vrot.slane %v1492_v37, 4  ;;  %v1064_v63 = vld [vmem:[#allocation2 + $0x60] sm:$0xf]  ;;  %vm1773_vm15 = vcmask 1046532  }
  0x9a   : > { %v1155_v51 = vld [vmem:[#allocation2 + $0xac] sm:$0xf]  ;;  %1037 = vst.msk [vmem:[#allocation2 + $0xb8] sm:$0xf] %vm393_vm0, %v866_v44  ;;  %v1038_v60 = vld [vmem:[#allocation2 + $0xbc] sm:$0x1]  ;;  %v1488_v52 = vsel %vm10113_vm13, %v1483_v41, %v1487_v24  ;;  %v10468_v32 = vpop.permute.xlu0 %1549  ;;  %vm10471_vm1 = vmor %vm1772_vm14, %vm1773_vm15 }
  0x9b   : > { %v1502_v47 = vrot.slane %v1500_v42, 4  ;;  %v1505_v53 = vrot.slane %v1503_v43, 5  ;;  %v1509_v54 = vshll.u32 %v1155_v51, 16  ;;  %1599 = vrot.lane.b32.xlu0 %v1488_v52, %s9950_s19  ;;  %v1498_v56 = vsel %vm10113_vm13, %v1493_v34, %v1497_v38  ;;  %1096 = vst.msk [vmem:[#allocation4 + $0x40] sm:$0xf] %vm393_vm0, %v1064_v63 }
  0x9c   : > { %v1513_v57 = vshrl.u32 %v1155_v51, 16  ;;  %v1039_v58 = vsel %vm10027_vm3, %v867_v59, %v1038_v60  ;;  %1601 = vrot.lane.b32.xlu1 %v1498_v56, %s9950_s19  ;;  %v1065_v0 = vld [vmem:[#allocation2 + $0x64] sm:$0xf]  ;;  %v1676_v46 = vld [vmem:[#allocation2] sm:$0xe]  ;;  %vm1643_vm8 = vcmask 60448  }
  0x9d   : > { %v1506_v61 = vor.u32 %v1505_v53, %v1502_v47  ;;  %v1511_v62 = vrot.slane %v1509_v54, 5  ;;  %1040 = vst [vmem:[#allocation2 + $0xbc] sm:$0x1] %v1039_v58  ;;  %1097 = vst.msk [vmem:[#allocation4 + $0x44] sm:$0xf] %vm393_vm0, %v1065_v0  ;;  %v9376_v31 = vrot.slane %v1676_v46, 9 }
  0x9e   : > { %v1515_v3 = vrot.slane %v1513_v57, 4  ;;  %v1156_v4 = vld [vmem:[#allocation2 + $0xb0] sm:$0x1]  ;;  %v1677_v11 = vld [vmem:[#allocation2 + $0x4] sm:$0xf]  ;;  %vm2176_vm9 = vcmask 126048  }
  0x9f   : > { %v1507_v26 = vrot.slane %v1506_v61, 4  ;;  %v1519_v6 = vshll.u32 %v1156_v4, 16  ;;  %v1678_v49 = vld [vmem:[#allocation2 + $0x8] sm:$0x1]  ;;  %v1777_v23 = vrot.slane %v1677_v11, 5  ;;  %vm4380_vm2 = vcmask 1041408  }
  0xa0   : > { %v1516_v5 = vor.u32 %v1515_v3, %v1511_v62  ;;  %v1157_v7 = vld [vmem:[#allocation2 + $0xb4] sm:$0xf]  ;;  %v1680_v27 = vld [vmem:[#allocation2 + $0x10] sm:$0xf]  ;;  %v1066_v29 = vld [vmem:[#allocation2 + $0x6c] sm:$0xf] }
  0xa1   : > { %v1512_v8 = vsel %vm10113_vm13, %v1507_v26, %v1511_v62  ;;  %v1158_v45 = vld [vmem:[#allocation2 + $0xb8] sm:$0xf]  ;;  %v1524_v9 = vshrl.u32 %v1157_v7, 16  ;;  %v1527_v10 = vshll.u32 %v1157_v7, 16  ;;  %v1521_v14 = vrot.slane %v1519_v6, 5  ;;  %v1548_v62 = vpop.permute.xlu0 %1547 }
  0xa2   : > { %1603 = vrot.lane.b32.xlu0 %v1512_v8, %s9950_s19  ;;  %v1517_v12 = vrot.slane %v1516_v5, 4  ;;  %v1533_v35 = vshll.u32 %v1158_v45, 16  ;;  %v1537_v15 = vshrl.u32 %v1158_v45, 16  ;;  %1098 = vst.msk [vmem:[#allocation4 + $0x48] sm:$0xf] %vm393_vm0, %v1066_v29  ;;  %v1779_v38 = vrot.slane %v1777_v23, 4 }
  0xa3   : > { %v1526_v16 = vrot.slane %v1524_v9, 4  ;;  %v1529_v17 = vrot.slane %v1527_v10, 5  ;;  %v1067_v33 = vld [vmem:[#allocation2 + $0x70] sm:$0xf]  ;;  %v1780_v39 = vrot.slane %v1678_v49, 5  ;;  %v1784_v59 = vrot.slane %v1680_v27, 5 }
  0xa4   : > { %v1522_v18 = vsel %vm10113_vm13, %v1517_v12, %v1521_v14  ;;  %v1535_v19 = vrot.slane %v1533_v35, 5  ;;  %v1159_v21 = vld [vmem:[#allocation2 + $0xbc] sm:$0x1]  ;;  %v1539_v22 = vrot.slane %v1537_v15, 4  ;;  %v1679_v40 = vld [vmem:[#allocation2 + $0xc] sm:$0xe]  ;;  %v1778_v51 = vsel %vm10471_vm1, %v9376_v31, %v1777_v23 }
  0xa5   : > { %1605 = vrot.lane.b32.xlu1 %v1522_v18, %s9950_s19  ;;  %v1530_v24 = vor.u32 %v1529_v17, %v1526_v16  ;;  %v1543_v25 = vshll.u32 %v1159_v21, 16  ;;  %1099 = vst.msk [vmem:[#allocation4 + $0x4c] sm:$0xf] %vm393_vm0, %v1067_v33  ;;  %v1681_v42 = vld [vmem:[#allocation2 + $0x14] sm:$0x1]  ;;  %v9377_v60 = vrot.slane %v1679_v40, 9  ;;  %v1781_v47 = vsel %vm10471_vm1, %v1779_v38, %v1780_v39 }
  0xa6   : > { %v1540_v28 = vor.u32 %v1539_v22, %v1535_v19  ;;  %v1683_v43 = vld [vmem:[#allocation2 + $0x1c] sm:$0xf]  ;;  %v1068_v44 = vld [vmem:[#allocation2 + $0x78] sm:$0xf]  ;;  %v1786_v53 = vrot.slane %v1784_v59, 4  ;;  %v1787_v54 = vrot.slane %v1681_v42, 5  ;;  %v1552_v4 = vpop.permute.xlu1 %1551 }
  0xa7   : > { %v1531_v20 = vrot.slane %v1530_v24, 4  ;;  %v1545_v30 = vrot.slane %v1543_v25, 5  ;;  %1100 = vst.msk [vmem:[#allocation4 + $0x50] sm:$0xf] %vm393_vm0, %v1068_v44  ;;  %v1069_v34 = vld [vmem:[#allocation2 + $0x7c] sm:$0xf]  ;;  %v1785_v3 = vsel %vm10471_vm1, %v9377_v60, %v1784_v59 }
  0xa8   : > { %v1541_v36 = vrot.slane %v1540_v28, 4  ;;  %v1682_v52 = vld [vmem:[#allocation2 + $0x18] sm:$0xe]  ;;  %1101 = vst.msk [vmem:[#allocation4 + $0x54] sm:$0xf] %vm393_vm0, %v1069_v34  ;;  %v1791_v56 = vrot.slane %v1683_v43, 5  ;;  %v1788_v6 = vsel %vm10471_vm1, %v1786_v53, %v1787_v54 }
  0xa9   : > { %v1536_v41 = vsel %vm10113_vm13, %v1531_v20, %v1535_v19  ;;  %v1070_v57 = vld [vmem:[#allocation2 + $0x84] sm:$0xf]  ;;  %v1684_v58 = vld [vmem:[#allocation2 + $0x20] sm:$0x1]  ;;  %v1686_v61 = vld [vmem:[#allocation2 + $0x28] sm:$0xf] }
  0xaa   : > { %1607 = vrot.lane.b32.xlu0 %v1536_v41, %s9950_s19  ;;  %v1546_v50 = vsel %vm10113_vm13, %v1541_v36, %v1545_v30  ;;  %1102 = vst.msk [vmem:[#allocation4 + $0x58] sm:$0xf] %vm393_vm0, %v1070_v57  ;;  %v1071_v63 = vld [vmem:[#allocation2 + $0x88] sm:$0xf]  ;;  %v9378_v0 = vrot.slane %v1682_v52, 9  ;;  %v1793_v7 = vrot.slane %v1791_v56, 4  ;;  %v1554_v16 = vpop.permute.xlu1 %1553  ;;  %v1556_v17 = vpop.permute.xlu0 %1555 }
  0xab   : > { %1609 = vrot.lane.b32.xlu1 %v1546_v50, %s9950_s19  ;;  %1103 = vst.msk [vmem:[#allocation4 + $0x5c] sm:$0xf] %vm393_vm0, %v1071_v63  ;;  %v1685_v26 = vld [vmem:[#allocation2 + $0x24] sm:$0xe]  ;;  %v1072_v5 = vld [vmem:[#allocation2 + $0x90] sm:$0xf] }
  0xac   : > { %v1794_v8 = vrot.slane %v1684_v58, 5  ;;  %v1798_v45 = vrot.slane %v1686_v61, 5  ;;  %1104 = vst.msk [vmem:[#allocation4 + $0x60] sm:$0xf] %vm393_vm0, %v1072_v5  ;;  %v1073_v9 = vld [vmem:[#allocation2 + $0x94] sm:$0xf]  ;;  %v1792_v14 = vsel %vm10471_vm1, %v9378_v0, %v1791_v56 }
  0xad   : > { %v1687_v10 = vld [vmem:[#allocation2 + $0x2c] sm:$0x1]  ;;  %v1689_v11 = vld [vmem:[#allocation2 + $0x34] sm:$0xf]  ;;  %1105 = vst.msk [vmem:[#allocation4 + $0x64] sm:$0xf] %vm393_vm0, %v1073_v9 }
  0xae   : > { %1887 = vrot.lane.b32.xlu0 %v1778_v51, %s9951_s20  ;;  %v1074_v12 = vld [vmem:[#allocation2 + $0x9c] sm:$0xf]  ;;  %v9379_v35 = vrot.slane %v1685_v26, 9  ;;  %v1688_v15 = vld [vmem:[#allocation2 + $0x30] sm:$0xe]  ;;  %v1795_v49 = vsel %vm10471_vm1, %v1793_v7, %v1794_v8  ;;  %v1800_v18 = vrot.slane %v1798_v45, 4  ;;  %v1558_v31 = vpop.permute.xlu1 %1557 }
  0xaf   : > { %1889 = vrot.lane.b32.xlu1 %v1781_v47, %s9951_s20  ;;  %1106 = vst.msk [vmem:[#allocation4 + $0x68] sm:$0xf] %vm393_vm0, %v1074_v12  ;;  %v1075_v46 = vld [vmem:[#allocation2 + $0xa0] sm:$0xf]  ;;  %v1801_v19 = vrot.slane %v1687_v10, 5  ;;  %v1805_v21 = vrot.slane %v1689_v11, 5 }
  0xb0   : > { %v1692_v22 = vld [vmem:[#allocation2 + $0x40] sm:$0xf]  ;;  %1107 = vst.msk [vmem:[#allocation4 + $0x6c] sm:$0xf] %vm393_vm0, %v1075_v46  ;;  %v1690_v23 = vld [vmem:[#allocation2 + $0x38] sm:$0x1]  ;;  %v1799_v28 = vsel %vm10471_vm1, %v9379_v35, %v1798_v45 }
  0xb1   : > { %v1076_v24 = vld [vmem:[#allocation2 + $0xa8] sm:$0xf]  ;;  %v391_v25 = vld [vmem:[%s10069_s18 + $0xf0] sm:$0xff]  ;;  %1645 = vst.msk [vmem:[#allocation4 + $0x4] sm:$0xf] %vm1643_vm8, %v10468_v32  ;;  %v9380_v29 = vrot.slane %v1688_v15, 9  ;;  %v1560_v32 = vpop.permute.xlu0 %1559  ;;  %v1802_v36 = vsel %vm10471_vm1, %v1800_v18, %v1801_v19 }
  0xb2   : > { %1891 = vrot.lane.b32.xlu0 %v1785_v3, %s9951_s20  ;;  %1646 = vst.msk [vmem:[#allocation4 + $0x8] sm:$0xf] %vm1643_vm8, %v1552_v4  ;;  %1644 = vst.msk [vmem:[#allocation4] sm:$0xf] %vm1643_vm8, %v1548_v62  ;;  %v1077_v27 = vld [vmem:[#allocation2 + $0xac] sm:$0xf]  ;;  %v9632_v41 = vpack.c.bf16 %v391_v25, %v391_v25  ;;  %v1562_v54 = vpop.permute.xlu1 %1561 }
  0xb3   : > { %1893 = vrot.lane.b32.xlu1 %v1788_v6, %s9951_s20  ;;  %1647 = vst.msk [vmem:[#allocation4 + $0xc] sm:$0xf] %vm1643_vm8, %v1554_v16  ;;  %1648 = vst.msk [vmem:[#allocation4 + $0x10] sm:$0xf] %vm1643_vm8, %v1556_v17  ;;  %v1691_v20 = vld [vmem:[#allocation2 + $0x3c] sm:$0xe]  ;;  %v1806_v51 = vsel %vm10471_vm1, %v9380_v29, %v1805_v21 }
  0xb4   : > { %1108 = vst.msk [vmem:[#allocation4 + $0x70] sm:$0xf] %vm393_vm0, %v1076_v24  ;;  %v1812_v30 = vrot.slane %v1692_v22, 5  ;;  %1109 = vst.msk [vmem:[#allocation4 + $0x74] sm:$0xf] %vm393_vm0, %v1077_v27  ;;  %v392_v33 = vld [vmem:[%s10069_s18 + $0xf8] sm:$0xff] }
  0xb5   : > { %v1807_v38 = vrot.slane %v1805_v21, 4  ;;  %v1808_v39 = vrot.slane %v1690_v23, 5  ;;  %v1693_v40 = vld [vmem:[#allocation2 + $0x44] sm:$0x1]  ;;  %1649 = vst.msk [vmem:[#allocation4 + $0x14] sm:$0xf] %vm1643_vm8, %v1558_v31  ;;  %v9633_v34 = vpack.c.bf16 %v392_v33, %v392_v33 }
  0xb6   : > { %1895 = vrot.lane.b32.xlu0 %v1792_v14, %s9951_s20  ;;  %1650 = vst.msk [vmem:[#allocation4 + $0x18] sm:$0xf] %vm1643_vm8, %v1560_v32  ;;  %v1078_v59 = vld [vmem:[#allocation2 + $0xb4] sm:$0xf]  ;;  %v1695_v42 = vld [vmem:[#allocation2 + $0x4c] sm:$0xf] }
  0xb7   : > { %1897 = vrot.lane.b32.xlu1 %v1795_v49, %s9951_s20  ;;  %1110 = vst.msk [vmem:[#allocation4 + $0x78] sm:$0xf] %vm393_vm0, %v1078_v59  ;;  %v1079_v43 = vld [vmem:[#allocation2 + $0xb8] sm:$0xf]  ;;  %v1694_v44 = vld [vmem:[#allocation2 + $0x48] sm:$0xe]  ;;  %v1809_v56 = vsel %vm10471_vm1, %v1807_v38, %v1808_v39 }
  0xb8   : > { %v1696_v50 = vld [vmem:[#allocation2 + $0x50] sm:$0x1]  ;;  %1111 = vst.msk [vmem:[#allocation4 + $0x7c] sm:$0xf] %vm393_vm0, %v1079_v43  ;;  %v9381_v60 = vrot.slane %v1691_v20, 9  ;;  %v1814_v52 = vrot.slane %v1812_v30, 4 }
  0xb9   : > { %v1815_v47 = vrot.slane %v1693_v40, 5  ;;  %v1698_v53 = vld [vmem:[#allocation2 + $0x58] sm:$0xf]  ;;  %v1819_v57 = vrot.slane %v1695_v42, 5  ;;  %1651 = vst.msk [vmem:[#allocation4 + $0x1c] sm:$0xf] %vm1643_vm8, %v1562_v54 }
  0xba   : > { %1899 = vrot.lane.b32.xlu0 %v1799_v28, %s9951_s20  ;;  %v453_v58 = vld [vmem:[#allocation2 + $0xc0] sm:$0x1]  ;;  %v869_v61 = vshrl.u32 %v9632_v41, 16  ;;  %v877_v62 = vshrl.u32 %v9633_v34, 16  ;;  %v880_v3 = vshll.u32 %v9633_v34, 16  ;;  %v872_v26 = vshll.u32 %v9632_v41, 16 }
  0xbb   : > { %1901 = vrot.lane.b32.xlu1 %v1802_v36, %s9951_s20  ;;  %v454_v63 = vsel %vm10027_vm3, 0, %v453_v58  ;;  %v1813_v5 = vsel %vm10471_vm1, %v9381_v60, %v1812_v30  ;;  %v9382_v6 = vrot.slane %v1694_v44, 9  ;;  %v1822_v7 = vrot.slane %v1696_v50, 5  ;;  %v1697_v10 = vld [vmem:[#allocation2 + $0x54] sm:$0xe] }
  0xbc   : > { %455 = vst [vmem:[#allocation2 + $0xc0] sm:$0x1] %v454_v63  ;;  %v871_v0 = vrot.slane %v869_v61, 7  ;;  %v10536_v4 = vrot.slane %v877_v62, 7  ;;  %v1826_v8 = vrot.slane %v1698_v53, 5  ;;  %v1816_v45 = vsel %vm10471_vm1, %v1814_v52, %v1815_v47 }
  0xbd   : > { %v1821_v9 = vrot.slane %v1819_v57, 4  ;;  %v1699_v14 = vld [vmem:[#allocation2 + $0x5c] sm:$0x1]  ;;  %v1701_v35 = vld [vmem:[#allocation2 + $0x64] sm:$0xf]  ;;  %v1820_v17 = vsel %vm10471_vm1, %v9382_v6, %v1819_v57  ;;  %v9383_v46 = vrot.slane %v1697_v10, 9  ;;  %v1564_v25 = vpop.permute.xlu0 %1563 }
  0xbe   : > { %1903 = vrot.lane.b32.xlu0 %v1806_v51, %s9951_s20  ;;  %v875_v11 = vrot.slane %v871_v0, 4  ;;  %v882_v12 = vor.u32 %v880_v3, %v10536_v4  ;;  %v874_v15 = vor.u32 %v872_v26, %v871_v0  ;;  %v1828_v18 = vrot.slane %v1826_v8, 4  ;;  %v1700_v21 = vld [vmem:[#allocation2 + $0x60] sm:$0xe]  ;;  %v1702_v23 = vld [vmem:[#allocation2 + $0x68] sm:$0x1] }
  0xbf   : > { %1905 = vrot.lane.b32.xlu1 %v1809_v56, %s9951_s20  ;;  %v1823_v49 = vsel %vm10471_vm1, %v1821_v9, %v1822_v7  ;;  %v1829_v19 = vrot.slane %v1699_v14, 5  ;;  %v1833_v22 = vrot.slane %v1701_v35, 5  ;;  %v1704_v24 = vld [vmem:[#allocation2 + $0x70] sm:$0xf]  ;;  %1652 = vst.msk [vmem:[#allocation4 + $0x20] sm:$0xf] %vm1643_vm8, %v1564_v25  ;;  %v1827_v29 = vsel %vm10471_vm1, %v9383_v46, %v1826_v8 }
  0xc0   : > { %v883_v16 = vsel %vm10100_vm12, %v875_v11, %v882_v12  ;;  %v9384_v20 = vrot.slane %v1700_v21, 9  ;;  %v1836_v32 = vrot.slane %v1702_v23, 5  ;;  %v1703_v33 = vld [vmem:[#allocation2 + $0x6c] sm:$0xe]  ;;  %v1840_v36 = vrot.slane %v1704_v24, 5 }
  0xc1   : > { %1044 = vst.msk [vmem:[#allocation2 + $0xc4] sm:$0xf] %vm393_vm0, %v883_v16  ;;  %v1830_v30 = vsel %vm10471_vm1, %v1828_v18, %v1829_v19  ;;  %v1835_v31 = vrot.slane %v1833_v22, 4  ;;  %v1705_v38 = vld [vmem:[#allocation2 + $0x74] sm:$0x1]  ;;  %v1566_v40 = vpop.permute.xlu1 %1565  ;;  %v9385_v59 = vrot.slane %v1703_v33, 9 }
  0xc2   : > { %1907 = vrot.lane.b32.xlu0 %v1813_v5, %s9951_s20  ;;  %v1707_v39 = vld [vmem:[#allocation2 + $0x7c] sm:$0xf]  ;;  %1653 = vst.msk [vmem:[#allocation4 + $0x24] sm:$0xf] %vm1643_vm8, %v1566_v40  ;;  %v1834_v48 = vsel %vm10471_vm1, %v9384_v20, %v1833_v22  ;;  %v1842_v42 = vrot.slane %v1840_v36, 4  ;;  %v1843_v43 = vrot.slane %v1705_v38, 5 }
  0xc3   : > { %1909 = vrot.lane.b32.xlu1 %v1816_v45, %s9951_s20  ;;  %v1041_v27 = vld [vmem:[#allocation2 + $0xc0] sm:$0xf]  ;;  %v1837_v41 = vsel %vm10471_vm1, %v1835_v31, %v1836_v32  ;;  %v1706_v44 = vld [vmem:[#allocation2 + $0x78] sm:$0xe]  ;;  %v1847_v50 = vrot.slane %v1707_v39, 5  ;;  %v1841_v47 = vsel %vm10471_vm1, %v9385_v59, %v1840_v36  ;;  %vm1983_vm0 = vcmask 93248  }
  0xc4   : > { %v1042_v28 = vsel %vm10094_vm11, %v874_v15, %v1041_v27  ;;  %v1568_v34 = vpop.permute.xlu0 %1567  ;;  %v1708_v51 = vld [vmem:[#allocation2 + $0x80] sm:$0x1]  ;;  %v1710_v60 = vld [vmem:[#allocation2 + $0x88] sm:$0xf]  ;;  %v9386_v53 = vrot.slane %v1706_v44, 9  ;;  %v1844_v54 = vsel %vm10471_vm1, %v1842_v42, %v1843_v43  ;;  %vm3268_vm11 = vcmask 224448  }
  0xc5   : > { %1043 = vst [vmem:[#allocation2 + $0xc0] sm:$0xf] %v1042_v28  ;;  %1654 = vst.msk [vmem:[#allocation4 + $0x28] sm:$0xf] %vm1643_vm8, %v1568_v34  ;;  %v1570_v52 = vpop.permute.xlu1 %1569  ;;  %v1849_v56 = vrot.slane %v1847_v50, 4  ;;  %v1850_v57 = vrot.slane %v1708_v51, 5 }
  0xc6   : > { %1911 = vrot.lane.b32.xlu0 %v1820_v17, %s9951_s20  ;;  %1655 = vst.msk [vmem:[#allocation4 + $0x2c] sm:$0xf] %vm1643_vm8, %v1570_v52  ;;  %v1709_v58 = vld [vmem:[#allocation2 + $0x84] sm:$0xe]  ;;  %v1854_v61 = vrot.slane %v1710_v60, 5  ;;  %v1848_v0 = vsel %vm10471_vm1, %v9386_v53, %v1847_v50  ;;  %vm3829_vm14 = vcmask 257248  }
  0xc7   : > { %1913 = vrot.lane.b32.xlu1 %v1823_v49, %s9951_s20  ;;  %v1711_v62 = vld [vmem:[#allocation2 + $0x8c] sm:$0x1]  ;;  %v1713_v63 = vld [vmem:[#allocation2 + $0x94] sm:$0xf]  ;;  %v9387_v26 = vrot.slane %v1709_v58, 9  ;;  %v1851_v6 = vsel %vm10471_vm1, %v1849_v56, %v1850_v57  ;;  %vm4166_vm15 = vcmask 290048  }
  0xc8   : > { %v1856_v7 = vrot.slane %v1854_v61, 4  ;;  %v1857_v8 = vrot.slane %v1711_v62, 5  ;;  %v1712_v45 = vld [vmem:[#allocation2 + $0x90] sm:$0xe]  ;;  %v1861_v9 = vrot.slane %v1713_v63, 5 }
  0xc9   : > { %v1714_v10 = vld [vmem:[#allocation2 + $0x98] sm:$0x1]  ;;  %v1716_v11 = vld [vmem:[#allocation2 + $0xa0] sm:$0xf]  ;;  %v1855_v12 = vsel %vm10471_vm1, %v9387_v26, %v1854_v61  ;;  %v9388_v14 = vrot.slane %v1712_v45, 9 }
  0xca   : > { %1915 = vrot.lane.b32.xlu0 %v1827_v29, %s9951_s20  ;;  %v1572_v3 = vpop.permute.xlu0 %1571  ;;  %v1858_v35 = vsel %vm10471_vm1, %v1856_v7, %v1857_v8  ;;  %v1863_v15 = vrot.slane %v1861_v9, 4  ;;  %v1864_v16 = vrot.slane %v1714_v10, 5  ;;  %v1715_v17 = vld [vmem:[#allocation2 + $0x9c] sm:$0xe]  ;;  %v1868_v46 = vrot.slane %v1716_v11, 5 }
  0xcb   : > { %1917 = vrot.lane.b32.xlu1 %v1830_v30, %s9951_s20  ;;  %1656 = vst.msk [vmem:[#allocation4 + $0x30] sm:$0xf] %vm1643_vm8, %v1572_v3  ;;  %v1574_v5 = vpop.permute.xlu1 %1573  ;;  %v1717_v49 = vld [vmem:[#allocation2 + $0xa4] sm:$0x1]  ;;  %v1719_v18 = vld [vmem:[#allocation2 + $0xac] sm:$0xf]  ;;  %v1862_v21 = vsel %vm10471_vm1, %v9388_v14, %v1861_v9 }
  0xcc   : > { %1657 = vst.msk [vmem:[#allocation4 + $0x34] sm:$0xf] %vm1643_vm8, %v1574_v5  ;;  %v9389_v22 = vrot.slane %v1715_v17, 9  ;;  %v1865_v23 = vsel %vm10471_vm1, %v1863_v15, %v1864_v16  ;;  %v1870_v24 = vrot.slane %v1868_v46, 4  ;;  %v1871_v25 = vrot.slane %v1717_v49, 5 }
  0xcd   : > { %v1718_v27 = vld [vmem:[#allocation2 + $0xa8] sm:$0xe]  ;;  %v1875_v28 = vrot.slane %v1719_v18, 5  ;;  %v1720_v29 = vld [vmem:[#allocation2 + $0xb0] sm:$0x1]  ;;  %v884_v11 = vrot.slane %v10536_v4, 4 }
  0xce   : > { %1919 = vrot.lane.b32.xlu0 %v1834_v48, %s9951_s20  ;;  %v1722_v20 = vld [vmem:[#allocation2 + $0xb8] sm:$0xf]  ;;  %v1869_v31 = vsel %vm10471_vm1, %v9389_v22, %v1868_v46  ;;  %v9390_v32 = vrot.slane %v1718_v27, 9  ;;  %v1872_v33 = vsel %vm10471_vm1, %v1870_v24, %v1871_v25  ;;  %v1878_v38 = vrot.slane %v1720_v29, 5  ;;  %v1721_v39 = vld [vmem:[#allocation2 + $0xb4] sm:$0xe] }
  0xcf   : > { %1921 = vrot.lane.b32.xlu1 %v1837_v41, %s9951_s20  ;;  %v1877_v36 = vrot.slane %v1875_v28, 4  ;;  %v1882_v40 = vrot.slane %v1722_v20, 5  ;;  %v1723_v48 = vld [vmem:[#allocation2 + $0xbc] sm:$0x1]  ;;  %v9391_v41 = vrot.slane %v1721_v39, 9 }
  0xd0   : > { %v1876_v59 = vsel %vm10471_vm1, %v9390_v32, %v1875_v28  ;;  %v1885_v50 = vrot.slane %v1723_v48, 5  ;;  %v2016_v52 = vld [vmem:[#allocation2 + $0xc] sm:$0xf]  ;;  %v2018_v56 = vld [vmem:[#allocation2 + $0x18] sm:$0xf] }
  0xd1   : > { %v1879_v43 = vsel %vm10471_vm1, %v1877_v36, %v1878_v38  ;;  %v1884_v44 = vrot.slane %v1882_v40, 4  ;;  %v1883_v51 = vsel %vm10471_vm1, %v9391_v41, %v1882_v40  ;;  %v2019_v57 = vld [vmem:[#allocation2 + $0x1c] sm:$0xf]  ;;  %v2020_v58 = vld [vmem:[#allocation2 + $0x24] sm:$0xf] }
  0xd2   : > { %1923 = vrot.lane.b32.xlu0 %v1841_v47, %s9951_s20  ;;  %v2017_v47 = vld [vmem:[#allocation2 + $0x10] sm:$0xf]  ;;  %v2021_v62 = vld [vmem:[#allocation2 + $0x28] sm:$0xf]  ;;  %v2025_v7 = vld [vmem:[#allocation2 + $0x40] sm:$0xf] }
  0xd3   : > { %1925 = vrot.lane.b32.xlu1 %v1844_v54, %s9951_s20  ;;  %v1576_v19 = vpop.permute.xlu0 %1575  ;;  %v1886_v60 = vsel %vm10471_vm1, %v1884_v44, %v1885_v50  ;;  %v2022_v3 = vld [vmem:[#allocation2 + $0x30] sm:$0xf]  ;;  %v509_v5 = vld [vmem:[#allocation2 + $0xc8] sm:$0x1]  ;;  %v2027_v10 = vld [vmem:[#allocation2 + $0x4c] sm:$0xf] }
  0xd4   : > { %1658 = vst.msk [vmem:[#allocation4 + $0x38] sm:$0xf] %vm1643_vm8, %v1576_v19  ;;  %v510_v8 = vsel %vm10035_vm5, 0, %v509_v5  ;;  %v2026_v9 = vld [vmem:[#allocation2 + $0x48] sm:$0xf] }
  0xd5   : > { %511 = vst [vmem:[#allocation2 + $0xc8] sm:$0x1] %v510_v8  ;;  %v2030_v46 = vld [vmem:[#allocation2 + $0x60] sm:$0xf]  ;;  %v2031_v4 = vld [vmem:[#allocation2 + $0x64] sm:$0xf] }
  0xd6   : > { %1927 = vrot.lane.b32.xlu0 %v1848_v0, %s9951_s20  ;;  %v2023_v0 = vld [vmem:[#allocation2 + $0x34] sm:$0xf]  ;;  %v2032_v49 = vld [vmem:[#allocation2 + $0x6c] sm:$0xf]  ;;  %v2033_v18 = vld [vmem:[#allocation2 + $0x70] sm:$0xf] }
  0xd7   : > { %1929 = vrot.lane.b32.xlu1 %v1851_v6, %s9951_s20  ;;  %v2024_v6 = vld [vmem:[#allocation2 + $0x3c] sm:$0xf]  ;;  %v2036_v24 = vld [vmem:[#allocation2 + $0x84] sm:$0xf]  ;;  %v2037_v25 = vld [vmem:[#allocation2 + $0x88] sm:$0xf] }
  0xd8   : > { %v1578_v30 = vpop.permute.xlu1 %1577  ;;  %v2209_v28 = vld [vmem:[#allocation2 + $0xc] sm:$0xf]  ;;  %v2038_v20 = vld [vmem:[#allocation2 + $0x90] sm:$0xf]  ;;  %v2039_v32 = vld [vmem:[#allocation2 + $0x94] sm:$0xf] }
  0xd9   : > { %1659 = vst.msk [vmem:[#allocation4 + $0x3c] sm:$0xf] %vm1643_vm8, %v1578_v30  ;;  %v2210_v30 = vld [vmem:[#allocation2 + $0x10] sm:$0xf]  ;;  %v2258_v36 = vshrl.u32 %v2209_v28, 16  ;;  %v2261_v38 = vshll.u32 %v2209_v28, 16 }
  0xda   : > { %1931 = vrot.lane.b32.xlu0 %v1855_v12, %s9951_s20  ;;  %v2028_v12 = vld [vmem:[#allocation2 + $0x54] sm:$0xf]  ;;  %v2267_v39 = vshll.u32 %v2210_v30, 16  ;;  %v2271_v40 = vshrl.u32 %v2210_v30, 16  ;;  %v2040_v41 = vld [vmem:[#allocation2 + $0x9c] sm:$0xf] }
  0xdb   : > { %1933 = vrot.lane.b32.xlu1 %v1858_v35, %s9951_s20  ;;  %v2029_v35 = vld [vmem:[#allocation2 + $0x58] sm:$0xf]  ;;  %v2041_v50 = vld [vmem:[#allocation2 + $0xa0] sm:$0xf] }
  0xdc   : > { %v1045_v15 = vld [vmem:[#allocation2 + $0xc8] sm:$0x1] }
  0xdd   : > { %v1580_v42 = vpop.permute.xlu0 %1579  ;;  %v1046_v17 = vsel %vm10027_vm3, %v884_v11, %v1045_v15  ;;  %v2044_v15 = vld [vmem:[#allocation2 + $0xb4] sm:$0xf] }
  0xde   : > { %1935 = vrot.lane.b32.xlu0 %v1862_v21, %s9951_s20  ;;  %1660 = vst.msk [vmem:[#allocation4 + $0x40] sm:$0xf] %vm1643_vm8, %v1580_v42  ;;  %1047 = vst [vmem:[#allocation2 + $0xc8] sm:$0x1] %v1046_v17  ;;  %v2034_v21 = vld [vmem:[#allocation2 + $0x78] sm:$0xf] }
  0xdf   : > { %1937 = vrot.lane.b32.xlu1 %v1865_v23, %s9951_s20  ;;  %v2035_v23 = vld [vmem:[#allocation2 + $0x7c] sm:$0xf] }
  0xe0   : > { %v1582_v34 = vpop.permute.xlu1 %1581 }
  0xe1   : > { %1661 = vst.msk [vmem:[#allocation4 + $0x44] sm:$0xf] %vm1643_vm8, %v1582_v34  ;;  %v2215_v34 = vld [vmem:[#allocation2 + $0x24] sm:$0xf] }
  0xe2   : > { %1939 = vrot.lane.b32.xlu0 %v1869_v31, %s9951_s20  ;;  %v2212_v31 = vld [vmem:[#allocation2 + $0x18] sm:$0xf] }
  0xe3   : > { %1941 = vrot.lane.b32.xlu1 %v1872_v33, %s9951_s20  ;;  %v2213_v33 = vld [vmem:[#allocation2 + $0x1c] sm:$0xf]  ;;  %v2282_v48 = vshrl.u32 %v2212_v31, 16 }
  0xe4   : > { %v2291_v42 = vshll.u32 %v2213_v33, 16 }
  0xe6   : > { %1943 = vrot.lane.b32.xlu0 %v1876_v59, %s9951_s20  ;;  %v2285_v59 = vshll.u32 %v2212_v31, 16  ;;  %v2221_v31 = vld [vmem:[#allocation2 + $0x3c] sm:$0xf] }
  0xe7   : > { %1945 = vrot.lane.b32.xlu1 %v1879_v43, %s9951_s20  ;;  %v1584_v53 = vpop.permute.xlu0 %1583  ;;  %v2295_v43 = vshrl.u32 %v2213_v33, 16  ;;  %v2046_v33 = vld [vmem:[#allocation2 + $0xc0] sm:$0xf] }
  0xe8   : > { %1662 = vst.msk [vmem:[#allocation4 + $0x48] sm:$0xf] %vm1643_vm8, %v1584_v53  ;;  %v1586_v54 = vpop.permute.xlu1 %1585  ;;  %v2216_v53 = vld [vmem:[#allocation2 + $0x28] sm:$0xf] }
  0xe9   : > { %1663 = vst.msk [vmem:[#allocation4 + $0x4c] sm:$0xf] %vm1643_vm8, %v1586_v54  ;;  %v10665_v54 = vrot.slane %v2267_v39, 5  ;;  %v2319_v8 = vshrl.u32 %v2216_v53, 16 }
  0xea   : > { %1947 = vrot.lane.b32.xlu0 %v1883_v51, %s9951_s20 }
  0xeb   : > { %1949 = vrot.lane.b32.xlu1 %v1886_v60, %s9951_s20  ;;  %v2042_v60 = vld [vmem:[#allocation2 + $0xa8] sm:$0xf] }
  0xee   : > { %2080 = vrot.lane.b32.xlu0 %v2016_v52, %s9952_s21  ;;  %v2260_v52 = vrot.slane %v2258_v36, 4 }
  0xef   : > { %2082 = vrot.lane.b32.xlu1 %v2017_v47, %s9952_s21  ;;  %v1588_v61 = vpop.permute.xlu0 %1587  ;;  %v2263_v47 = vrot.slane %v2261_v38, 5 }
  0xf0   : > { %1664 = vst.msk [vmem:[#allocation4 + $0x50] sm:$0xf] %vm1643_vm8, %v1588_v61  ;;  %v2287_v61 = vrot.slane %v2285_v59, 5  ;;  %v2047_v59 = vld [vmem:[#allocation2 + $0xc4] sm:$0xf] }
  0xf1   : > { %v2264_v11 = vor.u32 %v2263_v47, %v2260_v52  ;;  %v2354_v52 = vshrl.u32 %v2221_v31, 16  ;;  %v2357_v47 = vshll.u32 %v2221_v31, 16  ;;  %v2230_v31 = vld [vmem:[#allocation2 + $0x60] sm:$0xf] }
  0xf2   : > { %2084 = vrot.lane.b32.xlu0 %v2018_v56, %s9952_s21  ;;  %v1590_v63 = vpop.permute.xlu1 %1589  ;;  %v2211_v56 = vld [vmem:[#allocation2 + $0x14] sm:$0x1] }
  0xf3   : > { %2086 = vrot.lane.b32.xlu1 %v2019_v57, %s9952_s21  ;;  %1665 = vst.msk [vmem:[#allocation4 + $0x54] sm:$0xf] %vm1643_vm8, %v1590_v63  ;;  %v2273_v57 = vrot.slane %v2271_v40, 4  ;;  %v2214_v63 = vld [vmem:[#allocation2 + $0x20] sm:$0x1] }
  0xf6   : > { %2088 = vrot.lane.b32.xlu0 %v2020_v58, %s9952_s21  ;;  %v2284_v58 = vrot.slane %v2282_v48, 4 }
  0xf7   : > { %2090 = vrot.lane.b32.xlu1 %v2021_v62, %s9952_s21  ;;  %v10668_v62 = vrot.slane %v2291_v42, 5 }
  0xf8   : > { %v1592_v26 = vpop.permute.xlu0 %1591  ;;  %v2288_v17 = vor.u32 %v2287_v61, %v2284_v58 }
  0xf9   : > { %1666 = vst.msk [vmem:[#allocation4 + $0x58] sm:$0xf] %vm1643_vm8, %v1592_v26  ;;  %v2309_v26 = vshll.u32 %v2215_v34, 16 }
  0xfa   : > { %2092 = vrot.lane.b32.xlu0 %v2022_v3, %s9952_s21  ;;  %v2297_v3 = vrot.slane %v2295_v43, 4  ;;  %v10682_v36 = vrot.slane %v2288_v17, 4 }
  0xfb   : > { %2094 = vrot.lane.b32.xlu1 %v2023_v0, %s9952_s21  ;;  %v2306_v0 = vshrl.u32 %v2215_v34, 16 }
  0xfc   : > { %v1594_v45 = vpop.permute.xlu1 %1593  ;;  %v2294_v61 = vsel %vm10113_vm13, %v10682_v36, %v10668_v62 }
  0xfd   : > { %1667 = vst.msk [vmem:[#allocation4 + $0x5c] sm:$0xf] %vm1643_vm8, %v1594_v45 }
  0xfe   : > { %2096 = vrot.lane.b32.xlu0 %v2024_v6, %s9952_s21  ;;  %v2043_v6 = vld [vmem:[#allocation2 + $0xac] sm:$0xf] }
  0xff   : > { %2098 = vrot.lane.b32.xlu1 %v2025_v7, %s9952_s21  ;;  %v2315_v7 = vshll.u32 %v2216_v53, 16 }
 0x101   : > { %v1596_v14 = vpop.permute.xlu0 %1595 }
 0x102   : > { %2100 = vrot.lane.b32.xlu0 %v2026_v9, %s9952_s21  ;;  %1668 = vst.msk [vmem:[#allocation4 + $0x60] sm:$0xf] %vm1643_vm8, %v1596_v14  ;;  %v2277_v9 = vshll.u32 %v2211_v56, 16  ;;  %v2301_v14 = vshll.u32 %v2214_v63, 16 }
 0x103   : > { %2102 = vrot.lane.b32.xlu1 %v2027_v10, %s9952_s21  ;;  %v2218_v10 = vld [vmem:[#allocation2 + $0x30] sm:$0xf] }
 0x104   : > { %v10686_v39 = vrot.slane %v2301_v14, 5 }
 0x105   : > { %v1598_v16 = vpop.permute.xlu1 %1597 }
 0x106   : > { %2104 = vrot.lane.b32.xlu0 %v2028_v12, %s9952_s21  ;;  %1669 = vst.msk [vmem:[#allocation4 + $0x64] sm:$0xf] %vm1643_vm8, %v1598_v16  ;;  %v2274_v12 = vor.u32 %v2273_v57, %v10665_v54  ;;  %v2045_v16 = vld [vmem:[#allocation2 + $0xb8] sm:$0xf] }
 0x107   : > { %2106 = vrot.lane.b32.xlu1 %v2029_v35, %s9952_s21  ;;  %v2219_v35 = vld [vmem:[#allocation2 + $0x34] sm:$0xf] }
 0x108   : > { %v2339_v28 = vshll.u32 %v2219_v35, 16  ;;  %v2275_v30 = vrot.slane %v2274_v12, 4  ;;  %v2228_v12 = vld [vmem:[#allocation2 + $0x58] sm:$0xf] }
 0x10a   : > { %2108 = vrot.lane.b32.xlu0 %v2030_v46, %s9952_s21  ;;  %v2298_v46 = vor.u32 %v2297_v3, %v10668_v62  ;;  %v10690_v34 = vrot.slane %v2339_v28, 5  ;;  %v2224_v3 = vld [vmem:[#allocation2 + $0x48] sm:$0xf] }
 0x10b   : > { %2110 = vrot.lane.b32.xlu1 %v2031_v4, %s9952_s21  ;;  %v2308_v4 = vrot.slane %v2306_v0, 4  ;;  %v2381_v17 = vshll.u32 %v2224_v3, 16 }
 0x10c   : > { %v10684_v38 = vrot.slane %v2298_v46, 4 }
 0x10d   : > { %v1600_v19 = vpop.permute.xlu0 %1599  ;;  %v2383_v36 = vrot.slane %v2381_v17, 5 }
 0x10e   : > { %2112 = vrot.lane.b32.xlu0 %v2032_v49, %s9952_s21  ;;  %1670 = vst.msk [vmem:[#allocation4 + $0x68] sm:$0xf] %vm1643_vm8, %v1600_v19  ;;  %v1602_v22 = vpop.permute.xlu1 %1601  ;;  %v2311_v49 = vrot.slane %v2309_v26, 5  ;;  %v10676_v19 = vrot.slane %v2315_v7, 5  ;;  %v2304_v26 = vsel %vm10113_vm13, %v10684_v38, %v10686_v39  ;;  %v2225_v7 = vld [vmem:[#allocation2 + $0x4c] sm:$0xf] }
 0x10f   : > { %2114 = vrot.lane.b32.xlu1 %v2033_v18, %s9952_s21  ;;  %1671 = vst.msk [vmem:[#allocation4 + $0x6c] sm:$0xf] %vm1643_vm8, %v1602_v22  ;;  %v2321_v22 = vrot.slane %v2319_v8, 4  ;;  %v2227_v8 = vld [vmem:[#allocation2 + $0x54] sm:$0xf]  ;;  %v2387_v46 = vshll.u32 %v2225_v7, 16 }
 0x110   : > { %v2231_v38 = vld [vmem:[#allocation2 + $0x64] sm:$0xf] }
 0x111   : > { %v2322_v42 = vor.u32 %v2321_v22, %v10676_v19  ;;  %v10730_v39 = vrot.slane %v2387_v46, 5 }
 0x112   : > { %2116 = vrot.lane.b32.xlu0 %v2034_v21, %s9952_s21  ;;  %v2217_v21 = vld [vmem:[#allocation2 + $0x2c] sm:$0x1] }
 0x113   : > { %2118 = vrot.lane.b32.xlu1 %v2035_v23, %s9952_s21  ;;  %v2330_v23 = vshrl.u32 %v2218_v10, 16  ;;  %v2325_v40 = vshll.u32 %v2217_v21, 16 }
 0x114   : > { %v1604_v27 = vpop.permute.xlu0 %1603 }
 0x115   : > { %1672 = vst.msk [vmem:[#allocation4 + $0x70] sm:$0xf] %vm1643_vm8, %v1604_v27  ;;  %v2279_v27 = vrot.slane %v2277_v9, 5  ;;  %v2332_v43 = vrot.slane %v2330_v23, 4  ;;  %v10704_v63 = vrot.slane %v2325_v40, 5  ;;  %v2323_v9 = vrot.slane %v2322_v42, 4 }
 0x116   : > { %2120 = vrot.lane.b32.xlu0 %v2036_v24, %s9952_s21  ;;  %v2333_v24 = vshll.u32 %v2218_v10, 16  ;;  %v2356_v10 = vrot.slane %v2354_v52, 4  ;;  %v2226_v40 = vld [vmem:[#allocation2 + $0x50] sm:$0x1] }
 0x117   : > { %2122 = vrot.lane.b32.xlu1 %v2037_v25, %s9952_s21  ;;  %v1606_v29 = vpop.permute.xlu1 %1605  ;;  %v2280_v58 = vsel %vm10113_vm13, %v2275_v30, %v2279_v27  ;;  %v2328_v28 = vsel %vm10113_vm13, %v2323_v9, %v10704_v63  ;;  %v2397_v63 = vshll.u32 %v2226_v40, 16 }
 0x118   : > { %1673 = vst.msk [vmem:[#allocation4 + $0x74] sm:$0xf] %vm1643_vm8, %v1606_v29  ;;  %v2343_v29 = vshrl.u32 %v2219_v35, 16  ;;  %v2223_v35 = vld [vmem:[#allocation2 + $0x44] sm:$0x1] }
 0x119   : > { %v2373_v30 = vshll.u32 %v2223_v35, 16 }
 0x11a   : > { %2124 = vrot.lane.b32.xlu0 %v2038_v20, %s9952_s21  ;;  %v2265_v20 = vrot.slane %v2264_v11, 4  ;;  %v2359_v11 = vrot.slane %v2357_v47, 5 }
 0x11b   : > { %2126 = vrot.lane.b32.xlu1 %v2039_v32, %s9952_s21  ;;  %v2222_v32 = vld [vmem:[#allocation2 + $0x40] sm:$0xf] }
 0x11c   : > { %v1608_v44 = vpop.permute.xlu0 %1607  ;;  %v2363_v53 = vshll.u32 %v2222_v32, 16  ;;  %v2367_v56 = vshrl.u32 %v2222_v32, 16  ;;  %v2270_v57 = vsel %vm10113_vm13, %v2265_v20, %v10665_v54  ;;  %v2360_v20 = vor.u32 %v2359_v11, %v2356_v10  ;;  %v2232_v11 = vld [vmem:[#allocation2 + $0x68] sm:$0x1] }
 0x11d   : > { %1674 = vst.msk [vmem:[#allocation4 + $0x78] sm:$0xf] %vm1643_vm8, %v1608_v44  ;;  %v1610_v51 = vpop.permute.xlu1 %1609  ;;  %v2335_v44 = vrot.slane %v2333_v24, 5  ;;  %v2411_v24 = vshll.u32 %v2228_v12, 16 }
 0x11e   : > { %1675 = vst.msk [vmem:[#allocation4 + $0x7c] sm:$0xf] %vm1643_vm8, %v1610_v51  ;;  %2128 = vrot.lane.b32.xlu0 %v2040_v41, %s9952_s21  ;;  %v2312_v41 = vor.u32 %v2311_v49, %v2308_v4  ;;  %v2220_v51 = vld [vmem:[#allocation2 + $0x38] sm:$0x1]  ;;  %v10714_v14 = vrot.slane %v2363_v53, 5  ;;  %v2391_v4 = vshrl.u32 %v2225_v7, 16 }
 0x11f   : > { %2130 = vrot.lane.b32.xlu1 %v2041_v50, %s9952_s21  ;;  %v2349_v54 = vshll.u32 %v2220_v51, 16  ;;  %v2402_v49 = vshrl.u32 %v2227_v8, 16  ;;  %v2426_v51 = vshrl.u32 %v2230_v31, 16  ;;  %v2435_v53 = vshll.u32 %v2231_v38, 16 }
 0x120   : > { %v1888_v5 = vpop.permute.xlu0 %1887  ;;  %vm4331_vm8 = vcmask 293888  }
 0x121   : > { %1984 = vst.msk [vmem:[#allocation4] sm:$0xf] %vm1983_vm0, %v1888_v5  ;;  %v1890_v45 = vpop.permute.xlu1 %1889  ;;  %v2313_v5 = vrot.slane %v2312_v41, 4  ;;  %v10720_v23 = vrot.slane %v2349_v54, 5  ;;  %v10747_v10 = vrot.slane %v2435_v53, 5 }
 0x122   : > { %1985 = vst.msk [vmem:[#allocation4 + $0x4] sm:$0xf] %vm1983_vm0, %v1890_v45  ;;  %2132 = vrot.lane.b32.xlu0 %v2042_v60, %s9952_s21  ;;  %v2345_v60 = vrot.slane %v2343_v29, 4 }
 0x123   : > { %2134 = vrot.lane.b32.xlu1 %v2043_v6, %s9952_s21  ;;  %v2336_v6 = vor.u32 %v2335_v44, %v2332_v43  ;;  %v2318_v22 = vsel %vm10113_vm13, %v2313_v5, %v10676_v19  ;;  %v10732_v43 = vrot.slane %v2411_v24, 5  ;;  %v2229_v44 = vld [vmem:[#allocation2 + $0x5c] sm:$0x1] }
 0x124   : > { %v1892_v18 = vpop.permute.xlu0 %1891  ;;  %v2346_v62 = vor.u32 %v2345_v60, %v10690_v34  ;;  %v2429_v60 = vshll.u32 %v2230_v31, 16  ;;  %v2421_v5 = vshll.u32 %v2229_v44, 16 }
 0x125   : > { %1986 = vst.msk [vmem:[#allocation4 + $0x8] sm:$0xf] %vm1983_vm0, %v1892_v18  ;;  %v1894_v25 = vpop.permute.xlu1 %1893  ;;  %v2405_v18 = vshll.u32 %v2227_v8, 16  ;;  %v2337_v29 = vrot.slane %v2336_v6, 4  ;;  %v2234_v6 = vld [vmem:[#allocation2 + $0x70] sm:$0xf] }
 0x126   : > { %1987 = vst.msk [vmem:[#allocation4 + $0xc] sm:$0xf] %vm1983_vm0, %v1894_v25  ;;  %2136 = vrot.lane.b32.xlu0 %v2044_v15, %s9952_s21  ;;  %v2369_v15 = vrot.slane %v2367_v56, 4  ;;  %v2415_v25 = vshrl.u32 %v2228_v12, 16  ;;  %v2347_v19 = vrot.slane %v2346_v62, 4  ;;  %v2439_v56 = vshrl.u32 %v2231_v38, 16 }
 0x127   : > { %2138 = vrot.lane.b32.xlu1 %v2045_v16, %s9952_s21  ;;  %v2378_v16 = vshrl.u32 %v2224_v3, 16  ;;  %v2407_v41 = vrot.slane %v2405_v18, 5  ;;  %v2342_v47 = vsel %vm10113_vm13, %v2337_v29, %v10690_v34  ;;  %v2233_v3 = vld [vmem:[#allocation2 + $0x6c] sm:$0xf]  ;;  %v2431_v9 = vrot.slane %v2429_v60, 5 }
 0x128   : > { %v1896_v48 = vpop.permute.xlu0 %1895  ;;  %v2370_v32 = vor.u32 %v2369_v15, %v10714_v14  ;;  %v2441_v12 = vrot.slane %v2439_v56, 4  ;;  %v2450_v35 = vshrl.u32 %v2233_v3, 16  ;;  %v2453_v15 = vshll.u32 %v2233_v3, 16  ;;  %v2237_v29 = vld [vmem:[#allocation2 + $0x7c] sm:$0xf] }
 0x129   : > { %1988 = vst.msk [vmem:[#allocation4 + $0x10] sm:$0xf] %vm1983_vm0, %v1896_v48  ;;  %v1898_v50 = vpop.permute.xlu1 %1897  ;;  %v2393_v48 = vrot.slane %v2391_v4, 4  ;;  %v2459_v17 = vshll.u32 %v2234_v6, 16  ;;  %v2463_v46 = vshrl.u32 %v2234_v6, 16 }
 0x12a   : > { %1989 = vst.msk [vmem:[#allocation4 + $0x14] sm:$0xf] %vm1983_vm0, %v1898_v50  ;;  %2140 = vrot.lane.b32.xlu0 %v2046_v33, %s9952_s21  ;;  %v2380_v33 = vrot.slane %v2378_v16, 4  ;;  %v2417_v50 = vrot.slane %v2415_v25, 4  ;;  %v2452_v31 = vrot.slane %v2450_v35, 4 }
 0x12b   : > { %2142 = vrot.lane.b32.xlu1 %v2047_v59, %s9952_s21  ;;  %v2404_v59 = vrot.slane %v2402_v49, 4  ;;  %v2394_v34 = vor.u32 %v2393_v48, %v10730_v39  ;;  %v2239_v60 = vld [vmem:[#allocation2 + $0x84] sm:$0xf]  ;;  %s12802_s21 = scalar_lea.vmem %s13047_s10, %s9600_s15 }
 0x12c   : > { %v1900_v0 = vpop.permute.xlu0 %1899  ;;  %v2418_v8 = vor.u32 %v2417_v50, %v10732_v43  ;;  %v2498_v6 = vshrl.u32 %v2239_v60, 16 }
 0x12d   : > { %1990 = vst.msk [vmem:[#allocation4 + $0x18] sm:$0xf] %vm1983_vm0, %v1900_v0  ;;  %v1902_v45 = vpop.permute.xlu1 %1901  ;;  %v2371_v0 = vrot.slane %v2370_v32, 4  ;;  %v2408_v7 = vor.u32 %v2407_v41, %v2404_v59  ;;  %v2395_v18 = vrot.slane %v2394_v34, 4  ;;  %v10765_v32 = vrot.slane %v2459_v17, 5 }
 0x12e   : > { %1991 = vst.msk [vmem:[#allocation4 + $0x1c] sm:$0xf] %vm1983_vm0, %v1902_v45  ;;  %2641 = vrot.lane.b32.xlu0 %v2270_v57, %s9953_s22  ;;  %v2352_v57 = vsel %vm10113_vm13, %v2347_v19, %v10720_v23  ;;  %v2428_v45 = vrot.slane %v2426_v51, 4  ;;  %v10757_v25 = vrot.slane %v2418_v8, 4  ;;  %v2455_v19 = vrot.slane %v2453_v15, 5 }
 0x12f   : > { %2643 = vrot.lane.b32.xlu1 %v2280_v58, %s9953_s22  ;;  %v2361_v58 = vrot.slane %v2360_v20, 4  ;;  %v2409_v24 = vrot.slane %v2408_v7, 4  ;;  %v2483_v59 = vshll.u32 %v2237_v29, 16  ;;  %v2487_v41 = vshrl.u32 %v2237_v29, 16  ;;  %v2238_v34 = vld [vmem:[#allocation2 + $0x80] sm:$0x1] }
 0x130   : > { %v1904_v21 = vpop.permute.xlu0 %1903  ;;  %v2432_v20 = vor.u32 %v2431_v9, %v2428_v45 }
 0x131   : > { %1992 = vst.msk [vmem:[#allocation4 + $0x20] sm:$0xf] %vm1983_vm0, %v1904_v21  ;;  %v1906_v27 = vpop.permute.xlu1 %1905  ;;  %v2366_v16 = vsel %vm10113_vm13, %v2361_v58, %v10714_v14  ;;  %v2399_v21 = vrot.slane %v2397_v63, 5  ;;  %v2414_v50 = vsel %vm10113_vm13, %v2409_v24, %v10732_v43  ;;  %v2242_v58 = vld [vmem:[#allocation2 + $0x90] sm:$0xf]  ;;  %v2456_v43 = vor.u32 %v2455_v19, %v2452_v31 }
 0x132   : > { %1993 = vst.msk [vmem:[#allocation4 + $0x24] sm:$0xf] %vm1983_vm0, %v1906_v27  ;;  %2645 = vrot.lane.b32.xlu0 %v2294_v61, %s9953_s22  ;;  %v2375_v61 = vrot.slane %v2373_v30, 5  ;;  %v10759_v27 = vrot.slane %v2421_v5, 5  ;;  %v2442_v30 = vor.u32 %v2441_v12, %v10747_v10  ;;  %v2489_v5 = vrot.slane %v2487_v41, 4 }
 0x133   : > { %2647 = vrot.lane.b32.xlu1 %v2304_v26, %s9953_s22  ;;  %v2384_v26 = vor.u32 %v2383_v36, %v2380_v33  ;;  %v2235_v33 = vld [vmem:[#allocation2 + $0x74] sm:$0x1]  ;;  %v2465_v36 = vrot.slane %v2463_v46, 4  ;;  %v2400_v44 = vsel %vm10113_vm13, %v2395_v18, %v2399_v21  ;;  %v2522_v9 = vshrl.u32 %v2242_v58, 16  ;;  %v2245_v18 = vld [vmem:[#allocation2 + $0x9c] sm:$0xf] }
 0x134   : > { %v1908_v42 = vpop.permute.xlu0 %1907  ;;  %v2376_v4 = vsel %vm10113_vm13, %v2371_v0, %v2375_v61  ;;  %v2424_v51 = vsel %vm10113_vm13, %v10757_v25, %v10759_v27  ;;  %v2443_v53 = vrot.slane %v2442_v30, 4  ;;  %v2243_v0 = vld [vmem:[#allocation2 + $0x94] sm:$0xf]  ;;  %v2457_v46 = vrot.slane %v2456_v43, 4  ;;  %v2246_v24 = vld [vmem:[#allocation2 + $0xa0] sm:$0xf] }
 0x135   : > { %1994 = vst.msk [vmem:[#allocation4 + $0x28] sm:$0xf] %vm1983_vm0, %v1908_v42  ;;  %v1910_v52 = vpop.permute.xlu1 %1909  ;;  %v2385_v49 = vrot.slane %v2384_v26, 4  ;;  %v2466_v61 = vor.u32 %v2465_v36, %v10765_v32  ;;  %v10785_v26 = vrot.slane %v2483_v59, 5  ;;  %v2531_v15 = vshll.u32 %v2243_v0, 16 }
 0x136   : > { %1995 = vst.msk [vmem:[#allocation4 + $0x2c] sm:$0xf] %vm1983_vm0, %v1910_v52  ;;  %2649 = vrot.lane.b32.xlu0 %v2318_v22, %s9953_s22  ;;  %v2236_v22 = vld [vmem:[#allocation2 + $0x78] sm:$0xf]  ;;  %v2240_v52 = vld [vmem:[#allocation2 + $0x88] sm:$0xf] }
 0x137   : > { %2651 = vrot.lane.b32.xlu1 %v2328_v28, %s9953_s22  ;;  %v2445_v28 = vshll.u32 %v2232_v11, 16  ;;  %v2474_v38 = vshrl.u32 %v2236_v22, 16  ;;  %v2477_v40 = vshll.u32 %v2236_v22, 16  ;;  %v2390_v48 = vsel %vm10113_vm13, %v2385_v49, %v10730_v39  ;;  %v2244_v19 = vld [vmem:[#allocation2 + $0x98] sm:$0x1] }
 0x138   : > { %v1912_v54 = vpop.permute.xlu0 %1911  ;;  %v2507_v8 = vshll.u32 %v2240_v52, 16  ;;  %v2511_v45 = vshrl.u32 %v2240_v52, 16  ;;  %v2493_v49 = vshll.u32 %v2238_v34, 16  ;;  %v2467_v21 = vrot.slane %v2466_v61, 4 }
 0x139   : > { %1996 = vst.msk [vmem:[#allocation4 + $0x30] sm:$0xf] %vm1983_vm0, %v1912_v54  ;;  %v1914_v62 = vpop.permute.xlu1 %1913  ;;  %v2447_v56 = vrot.slane %v2445_v28, 5  ;;  %v2476_v63 = vrot.slane %v2474_v38, 4  ;;  %v2479_v3 = vrot.slane %v2477_v40, 5  ;;  %v2501_v54 = vshll.u32 %v2239_v60, 16 }
 0x13a   : > { %1997 = vst.msk [vmem:[#allocation4 + $0x34] sm:$0xf] %vm1983_vm0, %v1914_v62  ;;  %2653 = vrot.lane.b32.xlu0 %v2342_v47, %s9953_s22  ;;  %v2433_v47 = vrot.slane %v2432_v20, 4  ;;  %v2525_v62 = vshll.u32 %v2242_v58, 16  ;;  %v2490_v22 = vor.u32 %v2489_v5, %v10785_v26  ;;  %v10797_v27 = vrot.slane %v2507_v8, 5 }
 0x13b   : > { %2655 = vrot.lane.b32.xlu1 %v2352_v57, %s9953_s22  ;;  %v2469_v57 = vshll.u32 %v2235_v33, 16  ;;  %v2448_v17 = vsel %vm10113_vm13, %v2443_v53, %v2447_v56  ;;  %v2241_v28 = vld [vmem:[#allocation2 + $0x8c] sm:$0x1]  ;;  %v2513_v29 = vrot.slane %v2511_v45, 4  ;;  %v10800_v31 = vrot.slane %v2531_v15, 5 }
 0x13c   : > { %v1916_v23 = vpop.permute.xlu0 %1915  ;;  %v2438_v12 = vsel %vm10113_vm13, %v2433_v47, %v10747_v10  ;;  %v2500_v10 = vrot.slane %v2498_v6, 4  ;;  %v2527_v20 = vrot.slane %v2525_v62, 5  ;;  %v2546_v36 = vshrl.u32 %v2245_v18, 16  ;;  %v2249_v56 = vld [vmem:[#allocation2 + $0xac] sm:$0xf] }
 0x13d   : > { %1998 = vst.msk [vmem:[#allocation4 + $0x38] sm:$0xf] %vm1983_vm0, %v1916_v23  ;;  %v1918_v14 = vpop.permute.xlu1 %1917  ;;  %v2471_v35 = vrot.slane %v2469_v57, 5  ;;  %v2503_v23 = vrot.slane %v2501_v54, 5  ;;  %v2549_v38 = vshll.u32 %v2245_v18, 16  ;;  %v2462_v40 = vsel %vm10113_vm13, %v2457_v46, %v10765_v32 }
 0x13e   : > { %1999 = vst.msk [vmem:[#allocation4 + $0x3c] sm:$0xf] %vm1983_vm0, %v1918_v14  ;;  %2657 = vrot.lane.b32.xlu0 %v2366_v16, %s9953_s22  ;;  %v2535_v16 = vshrl.u32 %v2243_v0, 16  ;;  %v2524_v14 = vrot.slane %v2522_v9, 4  ;;  %v2559_v59 = vshrl.u32 %v2246_v24, 16  ;;  %v2491_v52 = vrot.slane %v2490_v22, 4 }
 0x13f   : > { %2659 = vrot.lane.b32.xlu1 %v2376_v4, %s9953_s22  ;;  %v2480_v4 = vor.u32 %v2479_v3, %v2476_v63  ;;  %v2472_v41 = vsel %vm10113_vm13, %v2467_v21, %v2471_v35  ;;  %v2517_v47 = vshll.u32 %v2241_v28, 16  ;;  %v2541_v53 = vshll.u32 %v2244_v19, 16  ;;  %v2247_v3 = vld [vmem:[#allocation2 + $0xa4] sm:$0x1]  ;;  %v2251_v45 = vld [vmem:[#allocation2 + $0xb4] sm:$0xf] }
 0x140   : > { %v1920_v42 = vpop.permute.xlu0 %1919  ;;  %v2537_v33 = vrot.slane %v2535_v16, 4  ;;  %v2528_v57 = vor.u32 %v2527_v20, %v2524_v14  ;;  %v2548_v43 = vrot.slane %v2546_v36, 4  ;;  %v2551_v61 = vrot.slane %v2549_v38, 5  ;;  %v2254_v19 = vld [vmem:[#allocation2 + $0xc0] sm:$0xf] }
 0x141   : > { %2000 = vst.msk [vmem:[#allocation4 + $0x40] sm:$0xf] %vm1983_vm0, %v1920_v42  ;;  %v1922_v39 = vpop.permute.xlu1 %1921  ;;  %v2481_v42 = vrot.slane %v2480_v4, 4  ;;  %v2561_v0 = vrot.slane %v2559_v59, 4  ;;  %v2583_v8 = vshrl.u32 %v2249_v56, 16  ;;  %v2543_v35 = vrot.slane %v2541_v53, 5 }
 0x142   : > { %2001 = vst.msk [vmem:[#allocation4 + $0x44] sm:$0xf] %vm1983_vm0, %v1922_v39  ;;  %2661 = vrot.lane.b32.xlu0 %v2390_v48, %s9953_s22  ;;  %v2555_v48 = vshll.u32 %v2246_v24, 16  ;;  %v2514_v39 = vor.u32 %v2513_v29, %v10797_v27  ;;  %v2538_v58 = vor.u32 %v2537_v33, %v10800_v31  ;;  %v2529_v16 = vrot.slane %v2528_v57, 4  ;;  %v2250_v24 = vld [vmem:[#allocation2 + $0xb0] sm:$0x1] }
 0x143   : > { %2663 = vrot.lane.b32.xlu1 %v2400_v44, %s9953_s22  ;;  %v2495_v44 = vrot.slane %v2493_v49, 5  ;;  %v2486_v6 = vsel %vm10113_vm13, %v2481_v42, %v10785_v26  ;;  %v2552_v46 = vor.u32 %v2551_v61, %v2548_v43  ;;  %v2565_v4 = vshll.u32 %v2247_v3, 16  ;;  %v2252_v49 = vld [vmem:[#allocation2 + $0xb8] sm:$0xf] }
 0x144   : > { %v1924_v7 = vpop.permute.xlu0 %1923  ;;  %v10815_v63 = vrot.slane %v2555_v48, 5  ;;  %v2594_v22 = vshrl.u32 %v2251_v45, 16  ;;  %v2597_v28 = vshll.u32 %v2251_v45, 16  ;;  %v2603_v20 = vshll.u32 %v2252_v49, 16  ;;  %v2255_v48 = vld [vmem:[#allocation2 + $0xc4] sm:$0xf] }
 0x145   : > { %2002 = vst.msk [vmem:[#allocation4 + $0x48] sm:$0xf] %vm1983_vm0, %v1924_v7  ;;  %v1926_v11 = vpop.permute.xlu1 %1925  ;;  %v2579_v7 = vshll.u32 %v2249_v56, 16  ;;  %v2496_v62 = vsel %vm10113_vm13, %v2491_v52, %v2495_v44  ;;  %v2534_v36 = vsel %vm10113_vm13, %v2529_v16, %v10800_v31  ;;  %v2553_v38 = vrot.slane %v2552_v46, 4 }
 0x146   : > { %2003 = vst.msk [vmem:[#allocation4 + $0x4c] sm:$0xf] %vm1983_vm0, %v1926_v11  ;;  %2665 = vrot.lane.b32.xlu0 %v2414_v50, %s9953_s22  ;;  %v2504_v50 = vor.u32 %v2503_v23, %v2500_v10  ;;  %v2515_v11 = vrot.slane %v2514_v39, 4  ;;  %v2562_v26 = vor.u32 %v2561_v0, %v10815_v63  ;;  %v2589_v42 = vshll.u32 %v2250_v24, 16 }
 0x147   : > { %2667 = vrot.lane.b32.xlu1 %v2424_v51, %s9953_s22  ;;  %v2248_v51 = vld [vmem:[#allocation2 + $0xa8] sm:$0xf]  ;;  %v10831_v23 = vrot.slane %v2579_v7, 5  ;;  %v2596_v44 = vrot.slane %v2594_v22, 4  ;;  %v2618_v31 = vshrl.u32 %v2254_v19, 16  ;;  %v2605_v39 = vrot.slane %v2603_v20, 5 }
 0x148   : > { %v1928_v25 = vpop.permute.xlu0 %1927  ;;  %v2570_v34 = vshrl.u32 %v2248_v51, 16  ;;  %v2573_v5 = vshll.u32 %v2248_v51, 16  ;;  %v2505_v54 = vrot.slane %v2504_v50, 4  ;;  %v2563_v59 = vrot.slane %v2562_v26, 4 }
 0x149   : > { %2004 = vst.msk [vmem:[#allocation4 + $0x50] sm:$0xf] %vm1983_vm0, %v1928_v25  ;;  %v1930_v30 = vpop.permute.xlu1 %1929  ;;  %v2585_v25 = vrot.slane %v2583_v8, 4  ;;  %v2599_v51 = vrot.slane %v2597_v28, 5  ;;  %v2627_v56 = vshll.u32 %v2255_v48, 16  ;;  %v2591_v3 = vrot.slane %v2589_v42, 5 }
 0x14a   : > { %2005 = vst.msk [vmem:[#allocation4 + $0x54] sm:$0xf] %vm1983_vm0, %v1930_v30  ;;  %2669 = vrot.lane.b32.xlu0 %v2438_v12, %s9953_s22  ;;  %v2519_v12 = vrot.slane %v2517_v47, 5  ;;  %v2572_v18 = vrot.slane %v2570_v34, 4  ;;  %v2575_v21 = vrot.slane %v2573_v5, 5  ;;  %v2510_v10 = vsel %vm10113_vm13, %v2505_v54, %v10797_v27 }
 0x14b   : > { %2671 = vrot.lane.b32.xlu1 %v2448_v17, %s9953_s22  ;;  %v2539_v17 = vrot.slane %v2538_v58, 4  ;;  %v2607_v30 = vshrl.u32 %v2252_v49, 16  ;;  %v2586_v50 = vor.u32 %v2585_v25, %v10831_v23  ;;  %v2253_v47 = vld [vmem:[#allocation2 + $0xbc] sm:$0x1]  ;;  %v2558_v58 = vsel %vm10113_vm13, %v2553_v38, %v10815_v63  ;;  %v2256_v63 = vld [vmem:[#allocation2 + $0xc8] sm:$0x1] }
 0x14c   : > { %v1932_v60 = vpop.permute.xlu0 %1931  ;;  %v2520_v14 = vsel %vm10113_vm13, %v2515_v11, %v2519_v12  ;;  %v2600_v0 = vor.u32 %v2599_v51, %v2596_v44  ;;  %v2613_v34 = vshll.u32 %v2253_v47, 16  ;;  %v2620_v5 = vrot.slane %v2618_v31, 4  ;;  %v2775_v44 = vld [vmem:[#allocation2 + $0x20] sm:$0x1] }
 0x14d   : > { %2006 = vst.msk [vmem:[#allocation4 + $0x58] sm:$0xf] %vm1983_vm0, %v1932_v60  ;;  %v1934_v32 = vpop.permute.xlu1 %1933  ;;  %v2544_v27 = vsel %vm10113_vm13, %v2539_v17, %v2543_v35  ;;  %v2621_v60 = vshll.u32 %v2254_v19, 16  ;;  %v2609_v53 = vrot.slane %v2607_v30, 4  ;;  %v2587_v7 = vrot.slane %v2586_v50, 4 }
 0x14e   : > { %2007 = vst.msk [vmem:[#allocation4 + $0x5c] sm:$0xf] %vm1983_vm0, %v1934_v32  ;;  %2673 = vrot.lane.b32.xlu0 %v2462_v40, %s9953_s22  ;;  %v2567_v40 = vrot.slane %v2565_v4, 5  ;;  %v2631_v32 = vshrl.u32 %v2255_v48, 16  ;;  %v2629_v45 = vrot.slane %v2627_v56, 5  ;;  %v2601_v12 = vrot.slane %v2600_v0, 4 }
 0x14f   : > { %2675 = vrot.lane.b32.xlu1 %v2472_v41, %s9953_s22  ;;  %v2576_v41 = vor.u32 %v2575_v21, %v2572_v18  ;;  %v2610_v8 = vor.u32 %v2609_v53, %v2605_v39  ;;  %v2615_v35 = vrot.slane %v2613_v34, 5  ;;  %v2592_v17 = vsel %vm10113_vm13, %v2587_v7, %v2591_v3  ;;  %v2771_v18 = vld [vmem:[#allocation2 + $0x10] sm:$0xf]  ;;  %v456_v21 = vld [vmem:[#allocation2 + $0xcc] sm:$0x1] }
 0x150   : > { %v1936_v9 = vpop.permute.xlu0 %1935  ;;  %v2568_v43 = vsel %vm10113_vm13, %v2563_v59, %v2567_v40  ;;  %v2637_v49 = vshll.u32 %v2256_v63, 16  ;;  %v457_v22 = vsel %vm10027_vm3, 0, %v456_v21  ;;  %v2868_v20 = vrot.slane %v2771_v18, 5  ;;  %v2774_v19 = vld [vmem:[#allocation2 + $0x1c] sm:$0xf] }
 0x151   : > { %2008 = vst.msk [vmem:[#allocation4 + $0x60] sm:$0xf] %vm1983_vm0, %v1936_v9  ;;  %v1938_v15 = vpop.permute.xlu1 %1937  ;;  %v2577_v61 = vrot.slane %v2576_v41, 4  ;;  %v2633_v9 = vrot.slane %v2631_v32, 4  ;;  %v2611_v46 = vrot.slane %v2610_v8, 4  ;;  %v2871_v48 = vrot.slane %v2772_v1, 5 }
 0x152   : > { %2009 = vst.msk [vmem:[#allocation4 + $0x64] sm:$0xf] %vm1983_vm0, %v1938_v15  ;;  %2677 = vrot.lane.b32.xlu0 %v2486_v6, %s9953_s22  ;;  %v2623_v6 = vrot.slane %v2621_v60, 5  ;;  %458 = vst [vmem:[#allocation2 + $0xcc] sm:$0x1] %v457_v22  ;;  %v2870_v40 = vrot.slane %v2868_v20, 4 }
 0x153   : > { %2679 = vrot.lane.b32.xlu1 %v2496_v62, %s9953_s22  ;;  %v2582_v11 = vsel %vm10113_vm13, %v2577_v61, %v10831_v23  ;;  %v2634_v4 = vor.u32 %v2633_v9, %v2629_v45  ;;  %v2616_v25 = vsel %vm10113_vm13, %v2611_v46, %v2615_v35  ;;  %v2773_v59 = vld [vmem:[#allocation2 + $0x18] sm:$0xe]  ;;  %v2875_v41 = vrot.slane %v2774_v19, 5  ;;  %v2777_v50 = vld [vmem:[#allocation2 + $0x28] sm:$0xf] }
 0x154   : > { %v1940_v29 = vpop.permute.xlu0 %1939  ;;  %v2624_v15 = vor.u32 %v2623_v6, %v2620_v5  ;;  %v9393_v31 = vrot.slane %v2773_v59, 9  ;;  %v2878_v47 = vrot.slane %v2775_v44, 5  ;;  %v2776_v53 = vld [vmem:[#allocation2 + $0x24] sm:$0xe]  ;;  %v2882_v56 = vrot.slane %v2777_v50, 5 }
 0x155   : > { %2010 = vst.msk [vmem:[#allocation4 + $0x68] sm:$0xf] %vm1983_vm0, %v1940_v29  ;;  %v1942_v33 = vpop.permute.xlu1 %1941  ;;  %v2635_v28 = vrot.slane %v2634_v4, 4  ;;  %v2639_v29 = vrot.slane %v2637_v49, 5  ;;  %v9394_v61 = vrot.slane %v2776_v53, 9  ;;  %vm2737_vm3 = vcmask 158848  }
 0x156   : > { %2011 = vst.msk [vmem:[#allocation4 + $0x6c] sm:$0xf] %vm1983_vm0, %v1942_v33  ;;  %2681 = vrot.lane.b32.xlu0 %v2510_v10, %s9953_s22  ;;  %v2606_v10 = vsel %vm10113_vm13, %v2601_v12, %v2605_v39  ;;  %v2625_v23 = vrot.slane %v2624_v15, 4  ;;  %v2877_v39 = vrot.slane %v2875_v41, 4  ;;  %v2884_v34 = vrot.slane %v2882_v56, 4 }
 0x157   : > { %2683 = vrot.lane.b32.xlu1 %v2520_v14, %s9953_s22  ;;  %v2770_v14 = vld [vmem:[#allocation2 + $0xc] sm:$0xe]  ;;  %v2640_v38 = vsel %vm10113_vm13, %v2635_v28, %v2639_v29  ;;  %v2779_v6 = vld [vmem:[#allocation2 + $0x30] sm:$0xe]  ;;  %v2781_v8 = vld [vmem:[#allocation2 + $0x38] sm:$0x1]  ;;  %v2883_v9 = vsel %vm10471_vm1, %v9394_v61, %v2882_v56 }
 0x158   : > { %v1944_v52 = vpop.permute.xlu0 %1943  ;;  %v2630_v33 = vsel %vm10113_vm13, %v2625_v23, %v2629_v45  ;;  %v2879_v0 = vsel %vm10471_vm1, %v2877_v39, %v2878_v47  ;;  %v2783_v45 = vld [vmem:[#allocation2 + $0x40] sm:$0xf]  ;;  %v2892_v35 = vrot.slane %v2781_v8, 5  ;;  %v2782_v15 = vld [vmem:[#allocation2 + $0x3c] sm:$0xe] }
 0x159   : > { %2012 = vst.msk [vmem:[#allocation4 + $0x70] sm:$0xf] %vm1983_vm0, %v1944_v52  ;;  %v1946_v57 = vpop.permute.xlu1 %1945  ;;  %v2872_v52 = vsel %vm10471_vm1, %v2870_v40, %v2871_v48  ;;  %v2784_v46 = vld [vmem:[#allocation2 + $0x44] sm:$0x1]  ;;  %v2786_v4 = vld [vmem:[#allocation2 + $0x4c] sm:$0xf] }
 0x15a   : > { %2013 = vst.msk [vmem:[#allocation4 + $0x74] sm:$0xf] %vm1983_vm0, %v1946_v57  ;;  %2685 = vrot.lane.b32.xlu0 %v2534_v36, %s9953_s22  ;;  %v9392_v36 = vrot.slane %v2770_v14, 9  ;;  %v2778_v57 = vld [vmem:[#allocation2 + $0x2c] sm:$0x1] }
 0x15b   : > { %2687 = vrot.lane.b32.xlu1 %v2544_v27, %s9953_s22  ;;  %v2885_v5 = vrot.slane %v2778_v57, 5  ;;  %v2785_v23 = vld [vmem:[#allocation2 + $0x48] sm:$0xe]  ;;  %v2787_v28 = vld [vmem:[#allocation2 + $0x50] sm:$0x1] }
 0x15c   : > { %v1948_v54 = vpop.permute.xlu0 %1947  ;;  %v2869_v51 = vsel %vm10471_vm1, %v9392_v36, %v2868_v20  ;;  %v2789_v29 = vld [vmem:[#allocation2 + $0x58] sm:$0xf]  ;;  %v9397_v20 = vrot.slane %v2785_v23, 9  ;;  %v2788_v36 = vld [vmem:[#allocation2 + $0x54] sm:$0xe] }
 0x15d   : > { %2014 = vst.msk [vmem:[#allocation4 + $0x78] sm:$0xf] %vm1983_vm0, %v1948_v54  ;;  %v1950_v62 = vpop.permute.xlu1 %1949  ;;  %v2790_v40 = vld [vmem:[#allocation2 + $0x5c] sm:$0x1]  ;;  %v2792_v48 = vld [vmem:[#allocation2 + $0x64] sm:$0xf] }
 0x15e   : > { %2015 = vst.msk [vmem:[#allocation4 + $0x7c] sm:$0xf] %vm1983_vm0, %v1950_v62  ;;  %2689 = vrot.lane.b32.xlu0 %v2558_v58, %s9953_s22  ;;  %v2780_v58 = vld [vmem:[#allocation2 + $0x34] sm:$0xf]  ;;  %v9395_v62 = vrot.slane %v2779_v6, 9  ;;  %vm11483_vm0 = vmand %vm4658_vm7, %vm459_vm4 }
 0x15f   : > { %2691 = vrot.lane.b32.xlu1 %v2568_v43, %s9953_s22  ;;  %v2876_v43 = vsel %vm10471_vm1, %v9393_v31, %v2875_v41  ;;  %v2889_v54 = vrot.slane %v2780_v58, 5  ;;  %v9398_v41 = vrot.slane %v2788_v36, 9  ;;  %v2791_v31 = vld [vmem:[#allocation2 + $0x60] sm:$0xe]  ;;  %v2793_v39 = vld [vmem:[#allocation2 + $0x68] sm:$0x1]  ;;  %vm11596_vm7 = vmand %vm4655_vm6, %vm459_vm4 }
 0x160   : > { %v2081_v16 = vpop.permute.xlu0 %2080  ;;  %v2795_v47 = vld [vmem:[#allocation2 + $0x70] sm:$0xf]  ;;  %v9399_v56 = vrot.slane %v2791_v31, 9  ;;  %v2794_v61 = vld [vmem:[#allocation2 + $0x6c] sm:$0xe]  ;;  %vm5898_vm4 = vcmask 126016  }
 0x161   : > { %2177 = vst.msk [vmem:[#allocation4] sm:$0xf] %vm2176_vm9, %v2081_v16  ;;  %v2083_v26 = vpop.permute.xlu1 %2082  ;;  %v2891_v12 = vrot.slane %v2889_v54, 4  ;;  %v2896_v16 = vrot.slane %v2783_v45, 5  ;;  %v2890_v49 = vsel %vm10471_vm1, %v9395_v62, %v2889_v54  ;;  %v9400_v54 = vrot.slane %v2794_v61, 9 }
 0x162   : > { %2178 = vst.msk [vmem:[#allocation4 + $0x4] sm:$0xf] %vm2176_vm9, %v2083_v26  ;;  %2693 = vrot.lane.b32.xlu0 %v2582_v11, %s9953_s22  ;;  %v2886_v11 = vsel %vm10471_vm1, %v2884_v34, %v2885_v5  ;;  %v9396_v26 = vrot.slane %v2782_v15, 9  ;;  %v2796_v34 = vld [vmem:[#allocation2 + $0x74] sm:$0x1] }
 0x163   : > { %2695 = vrot.lane.b32.xlu1 %v2592_v17, %s9953_s22  ;;  %v2893_v21 = vsel %vm10471_vm1, %v2891_v12, %v2892_v35  ;;  %v2898_v22 = vrot.slane %v2896_v16, 4  ;;  %v2798_v5 = vld [vmem:[#allocation2 + $0x7c] sm:$0xf]  ;;  %v2797_v62 = vld [vmem:[#allocation2 + $0x78] sm:$0xe] }
 0x164   : > { %v2085_v24 = vpop.permute.xlu0 %2084  ;;  %v2897_v14 = vsel %vm10471_vm1, %v9396_v26, %v2896_v16  ;;  %v2799_v12 = vld [vmem:[#allocation2 + $0x80] sm:$0x1]  ;;  %v2801_v35 = vld [vmem:[#allocation2 + $0x88] sm:$0xf]  ;;  %v9401_v16 = vrot.slane %v2797_v62, 9 }
 0x165   : > { %2179 = vst.msk [vmem:[#allocation4 + $0x8] sm:$0xf] %vm2176_vm9, %v2085_v24  ;;  %v2087_v30 = vpop.permute.xlu1 %2086  ;;  %v2903_v24 = vrot.slane %v2786_v4, 5  ;;  %v2800_v26 = vld [vmem:[#allocation2 + $0x84] sm:$0xe] }
 0x166   : > { %2180 = vst.msk [vmem:[#allocation4 + $0xc] sm:$0xf] %vm2176_vm9, %v2087_v30  ;;  %2697 = vrot.lane.b32.xlu0 %v2606_v10, %s9953_s22  ;;  %v2899_v10 = vrot.slane %v2784_v46, 5 }
 0x167   : > { %2699 = vrot.lane.b32.xlu1 %v2616_v25, %s9953_s22  ;;  %v2905_v19 = vrot.slane %v2903_v24, 4  ;;  %v2904_v59 = vsel %vm10471_vm1, %v9397_v20, %v2903_v24  ;;  %v9402_v24 = vrot.slane %v2800_v26, 9  ;;  %v2803_v20 = vld [vmem:[#allocation2 + $0x90] sm:$0xe] }
 0x168   : > { %v2089_v27 = vpop.permute.xlu0 %2088  ;;  %v2900_v1 = vsel %vm10471_vm1, %v2898_v22, %v2899_v10  ;;  %v2802_v22 = vld [vmem:[#allocation2 + $0x8c] sm:$0x1]  ;;  %v2804_v10 = vld [vmem:[#allocation2 + $0x94] sm:$0xf] }
 0x169   : > { %2181 = vst.msk [vmem:[#allocation4 + $0x10] sm:$0xf] %vm2176_vm9, %v2089_v27  ;;  %v2091_v42 = vpop.permute.xlu1 %2090  ;;  %v2910_v27 = vrot.slane %v2789_v29, 5 }
 0x16a   : > { %2182 = vst.msk [vmem:[#allocation4 + $0x14] sm:$0xf] %vm2176_vm9, %v2091_v42  ;;  %2701 = vrot.lane.b32.xlu0 %v2630_v33, %s9953_s22  ;;  %v2906_v33 = vrot.slane %v2787_v28, 5 }
 0x16b   : > { %2703 = vrot.lane.b32.xlu1 %v2640_v38, %s9953_s22  ;;  %v2912_v50 = vrot.slane %v2910_v27, 4  ;;  %v2911_v53 = vsel %vm10471_vm1, %v9398_v41, %v2910_v27  ;;  %v9403_v27 = vrot.slane %v2803_v20, 9  ;;  %v2806_v41 = vld [vmem:[#allocation2 + $0x9c] sm:$0xe] }
 0x16c   : > { %v2093_v60 = vpop.permute.xlu0 %2092  ;;  %v2907_v44 = vsel %vm10471_vm1, %v2905_v19, %v2906_v33  ;;  %v2805_v19 = vld [vmem:[#allocation2 + $0x98] sm:$0x1]  ;;  %v2807_v33 = vld [vmem:[#allocation2 + $0xa0] sm:$0xf] }
 0x16d   : > { %2183 = vst.msk [vmem:[#allocation4 + $0x18] sm:$0xf] %vm2176_vm9, %v2093_v60  ;;  %v2095_v32 = vpop.permute.xlu1 %2094  ;;  %v2917_v60 = vrot.slane %v2792_v48, 5 }
 0x16e   : > { %2184 = vst.msk [vmem:[#allocation4 + $0x1c] sm:$0xf] %vm2176_vm9, %v2095_v32  ;;  %2978 = vrot.lane.b32.xlu0 %v2869_v51, %s9954_s23  ;;  %v2913_v51 = vrot.slane %v2790_v40, 5 }
 0x16f   : > { %2980 = vrot.lane.b32.xlu1 %v2872_v52, %s9954_s23  ;;  %v2919_v58 = vrot.slane %v2917_v60, 4  ;;  %v2918_v6 = vsel %vm10471_vm1, %v9399_v56, %v2917_v60  ;;  %v9404_v60 = vrot.slane %v2806_v41, 9  ;;  %v2809_v56 = vld [vmem:[#allocation2 + $0xa8] sm:$0xe]  ;;  %v3114_v41 = vld [vmem:[#allocation2 + $0x3c] sm:$0xf] }
 0x170   : > { %v2097_v3 = vpop.permute.xlu0 %2096  ;;  %v2914_v57 = vsel %vm10471_vm1, %v2912_v50, %v2913_v51  ;;  %v2808_v50 = vld [vmem:[#allocation2 + $0xa4] sm:$0x1]  ;;  %v2810_v51 = vld [vmem:[#allocation2 + $0xac] sm:$0xf] }
 0x171   : > { %2185 = vst.msk [vmem:[#allocation4 + $0x20] sm:$0xf] %vm2176_vm9, %v2097_v3  ;;  %v2099_v7 = vpop.permute.xlu1 %2098  ;;  %v2924_v3 = vrot.slane %v2795_v47, 5 }
 0x172   : > { %2186 = vst.msk [vmem:[#allocation4 + $0x24] sm:$0xf] %vm2176_vm9, %v2099_v7  ;;  %2982 = vrot.lane.b32.xlu0 %v2876_v43, %s9954_s23  ;;  %v2920_v43 = vrot.slane %v2793_v39, 5 }
 0x173   : > { %2984 = vrot.lane.b32.xlu1 %v2879_v0, %s9954_s23  ;;  %v2926_v45 = vrot.slane %v2924_v3, 4  ;;  %v2925_v15 = vsel %vm10471_vm1, %v9400_v54, %v2924_v3  ;;  %v9405_v3 = vrot.slane %v2809_v56, 9  ;;  %v2812_v54 = vld [vmem:[#allocation2 + $0xb4] sm:$0xe] }
 0x174   : > { %v2101_v63 = vpop.permute.xlu0 %2100  ;;  %v2921_v8 = vsel %vm10471_vm1, %v2919_v58, %v2920_v43  ;;  %v2811_v58 = vld [vmem:[#allocation2 + $0xb0] sm:$0x1]  ;;  %v2813_v43 = vld [vmem:[#allocation2 + $0xb8] sm:$0xf] }
 0x175   : > { %2187 = vst.msk [vmem:[#allocation4 + $0x28] sm:$0xf] %vm2176_vm9, %v2101_v63  ;;  %v2103_v17 = vpop.permute.xlu1 %2102  ;;  %v2931_v63 = vrot.slane %v2798_v5, 5 }
 0x176   : > { %2188 = vst.msk [vmem:[#allocation4 + $0x2c] sm:$0xf] %vm2176_vm9, %v2103_v17  ;;  %2986 = vrot.lane.b32.xlu0 %v2883_v9, %s9954_s23  ;;  %v2927_v9 = vrot.slane %v2796_v34, 5 }
 0x177   : > { %2988 = vrot.lane.b32.xlu1 %v2886_v11, %s9954_s23  ;;  %v2933_v4 = vrot.slane %v2931_v63, 4  ;;  %v2932_v23 = vsel %vm10471_vm1, %v9401_v16, %v2931_v63  ;;  %v9406_v63 = vrot.slane %v2812_v54, 9  ;;  %v2815_v16 = vld [vmem:[#allocation2 + $0xc0] sm:$0xe]  ;;  %v3125_v54 = vld [vmem:[#allocation2 + $0x7c] sm:$0xf] }
 0x178   : > { %v2105_v18 = vpop.permute.xlu0 %2104  ;;  %v2928_v46 = vsel %vm10471_vm1, %v2926_v45, %v2927_v9  ;;  %v2814_v45 = vld [vmem:[#allocation2 + $0xbc] sm:$0x1]  ;;  %v2816_v9 = vld [vmem:[#allocation2 + $0xc4] sm:$0xf]  ;;  %v9407_v26 = vrot.slane %v2815_v16, 9 }
 0x179   : > { %2189 = vst.msk [vmem:[#allocation4 + $0x30] sm:$0xf] %vm2176_vm9, %v2105_v18  ;;  %v2107_v25 = vpop.permute.xlu1 %2106  ;;  %v2938_v18 = vrot.slane %v2801_v35, 5  ;;  %v3130_v16 = vld [vmem:[#allocation2 + $0x9c] sm:$0xf] }
 0x17a   : > { %2190 = vst.msk [vmem:[#allocation4 + $0x34] sm:$0xf] %vm2176_vm9, %v2107_v25  ;;  %2990 = vrot.lane.b32.xlu0 %v2890_v49, %s9954_s23  ;;  %v2934_v49 = vrot.slane %v2799_v12, 5 }
 0x17b   : > { %2992 = vrot.lane.b32.xlu1 %v2893_v21, %s9954_s23  ;;  %v2940_v29 = vrot.slane %v2938_v18, 4  ;;  %v2939_v36 = vsel %vm10471_vm1, %v9402_v24, %v2938_v18 }
 0x17c   : > { %v2109_v30 = vpop.permute.xlu0 %2108  ;;  %v2935_v28 = vsel %vm10471_vm1, %v2933_v4, %v2934_v49  ;;  %v2817_v4 = vld [vmem:[#allocation2 + $0xc8] sm:$0x1] }
 0x17d   : > { %2191 = vst.msk [vmem:[#allocation4 + $0x38] sm:$0xf] %vm2176_vm9, %v2109_v30  ;;  %v2111_v38 = vpop.permute.xlu1 %2110  ;;  %v2945_v30 = vrot.slane %v2804_v10, 5  ;;  %v2976_v10 = vrot.slane %v2817_v4, 5  ;;  %v3131_v4 = vld [vmem:[#allocation2 + $0xa0] sm:$0xf] }
 0x17e   : > { %2192 = vst.msk [vmem:[#allocation4 + $0x3c] sm:$0xf] %vm2176_vm9, %v2111_v38  ;;  %2994 = vrot.lane.b32.xlu0 %v2897_v14, %s9954_s23  ;;  %v2941_v14 = vrot.slane %v2802_v22, 5 }
 0x17f   : > { %2996 = vrot.lane.b32.xlu1 %v2900_v1, %s9954_s23  ;;  %v2947_v48 = vrot.slane %v2945_v30, 4  ;;  %v2946_v31 = vsel %vm10471_vm1, %v9403_v27, %v2945_v30  ;;  %v3109_v30 = vld [vmem:[#allocation2 + $0x1c] sm:$0xf] }
 0x180   : > { %v2113_v42 = vpop.permute.xlu0 %2112  ;;  %v2942_v40 = vsel %vm10471_vm1, %v2940_v29, %v2941_v14  ;;  %v3108_v14 = vld [vmem:[#allocation2 + $0x18] sm:$0xf] }
 0x181   : > { %2193 = vst.msk [vmem:[#allocation4 + $0x40] sm:$0xf] %vm2176_vm9, %v2113_v42  ;;  %v2115_v52 = vpop.permute.xlu1 %2114  ;;  %v2952_v42 = vrot.slane %v2807_v33, 5 }
 0x182   : > { %2194 = vst.msk [vmem:[#allocation4 + $0x44] sm:$0xf] %vm2176_vm9, %v2115_v52  ;;  %2998 = vrot.lane.b32.xlu0 %v2904_v59, %s9954_s23  ;;  %v2948_v59 = vrot.slane %v2805_v19, 5  ;;  %v3110_v19 = vld [vmem:[#allocation2 + $0x24] sm:$0xf] }
 0x183   : > { %3000 = vrot.lane.b32.xlu1 %v2907_v44, %s9954_s23  ;;  %v2954_v47 = vrot.slane %v2952_v42, 4  ;;  %v2953_v61 = vsel %vm10471_vm1, %v9404_v60, %v2952_v42  ;;  %v3117_v60 = vld [vmem:[#allocation2 + $0x4c] sm:$0xf] }
 0x184   : > { %v2117_v32 = vpop.permute.xlu0 %2116  ;;  %v2949_v39 = vsel %vm10471_vm1, %v2947_v48, %v2948_v59  ;;  %v3113_v48 = vld [vmem:[#allocation2 + $0x34] sm:$0xf] }
 0x185   : > { %2195 = vst.msk [vmem:[#allocation4 + $0x48] sm:$0xf] %vm2176_vm9, %v2117_v32  ;;  %v2119_v0 = vpop.permute.xlu1 %2118  ;;  %v2959_v32 = vrot.slane %v2810_v51, 5  ;;  %v3116_v51 = vld [vmem:[#allocation2 + $0x48] sm:$0xf] }
 0x186   : > { %2196 = vst.msk [vmem:[#allocation4 + $0x4c] sm:$0xf] %vm2176_vm9, %v2119_v0  ;;  %3002 = vrot.lane.b32.xlu0 %v2911_v53, %s9954_s23  ;;  %v2955_v53 = vrot.slane %v2808_v50, 5 }
 0x187   : > { %3004 = vrot.lane.b32.xlu1 %v2914_v57, %s9954_s23  ;;  %v2961_v5 = vrot.slane %v2959_v32, 4  ;;  %v2960_v62 = vsel %vm10471_vm1, %v9405_v3, %v2959_v32  ;;  %v3120_v32 = vld [vmem:[#allocation2 + $0x60] sm:$0xf] }
 0x188   : > { %v2121_v7 = vpop.permute.xlu0 %2120  ;;  %v2956_v34 = vsel %vm10471_vm1, %v2954_v47, %v2955_v53  ;;  %v3119_v53 = vld [vmem:[#allocation2 + $0x58] sm:$0xf] }
 0x189   : > { %2197 = vst.msk [vmem:[#allocation4 + $0x50] sm:$0xf] %vm2176_vm9, %v2121_v7  ;;  %v2123_v11 = vpop.permute.xlu1 %2122  ;;  %v2966_v7 = vrot.slane %v2813_v43, 5 }
 0x18a   : > { %2198 = vst.msk [vmem:[#allocation4 + $0x54] sm:$0xf] %vm2176_vm9, %v2123_v11  ;;  %3006 = vrot.lane.b32.xlu0 %v2918_v6, %s9954_s23  ;;  %v2962_v6 = vrot.slane %v2811_v58, 5  ;;  %v3121_v58 = vld [vmem:[#allocation2 + $0x64] sm:$0xf] }
 0x18b   : > { %3008 = vrot.lane.b32.xlu1 %v2921_v8, %s9954_s23  ;;  %v2968_v35 = vrot.slane %v2966_v7, 4  ;;  %v2967_v49 = vsel %vm10471_vm1, %v9406_v63, %v2966_v7  ;;  %v3128_v63 = vld [vmem:[#allocation2 + $0x90] sm:$0xf] }
 0x18c   : > { %v2125_v17 = vpop.permute.xlu0 %2124  ;;  %v2963_v12 = vsel %vm10471_vm1, %v2961_v5, %v2962_v6  ;;  %v3124_v5 = vld [vmem:[#allocation2 + $0x78] sm:$0xf] }
 0x18d   : > { %2199 = vst.msk [vmem:[#allocation4 + $0x58] sm:$0xf] %vm2176_vm9, %v2125_v17  ;;  %v2127_v21 = vpop.permute.xlu1 %2126  ;;  %v2973_v17 = vrot.slane %v2816_v9, 5  ;;  %v3127_v9 = vld [vmem:[#allocation2 + $0x88] sm:$0xf] }
 0x18e   : > { %2200 = vst.msk [vmem:[#allocation4 + $0x5c] sm:$0xf] %vm2176_vm9, %v2127_v21  ;;  %3010 = vrot.lane.b32.xlu0 %v2925_v15, %s9954_s23  ;;  %v2969_v15 = vrot.slane %v2814_v45, 5 }
 0x18f   : > { %3012 = vrot.lane.b32.xlu1 %v2928_v46, %s9954_s23  ;;  %v2975_v22 = vrot.slane %v2973_v17, 4  ;;  %v2974_v24 = vsel %vm10471_vm1, %v9407_v26, %v2973_v17  ;;  %v3301_v17 = vld [vmem:[#allocation2 + $0x18] sm:$0xf]  ;;  %v3302_v26 = vld [vmem:[#allocation2 + $0x1c] sm:$0xf] }
 0x190   : > { %v2129_v25 = vpop.permute.xlu0 %2128  ;;  %v2970_v21 = vsel %vm10471_vm1, %v2968_v35, %v2969_v15  ;;  %v512_v15 = vld [vmem:[#allocation2 + $0xd4] sm:$0x1] }
 0x191   : > { %2201 = vst.msk [vmem:[#allocation4 + $0x60] sm:$0xf] %vm2176_vm9, %v2129_v25  ;;  %v2131_v1 = vpop.permute.xlu1 %2130 }
 0x192   : > { %2202 = vst.msk [vmem:[#allocation4 + $0x64] sm:$0xf] %vm2176_vm9, %v2131_v1  ;;  %3014 = vrot.lane.b32.xlu0 %v2932_v23, %s9954_s23 }
 0x193   : > { %3016 = vrot.lane.b32.xlu1 %v2935_v28, %s9954_s23  ;;  %v2977_v28 = vsel %vm10471_vm1, %v2975_v22, %v2976_v10  ;;  %v3353_v22 = vshll.u32 %v3301_v17, 16  ;;  %v3304_v10 = vld [vmem:[#allocation2 + $0x24] sm:$0xf] }
 0x194   : > { %v2133_v38 = vpop.permute.xlu0 %2132 }
 0x195   : > { %2203 = vst.msk [vmem:[#allocation4 + $0x68] sm:$0xf] %vm2176_vm9, %v2133_v38  ;;  %v2135_v44 = vpop.permute.xlu1 %2134  ;;  %v3112_v38 = vld [vmem:[#allocation2 + $0x30] sm:$0xf] }
 0x196   : > { %2204 = vst.msk [vmem:[#allocation4 + $0x6c] sm:$0xf] %vm2176_vm9, %v2135_v44  ;;  %3018 = vrot.lane.b32.xlu0 %v2939_v36, %s9954_s23  ;;  %v3111_v36 = vld [vmem:[#allocation2 + $0x28] sm:$0xf]  ;;  %v3115_v44 = vld [vmem:[#allocation2 + $0x40] sm:$0xf] }
 0x197   : > { %3020 = vrot.lane.b32.xlu1 %v2942_v40, %s9954_s23 }
 0x198   : > { %v2137_v52 = vpop.permute.xlu0 %2136 }
 0x199   : > { %2205 = vst.msk [vmem:[#allocation4 + $0x70] sm:$0xf] %vm2176_vm9, %v2137_v52  ;;  %v2139_v57 = vpop.permute.xlu1 %2138 }
 0x19a   : > { %2206 = vst.msk [vmem:[#allocation4 + $0x74] sm:$0xf] %vm2176_vm9, %v2139_v57  ;;  %3022 = vrot.lane.b32.xlu0 %v2946_v31, %s9954_s23 }
 0x19b   : > { %3024 = vrot.lane.b32.xlu1 %v2949_v39, %s9954_s23  ;;  %v3118_v39 = vld [vmem:[#allocation2 + $0x54] sm:$0xf] }
 0x19c   : > { %v2141_v0 = vpop.permute.xlu0 %2140 }
 0x19d   : > { %2207 = vst.msk [vmem:[#allocation4 + $0x78] sm:$0xf] %vm2176_vm9, %v2141_v0  ;;  %v2143_v8 = vpop.permute.xlu1 %2142  ;;  %v3123_v0 = vld [vmem:[#allocation2 + $0x70] sm:$0xf] }
 0x19e   : > { %2208 = vst.msk [vmem:[#allocation4 + $0x7c] sm:$0xf] %vm2176_vm9, %v2143_v8  ;;  %3026 = vrot.lane.b32.xlu0 %v2953_v61, %s9954_s23  ;;  %v3122_v61 = vld [vmem:[#allocation2 + $0x6c] sm:$0xf]  ;;  %v3126_v8 = vld [vmem:[#allocation2 + $0x84] sm:$0xf] }
 0x19f   : > { %3028 = vrot.lane.b32.xlu1 %v2956_v34, %s9954_s23  ;;  %vm8892_vm9 = vcmask 31744  }
 0x1a0   : > { %v2642_v11 = vpop.permute.xlu0 %2641 }
 0x1a1   : > { %2738 = vst.msk [vmem:[#allocation4] sm:$0xf] %vm2737_vm3, %v2642_v11  ;;  %v2644_v46 = vpop.permute.xlu1 %2643 }
 0x1a2   : > { %2739 = vst.msk [vmem:[#allocation4 + $0x4] sm:$0xf] %vm2737_vm3, %v2644_v46  ;;  %3030 = vrot.lane.b32.xlu0 %v2960_v62, %s9954_s23 }
 0x1a3   : > { %3032 = vrot.lane.b32.xlu1 %v2963_v12, %s9954_s23  ;;  %v3129_v12 = vld [vmem:[#allocation2 + $0x94] sm:$0xf] }
 0x1a4   : > { %v2646_v18 = vpop.permute.xlu0 %2645 }
 0x1a5   : > { %2740 = vst.msk [vmem:[#allocation4 + $0x8] sm:$0xf] %vm2737_vm3, %v2646_v18  ;;  %v2648_v23 = vpop.permute.xlu1 %2647  ;;  %v513_v18 = vsel %vm10035_vm5, 0, %v512_v15  ;;  %vm3074_vm5 = vcmask 191648  }
 0x1a6   : > { %2741 = vst.msk [vmem:[#allocation4 + $0xc] sm:$0xf] %vm2737_vm3, %v2648_v23  ;;  %3034 = vrot.lane.b32.xlu0 %v2967_v49, %s9954_s23  ;;  %514 = vst [vmem:[#allocation2 + $0xd4] sm:$0x1] %v513_v18  ;;  %v3132_v23 = vld [vmem:[#allocation2 + $0xa8] sm:$0xf] }
 0x1a7   : > { %3036 = vrot.lane.b32.xlu1 %v2970_v21, %s9954_s23  ;;  %v3350_v21 = vshrl.u32 %v3301_v17, 16  ;;  %v9868_v15 = vld [vmem:[%s13038_s1 + $0x10] ss:$0 sps:$4 sm:$0x33]   ;;  %v3862_v17 = vld [vmem:[#allocation2 + $0x18] sm:$0xe] }
 0x1a8   : > { %v2650_v25 = vpop.permute.xlu0 %2649  ;;  %9843 = vmatprep.subr.msk.bf16.mxu0 %vm4380_vm2, %v9868_v15  ;;  %9844 = vmatprep.subr.msk.bf16.mxu1 %vm4380_vm2, %v9868_v15 }
 0x1a9   : > { %2742 = vst.msk [vmem:[#allocation4 + $0x10] sm:$0xf] %vm2737_vm3, %v2650_v25  ;;  %v2652_v29 = vpop.permute.xlu1 %2651  ;;  %v3133_v25 = vld [vmem:[#allocation2 + $0xac] sm:$0xf] }
 0x1aa   : > { %2743 = vst.msk [vmem:[#allocation4 + $0x14] sm:$0xf] %vm2737_vm3, %v2652_v29  ;;  %3038 = vrot.lane.b32.xlu0 %v2974_v24, %s9954_s23  ;;  %v3363_v29 = vshrl.u32 %v3302_v26, 16 }
 0x1ab   : > { %3040 = vrot.lane.b32.xlu1 %v2977_v28, %s9954_s23  ;;  %v3359_v28 = vshll.u32 %v3302_v26, 16 }
 0x1ac   : > { %v2654_v20 = vpop.permute.xlu0 %2653 }
 0x1ad   : > { %2744 = vst.msk [vmem:[#allocation4 + $0x18] sm:$0xf] %vm2737_vm3, %v2654_v20  ;;  %v2656_v1 = vpop.permute.xlu1 %2655  ;;  %v3374_v20 = vshrl.u32 %v3304_v10, 16 }
 0x1ae   : > { %2745 = vst.msk [vmem:[#allocation4 + $0x1c] sm:$0xf] %vm2737_vm3, %v2656_v1  ;;  %3172 = vrot.lane.b32.xlu0 %v3108_v14, %s9955_s24  ;;  %v3305_v14 = vld [vmem:[#allocation2 + $0x28] sm:$0xf]  ;;  %v3352_v1 = vrot.slane %v3350_v21, 4 }
 0x1af   : > { %3174 = vrot.lane.b32.xlu1 %v3109_v30, %s9955_s24  ;;  %v3377_v30 = vshll.u32 %v3304_v10, 16  ;;  %v3310_v21 = vld [vmem:[#allocation2 + $0x3c] sm:$0xf] }
 0x1b0   : > { %v2658_v33 = vpop.permute.xlu0 %2657 }
 0x1b1   : > { %2746 = vst.msk [vmem:[#allocation4 + $0x20] sm:$0xf] %vm2737_vm3, %v2658_v33  ;;  %v2660_v27 = vpop.permute.xlu1 %2659  ;;  %v3134_v33 = vld [vmem:[#allocation2 + $0xb4] sm:$0xf] }
 0x1b2   : > { %2747 = vst.msk [vmem:[#allocation4 + $0x24] sm:$0xf] %vm2737_vm3, %v2660_v27  ;;  %3176 = vrot.lane.b32.xlu0 %v3110_v19, %s9955_s24  ;;  %v3355_v19 = vrot.slane %v3353_v22, 5  ;;  %v3387_v27 = vshrl.u32 %v3305_v14, 16  ;;  %v4382_v22 = vsel %vm4380_vm2, %v9868_v15, 0 }
 0x1b3   : > { %3178 = vrot.lane.b32.xlu1 %v3111_v36, %s9955_s24  ;;  %v3383_v36 = vshll.u32 %v3305_v14, 16  ;;  %9724 = vmatpush3.bf16.msra.mxu0 %v4382_v22 }
 0x1b4   : > { %v2662_v40 = vpop.permute.xlu0 %2661  ;;  %9840 = vmatpush3.bf16.msra.mxu1 %v4382_v22  ;;  %v3316_v22 = vld [vmem:[#allocation2 + $0x54] sm:$0xf] }
 0x1b5   : > { %2748 = vst.msk [vmem:[#allocation4 + $0x28] sm:$0xf] %vm2737_vm3, %v2662_v40  ;;  %v2664_v59 = vpop.permute.xlu1 %2663  ;;  %v3135_v40 = vld [vmem:[#allocation2 + $0xb8] sm:$0xf] }
 0x1b6   : > { %2749 = vst.msk [vmem:[#allocation4 + $0x2c] sm:$0xf] %vm2737_vm3, %v2664_v59  ;;  %3180 = vrot.lane.b32.xlu0 %v3112_v38, %s9955_s24  ;;  %v3303_v59 = vld [vmem:[#allocation2 + $0x20] sm:$0x1] }
 0x1b7   : > { %3182 = vrot.lane.b32.xlu1 %v3113_v48, %s9955_s24  ;;  %v11067_v48 = vrot.slane %v3359_v28, 5 }
 0x1b8   : > { %v2666_v42 = vpop.permute.xlu0 %2665 }
 0x1b9   : > { %2750 = vst.msk [vmem:[#allocation4 + $0x30] sm:$0xf] %vm2737_vm3, %v2666_v42  ;;  %v2668_v50 = vpop.permute.xlu1 %2667 }
 0x1ba   : > { %2751 = vst.msk [vmem:[#allocation4 + $0x34] sm:$0xf] %vm2737_vm3, %v2668_v50  ;;  %3184 = vrot.lane.b32.xlu0 %v3114_v41, %s9955_s24  ;;  %v3365_v41 = vrot.slane %v3363_v29, 4  ;;  %v3379_v50 = vrot.slane %v3377_v30, 5  ;;  %v9869_v30 = vld [vmem:[%s13038_s1 + $0x8] sm:$0xff]  }
 0x1bb   : > { %3186 = vrot.lane.b32.xlu1 %v3115_v44, %s9955_s24  ;;  %v3376_v44 = vrot.slane %v3374_v20, 4  ;;  %v3311_v20 = vld [vmem:[#allocation2 + $0x40] sm:$0xf]  ;;  %9725 = vmatprep.subr.bf16.mxu0 %v9869_v30 }
 0x1bc   : > { %v2670_v31 = vpop.permute.xlu0 %2669  ;;  %9726 = vmatpush3.bf16.msra.mxu0 %v9869_v30  ;;  %9838 = vmatprep.subr.bf16.mxu1 %v9869_v30 }
 0x1bd   : > { %2752 = vst.msk [vmem:[#allocation4 + $0x38] sm:$0xf] %vm2737_vm3, %v2670_v31  ;;  %v2672_v52 = vpop.permute.xlu1 %2671  ;;  %v3356_v31 = vor.u32 %v3355_v19, %v3352_v1  ;;  %9841 = vmatpush3.bf16.msra.mxu1 %v9869_v30 }
 0x1be   : > { %2753 = vst.msk [vmem:[#allocation4 + $0x3c] sm:$0xf] %vm2737_vm3, %v2672_v52  ;;  %3188 = vrot.lane.b32.xlu0 %v3116_v51, %s9955_s24  ;;  %v3306_v51 = vld [vmem:[#allocation2 + $0x2c] sm:$0x1]  ;;  %v3369_v52 = vshll.u32 %v3303_v59, 16 }
 0x1bf   : > { %3190 = vrot.lane.b32.xlu1 %v3117_v60, %s9955_s24  ;;  %v3136_v60 = vld [vmem:[#allocation2 + $0xc0] sm:$0xf] }
 0x1c0   : > { %v2674_v47 = vpop.permute.xlu0 %2673 }
 0x1c1   : > { %2754 = vst.msk [vmem:[#allocation4 + $0x40] sm:$0xf] %vm2737_vm3, %v2674_v47  ;;  %v2676_v56 = vpop.permute.xlu1 %2675  ;;  %v3389_v47 = vrot.slane %v3387_v27, 4 }
 0x1c2   : > { %2755 = vst.msk [vmem:[#allocation4 + $0x44] sm:$0xf] %vm2737_vm3, %v2676_v56  ;;  %3192 = vrot.lane.b32.xlu0 %v3118_v39, %s9955_s24  ;;  %v11073_v39 = vrot.slane %v3383_v36, 5  ;;  %v3137_v56 = vld [vmem:[#allocation2 + $0xc4] sm:$0xf]  ;;  %v3425_v36 = vshll.u32 %v3310_v21, 16 }
 0x1c3   : > { %3194 = vrot.lane.b32.xlu1 %v3119_v53, %s9955_s24 }
 0x1c4   : > { %v2678_v57 = vpop.permute.xlu0 %2677 }
 0x1c5   : > { %2756 = vst.msk [vmem:[#allocation4 + $0x48] sm:$0xf] %vm2737_vm3, %v2678_v57  ;;  %v2680_v43 = vpop.permute.xlu1 %2679  ;;  %v3393_v57 = vshll.u32 %v3306_v51, 16  ;;  %v3431_v51 = vshll.u32 %v3311_v20, 16 }
 0x1c6   : > { %2757 = vst.msk [vmem:[#allocation4 + $0x4c] sm:$0xf] %vm2737_vm3, %v2680_v43  ;;  %3196 = vrot.lane.b32.xlu0 %v3120_v32, %s9955_s24  ;;  %v3366_v32 = vor.u32 %v3365_v41, %v11067_v48  ;;  %v3380_v43 = vor.u32 %v3379_v50, %v3376_v44 }
 0x1c7   : > { %3198 = vrot.lane.b32.xlu1 %v3121_v58, %s9955_s24 }
 0x1c8   : > { %v2682_v3 = vpop.permute.xlu0 %2681 }
 0x1c9   : > { %2758 = vst.msk [vmem:[#allocation4 + $0x50] sm:$0xf] %vm2737_vm3, %v2682_v3  ;;  %v2684_v34 = vpop.permute.xlu1 %2683  ;;  %v3139_v3 = vld [vmem:[#allocation2 + $0xd0] sm:$0xf] }
 0x1ca   : > { %2759 = vst.msk [vmem:[#allocation4 + $0x54] sm:$0xf] %vm2737_vm3, %v2684_v34  ;;  %3200 = vrot.lane.b32.xlu0 %v3122_v61, %s9955_s24  ;;  %v3138_v61 = vld [vmem:[#allocation2 + $0xcc] sm:$0xf]  ;;  %v3371_v34 = vrot.slane %v3369_v52, 5 }
 0x1cb   : > { %3202 = vrot.lane.b32.xlu1 %v3123_v0, %s9955_s24  ;;  %v3357_v0 = vrot.slane %v3356_v31, 4  ;;  %v3435_v31 = vshrl.u32 %v3311_v20, 16  ;;  %v3309_v52 = vld [vmem:[#allocation2 + $0x38] sm:$0x1] }
 0x1cc   : > { %v2686_v6 = vpop.permute.xlu0 %2685  ;;  %v3870_v20 = vld [vmem:[#allocation2 + $0x38] sm:$0x1] }
 0x1cd   : > { %2760 = vst.msk [vmem:[#allocation4 + $0x58] sm:$0xf] %vm2737_vm3, %v2686_v6  ;;  %v2688_v7 = vpop.permute.xlu1 %2687  ;;  %v11081_v6 = vld [vmem:[#allocation2 + $0x1c] sm:$0xf] }
 0x1ce   : > { %2761 = vst.msk [vmem:[#allocation4 + $0x5c] sm:$0xf] %vm2737_vm3, %v2688_v7  ;;  %3204 = vrot.lane.b32.xlu0 %v3124_v5, %s9955_s24  ;;  %v3390_v5 = vor.u32 %v3389_v47, %v11073_v39  ;;  %v4666_v7 = vld [vmem:[#allocation3] sm:$0x1] }
 0x1cf   : > { %3206 = vrot.lane.b32.xlu1 %v3125_v54, %s9955_s24 }
 0x1d0   : > { %v2690_v45 = vpop.permute.xlu0 %2689 }
 0x1d1   : > { %2762 = vst.msk [vmem:[#allocation4 + $0x60] sm:$0xf] %vm2737_vm3, %v2690_v45  ;;  %v2692_v62 = vpop.permute.xlu1 %2691  ;;  %v3367_v45 = vrot.slane %v3366_v32, 4  ;;  %v3427_v32 = vrot.slane %v3425_v36, 5  ;;  %v3470_v36 = vshrl.u32 %v3316_v22, 16 }
 0x1d2   : > { %2763 = vst.msk [vmem:[#allocation4 + $0x64] sm:$0xf] %vm2737_vm3, %v2692_v62  ;;  %3208 = vrot.lane.b32.xlu0 %v3126_v8, %s9955_s24  ;;  %v3307_v62 = vld [vmem:[#allocation2 + $0x30] sm:$0xf] }
 0x1d3   : > { %3210 = vrot.lane.b32.xlu1 %v3127_v9, %s9955_s24  ;;  %v11089_v9 = vrot.slane %v3393_v57, 5  ;;  %v3398_v26 = vshrl.u32 %v3307_v62, 16  ;;  %v3401_v18 = vshll.u32 %v3307_v62, 16 }
 0x1d4   : > { %v2694_v11 = vpop.permute.xlu0 %2693 }
 0x1d5   : > { %2764 = vst.msk [vmem:[#allocation4 + $0x68] sm:$0xf] %vm2737_vm3, %v2694_v11  ;;  %v2696_v35 = vpop.permute.xlu1 %2695  ;;  %v3403_v59 = vrot.slane %v3401_v18, 5 }
 0x1d6   : > { %2765 = vst.msk [vmem:[#allocation4 + $0x6c] sm:$0xf] %vm2737_vm3, %v2696_v35  ;;  %3212 = vrot.lane.b32.xlu0 %v3128_v63, %s9955_s24  ;;  %v4667_v63 = vsel %vm11085_vm10, 0, %v4666_v7  ;;  %v3308_v35 = vld [vmem:[#allocation2 + $0x34] sm:$0xf]  ;;  %v3437_v7 = vrot.slane %v3435_v31, 4 }
 0x1d7   : > { %3214 = vrot.lane.b32.xlu1 %v3129_v12, %s9955_s24  ;;  %v3381_v12 = vrot.slane %v3380_v43, 4  ;;  %4668 = vst [vmem:[#allocation3] sm:$0x1] %v4667_v63  ;;  %v3411_v28 = vshrl.u32 %v3308_v35, 16 }
 0x1d8   : > { %v2698_v46 = vpop.permute.xlu0 %2697 }
 0x1d9   : > { %2766 = vst.msk [vmem:[#allocation4 + $0x70] sm:$0xf] %vm2737_vm3, %v2698_v46  ;;  %v2700_v49 = vpop.permute.xlu1 %2699  ;;  %v3960_v46 = vrot.slane %v11081_v6, 5  ;;  %v3386_v14 = vsel %vm10113_vm13, %v3381_v12, %v11073_v39  ;;  %v3413_v50 = vrot.slane %v3411_v28, 4  ;;  %v9870_v39 = vld [vmem:[%s13038_s1] sm:$0xff]   ;;  %v11139_v6 = vrot.slane %v3431_v51, 5 }
 0x1da   : > { %2767 = vst.msk [vmem:[#allocation4 + $0x74] sm:$0xf] %vm2737_vm3, %v2700_v49  ;;  %3216 = vrot.lane.b32.xlu0 %v3130_v16, %s9955_s24  ;;  %v3362_v16 = vsel %vm10113_vm13, %v3357_v0, %v11067_v48  ;;  %v3391_v49 = vrot.slane %v3390_v5, 4  ;;  %v3400_v48 = vrot.slane %v3398_v26, 4  ;;  %9727 = vmatprep.subr.bf16.mxu0 %v9870_v39  ;;  %v3417_v5 = vshll.u32 %v3309_v52, 16 }
 0x1db   : > { %3218 = vrot.lane.b32.xlu1 %v3131_v4, %s9955_s24  ;;  %v3864_v4 = vld [vmem:[#allocation2 + $0x20] sm:$0x1]  ;;  %v3962_v1 = vrot.slane %v3960_v46, 4  ;;  %9728 = vmatpush3.bf16.msra.mxu0 %v9870_v39  ;;  %v3317_v28 = vld [vmem:[#allocation2 + $0x58] sm:$0xf] }
 0x1dc   : > { %v2702_v24 = vpop.permute.xlu0 %2701  ;;  %v3963_v19 = vrot.slane %v3864_v4, 5  ;;  %v3396_v27 = vsel %vm10113_vm13, %v3391_v49, %v11089_v9  ;;  %9839 = vmatprep.subr.bf16.mxu1 %v9870_v39  ;;  %v3314_v49 = vld [vmem:[#allocation2 + $0x4c] sm:$0xf] }
 0x1dd   : > { %2768 = vst.msk [vmem:[#allocation4 + $0x78] sm:$0xf] %vm2737_vm3, %v2702_v24  ;;  %v2704_v2 = vpop.permute.xlu1 %2703  ;;  %v11108_v24 = vld [vmem:[#allocation2 + $0x28] sm:$0xf]  ;;  %9842 = vmatpush3.bf16.msra.mxu1 %v9870_v39  ;;  %v3455_v30 = vshll.u32 %v3314_v49, 16 }
 0x1de   : > { %2769 = vst.msk [vmem:[#allocation4 + $0x7c] sm:$0xf] %vm2737_vm3, %v2704_v2  ;;  %3220 = vrot.lane.b32.xlu0 %v3132_v23, %s9955_s24  ;;  %v3372_v23 = vsel %vm10113_vm13, %v3367_v45, %v3371_v34  ;;  %v9408_v2 = vrot.slane %v3862_v17, 9  ;;  %v3438_v17 = vor.u32 %v3437_v7, %v11139_v6  ;;  %vm6428_vm3 = vcmask 257216  }
 0x1df   : > { %3222 = vrot.lane.b32.xlu1 %v3133_v25, %s9955_s24  ;;  %v3407_v25 = vshll.u32 %v3308_v35, 16  ;;  %v11171_v39 = vrot.slane %v3455_v30, 5  ;;  %v3322_v30 = vld [vmem:[#allocation2 + $0x6c] sm:$0xf] }
 0x1e0   : > { %v2979_v38 = vpop.permute.xlu0 %2978  ;;  %v3961_v47 = vsel %vm10471_vm1, %v9408_v2, %v3960_v46  ;;  %v3313_v46 = vld [vmem:[#allocation2 + $0x48] sm:$0xf]  ;;  %v3439_v2 = vrot.slane %v3438_v17, 4  ;;  %v3875_v17 = vld [vmem:[#allocation2 + $0x4c] sm:$0xf] }
 0x1e1   : > { %3075 = vst.msk [vmem:[#allocation4] sm:$0xf] %vm3074_vm5, %v2979_v38  ;;  %v2981_v42 = vpop.permute.xlu1 %2980  ;;  %v3865_v38 = vld [vmem:[#allocation2 + $0x24] sm:$0xe]  ;;  %v11125_v44 = vrot.slane %v3407_v25, 5  ;;  %v3449_v25 = vshll.u32 %v3313_v46, 16 }
 0x1e2   : > { %3076 = vst.msk [vmem:[#allocation4 + $0x4] sm:$0xf] %vm3074_vm5, %v2981_v42  ;;  %3224 = vrot.lane.b32.xlu0 %v3134_v33, %s9955_s24  ;;  %v3422_v33 = vshrl.u32 %v3310_v21, 16  ;;  %v3867_v42 = vld [vmem:[#allocation2 + $0x2c] sm:$0x1]  ;;  %v9409_v57 = vrot.slane %v3865_v38, 9 }
 0x1e3   : > { %3226 = vrot.lane.b32.xlu1 %v3135_v40, %s9955_s24  ;;  %v3967_v40 = vrot.slane %v11108_v24, 5  ;;  %v3970_v43 = vrot.slane %v3867_v42, 5  ;;  %v3414_v34 = vor.u32 %v3413_v50, %v11125_v44  ;;  %v3446_v24 = vshrl.u32 %v3313_v46, 16 }
 0x1e4   : > { %v2983_v53 = vpop.permute.xlu0 %2982  ;;  %v3977_v42 = vrot.slane %v3870_v20, 5  ;;  %v3451_v50 = vrot.slane %v3449_v25, 5  ;;  %v3874_v25 = vld [vmem:[#allocation2 + $0x48] sm:$0xe] }
 0x1e5   : > { %3077 = vst.msk [vmem:[#allocation4 + $0x8] sm:$0xf] %vm3074_vm5, %v2983_v53  ;;  %v2985_v58 = vpop.permute.xlu1 %2984  ;;  %v3964_v53 = vsel %vm10471_vm1, %v3962_v1, %v3963_v19  ;;  %v3968_v62 = vsel %vm10471_vm1, %v9409_v57, %v3967_v40  ;;  %v3415_v15 = vrot.slane %v3414_v34, 4  ;;  %v3459_v1 = vshrl.u32 %v3314_v49, 16 }
 0x1e6   : > { %3078 = vst.msk [vmem:[#allocation4 + $0xc] sm:$0xf] %vm3074_vm5, %v2985_v58  ;;  %3228 = vrot.lane.b32.xlu0 %v3136_v60, %s9955_s24  ;;  %v3969_v58 = vrot.slane %v3967_v40, 4  ;;  %v3472_v57 = vrot.slane %v3470_v36, 4 }
 0x1e7   : > { %3230 = vrot.lane.b32.xlu1 %v3137_v56, %s9955_s24  ;;  %v3424_v56 = vrot.slane %v3422_v33, 4  ;;  %v3872_v33 = vld [vmem:[#allocation2 + $0x40] sm:$0xf] }
 0x1e8   : > { %v2987_v8 = vpop.permute.xlu0 %2986  ;;  %v3971_v35 = vsel %vm10471_vm1, %v3969_v58, %v3970_v43  ;;  %v3981_v52 = vrot.slane %v3872_v33, 5  ;;  %v3878_v33 = vld [vmem:[#allocation2 + $0x58] sm:$0xf] }
 0x1e9   : > { %3079 = vst.msk [vmem:[#allocation4 + $0x10] sm:$0xf] %vm3074_vm5, %v2987_v8  ;;  %v2989_v11 = vpop.permute.xlu1 %2988  ;;  %v3428_v45 = vor.u32 %v3427_v32, %v3424_v56  ;;  %v3873_v56 = vld [vmem:[#allocation2 + $0x44] sm:$0x1]  ;;  %v3315_v32 = vld [vmem:[#allocation2 + $0x50] sm:$0x1] }
 0x1ea   : > { %3080 = vst.msk [vmem:[#allocation4 + $0x14] sm:$0xf] %vm3074_vm5, %v2989_v11  ;;  %3232 = vrot.lane.b32.xlu0 %v3138_v61, %s9955_s24  ;;  %v3404_v61 = vor.u32 %v3403_v59, %v3400_v48  ;;  %v11147_v11 = vld [vmem:[#allocation2 + $0x34] sm:$0xf]  ;;  %v3479_v48 = vshll.u32 %v3317_v28, 16  ;;  %v3483_v59 = vshrl.u32 %v3317_v28, 16 }
 0x1eb   : > { %3234 = vrot.lane.b32.xlu1 %v3139_v3, %s9955_s24  ;;  %v3312_v3 = vld [vmem:[#allocation2 + $0x44] sm:$0x1]  ;;  %v3429_v26 = vrot.slane %v3428_v45, 4  ;;  %v3974_v21 = vrot.slane %v11147_v11, 5  ;;  %v3984_v45 = vrot.slane %v3873_v56, 5  ;;  %v3988_v28 = vrot.slane %v3875_v17, 5 }
 0x1ec   : > { %v2991_v10 = vpop.permute.xlu0 %2990  ;;  %v3441_v9 = vshll.u32 %v3312_v3, 16  ;;  %v3405_v63 = vrot.slane %v3404_v61, 4  ;;  %v11176_v43 = vrot.slane %v3479_v48, 5  ;;  %v3485_v61 = vrot.slane %v3483_v59, 4  ;;  %v3323_v59 = vld [vmem:[#allocation2 + $0x70] sm:$0xf] }
 0x1ed   : > { %3081 = vst.msk [vmem:[#allocation4 + $0x18] sm:$0xf] %vm3074_vm5, %v2991_v10  ;;  %v2993_v29 = vpop.permute.xlu1 %2992  ;;  %v3434_v38 = vsel %vm10113_vm13, %v3429_v26, %v11139_v6  ;;  %v3318_v6 = vld [vmem:[#allocation2 + $0x5c] sm:$0x1]  ;;  %v9412_v48 = vrot.slane %v3874_v25, 9 }
 0x1ee   : > { %3082 = vst.msk [vmem:[#allocation4 + $0x1c] sm:$0xf] %vm3074_vm5, %v2993_v29  ;;  %3733 = vrot.lane.b32.xlu0 %v3362_v16, %s9956_s29  ;;  %v3419_v16 = vrot.slane %v3417_v5, 5  ;;  %v3443_v18 = vrot.slane %v3441_v9, 5  ;;  %v3410_v10 = vsel %vm10113_vm13, %v3405_v63, %v11125_v44  ;;  %v3448_v44 = vrot.slane %v3446_v24, 4 }
 0x1ef   : > { %3735 = vrot.lane.b32.xlu1 %v3372_v23, %s9956_s29  ;;  %v3868_v23 = vld [vmem:[#allocation2 + $0x30] sm:$0xe]  ;;  %v3326_v25 = vld [vmem:[#allocation2 + $0x7c] sm:$0xf] }
 0x1f0   : > { %v2995_v41 = vpop.permute.xlu0 %2994  ;;  %v9410_v40 = vrot.slane %v3868_v23, 9  ;;  %v3444_v31 = vsel %vm10113_vm13, %v3439_v2, %v3443_v18  ;;  %v3452_v5 = vor.u32 %v3451_v50, %v3448_v44  ;;  %v3319_v18 = vld [vmem:[#allocation2 + $0x60] sm:$0xf]  ;;  %v3518_v44 = vshrl.u32 %v3322_v30, 16 }
 0x1f1   : > { %3083 = vst.msk [vmem:[#allocation4 + $0x20] sm:$0xf] %vm3074_vm5, %v2995_v41  ;;  %v2997_v60 = vpop.permute.xlu1 %2996  ;;  %v3976_v41 = vrot.slane %v3974_v21, 4  ;;  %v3494_v2 = vshrl.u32 %v3319_v18, 16  ;;  %v3497_v20 = vshll.u32 %v3319_v18, 16  ;;  %v3521_v50 = vshll.u32 %v3322_v30, 16 }
 0x1f2   : > { %3084 = vst.msk [vmem:[#allocation4 + $0x24] sm:$0xf] %vm3074_vm5, %v2997_v60  ;;  %3737 = vrot.lane.b32.xlu0 %v3386_v14, %s9956_s29  ;;  %v3420_v14 = vsel %vm10113_vm13, %v3415_v15, %v3419_v16  ;;  %v3871_v60 = vld [vmem:[#allocation2 + $0x3c] sm:$0xe]  ;;  %v3975_v3 = vsel %vm10471_vm1, %v9410_v40, %v3974_v21  ;;  %v3453_v16 = vrot.slane %v3452_v5, 4 }
 0x1f3   : > { %3739 = vrot.lane.b32.xlu1 %v3396_v27, %s9956_s29  ;;  %v3473_v27 = vshll.u32 %v3316_v22, 16  ;;  %v9411_v34 = vrot.slane %v3871_v60, 9  ;;  %v3995_v60 = vrot.slane %v3878_v33, 5  ;;  %v3523_v5 = vrot.slane %v3521_v50, 5  ;;  %v3880_v30 = vld [vmem:[#allocation2 + $0x60] sm:$0xe] }
 0x1f4   : > { %v2999_v0 = vpop.permute.xlu0 %2998 }
 0x1f5   : > { %3085 = vst.msk [vmem:[#allocation4 + $0x28] sm:$0xf] %vm3074_vm5, %v2999_v0  ;;  %v3001_v8 = vpop.permute.xlu1 %3000  ;;  %v3475_v58 = vrot.slane %v3473_v27, 5  ;;  %v3978_v0 = vsel %vm10471_vm1, %v3976_v41, %v3977_v42  ;;  %v3982_v15 = vsel %vm10471_vm1, %v9411_v34, %v3981_v52  ;;  %v3990_v41 = vrot.slane %v3988_v28, 4 }
 0x1f6   : > { %3086 = vst.msk [vmem:[#allocation4 + $0x2c] sm:$0xf] %vm3074_vm5, %v3001_v8  ;;  %4070 = vrot.lane.b32.xlu0 %v3961_v47, %s9957_s12  ;;  %v3461_v47 = vrot.slane %v3459_v1, 4  ;;  %v3983_v8 = vrot.slane %v3981_v52, 4  ;;  %v3496_v52 = vrot.slane %v3494_v2, 4  ;;  %v3520_v34 = vrot.slane %v3518_v44, 4 }
 0x1f7   : > { %4072 = vrot.lane.b32.xlu1 %v3964_v53, %s9957_s12  ;;  %v3476_v11 = vor.u32 %v3475_v58, %v3472_v57  ;;  %v3527_v57 = vshll.u32 %v3323_v59, 16  ;;  %v3531_v58 = vshrl.u32 %v3323_v59, 16  ;;  %v3328_v2 = vld [vmem:[#allocation2 + $0x84] sm:$0xf]  ;;  %v3329_v59 = vld [vmem:[#allocation2 + $0x88] sm:$0xf] }
 0x1f8   : > { %v3003_v12 = vpop.permute.xlu0 %3002  ;;  %v3462_v9 = vor.u32 %v3461_v47, %v11171_v39  ;;  %v3566_v44 = vshrl.u32 %v3328_v2, 16  ;;  %v3569_v50 = vshll.u32 %v3328_v2, 16 }
 0x1f9   : > { %3087 = vst.msk [vmem:[#allocation4 + $0x30] sm:$0xf] %vm3074_vm5, %v3003_v12  ;;  %v3005_v4 = vpop.permute.xlu1 %3004  ;;  %v3486_v12 = vor.u32 %v3485_v61, %v11176_v43  ;;  %v3477_v22 = vrot.slane %v3476_v11, 4  ;;  %v3321_v61 = vld [vmem:[#allocation2 + $0x68] sm:$0x1] }
 0x1fa   : > { %3088 = vst.msk [vmem:[#allocation4 + $0x34] sm:$0xf] %vm3074_vm5, %v3005_v4  ;;  %4074 = vrot.lane.b32.xlu0 %v3968_v62, %s9957_s12  ;;  %v3465_v62 = vshll.u32 %v3315_v32, 16  ;;  %v3985_v4 = vsel %vm10471_vm1, %v3983_v8, %v3984_v45  ;;  %v3463_v49 = vrot.slane %v3462_v9, 4  ;;  %v3324_v9 = vld [vmem:[#allocation2 + $0x74] sm:$0x1] }
 0x1fb   : > { %4076 = vrot.lane.b32.xlu1 %v3971_v35, %s9957_s12  ;;  %v3489_v35 = vshll.u32 %v3318_v6, 16  ;;  %v3487_v23 = vrot.slane %v3486_v12, 4  ;;  %v3482_v40 = vsel %vm10113_vm13, %v3477_v22, %v11176_v43  ;;  %v3513_v11 = vshll.u32 %v3321_v61, 16 }
 0x1fc   : > { %v3007_v29 = vpop.permute.xlu0 %3006  ;;  %v3467_v26 = vrot.slane %v3465_v62, 5  ;;  %v11222_v12 = vrot.slane %v3527_v57, 5  ;;  %v3537_v17 = vshll.u32 %v3324_v9, 16 }
 0x1fd   : > { %3089 = vst.msk [vmem:[#allocation4 + $0x38] sm:$0xf] %vm3074_vm5, %v3007_v29  ;;  %v3009_v19 = vpop.permute.xlu1 %3008  ;;  %v3491_v24 = vrot.slane %v3489_v35, 5  ;;  %v3458_v29 = vsel %vm10113_vm13, %v3453_v16, %v11171_v39  ;;  %v3499_v39 = vrot.slane %v3497_v20, 5  ;;  %v3533_v35 = vrot.slane %v3531_v58, 4 }
 0x1fe   : > { %3090 = vst.msk [vmem:[#allocation4 + $0x3c] sm:$0xf] %vm3074_vm5, %v3009_v19  ;;  %3741 = vrot.lane.b32.xlu0 %v3410_v10, %s9956_s29  ;;  %v3320_v10 = vld [vmem:[#allocation2 + $0x64] sm:$0xf]  ;;  %v3468_v19 = vsel %vm10113_vm13, %v3463_v49, %v3467_v26  ;;  %v3524_v16 = vor.u32 %v3523_v5, %v3520_v34  ;;  %v3515_v22 = vrot.slane %v3513_v11, 5 }
 0x1ff   : > { %3743 = vrot.lane.b32.xlu1 %v3420_v14, %s9956_s29  ;;  %v3876_v14 = vld [vmem:[#allocation2 + $0x50] sm:$0x1]  ;;  %v3503_v36 = vshll.u32 %v3320_v10, 16  ;;  %v3507_v27 = vshrl.u32 %v3320_v10, 16  ;;  %v3500_v45 = vor.u32 %v3499_v39, %v3496_v52  ;;  %v3881_v49 = vld [vmem:[#allocation2 + $0x64] sm:$0xf]  ;;  %v3534_v10 = vor.u32 %v3533_v35, %v11222_v12 }
 0x200   : > { %v3011_v51 = vpop.permute.xlu0 %3010  ;;  %v3991_v42 = vrot.slane %v3876_v14, 5  ;;  %v4002_v14 = vrot.slane %v3881_v49, 5  ;;  %v3883_v58 = vld [vmem:[#allocation2 + $0x6c] sm:$0xe]  ;;  %v3885_v34 = vld [vmem:[#allocation2 + $0x74] sm:$0x1] }
 0x201   : > { %3091 = vst.msk [vmem:[#allocation4 + $0x40] sm:$0xf] %vm3074_vm5, %v3011_v51  ;;  %v3013_v53 = vpop.permute.xlu1 %3012  ;;  %v3492_v51 = vsel %vm10113_vm13, %v3487_v23, %v3491_v24  ;;  %v11211_v56 = vrot.slane %v3503_v36, 5  ;;  %v3509_v32 = vrot.slane %v3507_v27, 4  ;;  %v3325_v23 = vld [vmem:[#allocation2 + $0x78] sm:$0xf] }
 0x202   : > { %3092 = vst.msk [vmem:[#allocation4 + $0x44] sm:$0xf] %vm3074_vm5, %v3013_v53  ;;  %3745 = vrot.lane.b32.xlu0 %v3434_v38, %s9956_s29  ;;  %v3879_v53 = vld [vmem:[#allocation2 + $0x5c] sm:$0x1]  ;;  %v3545_v33 = vshll.u32 %v3325_v23, 16  ;;  %v9415_v9 = vrot.slane %v3883_v58, 9 }
 0x203   : > { %3747 = vrot.lane.b32.xlu1 %v3444_v31, %s9956_s29  ;;  %v3877_v31 = vld [vmem:[#allocation2 + $0x54] sm:$0xe]  ;;  %v3998_v8 = vrot.slane %v3879_v53, 5  ;;  %v3575_v53 = vshll.u32 %v3329_v59, 16  ;;  %v3327_v5 = vld [vmem:[#allocation2 + $0x80] sm:$0x1] }
 0x204   : > { %v3015_v7 = vpop.permute.xlu0 %3014  ;;  %v9413_v6 = vrot.slane %v3877_v31, 9  ;;  %v9414_v31 = vrot.slane %v3880_v30, 9  ;;  %v3886_v30 = vld [vmem:[#allocation2 + $0x78] sm:$0xe] }
 0x205   : > { %3093 = vst.msk [vmem:[#allocation4 + $0x48] sm:$0xf] %vm3074_vm5, %v3015_v7  ;;  %v3017_v63 = vpop.permute.xlu1 %3016  ;;  %v3997_v7 = vrot.slane %v3995_v60, 4 }
 0x206   : > { %3094 = vst.msk [vmem:[#allocation4 + $0x4c] sm:$0xf] %vm3074_vm5, %v3017_v63  ;;  %4078 = vrot.lane.b32.xlu0 %v3975_v3, %s9957_s12  ;;  %v3989_v3 = vsel %vm10471_vm1, %v9412_v48, %v3988_v28  ;;  %v3510_v63 = vor.u32 %v3509_v32, %v11211_v56  ;;  %v3525_v28 = vrot.slane %v3524_v16, 4  ;;  %v3555_v48 = vshrl.u32 %v3326_v25, 16 }
 0x207   : > { %4080 = vrot.lane.b32.xlu1 %v3978_v0, %s9957_s12  ;;  %v3992_v0 = vsel %vm10471_vm1, %v3990_v41, %v3991_v42  ;;  %v3999_v18 = vsel %vm10471_vm1, %v3997_v7, %v3998_v8  ;;  %v3884_v42 = vld [vmem:[#allocation2 + $0x70] sm:$0xf]  ;;  %v3571_v7 = vrot.slane %v3569_v50, 5  ;;  %v4003_v8 = vsel %vm10471_vm1, %v9414_v31, %v4002_v14  ;;  %v3335_v50 = vld [vmem:[#allocation2 + $0xa0] sm:$0xf] }
 0x208   : > { %v3019_v46 = vpop.permute.xlu0 %3018  ;;  %v3623_v58 = vshll.u32 %v3335_v50, 16 }
 0x209   : > { %3095 = vst.msk [vmem:[#allocation4 + $0x50] sm:$0xf] %vm3074_vm5, %v3019_v46  ;;  %v3021_v21 = vpop.permute.xlu1 %3020  ;;  %v3996_v46 = vsel %vm10471_vm1, %v9413_v6, %v3995_v60  ;;  %v4004_v60 = vrot.slane %v4002_v14, 4  ;;  %v3568_v6 = vrot.slane %v3566_v44, 4 }
 0x20a   : > { %3096 = vst.msk [vmem:[#allocation4 + $0x54] sm:$0xf] %vm3074_vm5, %v3021_v21  ;;  %4082 = vrot.lane.b32.xlu0 %v3982_v15, %s9957_s12  ;;  %v3511_v21 = vrot.slane %v3510_v63, 4  ;;  %v11261_v63 = vrot.slane %v3575_v53, 5 }
 0x20b   : > { %4084 = vrot.lane.b32.xlu1 %v3985_v4, %s9957_s12  ;;  %v3501_v4 = vrot.slane %v3500_v45, 4  ;;  %v3572_v49 = vor.u32 %v3571_v7, %v3568_v6 }
 0x20c   : > { %v3023_v1 = vpop.permute.xlu0 %3022  ;;  %v3516_v27 = vsel %vm10113_vm13, %v3511_v21, %v3515_v22 }
 0x20d   : > { %3097 = vst.msk [vmem:[#allocation4 + $0x58] sm:$0xf] %vm3074_vm5, %v3023_v1  ;;  %v3025_v38 = vpop.permute.xlu1 %3024  ;;  %v3506_v20 = vsel %vm10113_vm13, %v3501_v4, %v11211_v56  ;;  %v3882_v1 = vld [vmem:[#allocation2 + $0x68] sm:$0x1]  ;;  %v3579_v56 = vshrl.u32 %v3329_v59, 16  ;;  %v3573_v2 = vrot.slane %v3572_v49, 4 }
 0x20e   : > { %3098 = vst.msk [vmem:[#allocation4 + $0x5c] sm:$0xf] %vm3074_vm5, %v3025_v38  ;;  %3749 = vrot.lane.b32.xlu0 %v3458_v29, %s9956_s29  ;;  %v3539_v29 = vrot.slane %v3537_v17, 5  ;;  %v3535_v38 = vrot.slane %v3534_v10, 4  ;;  %v4005_v52 = vrot.slane %v3882_v1, 5  ;;  %v3561_v17 = vshll.u32 %v3327_v5, 16 }
 0x20f   : > { %3751 = vrot.lane.b32.xlu1 %v3468_v19, %s9956_s29  ;;  %v3542_v19 = vshrl.u32 %v3325_v23, 16  ;;  %v3581_v11 = vrot.slane %v3579_v56, 4  ;;  %v3331_v10 = vld [vmem:[#allocation2 + $0x90] sm:$0xf]  ;;  %v3578_v31 = vsel %vm10113_vm13, %v3573_v2, %v11261_v63 }
 0x210   : > { %v3027_v47 = vpop.permute.xlu0 %3026  ;;  %v3540_v57 = vsel %vm10113_vm13, %v3535_v38, %v3539_v29  ;;  %v4006_v45 = vsel %vm10471_vm1, %v4004_v60, %v4005_v52  ;;  %v3887_v29 = vld [vmem:[#allocation2 + $0x7c] sm:$0xf]  ;;  %v3590_v1 = vshrl.u32 %v3331_v10, 16  ;;  %v9416_v60 = vrot.slane %v3886_v30, 9  ;;  %v3890_v52 = vld [vmem:[#allocation2 + $0x88] sm:$0xf] }
 0x211   : > { %3099 = vst.msk [vmem:[#allocation4 + $0x60] sm:$0xf] %vm3074_vm5, %v3027_v47  ;;  %v3029_v43 = vpop.permute.xlu1 %3028  ;;  %v3544_v39 = vrot.slane %v3542_v19, 4  ;;  %v3547_v47 = vrot.slane %v3545_v33, 5  ;;  %v3582_v21 = vor.u32 %v3581_v11, %v11261_v63  ;;  %v3593_v19 = vshll.u32 %v3331_v10, 16 }
 0x212   : > { %3100 = vst.msk [vmem:[#allocation4 + $0x64] sm:$0xf] %vm3074_vm5, %v3029_v43  ;;  %3753 = vrot.lane.b32.xlu0 %v3482_v40, %s9956_s29  ;;  %v3551_v40 = vshll.u32 %v3326_v25, 16  ;;  %v4009_v43 = vrot.slane %v3884_v42, 5  ;;  %v4016_v38 = vrot.slane %v3887_v29, 5 }
 0x213   : > { %3755 = vrot.lane.b32.xlu1 %v3492_v51, %s9956_s29  ;;  %v3530_v51 = vsel %vm10113_vm13, %v3525_v28, %v11222_v12  ;;  %v3563_v28 = vrot.slane %v3561_v17, 5  ;;  %v3337_v30 = vld [vmem:[#allocation2 + $0xa8] sm:$0xf] }
 0x214   : > { %v3031_v62 = vpop.permute.xlu0 %3030  ;;  %v11251_v61 = vrot.slane %v3551_v40, 5  ;;  %v4011_v35 = vrot.slane %v4009_v43, 4  ;;  %v3334_v40 = vld [vmem:[#allocation2 + $0x9c] sm:$0xf] }
 0x215   : > { %3101 = vst.msk [vmem:[#allocation4 + $0x68] sm:$0xf] %vm3074_vm5, %v3031_v62  ;;  %v3033_v15 = vpop.permute.xlu1 %3032  ;;  %v3548_v62 = vor.u32 %v3547_v47, %v3544_v39  ;;  %v3592_v39 = vrot.slane %v3590_v1, 4  ;;  %v3595_v47 = vrot.slane %v3593_v19, 5  ;;  %v3614_v53 = vshrl.u32 %v3334_v40, 16 }
 0x216   : > { %3102 = vst.msk [vmem:[#allocation4 + $0x6c] sm:$0xf] %vm3074_vm5, %v3033_v15  ;;  %4086 = vrot.lane.b32.xlu0 %v3989_v3, %s9957_s12  ;;  %v3557_v3 = vrot.slane %v3555_v48, 4  ;;  %v4012_v15 = vrot.slane %v3885_v34, 5  ;;  %v3617_v56 = vshll.u32 %v3334_v40, 16  ;;  %v4023_v34 = vrot.slane %v3890_v52, 5 }
 0x217   : > { %4088 = vrot.lane.b32.xlu1 %v3992_v0, %s9957_s12  ;;  %v3616_v63 = vrot.slane %v3614_v53, 4  ;;  %v3338_v19 = vld [vmem:[#allocation2 + $0xac] sm:$0xf]  ;;  %v3341_v40 = vld [vmem:[#allocation2 + $0xb8] sm:$0xf] }
 0x218   : > { %v3035_v26 = vpop.permute.xlu0 %3034  ;;  %v3558_v16 = vor.u32 %v3557_v3, %v11251_v61  ;;  %v3619_v11 = vrot.slane %v3617_v56, 5  ;;  %v3647_v52 = vshll.u32 %v3338_v19, 16 }
 0x219   : > { %3103 = vst.msk [vmem:[#allocation4 + $0x70] sm:$0xf] %vm3074_vm5, %v3035_v26  ;;  %v3037_v24 = vpop.permute.xlu1 %3036  ;;  %v4010_v26 = vsel %vm10471_vm1, %v9415_v9, %v4009_v43  ;;  %v3627_v43 = vshrl.u32 %v3335_v50, 16  ;;  %v4017_v9 = vsel %vm10471_vm1, %v9416_v60, %v4016_v38  ;;  %v3896_v60 = vld [vmem:[#allocation2 + $0xa0] sm:$0xf] }
 0x21a   : > { %3104 = vst.msk [vmem:[#allocation4 + $0x74] sm:$0xf] %vm3074_vm5, %v3037_v24  ;;  %4090 = vrot.lane.b32.xlu0 %v3996_v46, %s9957_s12  ;;  %v3330_v46 = vld [vmem:[#allocation2 + $0x8c] sm:$0x1]  ;;  %v4013_v24 = vsel %vm10471_vm1, %v4011_v35, %v4012_v15  ;;  %v3559_v25 = vrot.slane %v3558_v16, 4  ;;  %v11301_v15 = vrot.slane %v3623_v58, 5  ;;  %v3620_v10 = vor.u32 %v3619_v11, %v3616_v63 }
 0x21b   : > { %4092 = vrot.lane.b32.xlu1 %v3999_v18, %s9957_s12  ;;  %v3549_v18 = vrot.slane %v3548_v62, 4  ;;  %v3585_v22 = vshll.u32 %v3330_v46, 16  ;;  %v3596_v62 = vor.u32 %v3595_v47, %v3592_v39  ;;  %v3629_v16 = vrot.slane %v3627_v43, 4  ;;  %v3339_v11 = vld [vmem:[#allocation2 + $0xb0] sm:$0x1] }
 0x21c   : > { %v3039_v36 = vpop.permute.xlu0 %3038  ;;  %v3564_v59 = vsel %vm10113_vm13, %v3559_v25, %v3563_v28  ;;  %v4025_v46 = vrot.slane %v4023_v34, 4  ;;  %v11311_v28 = vld [vmem:[#allocation2 + $0x94] sm:$0xf]  ;;  %v3651_v39 = vshrl.u32 %v3338_v19, 16 }
 0x21d   : > { %3105 = vst.msk [vmem:[#allocation4 + $0x78] sm:$0xf] %vm3074_vm5, %v3039_v36  ;;  %v3041_v41 = vpop.permute.xlu1 %3040  ;;  %v3554_v33 = vsel %vm10113_vm13, %v3549_v18, %v11251_v61  ;;  %v3583_v36 = vrot.slane %v3582_v21, 4  ;;  %v3336_v18 = vld [vmem:[#allocation2 + $0xa4] sm:$0x1] }
 0x21e   : > { %3106 = vst.msk [vmem:[#allocation4 + $0x7c] sm:$0xf] %vm3074_vm5, %v3041_v41  ;;  %3757 = vrot.lane.b32.xlu0 %v3506_v20, %s9956_s29  ;;  %v3332_v20 = vld [vmem:[#allocation2 + $0x94] sm:$0xf]  ;;  %v3888_v41 = vld [vmem:[#allocation2 + $0x80] sm:$0x1] }
 0x21f   : > { %3759 = vrot.lane.b32.xlu1 %v3516_v27, %s9956_s29  ;;  %v3587_v27 = vrot.slane %v3585_v22, 5  ;;  %v3599_v42 = vshll.u32 %v3332_v20, 16  ;;  %v3603_v44 = vshrl.u32 %v3332_v20, 16  ;;  %v3597_v22 = vrot.slane %v3596_v62, 4 }
 0x220   : > { %v3173_v32 = vpop.permute.xlu0 %3172  ;;  %v3633_v25 = vshll.u32 %v3336_v18, 16  ;;  %v3653_v62 = vrot.slane %v3651_v39, 4  ;;  %vm6989_vm5 = vcmask 322816  }
 0x221   : > { %3269 = vst.msk [vmem:[#allocation4] sm:$0xf] %vm3268_vm11, %v3173_v32  ;;  %v3175_v0 = vpop.permute.xlu1 %3174  ;;  %v4018_v32 = vrot.slane %v4016_v38, 4  ;;  %v3588_v3 = vsel %vm10113_vm13, %v3583_v36, %v3587_v27  ;;  %v11291_v5 = vrot.slane %v3599_v42, 5  ;;  %v3605_v6 = vrot.slane %v3603_v44, 4 }
 0x222   : > { %3270 = vst.msk [vmem:[#allocation4 + $0x4] sm:$0xf] %vm3268_vm11, %v3175_v0  ;;  %3761 = vrot.lane.b32.xlu0 %v3530_v51, %s9956_s29  ;;  %v3889_v0 = vld [vmem:[#allocation2 + $0x84] sm:$0xe]  ;;  %v3621_v36 = vrot.slane %v3620_v10, 4  ;;  %v4030_v27 = vrot.slane %v11311_v28, 5 }
 0x223   : > { %3763 = vrot.lane.b32.xlu1 %v3540_v57, %s9956_s29  ;;  %v4019_v57 = vrot.slane %v3888_v41, 5  ;;  %v9417_v35 = vrot.slane %v3889_v0, 9  ;;  %v3606_v49 = vor.u32 %v3605_v6, %v11291_v5  ;;  %v3340_v38 = vld [vmem:[#allocation2 + $0xb4] sm:$0xf]  ;;  %v3892_v41 = vld [vmem:[#allocation2 + $0x90] sm:$0xe] }
 0x224   : > { %v3177_v12 = vpop.permute.xlu0 %3176  ;;  %v3638_v42 = vshrl.u32 %v3337_v30, 16  ;;  %v3641_v44 = vshll.u32 %v3337_v30, 16  ;;  %v3662_v53 = vshrl.u32 %v3340_v38, 16  ;;  %v3665_v56 = vshll.u32 %v3340_v38, 16 }
 0x225   : > { %3271 = vst.msk [vmem:[#allocation4 + $0x8] sm:$0xf] %vm3268_vm11, %v3177_v12  ;;  %v3179_v4 = vpop.permute.xlu1 %3178  ;;  %v4020_v12 = vsel %vm10471_vm1, %v4018_v32, %v4019_v57  ;;  %v3607_v2 = vrot.slane %v3606_v49, 4  ;;  %v3671_v32 = vshll.u32 %v3341_v40, 16  ;;  %v3675_v57 = vshrl.u32 %v3341_v40, 16 }
 0x226   : > { %3272 = vst.msk [vmem:[#allocation4 + $0xc] sm:$0xf] %vm3268_vm11, %v3179_v4  ;;  %4094 = vrot.lane.b32.xlu0 %v4003_v8, %s9957_s12  ;;  %v3891_v8 = vld [vmem:[#allocation2 + $0x8c] sm:$0x1]  ;;  %v3626_v58 = vsel %vm10113_vm13, %v3621_v36, %v11301_v15  ;;  %v9418_v43 = vrot.slane %v3892_v41, 9  ;;  %v4037_v0 = vrot.slane %v3896_v60, 5 }
 0x227   : > { %4096 = vrot.lane.b32.xlu1 %v4006_v45, %s9957_s12  ;;  %v3333_v45 = vld [vmem:[#allocation2 + $0x98] sm:$0x1]  ;;  %v4026_v4 = vrot.slane %v3891_v8, 5  ;;  %v3895_v8 = vld [vmem:[#allocation2 + $0x9c] sm:$0xe] }
 0x228   : > { %v3181_v23 = vpop.permute.xlu0 %3180  ;;  %v9419_v49 = vrot.slane %v3895_v8, 9  ;;  %v3343_v36 = vld [vmem:[#allocation2 + $0xc0] sm:$0xf]  ;;  %v3898_v41 = vld [vmem:[#allocation2 + $0xa8] sm:$0xe] }
 0x229   : > { %3273 = vst.msk [vmem:[#allocation4 + $0x10] sm:$0xf] %vm3268_vm11, %v3181_v23  ;;  %v3183_v14 = vpop.permute.xlu1 %3182  ;;  %v4024_v23 = vsel %vm10471_vm1, %v9417_v35, %v4023_v34  ;;  %v3640_v34 = vrot.slane %v3638_v42, 4  ;;  %v3667_v35 = vrot.slane %v3665_v56, 5  ;;  %v3689_v60 = vshll.u32 %v3343_v36, 16 }
 0x22a   : > { %3274 = vst.msk [vmem:[#allocation4 + $0x14] sm:$0xf] %vm3268_vm11, %v3183_v14  ;;  %4098 = vrot.lane.b32.xlu0 %v4010_v26, %s9957_s12  ;;  %v3609_v26 = vshll.u32 %v3333_v45, 16  ;;  %v4027_v14 = vsel %vm10471_vm1, %v4025_v46, %v4026_v4  ;;  %v3897_v45 = vld [vmem:[#allocation2 + $0xa4] sm:$0x1]  ;;  %v4031_v46 = vsel %vm10471_vm1, %v9418_v43, %v4030_v27 }
 0x22b   : > { %4100 = vrot.lane.b32.xlu1 %v4013_v24, %s9957_s12  ;;  %v3630_v24 = vor.u32 %v3629_v16, %v11301_v15  ;;  %v11337_v15 = vrot.slane %v3671_v32, 5  ;;  %v3677_v16 = vrot.slane %v3675_v57, 4  ;;  %v3346_v56 = vld [vmem:[#allocation2 + $0xcc] sm:$0xf]  ;;  %v3347_v43 = vld [vmem:[#allocation2 + $0xd0] sm:$0xf] }
 0x22c   : > { %v3185_v48 = vpop.permute.xlu0 %3184  ;;  %v3611_v20 = vrot.slane %v3609_v26, 5  ;;  %v3710_v8 = vshrl.u32 %v3346_v56, 16 }
 0x22d   : > { %3275 = vst.msk [vmem:[#allocation4 + $0x18] sm:$0xf] %vm3268_vm11, %v3185_v48  ;;  %v3187_v51 = vpop.permute.xlu1 %3186  ;;  %v3631_v48 = vrot.slane %v3630_v24, 4  ;;  %v3678_v28 = vor.u32 %v3677_v16, %v11337_v15  ;;  %v3345_v16 = vld [vmem:[#allocation2 + $0xc8] sm:$0x1] }
 0x22e   : > { %3276 = vst.msk [vmem:[#allocation4 + $0x1c] sm:$0xf] %vm3268_vm11, %v3187_v51  ;;  %3765 = vrot.lane.b32.xlu0 %v3554_v33, %s9956_s29  ;;  %v3602_v33 = vsel %vm10113_vm13, %v3597_v22, %v11291_v5  ;;  %v3612_v51 = vsel %vm10113_vm13, %v3607_v2, %v3611_v20  ;;  %v3643_v5 = vrot.slane %v3641_v44, 5  ;;  %v4040_v22 = vrot.slane %v3897_v45, 5  ;;  %v3899_v20 = vld [vmem:[#allocation2 + $0xac] sm:$0xf] }
 0x22f   : > { %3767 = vrot.lane.b32.xlu1 %v3564_v59, %s9956_s29  ;;  %v3635_v59 = vrot.slane %v3633_v25, 5  ;;  %v3679_v40 = vrot.slane %v3678_v28, 4  ;;  %v4044_v42 = vrot.slane %v3899_v20, 5  ;;  %v3713_v45 = vshll.u32 %v3346_v56, 16 }
 0x230   : > { %v3189_v61 = vpop.permute.xlu0 %3188  ;;  %v3644_v26 = vor.u32 %v3643_v5, %v3640_v34  ;;  %v3901_v5 = vld [vmem:[#allocation2 + $0xb4] sm:$0xe] }
 0x231   : > { %3277 = vst.msk [vmem:[#allocation4 + $0x20] sm:$0xf] %vm3268_vm11, %v3189_v61  ;;  %v3191_v7 = vpop.permute.xlu1 %3190  ;;  %v4032_v61 = vrot.slane %v4030_v27, 4 }
 0x232   : > { %3278 = vst.msk [vmem:[#allocation4 + $0x24] sm:$0xf] %vm3268_vm11, %v3191_v7  ;;  %3769 = vrot.lane.b32.xlu0 %v3578_v31, %s9956_s29  ;;  %v3894_v31 = vld [vmem:[#allocation2 + $0x98] sm:$0x1]  ;;  %v3636_v7 = vsel %vm10113_vm13, %v3631_v48, %v3635_v59  ;;  %v3645_v2 = vrot.slane %v3644_v26, 4 }
 0x233   : > { %3771 = vrot.lane.b32.xlu1 %v3588_v3, %s9956_s29  ;;  %v4033_v3 = vrot.slane %v3894_v31, 5  ;;  %v3344_v59 = vld [vmem:[#allocation2 + $0xc4] sm:$0xf]  ;;  %v3686_v31 = vshrl.u32 %v3343_v36, 16 }
 0x234   : > { %v3193_v17 = vpop.permute.xlu0 %3192 }
 0x235   : > { %3279 = vst.msk [vmem:[#allocation4 + $0x28] sm:$0xf] %vm3268_vm11, %v3193_v17  ;;  %v3195_v21 = vpop.permute.xlu1 %3194  ;;  %v3342_v17 = vld [vmem:[#allocation2 + $0xbc] sm:$0x1]  ;;  %v4034_v4 = vsel %vm10471_vm1, %v4032_v61, %v4033_v3  ;;  %v9420_v61 = vrot.slane %v3898_v41, 9  ;;  %v4046_v3 = vrot.slane %v4044_v42, 4 }
 0x236   : > { %3280 = vst.msk [vmem:[#allocation4 + $0x2c] sm:$0xf] %vm3268_vm11, %v3195_v21  ;;  %4102 = vrot.lane.b32.xlu0 %v4017_v9, %s9957_s12  ;;  %v11334_v9 = vrot.slane %v3647_v52, 5  ;;  %v4039_v21 = vrot.slane %v4037_v0, 4 }
 0x237   : > { %4104 = vrot.lane.b32.xlu1 %v4020_v12, %s9957_s12  ;;  %v3664_v12 = vrot.slane %v3662_v53, 4  ;;  %v3699_v53 = vshrl.u32 %v3344_v59, 16 }
 0x238   : > { %v3197_v29 = vpop.permute.xlu0 %3196  ;;  %v3654_v10 = vor.u32 %v3653_v62, %v11334_v9  ;;  %v3650_v44 = vsel %vm10113_vm13, %v3645_v2, %v11334_v9  ;;  %v3903_v62 = vld [vmem:[#allocation2 + $0xbc] sm:$0x1] }
 0x239   : > { %3281 = vst.msk [vmem:[#allocation4 + $0x30] sm:$0xf] %vm3268_vm11, %v3197_v29  ;;  %v3199_v1 = vpop.permute.xlu1 %3198  ;;  %v3668_v25 = vor.u32 %v3667_v35, %v3664_v12  ;;  %v3681_v29 = vshll.u32 %v3342_v17, 16  ;;  %v3719_v12 = vshll.u32 %v3347_v43, 16  ;;  %v3723_v35 = vshrl.u32 %v3347_v43, 16 }
 0x23a   : > { %3282 = vst.msk [vmem:[#allocation4 + $0x34] sm:$0xf] %vm3268_vm11, %v3199_v1  ;;  %4106 = vrot.lane.b32.xlu0 %v4024_v23, %s9957_s12  ;;  %v3657_v23 = vshll.u32 %v3339_v11, 16  ;;  %v4041_v1 = vsel %vm10471_vm1, %v4039_v21, %v4040_v22  ;;  %v3655_v19 = vrot.slane %v3654_v10, 4  ;;  %v3701_v11 = vrot.slane %v3699_v53, 4 }
 0x23b   : > { %4108 = vrot.lane.b32.xlu1 %v4027_v14, %s9957_s12  ;;  %v4038_v14 = vsel %vm10471_vm1, %v9419_v49, %v4037_v0  ;;  %v3669_v38 = vrot.slane %v3668_v25, 4  ;;  %v3683_v48 = vrot.slane %v3681_v29, 5  ;;  %v4045_v17 = vsel %vm10471_vm1, %v9420_v61, %v4044_v42  ;;  %v3907_v61 = vld [vmem:[#allocation2 + $0xcc] sm:$0xe] }
 0x23c   : > { %v3201_v50 = vpop.permute.xlu0 %3200  ;;  %v4054_v26 = vrot.slane %v3903_v62, 5  ;;  %v3712_v21 = vrot.slane %v3710_v8, 4  ;;  %v3715_v22 = vrot.slane %v3713_v45, 5  ;;  %v3721_v25 = vrot.slane %v3719_v12, 5 }
 0x23d   : > { %3283 = vst.msk [vmem:[#allocation4 + $0x38] sm:$0xf] %vm3268_vm11, %v3201_v50  ;;  %v3203_v47 = vpop.permute.xlu1 %3202  ;;  %v3900_v50 = vld [vmem:[#allocation2 + $0xb0] sm:$0x1]  ;;  %v3674_v57 = vsel %vm10113_vm13, %v3669_v38, %v11337_v15  ;;  %v3725_v28 = vrot.slane %v3723_v35, 4 }
 0x23e   : > { %3284 = vst.msk [vmem:[#allocation4 + $0x3c] sm:$0xf] %vm3268_vm11, %v3203_v47  ;;  %3773 = vrot.lane.b32.xlu0 %v3602_v33, %s9956_s29  ;;  %v3659_v33 = vrot.slane %v3657_v23, 5  ;;  %v3695_v47 = vshll.u32 %v3344_v59, 16  ;;  %v4047_v0 = vrot.slane %v3900_v50, 5 }
 0x23f   : > { %3775 = vrot.lane.b32.xlu1 %v3612_v51, %s9956_s29  ;;  %v3902_v51 = vld [vmem:[#allocation2 + $0xb8] sm:$0xf] }
 0x240   : > { %v3205_v6 = vpop.permute.xlu0 %3204  ;;  %v3660_v39 = vsel %vm10113_vm13, %v3655_v19, %v3659_v33  ;;  %v4051_v34 = vrot.slane %v3902_v51, 5 }
 0x241   : > { %3285 = vst.msk [vmem:[#allocation4 + $0x40] sm:$0xf] %vm3268_vm11, %v3205_v6  ;;  %v3207_v63 = vpop.permute.xlu1 %3206  ;;  %v3688_v6 = vrot.slane %v3686_v31, 4  ;;  %v3904_v31 = vld [vmem:[#allocation2 + $0xc0] sm:$0xe] }
 0x242   : > { %3286 = vst.msk [vmem:[#allocation4 + $0x44] sm:$0xf] %vm3268_vm11, %v3207_v63  ;;  %3777 = vrot.lane.b32.xlu0 %v3626_v58, %s9956_s29  ;;  %v3684_v58 = vsel %vm10113_vm13, %v3679_v40, %v3683_v48  ;;  %v3697_v63 = vrot.slane %v3695_v47, 5  ;;  %v4053_v49 = vrot.slane %v4051_v34, 4  ;;  %v3905_v48 = vld [vmem:[#allocation2 + $0xc4] sm:$0xf] }
 0x243   : > { %3779 = vrot.lane.b32.xlu1 %v3636_v7, %s9956_s29  ;;  %v3691_v7 = vrot.slane %v3689_v60, 5  ;;  %v4058_v60 = vrot.slane %v3905_v48, 5  ;;  %v3908_v47 = vld [vmem:[#allocation2 + $0xd0] sm:$0xf]  ;;  %v9422_v56 = vrot.slane %v3904_v31, 9 }
 0x244   : > { %v3209_v18 = vpop.permute.xlu0 %3208  ;;  %v3702_v23 = vor.u32 %v3701_v11, %v3697_v63  ;;  %v4055_v20 = vsel %vm10471_vm1, %v4053_v49, %v4054_v26 }
 0x245   : > { %3287 = vst.msk [vmem:[#allocation4 + $0x48] sm:$0xf] %vm3268_vm11, %v3209_v18  ;;  %v3211_v24 = vpop.permute.xlu1 %3210  ;;  %v3692_v18 = vor.u32 %v3691_v7, %v3688_v6  ;;  %v9423_v6 = vrot.slane %v3907_v61, 9 }
 0x246   : > { %3288 = vst.msk [vmem:[#allocation4 + $0x4c] sm:$0xf] %vm3268_vm11, %v3211_v24  ;;  %4110 = vrot.lane.b32.xlu0 %v4031_v46, %s9957_s12  ;;  %v4048_v46 = vsel %vm10471_vm1, %v4046_v3, %v4047_v0  ;;  %v3705_v24 = vshll.u32 %v3345_v16, 16  ;;  %v3703_v33 = vrot.slane %v3702_v23, 4  ;;  %v4065_v3 = vrot.slane %v3908_v47, 5 }
 0x247   : > { %4112 = vrot.lane.b32.xlu1 %v4034_v4, %s9957_s12  ;;  %v9421_v4 = vrot.slane %v3901_v5, 9  ;;  %v4059_v5 = vsel %vm10471_vm1, %v9422_v56, %v4058_v60 }
 0x248   : > { %v3213_v30 = vpop.permute.xlu0 %3212  ;;  %v3707_v36 = vrot.slane %v3705_v24, 5  ;;  %v4067_v45 = vrot.slane %v4065_v3, 4 }
 0x249   : > { %3289 = vst.msk [vmem:[#allocation4 + $0x50] sm:$0xf] %vm3268_vm11, %v3213_v30  ;;  %v3215_v27 = vpop.permute.xlu1 %3214  ;;  %v4052_v2 = vsel %vm10471_vm1, %v9421_v4, %v4051_v34  ;;  %v3693_v30 = vrot.slane %v3692_v18, 4  ;;  %v3909_v34 = vld [vmem:[#allocation2 + $0xd4] sm:$0x1] }
 0x24a   : > { %3290 = vst.msk [vmem:[#allocation4 + $0x54] sm:$0xf] %vm3268_vm11, %v3215_v27  ;;  %4114 = vrot.lane.b32.xlu0 %v4038_v14, %s9957_s12  ;;  %v3348_v14 = vld [vmem:[#allocation2 + $0xd4] sm:$0x1]  ;;  %v3726_v27 = vor.u32 %v3725_v28, %v3721_v25 }
 0x24b   : > { %4116 = vrot.lane.b32.xlu1 %v4041_v1, %s9957_s12  ;;  %v3716_v1 = vor.u32 %v3715_v22, %v3712_v21  ;;  %v3729_v38 = vshll.u32 %v3348_v14, 16  ;;  %v3698_v59 = vsel %vm10113_vm13, %v3693_v30, %v3697_v63  ;;  %v4066_v63 = vsel %vm10471_vm1, %v9423_v6, %v4065_v3 }
 0x24c   : > { %v3217_v52 = vpop.permute.xlu0 %3216  ;;  %v3727_v50 = vrot.slane %v3726_v27, 4 }
 0x24d   : > { %3291 = vst.msk [vmem:[#allocation4 + $0x58] sm:$0xf] %vm3268_vm11, %v3217_v52  ;;  %v3219_v32 = vpop.permute.xlu1 %3218  ;;  %v3717_v41 = vrot.slane %v3716_v1, 4  ;;  %v3731_v51 = vrot.slane %v3729_v38, 5 }
 0x24e   : > { %3292 = vst.msk [vmem:[#allocation4 + $0x5c] sm:$0xf] %vm3268_vm11, %v3219_v32  ;;  %3781 = vrot.lane.b32.xlu0 %v3650_v44, %s9956_s29  ;;  %v3708_v44 = vsel %vm10113_vm13, %v3703_v33, %v3707_v36 }
 0x24f   : > { %3783 = vrot.lane.b32.xlu1 %v3660_v39, %s9956_s29  ;;  %v3906_v39 = vld [vmem:[#allocation2 + $0xc8] sm:$0x1]  ;;  %v3722_v53 = vsel %vm10113_vm13, %v3717_v41, %v3721_v25 }
 0x250   : > { %v3221_v9 = vpop.permute.xlu0 %3220  ;;  %v4061_v43 = vrot.slane %v3906_v39, 5 }
 0x251   : > { %3293 = vst.msk [vmem:[#allocation4 + $0x60] sm:$0xf] %vm3268_vm11, %v3221_v9  ;;  %v3223_v15 = vpop.permute.xlu1 %3222  ;;  %v4068_v9 = vrot.slane %v3909_v34, 5 }
 0x252   : > { %3294 = vst.msk [vmem:[#allocation4 + $0x64] sm:$0xf] %vm3268_vm11, %v3223_v15  ;;  %3785 = vrot.lane.b32.xlu0 %v3674_v57, %s9956_s29  ;;  %v3732_v57 = vsel %vm10113_vm13, %v3727_v50, %v3731_v51 }
 0x253   : > { %3787 = vrot.lane.b32.xlu1 %v3684_v58, %s9956_s29  ;;  %v4060_v58 = vrot.slane %v4058_v60, 4  ;;  %v4069_v12 = vsel %vm10471_vm1, %v4067_v45, %v4068_v9 }
 0x254   : > { %v3225_v10 = vpop.permute.xlu0 %3224 }
 0x255   : > { %3295 = vst.msk [vmem:[#allocation4 + $0x68] sm:$0xf] %vm3268_vm11, %v3225_v10  ;;  %v3227_v29 = vpop.permute.xlu1 %3226  ;;  %v4062_v8 = vsel %vm10471_vm1, %v4060_v58, %v4061_v43 }
 0x256   : > { %3296 = vst.msk [vmem:[#allocation4 + $0x6c] sm:$0xf] %vm3268_vm11, %v3227_v29  ;;  %4118 = vrot.lane.b32.xlu0 %v4045_v17, %s9957_s12  ;;  %v5306_v17 = vld [vmem:[#allocation3] sm:$0xf] }
 0x257   : > { %4120 = vrot.lane.b32.xlu1 %v4048_v46, %s9957_s12  ;;  %v5307_v46 = vld [vmem:[#allocation3 + $0x4] sm:$0xf] }
 0x258   : > { %v3229_v19 = vpop.permute.xlu0 %3228 }
 0x259   : > { %3297 = vst.msk [vmem:[#allocation4 + $0x70] sm:$0xf] %vm3268_vm11, %v3229_v19  ;;  %v3231_v40 = vpop.permute.xlu1 %3230 }
 0x25a   : > { %3298 = vst.msk [vmem:[#allocation4 + $0x74] sm:$0xf] %vm3268_vm11, %v3231_v40  ;;  %4122 = vrot.lane.b32.xlu0 %v4052_v2, %s9957_s12 }
 0x25b   : > { %4124 = vrot.lane.b32.xlu1 %v4055_v20, %s9957_s12 }
 0x25c   : > { %v3233_v42 = vpop.permute.xlu0 %3232 }
 0x25d   : > { %3299 = vst.msk [vmem:[#allocation4 + $0x78] sm:$0xf] %vm3268_vm11, %v3233_v42  ;;  %v3235_v52 = vpop.permute.xlu1 %3234 }
 0x25e   : > { %3300 = vst.msk [vmem:[#allocation4 + $0x7c] sm:$0xf] %vm3268_vm11, %v3235_v52  ;;  %3789 = vrot.lane.b32.xlu0 %v3698_v59, %s9956_s29  ;;  %vm7520_vm11 = vcmask 454016  }
 0x25f   : > { %3791 = vrot.lane.b32.xlu1 %v3708_v44, %s9956_s29 }
 0x260   : > { %v3734_v32 = vpop.permute.xlu0 %3733 }
 0x261   : > { %3830 = vst.msk [vmem:[#allocation4] sm:$0xf] %vm3829_vm14, %v3734_v32  ;;  %v3736_v0 = vpop.permute.xlu1 %3735 }
 0x262   : > { %3831 = vst.msk [vmem:[#allocation4 + $0x4] sm:$0xf] %vm3829_vm14, %v3736_v0  ;;  %3793 = vrot.lane.b32.xlu0 %v3722_v53, %s9956_s29 }
 0x263   : > { %3795 = vrot.lane.b32.xlu1 %v3732_v57, %s9956_s29 }
 0x264   : > { %v3738_v7 = vpop.permute.xlu0 %3737 }
 0x265   : > { %3832 = vst.msk [vmem:[#allocation4 + $0x8] sm:$0xf] %vm3829_vm14, %v3738_v7  ;;  %v3740_v62 = vpop.permute.xlu1 %3739 }
 0x266   : > { %3833 = vst.msk [vmem:[#allocation4 + $0xc] sm:$0xf] %vm3829_vm14, %v3740_v62  ;;  %4126 = vrot.lane.b32.xlu0 %v4059_v5, %s9957_s12  ;;  %v4672_v62 = vld [vmem:[#allocation3 + $0x18] sm:$0x1] }
 0x267   : > { %4128 = vrot.lane.b32.xlu1 %v4062_v8, %s9957_s12 }
 0x268   : > { %v4071_v11 = vpop.permute.xlu0 %4070 }
 0x269   : > { %4167 = vst.msk [vmem:[#allocation4] sm:$0xf] %vm4166_vm15, %v4071_v11  ;;  %v4073_v35 = vpop.permute.xlu1 %4072  ;;  %v4673_v11 = vsel %vm11085_vm10, 0, %v4672_v62 }
 0x26a   : > { %4168 = vst.msk [vmem:[#allocation4 + $0x4] sm:$0xf] %vm4166_vm15, %v4073_v35  ;;  %4130 = vrot.lane.b32.xlu0 %v4066_v63, %s9957_s12  ;;  %4674 = vst [vmem:[#allocation3 + $0x18] sm:$0x1] %v4673_v11  ;;  %v4669_v35 = vld [vmem:[#allocation3 + $0xc] sm:$0x1] }
 0x26b   : > { %4132 = vrot.lane.b32.xlu1 %v4069_v12, %s9957_s12 }
 0x26c   : > { %v4075_v15 = vpop.permute.xlu0 %4074 }
 0x26d   : > { %4169 = vst.msk [vmem:[#allocation4 + $0x8] sm:$0xf] %vm4166_vm15, %v4075_v15  ;;  %v4077_v16 = vpop.permute.xlu1 %4076  ;;  %v4670_v15 = vsel %vm11085_vm10, 0, %v4669_v35 }
 0x26e   : > { %4170 = vst.msk [vmem:[#allocation4 + $0xc] sm:$0xf] %vm4166_vm15, %v4077_v16  ;;  %4671 = vst [vmem:[#allocation3 + $0xc] sm:$0x1] %v4670_v15  ;;  %v4739_v15 = vld [vmem:[#allocation3 + $0x50] sm:$0x1] }
 0x270   : > { %v4199_v4 = vld [vmem:[#allocation4] sm:$0xf]  ;;  %v3742_v49 = vpop.permute.xlu0 %3741 }
 0x271   : > { %5338 = vst.msk [vmem:[#allocation4] sm:$0xf] %vm4655_vm6, %v5306_v17  ;;  %v4200_v26 = vld [vmem:[#allocation4 + $0x4] sm:$0xf]  ;;  %v3744_v18 = vpop.permute.xlu1 %3743  ;;  %v4727_v17 = vld [vmem:[#allocation3 + $0x20] sm:$0x1] }
 0x272   : > { %3834 = vst.msk [vmem:[#allocation4 + $0x10] sm:$0xf] %vm3829_vm14, %v3742_v49  ;;  %3835 = vst.msk [vmem:[#allocation4 + $0x14] sm:$0xf] %vm3829_vm14, %v3744_v18  ;;  %v9424_v21 = vcombine.low %v4199_v4, %v4200_v26  ;;  %v4728_v49 = vsel %vm11483_vm0, 0, %v4727_v17  ;;  %v4740_v17 = vsel %vm11483_vm0, 0, %v4739_v15 }
 0x273   : > { %5339 = vst.msk [vmem:[#allocation4 + $0x4] sm:$0xf] %vm4655_vm6, %v5307_v46  ;;  %4729 = vst [vmem:[#allocation3 + $0x20] sm:$0x1] %v4728_v49  ;;  %v4724_v26 = vld [vmem:[#allocation3 + $0x14] sm:$0x1] }
 0x274   : > { %9729 = vmatprep.mubr.msk.bf16.mxu0 %vm4331_vm8, %v9424_v21  ;;  %v3746_v22 = vpop.permute.xlu0 %3745  ;;  %v4725_v21 = vsel %vm11483_vm0, 0, %v4724_v26  ;;  %4741 = vst [vmem:[#allocation3 + $0x50] sm:$0x1] %v4740_v17  ;;  %v4690_v49 = vld [vmem:[#allocation3 + $0x60] sm:$0x1] }
 0x275   : > { %3836 = vst.msk [vmem:[#allocation4 + $0x18] sm:$0xf] %vm3829_vm14, %v3746_v22  ;;  %v3748_v10 = vpop.permute.xlu1 %3747  ;;  %v9871_v23 = vld [vmem:[#allocation4 + $0x8] sm:$0xff]   ;;  %4726 = vst [vmem:[#allocation3 + $0x14] sm:$0x1] %v4725_v21  ;;  %v4691_v26 = vsel %vm11085_vm10, 0, %v4690_v49 }
 0x276   : > { %3837 = vst.msk [vmem:[#allocation4 + $0x1c] sm:$0xf] %vm3829_vm14, %v3748_v10  ;;  %9730 = vmatmul.mubr.msk.bf16.vlgmr.msra.gmra.mxu0 %vm4331_vm8, %v9871_v23  ;;  %4692 = vst [vmem:[#allocation3 + $0x60] sm:$0x1] %v4691_v26  ;;  %v4769_v26 = vld [vmem:[#allocation3 + $0xc8] sm:$0x1] }
 0x278   : > { %v4079_v24 = vpop.permute.xlu0 %4078 }
 0x279   : > { %4171 = vst.msk [vmem:[#allocation4 + $0x10] sm:$0xf] %vm4166_vm15, %v4079_v24  ;;  %v4081_v25 = vpop.permute.xlu1 %4080 }
 0x27a   : > { %4172 = vst.msk [vmem:[#allocation4 + $0x14] sm:$0xf] %vm4166_vm15, %v4081_v25 }
 0x27c   : > { %v4083_v28 = vpop.permute.xlu0 %4082 }
 0x27d   : > { %4173 = vst.msk [vmem:[#allocation4 + $0x18] sm:$0xf] %vm4166_vm15, %v4083_v28  ;;  %v4085_v29 = vpop.permute.xlu1 %4084  ;;  %v4721_v28 = vld [vmem:[#allocation3 + $0x8] sm:$0x1] }
 0x27e   : > { %4174 = vst.msk [vmem:[#allocation4 + $0x1c] sm:$0xf] %vm4166_vm15, %v4085_v29 }
 0x280   : > { %v3750_v14 = vpop.permute.xlu0 %3749 }
 0x281   : > { %3838 = vst.msk [vmem:[#allocation4 + $0x20] sm:$0xf] %vm3829_vm14, %v3750_v14  ;;  %v3752_v2 = vpop.permute.xlu1 %3751  ;;  %v9872_v20 = vld [vmem:[#allocation4 + $0x10] sm:$0xff]   ;;  %v4678_v14 = vld [vmem:[#allocation3 + $0x30] sm:$0x1] }
 0x282   : > { %3839 = vst.msk [vmem:[#allocation4 + $0x24] sm:$0xf] %vm3829_vm14, %v3752_v2  ;;  %9733 = vmatprep.mubr.msk.bf16.mxu0 %vm4331_vm8, %v9872_v20  ;;  %v5370_v2 = vld [vmem:[#allocation3] sm:$0xf]  ;;  %v4722_v20 = vsel %vm11483_vm0, 0, %v4721_v28 }
 0x283   : > { %4723 = vst [vmem:[#allocation3 + $0x8] sm:$0x1] %v4722_v20 }
 0x284   : > { %v3754_v30 = vpop.permute.xlu0 %3753 }
 0x285   : > { %3840 = vst.msk [vmem:[#allocation4 + $0x28] sm:$0xf] %vm3829_vm14, %v3754_v30  ;;  %v3756_v1 = vpop.permute.xlu1 %3755  ;;  %v9873_v19 = vld [vmem:[#allocation4 + $0x18] sm:$0xff]   ;;  %v4679_v30 = vsel %vm11085_vm10, 0, %v4678_v14  ;;  %v4751_v14 = vld [vmem:[#allocation3 + $0x80] sm:$0x1] }
 0x286   : > { %3841 = vst.msk [vmem:[#allocation4 + $0x2c] sm:$0xf] %vm3829_vm14, %v3756_v1  ;;  %9734 = vmatmul.mubr.msk.bf16.gmra.mxu0 %vm4331_vm8, %v9873_v19  ;;  %v5419_v1 = vshrl.u32 %v5370_v2, 16  ;;  %v5422_v19 = vshll.u32 %v5370_v2, 16  ;;  %4680 = vst [vmem:[#allocation3 + $0x30] sm:$0x1] %v4679_v30 }
 0x287   : > { %v4752_v20 = vsel %vm11483_vm0, 0, %v4751_v14  ;;  %v4748_v30 = vld [vmem:[#allocation3 + $0x74] sm:$0x1] }
 0x288   : > { %v4087_v33 = vpop.permute.xlu0 %4086  ;;  %4753 = vst [vmem:[#allocation3 + $0x80] sm:$0x1] %v4752_v20 }
 0x289   : > { %4175 = vst.msk [vmem:[#allocation4 + $0x20] sm:$0xf] %vm4166_vm15, %v4087_v33  ;;  %v4089_v36 = vpop.permute.xlu1 %4088  ;;  %v4675_v33 = vld [vmem:[#allocation3 + $0x24] sm:$0x1] }
 0x28a   : > { %4176 = vst.msk [vmem:[#allocation4 + $0x24] sm:$0xf] %vm4166_vm15, %v4089_v36 }
 0x28c   : > { %v4091_v27 = vpop.permute.xlu0 %4090 }
 0x28d   : > { %4177 = vst.msk [vmem:[#allocation4 + $0x28] sm:$0xf] %vm4166_vm15, %v4091_v27  ;;  %v4093_v38 = vpop.permute.xlu1 %4092  ;;  %v4676_v27 = vsel %vm11085_vm10, 0, %v4675_v33 }
 0x28e   : > { %4178 = vst.msk [vmem:[#allocation4 + $0x2c] sm:$0xf] %vm4166_vm15, %v4093_v38  ;;  %v5421_v38 = vrot.slane %v5419_v1, 4  ;;  %4677 = vst [vmem:[#allocation3 + $0x24] sm:$0x1] %v4676_v27  ;;  %v4749_v1 = vsel %vm11483_vm0, 0, %v4748_v30 }
 0x28f   : > { %4750 = vst [vmem:[#allocation3 + $0x74] sm:$0x1] %v4749_v1 }
 0x290   : > { %v3758_v40 = vpop.permute.xlu0 %3757 }
 0x291   : > { %3842 = vst.msk [vmem:[#allocation4 + $0x30] sm:$0xf] %vm3829_vm14, %v3758_v40  ;;  %v3760_v48 = vpop.permute.xlu1 %3759  ;;  %v9874_v59 = vld [vmem:[#allocation4 + $0x20] sm:$0xff]   ;;  %v5424_v40 = vrot.slane %v5422_v19, 5  ;;  %v4702_v19 = vld [vmem:[#allocation3 + $0x90] sm:$0x1] }
 0x292   : > { %3843 = vst.msk [vmem:[#allocation4 + $0x34] sm:$0xf] %vm3829_vm14, %v3760_v48  ;;  %9737 = vmatprep.mubr.msk.bf16.mxu0 %vm4331_vm8, %v9874_v59  ;;  %v4703_v33 = vsel %vm11085_vm10, 0, %v4702_v19  ;;  %v4766_v19 = vld [vmem:[#allocation3 + $0xbc] sm:$0x1] }
 0x293   : > { %4704 = vst [vmem:[#allocation3 + $0x90] sm:$0x1] %v4703_v33 }
 0x294   : > { %v3762_v41 = vpop.permute.xlu0 %3761 }
 0x295   : > { %3844 = vst.msk [vmem:[#allocation4 + $0x38] sm:$0xf] %vm3829_vm14, %v3762_v41  ;;  %v3764_v42 = vpop.permute.xlu1 %3763  ;;  %v9875_v44 = vld [vmem:[#allocation4 + $0x28] sm:$0xff]   ;;  %v4733_v41 = vld [vmem:[#allocation3 + $0x38] sm:$0x1] }
 0x296   : > { %3845 = vst.msk [vmem:[#allocation4 + $0x3c] sm:$0xf] %vm3829_vm14, %v3764_v42  ;;  %9738 = vmatmul.mubr.msk.bf16.gmra.mxu0 %vm4331_vm8, %v9875_v44  ;;  %v4734_v42 = vsel %vm11483_vm0, 0, %v4733_v41  ;;  %v5371_v44 = vld [vmem:[#allocation3 + $0x4] sm:$0xf] }
 0x297   : > { %4735 = vst [vmem:[#allocation3 + $0x38] sm:$0x1] %v4734_v42  ;;  %v4708_v41 = vld [vmem:[#allocation3 + $0xa8] sm:$0x1] }
 0x298   : > { %v4095_v50 = vpop.permute.xlu0 %4094  ;;  %v4709_v42 = vsel %vm11085_vm10, 0, %v4708_v41 }
 0x299   : > { %4179 = vst.msk [vmem:[#allocation4 + $0x30] sm:$0xf] %vm4166_vm15, %v4095_v50  ;;  %v4097_v51 = vpop.permute.xlu1 %4096  ;;  %v5425_v50 = vor.u32 %v5424_v40, %v5421_v38  ;;  %v4757_v38 = vld [vmem:[#allocation3 + $0x98] sm:$0x1]  ;;  %4710 = vst [vmem:[#allocation3 + $0xa8] sm:$0x1] %v4709_v42 }
 0x29a   : > { %4180 = vst.msk [vmem:[#allocation4 + $0x34] sm:$0xf] %vm4166_vm15, %v4097_v51  ;;  %v4730_v51 = vld [vmem:[#allocation3 + $0x2c] sm:$0x1]  ;;  %v4758_v40 = vsel %vm11483_vm0, 0, %v4757_v38 }
 0x29b   : > { %4759 = vst [vmem:[#allocation3 + $0x98] sm:$0x1] %v4758_v40  ;;  %v4767_v40 = vsel %vm11483_vm0, 0, %v4766_v19 }
 0x29c   : > { %v4099_v31 = vpop.permute.xlu0 %4098  ;;  %4768 = vst [vmem:[#allocation3 + $0xbc] sm:$0x1] %v4767_v40 }
 0x29d   : > { %4181 = vst.msk [vmem:[#allocation4 + $0x38] sm:$0xf] %vm4166_vm15, %v4099_v31  ;;  %v4101_v60 = vpop.permute.xlu1 %4100  ;;  %v5428_v31 = vshll.u32 %v5371_v44, 16 }
 0x29e   : > { %4182 = vst.msk [vmem:[#allocation4 + $0x3c] sm:$0xf] %vm4166_vm15, %v4101_v60  ;;  %v5432_v60 = vshrl.u32 %v5371_v44, 16  ;;  %v4705_v44 = vld [vmem:[#allocation3 + $0x9c] sm:$0x1] }
 0x29f   : > { %v5219_v40 = vld [vmem:[#allocation3 + $0x38] sm:$0x1] }
 0x2a0   : > { %v3766_v52 = vpop.permute.xlu0 %3765 }
 0x2a1   : > { %3846 = vst.msk [vmem:[#allocation4 + $0x40] sm:$0xf] %vm3829_vm14, %v3766_v52  ;;  %v3768_v39 = vpop.permute.xlu1 %3767  ;;  %v9876_v47 = vld [vmem:[#allocation4 + $0x30] sm:$0xff]  }
 0x2a2   : > { %3847 = vst.msk [vmem:[#allocation4 + $0x44] sm:$0xf] %vm3829_vm14, %v3768_v39  ;;  %9741 = vmatprep.mubr.msk.bf16.mxu0 %vm4331_vm8, %v9876_v47  ;;  %v4731_v39 = vsel %vm11483_vm0, 0, %v4730_v51  ;;  %v5426_v47 = vrot.slane %v5425_v50, 4  ;;  %v4706_v50 = vsel %vm11085_vm10, 0, %v4705_v44 }
 0x2a3   : > { %4732 = vst [vmem:[#allocation3 + $0x2c] sm:$0x1] %v4731_v39  ;;  %4707 = vst [vmem:[#allocation3 + $0x9c] sm:$0x1] %v4706_v50  ;;  %v4763_v51 = vld [vmem:[#allocation3 + $0xb0] sm:$0x1] }
 0x2a4   : > { %v3770_v53 = vpop.permute.xlu0 %3769  ;;  %v11575_v39 = vld [vmem:[%s13039_s2] ss:$0 sm:$0xff] }
 0x2a5   : > { %3848 = vst.msk [vmem:[#allocation4 + $0x48] sm:$0xf] %vm3829_vm14, %v3770_v53  ;;  %v3772_v56 = vpop.permute.xlu1 %3771  ;;  %v9877_v32 = vld [vmem:[#allocation4 + $0x38] sm:$0xff]  }
 0x2a6   : > { %3849 = vst.msk [vmem:[#allocation4 + $0x4c] sm:$0xf] %vm3829_vm14, %v3772_v56  ;;  %9742 = vmatmul.mubr.msk.bf16.gmra.mxu0 %vm4331_vm8, %v9877_v32  ;;  %v5430_v32 = vrot.slane %v5428_v31, 5  ;;  %v4764_v31 = vsel %vm11483_vm0, 0, %v4763_v51 }
 0x2a7   : > { %4765 = vst [vmem:[#allocation3 + $0xb0] sm:$0x1] %v4764_v31 }
 0x2a8   : > { %v4103_v57 = vpop.permute.xlu0 %4102 }
 0x2a9   : > { %4183 = vst.msk [vmem:[#allocation4 + $0x40] sm:$0xf] %vm4166_vm15, %v4103_v57  ;;  %v4105_v58 = vpop.permute.xlu1 %4104  ;;  %v5372_v57 = vld [vmem:[#allocation3 + $0x8] sm:$0x1] }
 0x2aa   : > { %4184 = vst.msk [vmem:[#allocation4 + $0x44] sm:$0xf] %vm4166_vm15, %v4105_v58  ;;  %v5434_v58 = vrot.slane %v5432_v60, 4  ;;  %v4760_v60 = vld [vmem:[#allocation3 + $0xa4] sm:$0x1] }
 0x2ac   : > { %v4107_v43 = vpop.permute.xlu0 %4106 }
 0x2ad   : > { %4185 = vst.msk [vmem:[#allocation4 + $0x48] sm:$0xf] %vm4166_vm15, %v4107_v43  ;;  %v4109_v61 = vpop.permute.xlu1 %4108  ;;  %v5438_v43 = vshll.u32 %v5372_v57, 16 }
 0x2ae   : > { %4186 = vst.msk [vmem:[#allocation4 + $0x4c] sm:$0xf] %vm4166_vm15, %v4109_v61  ;;  %v5431_v61 = vsel %vm10113_vm13, %v5426_v47, %v5430_v32 }
 0x2af   : > { %5802 = vrot.lane.b32.xlu0 %v5431_v61, %s9951_s20 }
 0x2b0   : > { %v3774_v3 = vpop.permute.xlu0 %3773 }
 0x2b1   : > { %3850 = vst.msk [vmem:[#allocation4 + $0x50] sm:$0xf] %vm3829_vm14, %v3774_v3  ;;  %v3776_v0 = vpop.permute.xlu1 %3775  ;;  %v9878_v34 = vld [vmem:[#allocation4 + $0x40] sm:$0xff]  }
 0x2b2   : > { %3851 = vst.msk [vmem:[#allocation4 + $0x54] sm:$0xf] %vm3829_vm14, %v3776_v0  ;;  %9745 = vmatprep.mubr.msk.bf16.mxu1 %vm4331_vm8, %v9878_v34  ;;  %v5435_v0 = vor.u32 %v5434_v58, %v5430_v32  ;;  %v5440_v34 = vrot.slane %v5438_v43, 5 }
 0x2b4   : > { %v3778_v5 = vpop.permute.xlu0 %3777 }
 0x2b5   : > { %3852 = vst.msk [vmem:[#allocation4 + $0x58] sm:$0xf] %vm3829_vm14, %v3778_v5  ;;  %v3780_v6 = vpop.permute.xlu1 %3779  ;;  %v9879_v7 = vld [vmem:[#allocation4 + $0x48] sm:$0xff]  }
 0x2b6   : > { %3853 = vst.msk [vmem:[#allocation4 + $0x5c] sm:$0xf] %vm3829_vm14, %v3780_v6  ;;  %9746 = vmatmul.mubr.msk.bf16.vlgmr.msra.gmra.mxu1 %vm4331_vm8, %v9879_v7  ;;  %v5436_v6 = vrot.slane %v5435_v0, 4 }
 0x2b8   : > { %v4111_v8 = vpop.permute.xlu0 %4110 }
 0x2b9   : > { %4187 = vst.msk [vmem:[#allocation4 + $0x50] sm:$0xf] %vm4166_vm15, %v4111_v8  ;;  %v4113_v45 = vpop.permute.xlu1 %4112  ;;  %v5441_v8 = vsel %vm10113_vm13, %v5436_v6, %v5440_v34 }
 0x2ba   : > { %4188 = vst.msk [vmem:[#allocation4 + $0x54] sm:$0xf] %vm4166_vm15, %v4113_v45  ;;  %5804 = vrot.lane.b32.xlu1 %v5441_v8, %s9951_s20 }
 0x2bc   : > { %v4115_v9 = vpop.permute.xlu0 %4114 }
 0x2bd   : > { %4189 = vst.msk [vmem:[#allocation4 + $0x58] sm:$0xf] %vm4166_vm15, %v4115_v9  ;;  %v4117_v63 = vpop.permute.xlu1 %4116  ;;  %v4684_v9 = vld [vmem:[#allocation3 + $0x48] sm:$0x1] }
 0x2be   : > { %4190 = vst.msk [vmem:[#allocation4 + $0x5c] sm:$0xf] %vm4166_vm15, %v4117_v63  ;;  %v4685_v62 = vsel %vm11085_vm10, 0, %v4684_v9  ;;  %v4681_v63 = vld [vmem:[#allocation3 + $0x3c] sm:$0x1] }
 0x2bf   : > { %4686 = vst [vmem:[#allocation3 + $0x48] sm:$0x1] %v4685_v62  ;;  %v4682_v11 = vsel %vm11085_vm10, 0, %v4681_v63  ;;  %v4711_v62 = vld [vmem:[#allocation3 + $0xb4] sm:$0x1] }
 0x2c0   : > { %v3782_v16 = vpop.permute.xlu0 %3781  ;;  %4683 = vst [vmem:[#allocation3 + $0x3c] sm:$0x1] %v4682_v11 }
 0x2c1   : > { %3854 = vst.msk [vmem:[#allocation4 + $0x60] sm:$0xf] %vm3829_vm14, %v3782_v16  ;;  %v3784_v46 = vpop.permute.xlu1 %3783  ;;  %v9880_v4 = vld [vmem:[#allocation4 + $0x50] sm:$0xff]  }
 0x2c2   : > { %3855 = vst.msk [vmem:[#allocation4 + $0x64] sm:$0xf] %vm3829_vm14, %v3784_v46  ;;  %9749 = vmatprep.mubr.msk.bf16.mxu1 %vm4331_vm8, %v9880_v4  ;;  %v4736_v46 = vld [vmem:[#allocation3 + $0x44] sm:$0x1] }
 0x2c3   : > { %v4737_v4 = vsel %vm11483_vm0, 0, %v4736_v46 }
 0x2c4   : > { %v3786_v18 = vpop.permute.xlu0 %3785  ;;  %4738 = vst [vmem:[#allocation3 + $0x44] sm:$0x1] %v4737_v4 }
 0x2c5   : > { %3856 = vst.msk [vmem:[#allocation4 + $0x68] sm:$0xf] %vm3829_vm14, %v3786_v18  ;;  %v3788_v22 = vpop.permute.xlu1 %3787  ;;  %v9881_v10 = vld [vmem:[#allocation4 + $0x58] sm:$0xff]  }
 0x2c6   : > { %3857 = vst.msk [vmem:[#allocation4 + $0x6c] sm:$0xf] %vm3829_vm14, %v3788_v22  ;;  %9750 = vmatmul.mubr.msk.bf16.gmra.mxu1 %vm4331_vm8, %v9881_v10  ;;  %v4687_v18 = vld [vmem:[#allocation3 + $0x54] sm:$0x1]  ;;  %v4745_v22 = vld [vmem:[#allocation3 + $0x68] sm:$0x1] }
 0x2c7   : > { %v4688_v21 = vsel %vm11085_vm10, 0, %v4687_v18  ;;  %v4746_v10 = vsel %vm11483_vm0, 0, %v4745_v22  ;;  %v5296_v18 = vld [vmem:[#allocation3 + $0xbc] sm:$0x1] }
 0x2c8   : > { %v4119_v23 = vpop.permute.xlu0 %4118  ;;  %4689 = vst [vmem:[#allocation3 + $0x54] sm:$0x1] %v4688_v21  ;;  %4747 = vst [vmem:[#allocation3 + $0x68] sm:$0x1] %v4746_v10  ;;  %v5201_v21 = vld [vmem:[#allocation3 + $0x18] sm:$0xf] }
 0x2c9   : > { %4191 = vst.msk [vmem:[#allocation4 + $0x60] sm:$0xf] %vm4166_vm15, %v4119_v23  ;;  %v4121_v24 = vpop.permute.xlu1 %4120  ;;  %v4742_v23 = vld [vmem:[#allocation3 + $0x5c] sm:$0x1]  ;;  %v4770_v10 = vsel %vm11483_vm0, 0, %v4769_v26 }
 0x2ca   : > { %4192 = vst.msk [vmem:[#allocation4 + $0x64] sm:$0xf] %vm4166_vm15, %v4121_v24  ;;  %v4743_v24 = vsel %vm11483_vm0, 0, %v4742_v23  ;;  %4771 = vst [vmem:[#allocation3 + $0xc8] sm:$0x1] %v4770_v10 }
 0x2cb   : > { %4744 = vst [vmem:[#allocation3 + $0x5c] sm:$0x1] %v4743_v24 }
 0x2cc   : > { %v4123_v25 = vpop.permute.xlu0 %4122 }
 0x2cd   : > { %4193 = vst.msk [vmem:[#allocation4 + $0x68] sm:$0xf] %vm4166_vm15, %v4123_v25  ;;  %v4125_v29 = vpop.permute.xlu1 %4124  ;;  %v4696_v25 = vld [vmem:[#allocation3 + $0x78] sm:$0x1] }
 0x2ce   : > { %4194 = vst.msk [vmem:[#allocation4 + $0x6c] sm:$0xf] %vm4166_vm15, %v4125_v29  ;;  %v4697_v28 = vsel %vm11085_vm10, 0, %v4696_v25  ;;  %v4693_v29 = vld [vmem:[#allocation3 + $0x6c] sm:$0x1] }
 0x2cf   : > { %4698 = vst [vmem:[#allocation3 + $0x78] sm:$0x1] %v4697_v28  ;;  %v4694_v2 = vsel %vm11085_vm10, 0, %v4693_v29  ;;  %v5194_v29 = vld [vmem:[#allocation3 + $0xc] sm:$0xf] }
 0x2d0   : > { %v3790_v36 = vpop.permute.xlu0 %3789  ;;  %4695 = vst [vmem:[#allocation3 + $0x6c] sm:$0x1] %v4694_v2 }
 0x2d1   : > { %3858 = vst.msk [vmem:[#allocation4 + $0x70] sm:$0xf] %vm3829_vm14, %v3790_v36  ;;  %v3792_v48 = vpop.permute.xlu1 %3791  ;;  %v9882_v59 = vld [vmem:[#allocation4 + $0x60] sm:$0xff]   ;;  %v4699_v36 = vld [vmem:[#allocation3 + $0x84] sm:$0x1] }
 0x2d2   : > { %3859 = vst.msk [vmem:[#allocation4 + $0x74] sm:$0xf] %vm3829_vm14, %v3792_v48  ;;  %9753 = vmatprep.mubr.msk.bf16.mxu1 %vm4331_vm8, %v9882_v59  ;;  %v4700_v27 = vsel %vm11085_vm10, 0, %v4699_v36  ;;  %v4754_v48 = vld [vmem:[#allocation3 + $0x8c] sm:$0x1] }
 0x2d3   : > { %4701 = vst [vmem:[#allocation3 + $0x84] sm:$0x1] %v4700_v27  ;;  %v4755_v59 = vsel %vm11483_vm0, 0, %v4754_v48  ;;  %v5205_v36 = vld [vmem:[#allocation3 + $0x20] sm:$0x1] }
 0x2d4   : > { %v3794_v52 = vpop.permute.xlu0 %3793  ;;  %4756 = vst [vmem:[#allocation3 + $0x8c] sm:$0x1] %v4755_v59 }
 0x2d5   : > { %3860 = vst.msk [vmem:[#allocation4 + $0x78] sm:$0xf] %vm3829_vm14, %v3794_v52  ;;  %v3796_v53 = vpop.permute.xlu1 %3795  ;;  %v9883_v56 = vld [vmem:[#allocation4 + $0x68] sm:$0xff]   ;;  %v4761_v52 = vsel %vm11483_vm0, 0, %v4760_v60 }
 0x2d6   : > { %3861 = vst.msk [vmem:[#allocation4 + $0x7c] sm:$0xf] %vm3829_vm14, %v3796_v53  ;;  %9754 = vmatmul.mubr.msk.bf16.gmra.mxu1 %vm4331_vm8, %v9883_v56  ;;  %4762 = vst [vmem:[#allocation3 + $0xa4] sm:$0x1] %v4761_v52  ;;  %v11580_v53 = vld [vmem:[%s13040_s3] ss:$0 sm:$0xff] }
 0x2d7   : > { %v4714_v56 = vld [vmem:[#allocation3 + $0xc0] sm:$0x1]  ;;  %v5198_v52 = vld [vmem:[#allocation3 + $0x14] sm:$0x1]  ;;  %vm8081_vm14 = vcmask 519616  }
 0x2d8   : > { %v4127_v3 = vpop.permute.xlu0 %4126  ;;  %v4715_v57 = vsel %vm11085_vm10, 0, %v4714_v56 }
 0x2d9   : > { %4195 = vst.msk [vmem:[#allocation4 + $0x70] sm:$0xf] %vm4166_vm15, %v4127_v3  ;;  %v4129_v5 = vpop.permute.xlu1 %4128  ;;  %4716 = vst [vmem:[#allocation3 + $0xc0] sm:$0x1] %v4715_v57 }
 0x2da   : > { %4196 = vst.msk [vmem:[#allocation4 + $0x74] sm:$0xf] %vm4166_vm15, %v4129_v5 }
 0x2dc   : > { %v4131_v7 = vpop.permute.xlu0 %4130 }
 0x2dd   : > { %4197 = vst.msk [vmem:[#allocation4 + $0x78] sm:$0xf] %vm4166_vm15, %v4131_v7  ;;  %v4133_v45 = vpop.permute.xlu1 %4132 }
 0x2de   : > { %4198 = vst.msk [vmem:[#allocation4 + $0x7c] sm:$0xf] %vm4166_vm15, %v4133_v45  ;;  %vm8418_vm15 = vcmask 585216  }
 0x2e1   : > { %v9884_v35 = vld [vmem:[#allocation4 + $0x70] sm:$0xff]  }
 0x2e2   : > { %9757 = vmatprep.mubr.msk.bf16.mxu1 %vm4331_vm8, %v9884_v35 }
 0x2e5   : > { %v9885_v16 = vld [vmem:[#allocation4 + $0x78] sm:$0xff]  }
 0x2e6   : > { %9758 = vmatmul.mubr.msk.bf16.gmra.mxu1 %vm4331_vm8, %v9885_v16  ;;  %v4712_v16 = vsel %vm11085_vm10, 0, %v4711_v62  ;;  %vm8599_vm8 = vcmask 588800  }
 0x2e7   : > { %4713 = vst [vmem:[#allocation3 + $0xb4] sm:$0x1] %v4712_v16 }
 0x336   : > { %v9731_v47 = vpop.f32.mrf.mxu0 }
 0x337   : > { %v4554_v32 = vmul.f32 %v9731_v47, %v11575_v39 }
 0x338   : > { %v4418_v58 = vpop.f32.mrf.mxu0 }
 0x339   : > { %v4593_v43 = vadd.f32 %v11580_v53, %v4554_v32  ;;  %v4552_v61 = vmul.f32 %v11575_v39, %v4418_v58 }
 0x33a   : > { %v9732_v3 = vpop.f32.mrf.mxu0 }
 0x33b   : > { %v4625_v0 = vmax.f32 %v4593_v43, 0.0  ;;  %v4591_v34 = vadd.f32 %v11580_v53, %v4552_v61  ;;  %v4555_v5 = vmul.f32 %v9732_v3, %v11575_v39 }
 0x33c   : > { %v4421_v6 = vpop.f32.mrf.mxu0 }
 0x33d   : > { %v9636_v7 = vpack.c.bf16 %v4625_v0, %v4625_v0  ;;  %v4623_v8 = vmax.f32 %v4591_v34, 0.0  ;;  %v4594_v45 = vadd.f32 %v11580_v53, %v4555_v5  ;;  %v4553_v9 = vmul.f32 %v11575_v39, %v4421_v6 }
 0x33f   : > { %v4889_v63 = vshrl.u32 %v9636_v7, 16  ;;  %v9634_v11 = vpack.c.bf16 %v4623_v8, %v4623_v8  ;;  %v4626_v35 = vmax.f32 %v4594_v45, 0.0  ;;  %v4592_v15 = vadd.f32 %v11580_v53, %v4553_v9 }
 0x340   : > { %v4892_v46 = vshll.u32 %v9636_v7, 16 }
 0x341   : > { %v4891_v17 = vrot.slane %v4889_v63, 7  ;;  %v4872_v4 = vshrl.u32 %v9634_v11, 16  ;;  %v9637_v49 = vpack.c.bf16 %v4626_v35, %v4626_v35  ;;  %v4624_v22 = vmax.f32 %v4592_v15, 0.0 }
 0x342   : > { %v4875_v25 = vshll.u32 %v9634_v11, 16 }
 0x343   : > { %v4894_v23 = vor.u32 %v4892_v46, %v4891_v17  ;;  %v4874_v24 = vrot.slane %v4872_v4, 7  ;;  %v4897_v28 = vshrl.u32 %v9637_v49, 16  ;;  %v9635_v14 = vpack.c.bf16 %v4624_v22, %v4624_v22 }
 0x344   : > { %v4900_v1 = vshll.u32 %v9637_v49, 16  ;;  %v4895_v33 = vrot.slane %v4891_v17, 4 }
 0x345   : > { %v5202_v2 = vsel %vm11596_vm7, %v4894_v23, %v5201_v21  ;;  %v4877_v20 = vor.u32 %v4875_v25, %v4874_v24  ;;  %v4899_v30 = vrot.slane %v4897_v28, 7  ;;  %v4880_v27 = vshrl.u32 %v9635_v14, 16 }
 0x346   : > { %5203 = vst [vmem:[#allocation3 + $0x18] sm:$0xf] %v5202_v2  ;;  %v9735_v38 = vpop.f32.mrf.mxu0  ;;  %v4883_v50 = vshll.u32 %v9635_v14, 16  ;;  %v4878_v32 = vrot.slane %v4874_v24, 4 }
 0x347   : > { %v5195_v48 = vsel %vm11596_vm7, %v4877_v20, %v5194_v29  ;;  %v4902_v59 = vor.u32 %v4900_v1, %v4899_v30  ;;  %v4904_v41 = vrot.slane %v4899_v30, 4  ;;  %v4558_v42 = vmul.f32 %v9735_v38, %v11575_v39  ;;  %v5215_v29 = vld [vmem:[#allocation3 + $0x30] sm:$0xf] }
 0x348   : > { %5196 = vst [vmem:[#allocation3 + $0xc] sm:$0xf] %v5195_v48  ;;  %v4882_v44 = vrot.slane %v4880_v27, 7  ;;  %v4434_v51 = vpop.f32.mrf.mxu0 }
 0x349   : > { %v4903_v31 = vsel %vm10100_vm12, %v4895_v33, %v4902_v59  ;;  %v5206_v60 = vsel %vm11085_vm10, %v4904_v41, %v5205_v36  ;;  %v4597_v47 = vadd.f32 %v11580_v53, %v4558_v42  ;;  %v4556_v56 = vmul.f32 %v11575_v39, %v4434_v51  ;;  %v5208_v36 = vld [vmem:[#allocation3 + $0x24] sm:$0xf] }
 0x34a   : > { %5204 = vst.msk [vmem:[#allocation3 + $0x1c] sm:$0xf] %vm4655_vm6, %v4903_v31  ;;  %5207 = vst [vmem:[#allocation3 + $0x20] sm:$0x1] %v5206_v60  ;;  %v4885_v57 = vor.u32 %v4883_v50, %v4882_v44  ;;  %v4887_v58 = vrot.slane %v4882_v44, 4  ;;  %v9736_v43 = vpop.f32.mrf.mxu0 }
 0x34b   : > { %v4629_v61 = vmax.f32 %v4597_v47, 0.0  ;;  %v4595_v3 = vadd.f32 %v11580_v53, %v4556_v56  ;;  %v4559_v0 = vmul.f32 %v9736_v43, %v11575_v39 }
 0x34c   : > { %v4886_v34 = vsel %vm10100_vm12, %v4878_v32, %v4885_v57  ;;  %v5199_v5 = vsel %vm11085_vm10, %v4887_v58, %v5198_v52  ;;  %v4437_v6 = vpop.f32.mrf.mxu0 }
 0x34d   : > { %5197 = vst.msk [vmem:[#allocation3 + $0x10] sm:$0xf] %vm4655_vm6, %v4886_v34  ;;  %5200 = vst [vmem:[#allocation3 + $0x14] sm:$0x1] %v5199_v5  ;;  %v9640_v7 = vpack.c.bf16 %v4629_v61, %v4629_v61  ;;  %v4627_v8 = vmax.f32 %v4595_v3, 0.0  ;;  %v4598_v45 = vadd.f32 %v11580_v53, %v4559_v0  ;;  %v4557_v9 = vmul.f32 %v11575_v39, %v4437_v6 }
 0x34e   : > { %v5376_v62 = vld [vmem:[#allocation3 + $0x18] sm:$0xf] }
 0x34f   : > { %v5310_v63 = vld [vmem:[#allocation3 + $0x18] sm:$0xf]  ;;  %v5467_v11 = vshrl.u32 %v5376_v62, 16  ;;  %v5470_v35 = vshll.u32 %v5376_v62, 16  ;;  %v4923_v15 = vshrl.u32 %v9640_v7, 16  ;;  %v4926_v16 = vshll.u32 %v9640_v7, 16 }
 0x350   : > { %5342 = vst.msk [vmem:[#allocation4 + $0x10] sm:$0xf] %vm4655_vm6, %v5310_v63  ;;  %v9638_v17 = vpack.c.bf16 %v4627_v8, %v4627_v8  ;;  %v4630_v46 = vmax.f32 %v4598_v45, 0.0  ;;  %v5373_v4 = vld [vmem:[#allocation3 + $0xc] sm:$0xf]  ;;  %v4596_v49 = vadd.f32 %v11580_v53, %v4557_v9 }
 0x351   : > { %v5443_v26 = vshrl.u32 %v5373_v4, 16  ;;  %v5446_v21 = vshll.u32 %v5373_v4, 16  ;;  %v11627_v22 = vrot.slane %v5467_v11, 4  ;;  %v5308_v10 = vld [vmem:[#allocation3 + $0xc] sm:$0xf]  ;;  %v4925_v23 = vrot.slane %v4923_v15, 7 }
 0x352   : > { %v4906_v24 = vshrl.u32 %v9638_v17, 16  ;;  %v4909_v25 = vshll.u32 %v9638_v17, 16  ;;  %v9641_v28 = vpack.c.bf16 %v4630_v46, %v4630_v46  ;;  %5340 = vst.msk [vmem:[#allocation4 + $0x8] sm:$0xf] %vm4655_vm6, %v5308_v10  ;;  %v4628_v14 = vmax.f32 %v4596_v49, 0.0 }
 0x353   : > { %v5445_v2 = vrot.slane %v5443_v26, 4  ;;  %v5448_v20 = vrot.slane %v5446_v21, 5  ;;  %v5472_v30 = vrot.slane %v5470_v35, 5  ;;  %v4928_v1 = vor.u32 %v4926_v16, %v4925_v23  ;;  %v5311_v43 = vld [vmem:[#allocation3 + $0x1c] sm:$0xf] }
 0x354   : > { %v4929_v19 = vrot.slane %v4925_v23, 4  ;;  %v4908_v33 = vrot.slane %v4906_v24, 7  ;;  %v4931_v27 = vshrl.u32 %v9641_v28, 16  ;;  %v4934_v38 = vshll.u32 %v9641_v28, 16  ;;  %v5374_v59 = vld [vmem:[#allocation3 + $0x10] sm:$0xf] }
 0x355   : > { %v9639_v48 = vpack.c.bf16 %v4628_v14, %v4628_v14  ;;  %v5449_v41 = vor.u32 %v5448_v20, %v5445_v2  ;;  %v5473_v42 = vor.u32 %v5472_v30, %v11627_v22  ;;  %v5216_v44 = vsel %vm11596_vm7, %v4928_v1, %v5215_v29  ;;  %v5375_v60 = vld [vmem:[#allocation3 + $0x14] sm:$0x1]  ;;  %v5309_v52 = vld [vmem:[#allocation3 + $0x10] sm:$0xf]  ;;  %5343 = vst.msk [vmem:[#allocation4 + $0x14] sm:$0xf] %vm4655_vm6, %v5311_v43 }
 0x356   : > { %v4911_v50 = vor.u32 %v4909_v25, %v4908_v33  ;;  %v4912_v51 = vrot.slane %v4908_v33, 4  ;;  %v4933_v31 = vrot.slane %v4931_v27, 7  ;;  %5217 = vst [vmem:[#allocation3 + $0x30] sm:$0xf] %v5216_v44  ;;  %v9739_v32 = vpop.f32.mrf.mxu0  ;;  %v5452_v58 = vshll.u32 %v5374_v59, 16 }
 0x357   : > { %v4914_v47 = vshrl.u32 %v9639_v48, 16  ;;  %v4917_v56 = vshll.u32 %v9639_v48, 16  ;;  %v5450_v57 = vrot.slane %v5449_v41, 4  ;;  %5341 = vst.msk [vmem:[#allocation4 + $0xc] sm:$0xf] %vm4655_vm6, %v5309_v52  ;;  %v4562_v34 = vmul.f32 %v9739_v32, %v11575_v39 }
 0x358   : > { %v5209_v61 = vsel %vm11596_vm7, %v4911_v50, %v5208_v36  ;;  %v4936_v3 = vor.u32 %v4934_v38, %v4933_v31  ;;  %v4938_v0 = vrot.slane %v4933_v31, 4  ;;  %v4450_v6 = vpop.f32.mrf.mxu0  ;;  %v5454_v7 = vrot.slane %v5452_v58, 5  ;;  %v5212_v63 = vld [vmem:[#allocation3 + $0x2c] sm:$0x1]  ;;  %v5377_v10 = vld [vmem:[#allocation3 + $0x1c] sm:$0xf] }
 0x359   : > { %5210 = vst [vmem:[#allocation3 + $0x24] sm:$0xf] %v5209_v61  ;;  %v4916_v5 = vrot.slane %v4914_v47, 7  ;;  %v5456_v8 = vshrl.u32 %v5374_v59, 16  ;;  %v5462_v45 = vshll.u32 %v5375_v60, 16  ;;  %v4601_v11 = vadd.f32 %v11580_v53, %v4562_v34 }
 0x35a   : > { %v4937_v9 = vsel %vm10100_vm12, %v4929_v19, %v4936_v3  ;;  %v5220_v62 = vsel %vm11085_vm10, %v4938_v0, %v5219_v40  ;;  %v4560_v35 = vmul.f32 %v11575_v39, %v4450_v6  ;;  %v5455_v17 = vsel %vm10113_vm13, %v5450_v57, %v5454_v7  ;;  %v9740_v46 = vpop.f32.mrf.mxu0  ;;  %v5378_v23 = vld [vmem:[#allocation3 + $0x20] sm:$0x1] }
 0x35b   : > { %5218 = vst.msk [vmem:[#allocation3 + $0x34] sm:$0xf] %vm4655_vm6, %v4937_v9  ;;  %5221 = vst [vmem:[#allocation3 + $0x38] sm:$0x1] %v5220_v62  ;;  %v4919_v15 = vor.u32 %v4917_v56, %v4916_v5  ;;  %v4921_v16 = vrot.slane %v4916_v5, 4  ;;  %v5458_v4 = vrot.slane %v5456_v8, 4  ;;  %5806 = vrot.lane.b32.xlu0 %v5455_v17, %s9951_s20  ;;  %v4563_v21 = vmul.f32 %v9740_v46, %v11575_v39 }
 0x35c   : > { %v4633_v49 = vmax.f32 %v4601_v11, 0.0  ;;  %v4599_v26 = vadd.f32 %v11580_v53, %v4560_v35  ;;  %v5464_v22 = vrot.slane %v5462_v45, 5  ;;  %v4453_v28 = vpop.f32.mrf.mxu0  ;;  %v5474_v14 = vrot.slane %v5473_v42, 4  ;;  %v5229_v56 = vld [vmem:[#allocation3 + $0x48] sm:$0xf] }
 0x35d   : > { %v4920_v24 = vsel %vm10100_vm12, %v4912_v51, %v4919_v15  ;;  %v5213_v25 = vsel %vm11085_vm10, %v4921_v16, %v5212_v63  ;;  %v5459_v29 = vor.u32 %v5458_v4, %v5454_v7  ;;  %v4602_v30 = vadd.f32 %v11580_v53, %v4563_v21  ;;  %v5222_v5 = vld [vmem:[#allocation3 + $0x3c] sm:$0xf]  ;;  %v5233_v35 = vld [vmem:[#allocation3 + $0x50] sm:$0x1] }
 0x35e   : > { %5211 = vst.msk [vmem:[#allocation3 + $0x28] sm:$0xf] %vm4655_vm6, %v4920_v24  ;;  %5214 = vst [vmem:[#allocation3 + $0x2c] sm:$0x1] %v5213_v25  ;;  %v9644_v2 = vpack.c.bf16 %v4633_v49, %v4633_v49  ;;  %v4631_v20 = vmax.f32 %v4599_v26, 0.0  ;;  %v4561_v1 = vmul.f32 %v11575_v39, %v4453_v28  ;;  %v5476_v33 = vshll.u32 %v5377_v10, 16 }
 0x35f   : > { %v5460_v19 = vrot.slane %v5459_v29, 4  ;;  %v5480_v36 = vshrl.u32 %v5377_v10, 16  ;;  %v5486_v27 = vshll.u32 %v5378_v23, 16  ;;  %v4634_v59 = vmax.f32 %v4602_v30, 0.0  ;;  %v5226_v23 = vld [vmem:[#allocation3 + $0x44] sm:$0x1] }
 0x360   : > { %v4957_v38 = vshrl.u32 %v9644_v2, 16  ;;  %v4960_v40 = vshll.u32 %v9644_v2, 16  ;;  %v9642_v48 = vpack.c.bf16 %v4631_v20, %v4631_v20  ;;  %v4600_v41 = vadd.f32 %v11580_v53, %v4561_v1  ;;  %v5379_v47 = vld [vmem:[#allocation3 + $0x24] sm:$0xf] }
 0x361   : > { %v5465_v42 = vsel %vm10113_vm13, %v5460_v19, %v5464_v22  ;;  %v5478_v44 = vrot.slane %v5476_v33, 5  ;;  %v5482_v50 = vrot.slane %v5480_v36, 4  ;;  %v9645_v52 = vpack.c.bf16 %v4634_v59, %v4634_v59  ;;  %v5312_v26 = vld [vmem:[#allocation3 + $0x24] sm:$0xf] }
 0x362   : > { %v4959_v51 = vrot.slane %v4957_v38, 7  ;;  %v4940_v31 = vshrl.u32 %v9642_v48, 16  ;;  %v4943_v60 = vshll.u32 %v9642_v48, 16  ;;  %5808 = vrot.lane.b32.xlu1 %v5465_v42, %s9951_s20  ;;  %v4632_v32 = vmax.f32 %v4600_v41, 0.0  ;;  %5344 = vst.msk [vmem:[#allocation4 + $0x18] sm:$0xf] %vm4655_vm6, %v5312_v26 }
 0x363   : > { %v5479_v57 = vsel %vm10113_vm13, %v5474_v14, %v5478_v44  ;;  %v5483_v58 = vor.u32 %v5482_v50, %v5478_v44  ;;  %v5488_v43 = vrot.slane %v5486_v27, 5  ;;  %v4965_v34 = vshrl.u32 %v9645_v52, 16  ;;  %v5314_v27 = vld [vmem:[#allocation3 + $0x30] sm:$0xf]  ;;  %v5315_v38 = vld [vmem:[#allocation3 + $0x34] sm:$0xf] }
 0x364   : > { %v4962_v61 = vor.u32 %v4960_v40, %v4959_v51  ;;  %v4963_v3 = vrot.slane %v4959_v51, 4  ;;  %v4942_v0 = vrot.slane %v4940_v31, 7  ;;  %5810 = vrot.lane.b32.xlu0 %v5479_v57, %s9951_s20  ;;  %v4968_v6 = vshll.u32 %v9645_v52, 16  ;;  %5346 = vst.msk [vmem:[#allocation4 + $0x20] sm:$0xf] %vm4655_vm6, %v5314_v27 }
 0x365   : > { %v9643_v7 = vpack.c.bf16 %v4632_v32, %v4632_v32  ;;  %v5484_v8 = vrot.slane %v5483_v58, 4  ;;  %v5491_v45 = vshrl.u32 %v5379_v47, 16  ;;  %v4967_v11 = vrot.slane %v4965_v34, 7  ;;  %v5380_v15 = vld [vmem:[#allocation3 + $0x28] sm:$0xf] }
 0x366   : > { %v5230_v9 = vsel %vm11596_vm7, %v4962_v61, %v5229_v56  ;;  %v4945_v62 = vor.u32 %v4943_v60, %v4942_v0  ;;  %v4946_v63 = vrot.slane %v4942_v0, 4  ;;  %v9743_v4 = vpop.f32.mrf.mxu0  ;;  %v5494_v29 = vshll.u32 %v5379_v47, 16  ;;  %v5313_v20 = vld [vmem:[#allocation3 + $0x28] sm:$0xf]  ;;  %v5381_v36 = vld [vmem:[#allocation3 + $0x2c] sm:$0x1] }
 0x367   : > { %5231 = vst [vmem:[#allocation3 + $0x48] sm:$0xf] %v5230_v9  ;;  %v4948_v16 = vshrl.u32 %v9643_v7, 16  ;;  %v4951_v17 = vshll.u32 %v9643_v7, 16  ;;  %v5489_v46 = vsel %vm10113_vm13, %v5484_v8, %v5488_v43  ;;  %v5493_v49 = vrot.slane %v5491_v45, 4 }
 0x368   : > { %v5223_v21 = vsel %vm11596_vm7, %v4945_v62, %v5222_v5  ;;  %v4970_v22 = vor.u32 %v4968_v6, %v4967_v11  ;;  %v4972_v10 = vrot.slane %v4967_v11, 4  ;;  %5812 = vrot.lane.b32.xlu1 %v5489_v46, %s9951_s20  ;;  %v4566_v24 = vmul.f32 %v9743_v4, %v11575_v39  ;;  %v4466_v28 = vpop.f32.mrf.mxu0  ;;  %5345 = vst.msk [vmem:[#allocation4 + $0x1c] sm:$0xf] %vm4655_vm6, %v5313_v20  ;;  %v5382_v60 = vld [vmem:[#allocation3 + $0x30] sm:$0xf] }
 0x369   : > { %5224 = vst [vmem:[#allocation3 + $0x3c] sm:$0xf] %v5223_v21  ;;  %v4950_v25 = vrot.slane %v4948_v16, 7  ;;  %v5500_v14 = vshll.u32 %v5380_v15, 16  ;;  %v5504_v2 = vshrl.u32 %v5380_v15, 16  ;;  %v4564_v33 = vmul.f32 %v11575_v39, %v4466_v28 }
 0x36a   : > { %v4971_v30 = vsel %vm10100_vm12, %v4963_v3, %v4970_v22  ;;  %v5234_v1 = vsel %vm11085_vm10, %v4972_v10, %v5233_v35  ;;  %v4605_v19 = vadd.f32 %v11580_v53, %v4566_v24  ;;  %v5496_v59 = vrot.slane %v5494_v29, 5  ;;  %v9744_v42 = vpop.f32.mrf.mxu0  ;;  %5347 = vst.msk [vmem:[#allocation4 + $0x24] sm:$0xf] %vm4655_vm6, %v5315_v38  ;;  %v5383_v62 = vld [vmem:[#allocation3 + $0x34] sm:$0xf] }
 0x36b   : > { %5232 = vst.msk [vmem:[#allocation3 + $0x4c] sm:$0xf] %vm4655_vm6, %v4971_v30  ;;  %5235 = vst [vmem:[#allocation3 + $0x50] sm:$0x1] %v5234_v1  ;;  %v4953_v40 = vor.u32 %v4951_v17, %v4950_v25  ;;  %v4955_v48 = vrot.slane %v4950_v25, 4  ;;  %v5502_v41 = vrot.slane %v5500_v14, 5  ;;  %v4603_v50 = vadd.f32 %v11580_v53, %v4564_v33 }
 0x36c   : > { %v4637_v44 = vmax.f32 %v4605_v19, 0.0  ;;  %v4567_v51 = vmul.f32 %v9744_v42, %v11575_v39  ;;  %v5506_v31 = vrot.slane %v5504_v2, 4  ;;  %v5497_v56 = vor.u32 %v5496_v59, %v5493_v49  ;;  %v4469_v32 = vpop.f32.mrf.mxu0  ;;  %v5243_v49 = vld [vmem:[#allocation3 + $0x60] sm:$0xf]  ;;  %v5236_v28 = vld [vmem:[#allocation3 + $0x54] sm:$0xf] }
 0x36d   : > { %v4954_v52 = vsel %vm10100_vm12, %v4946_v63, %v4953_v40  ;;  %v5227_v47 = vsel %vm11085_vm10, %v4955_v48, %v5226_v23  ;;  %v5510_v57 = vshll.u32 %v5381_v36, 16  ;;  %v4635_v43 = vmax.f32 %v4603_v50, 0.0  ;;  %v5384_v1 = vld [vmem:[#allocation3 + $0x38] sm:$0x1]  ;;  %v5247_v38 = vld [vmem:[#allocation3 + $0x68] sm:$0x1] }
 0x36e   : > { %5225 = vst.msk [vmem:[#allocation3 + $0x40] sm:$0xf] %vm4655_vm6, %v4954_v52  ;;  %5228 = vst [vmem:[#allocation3 + $0x44] sm:$0x1] %v5227_v47  ;;  %v9648_v58 = vpack.c.bf16 %v4637_v44, %v4637_v44  ;;  %v4606_v61 = vadd.f32 %v11580_v53, %v4567_v51  ;;  %v4565_v3 = vmul.f32 %v11575_v39, %v4469_v32  ;;  %v5498_v0 = vrot.slane %v5497_v56, 4 }
 0x36f   : > { %v5507_v34 = vor.u32 %v5506_v31, %v5502_v41  ;;  %v5512_v5 = vrot.slane %v5510_v57, 5  ;;  %v5515_v6 = vshrl.u32 %v5382_v60, 16  ;;  %v9646_v45 = vpack.c.bf16 %v4635_v43, %v4635_v43  ;;  %v5240_v31 = vld [vmem:[#allocation3 + $0x5c] sm:$0x1] }
 0x370   : > { %v4991_v7 = vshrl.u32 %v9648_v58, 16  ;;  %v4994_v8 = vshll.u32 %v9648_v58, 16  ;;  %v4638_v9 = vmax.f32 %v4606_v61, 0.0  ;;  %v5503_v63 = vsel %vm10113_vm13, %v5498_v0, %v5502_v41  ;;  %v5385_v52 = vld [vmem:[#allocation3 + $0x3c] sm:$0xf] }
 0x371   : > { %v4604_v11 = vadd.f32 %v11580_v53, %v4565_v3  ;;  %v5508_v35 = vrot.slane %v5507_v34, 4  ;;  %v5517_v15 = vrot.slane %v5515_v6, 4  ;;  %v4974_v17 = vshrl.u32 %v9646_v45, 16  ;;  %5814 = vrot.lane.b32.xlu0 %v5503_v63, %s9951_s20  ;;  %v5316_v61 = vld [vmem:[#allocation3 + $0x3c] sm:$0xf] }
 0x372   : > { %v4993_v16 = vrot.slane %v4991_v7, 7  ;;  %v4977_v46 = vshll.u32 %v9646_v45, 16  ;;  %v9649_v4 = vpack.c.bf16 %v4638_v9, %v4638_v9  ;;  %v5518_v22 = vshll.u32 %v5382_v60, 16  ;;  %5348 = vst.msk [vmem:[#allocation4 + $0x28] sm:$0xf] %vm4655_vm6, %v5316_v61 }
 0x373   : > { %v4636_v26 = vmax.f32 %v4604_v11, 0.0  ;;  %v5513_v21 = vsel %vm10113_vm13, %v5508_v35, %v5512_v5  ;;  %v5524_v10 = vshll.u32 %v5383_v62, 16  ;;  %v4976_v25 = vrot.slane %v4974_v17, 7  ;;  %v5318_v7 = vld [vmem:[#allocation3 + $0x48] sm:$0xf] }
 0x374   : > { %v4996_v23 = vor.u32 %v4994_v8, %v4993_v16  ;;  %v4997_v24 = vrot.slane %v4993_v16, 4  ;;  %v4999_v29 = vshrl.u32 %v9649_v4, 16  ;;  %5816 = vrot.lane.b32.xlu1 %v5513_v21, %s9951_s20  ;;  %v5002_v14 = vshll.u32 %v9649_v4, 16  ;;  %5350 = vst.msk [vmem:[#allocation4 + $0x30] sm:$0xf] %vm4655_vm6, %v5318_v7 }
 0x375   : > { %v9647_v2 = vpack.c.bf16 %v4636_v26, %v4636_v26  ;;  %v5520_v20 = vrot.slane %v5518_v22, 5  ;;  %v5526_v30 = vrot.slane %v5524_v10, 5  ;;  %v4979_v33 = vor.u32 %v4977_v46, %v4976_v25  ;;  %v5386_v47 = vld [vmem:[#allocation3 + $0x40] sm:$0xf]  ;;  %v5319_v11 = vld [vmem:[#allocation3 + $0x4c] sm:$0xf] }
 0x376   : > { %v5244_v19 = vsel %vm11596_vm7, %v4996_v23, %v5243_v49  ;;  %v4980_v36 = vrot.slane %v4976_v25, 4  ;;  %v5001_v27 = vrot.slane %v4999_v29, 7  ;;  %v5528_v41 = vshrl.u32 %v5383_v62, 16  ;;  %v9747_v42 = vpop.f32.mrf.mxu1  ;;  %v5317_v6 = vld [vmem:[#allocation3 + $0x40] sm:$0xf] }
 0x377   : > { %5245 = vst [vmem:[#allocation3 + $0x60] sm:$0xf] %v5244_v19  ;;  %v4982_v40 = vshrl.u32 %v9647_v2, 16  ;;  %v4985_v48 = vshll.u32 %v9647_v2, 16  ;;  %v5521_v59 = vor.u32 %v5520_v20, %v5517_v15  ;;  %v5237_v44 = vsel %vm11596_vm7, %v4979_v33, %v5236_v28  ;;  %5349 = vst.msk [vmem:[#allocation4 + $0x2c] sm:$0xf] %vm4655_vm6, %v5317_v6 }
 0x378   : > { %v5004_v50 = vor.u32 %v5002_v14, %v5001_v27  ;;  %v5006_v51 = vrot.slane %v5001_v27, 4  ;;  %v5534_v60 = vshll.u32 %v5384_v1, 16  ;;  %5238 = vst [vmem:[#allocation3 + $0x54] sm:$0xf] %v5237_v44  ;;  %v5530_v57 = vrot.slane %v5528_v41, 4  ;;  %v4482_v43 = vpop.f32.mrf.mxu1 }
 0x379   : > { %v4984_v56 = vrot.slane %v4982_v40, 7  ;;  %v5522_v32 = vrot.slane %v5521_v59, 4  ;;  %v4570_v58 = vmul.f32 %v9747_v42, %v11575_v39  ;;  %v4568_v5 = vmul.f32 %v11575_v39, %v4482_v43  ;;  %5351 = vst.msk [vmem:[#allocation4 + $0x34] sm:$0xf] %vm4655_vm6, %v5319_v11  ;;  %v11723_v22 = vld [vmem:[#allocation3 + $0x48] sm:$0xf] }
 0x37a   : > { %v5005_v3 = vsel %vm10100_vm12, %v4997_v24, %v5004_v50  ;;  %v5248_v0 = vsel %vm11085_vm10, %v5006_v51, %v5247_v38  ;;  %v5536_v34 = vrot.slane %v5534_v60, 5  ;;  %v5531_v62 = vor.u32 %v5530_v57, %v5526_v30  ;;  %v9748_v63 = vpop.f32.mrf.mxu1  ;;  %v5387_v28 = vld [vmem:[#allocation3 + $0x44] sm:$0x1]  ;;  %v5250_v57 = vld [vmem:[#allocation3 + $0x6c] sm:$0xf] }
 0x37b   : > { %5246 = vst.msk [vmem:[#allocation3 + $0x64] sm:$0xf] %vm4655_vm6, %v5005_v3  ;;  %5249 = vst [vmem:[#allocation3 + $0x68] sm:$0x1] %v5248_v0  ;;  %v4987_v8 = vor.u32 %v4985_v48, %v4984_v56  ;;  %v4989_v45 = vrot.slane %v4984_v56, 4  ;;  %v5527_v9 = vsel %vm10113_vm13, %v5522_v32, %v5526_v30  ;;  %v4609_v35 = vadd.f32 %v11580_v53, %v4570_v58 }
 0x37c   : > { %5818 = vrot.lane.b32.xlu0 %v5527_v9, %s9951_s20  ;;  %v4607_v15 = vadd.f32 %v11580_v53, %v4568_v5  ;;  %v5539_v16 = vshrl.u32 %v5385_v52, 16  ;;  %v5542_v17 = vshll.u32 %v5385_v52, 16  ;;  %v5532_v49 = vrot.slane %v5531_v62, 4  ;;  %v4485_v21 = vpop.f32.mrf.mxu1  ;;  %v5257_v52 = vld [vmem:[#allocation3 + $0x78] sm:$0xf] }
 0x37d   : > { %v4988_v46 = vsel %vm10100_vm12, %v4980_v36, %v4987_v8  ;;  %v5241_v4 = vsel %vm11085_vm10, %v4989_v45, %v5240_v31  ;;  %v5548_v26 = vshll.u32 %v5386_v47, 16  ;;  %v4641_v10 = vmax.f32 %v4609_v35, 0.0  ;;  %v5389_v0 = vld [vmem:[#allocation3 + $0x4c] sm:$0xf]  ;;  %v5390_v8 = vld [vmem:[#allocation3 + $0x50] sm:$0x1] }
 0x37e   : > { %5239 = vst.msk [vmem:[#allocation3 + $0x58] sm:$0xf] %vm4655_vm6, %v4988_v46  ;;  %5242 = vst [vmem:[#allocation3 + $0x5c] sm:$0x1] %v5241_v4  ;;  %v4639_v23 = vmax.f32 %v4607_v15, 0.0  ;;  %v5541_v24 = vrot.slane %v5539_v16, 4  ;;  %v5537_v29 = vsel %vm10113_vm13, %v5532_v49, %v5536_v34  ;;  %v4571_v20 = vmul.f32 %v9748_v63, %v11575_v39 }
 0x37f   : > { %v5544_v25 = vrot.slane %v5542_v17, 5  ;;  %v5550_v14 = vrot.slane %v5548_v26, 5  ;;  %v5552_v2 = vshrl.u32 %v5386_v47, 16  ;;  %5820 = vrot.lane.b32.xlu1 %v5537_v29, %s9951_s20  ;;  %v9652_v30 = vpack.c.bf16 %v4641_v10, %v4641_v10  ;;  %v5320_v35 = vld [vmem:[#allocation3 + $0x54] sm:$0xf] }
 0x380   : > { %v9650_v1 = vpack.c.bf16 %v4639_v23, %v4639_v23  ;;  %v4569_v33 = vmul.f32 %v11575_v39, %v4485_v21  ;;  %v4610_v36 = vadd.f32 %v11580_v53, %v4571_v20  ;;  %v5558_v38 = vshll.u32 %v5387_v28, 16  ;;  %v5322_v15 = vld [vmem:[#allocation3 + $0x60] sm:$0xf]  ;;  %5352 = vst.msk [vmem:[#allocation4 + $0x38] sm:$0xf] %vm4655_vm6, %v5320_v35 }
 0x381   : > { %v5545_v19 = vor.u32 %v5544_v25, %v5541_v24  ;;  %v5554_v27 = vrot.slane %v5552_v2, 4  ;;  %v5563_v40 = vshrl.u32 %v11723_v22, 16  ;;  %v5025_v48 = vshrl.u32 %v9652_v30, 16  ;;  %5354 = vst.msk [vmem:[#allocation4 + $0x40] sm:$0xf] %vm4655_vm6, %v5322_v15 }
 0x382   : > { %v5028_v59 = vshll.u32 %v9652_v30, 16  ;;  %v5008_v41 = vshrl.u32 %v9650_v1, 16  ;;  %v5011_v42 = vshll.u32 %v9650_v1, 16  ;;  %v4642_v50 = vmax.f32 %v4610_v36, 0.0  ;;  %v5323_v49 = vld [vmem:[#allocation3 + $0x64] sm:$0xf] }
 0x383   : > { %v5546_v44 = vrot.slane %v5545_v19, 4  ;;  %v4608_v51 = vadd.f32 %v11580_v53, %v4569_v33  ;;  %v5555_v31 = vor.u32 %v5554_v27, %v5550_v14  ;;  %v5027_v60 = vrot.slane %v5025_v48, 7  ;;  %5355 = vst.msk [vmem:[#allocation4 + $0x44] sm:$0xf] %vm4655_vm6, %v5323_v49  ;;  %v5261_v28 = vld [vmem:[#allocation3 + $0x80] sm:$0x1] }
 0x384   : > { %v11734_v47 = vrot.slane %v5008_v41, 7  ;;  %v5560_v56 = vrot.slane %v5558_v38, 5  ;;  %v5565_v32 = vrot.slane %v5563_v40, 4  ;;  %v9653_v43 = vpack.c.bf16 %v4642_v50, %v4642_v50  ;;  %v5254_v33 = vld [vmem:[#allocation3 + $0x74] sm:$0x1] }
 0x385   : > { %v5551_v58 = vsel %vm10113_vm13, %v5546_v44, %v5550_v14  ;;  %v4640_v61 = vmax.f32 %v4608_v51, 0.0  ;;  %v5556_v3 = vrot.slane %v5555_v31, 4  ;;  %v5030_v34 = vor.u32 %v5028_v59, %v5027_v60  ;;  %v5321_v25 = vld [vmem:[#allocation3 + $0x58] sm:$0xf]  ;;  %v5391_v48 = vld [vmem:[#allocation3 + $0x54] sm:$0xf] }
 0x386   : > { %v5031_v5 = vrot.slane %v5027_v60, 4  ;;  %v5013_v6 = vor.u32 %v5011_v42, %v11734_v47  ;;  %v5014_v7 = vrot.slane %v11734_v47, 4  ;;  %5822 = vrot.lane.b32.xlu0 %v5551_v58, %s9951_s20  ;;  %v5033_v45 = vshrl.u32 %v9653_v43, 16  ;;  %v9751_v11 = vpop.f32.mrf.mxu1  ;;  %5353 = vst.msk [vmem:[#allocation4 + $0x3c] sm:$0xf] %vm4655_vm6, %v5321_v25 }
 0x387   : > { %v5036_v9 = vshll.u32 %v9653_v43, 16  ;;  %v9651_v62 = vpack.c.bf16 %v4640_v61, %v4640_v61  ;;  %v5561_v63 = vsel %vm10113_vm13, %v5556_v3, %v5560_v56  ;;  %v5258_v16 = vsel %vm11596_vm7, %v5030_v34, %v5257_v52  ;;  %v5392_v47 = vld [vmem:[#allocation3 + $0x58] sm:$0xf] }
 0x388   : > { %v5251_v17 = vsel %vm11596_vm7, %v5013_v6, %v5250_v57  ;;  %5824 = vrot.lane.b32.xlu1 %v5561_v63, %s9951_s20  ;;  %v5566_v46 = vshll.u32 %v11723_v22, 16  ;;  %v5572_v4 = vshll.u32 %v5389_v0, 16  ;;  %5259 = vst [vmem:[#allocation3 + $0x78] sm:$0xf] %v5258_v16  ;;  %v5035_v26 = vrot.slane %v5033_v45, 7  ;;  %v4498_v24 = vpop.f32.mrf.mxu1 }
 0x389   : > { %5252 = vst [vmem:[#allocation3 + $0x6c] sm:$0xf] %v5251_v17  ;;  %v5016_v21 = vshrl.u32 %v9651_v62, 16  ;;  %v5019_v10 = vshll.u32 %v9651_v62, 16  ;;  %v5576_v23 = vshrl.u32 %v5389_v0, 16  ;;  %v5582_v22 = vshll.u32 %v5390_v8, 16 }
 0x38a   : > { %v5568_v29 = vrot.slane %v5566_v46, 5  ;;  %v5574_v14 = vrot.slane %v5572_v4, 5  ;;  %v4574_v2 = vmul.f32 %v9751_v11, %v11575_v39  ;;  %v5038_v20 = vor.u32 %v5036_v9, %v5035_v26  ;;  %v9752_v59 = vpop.f32.mrf.mxu1  ;;  %v5393_v11 = vld [vmem:[#allocation3 + $0x5c] sm:$0x1] }
 0x38b   : > { %v5040_v30 = vrot.slane %v5035_v26, 4  ;;  %v5018_v1 = vrot.slane %v5016_v21, 7  ;;  %v5578_v19 = vrot.slane %v5576_v23, 4  ;;  %v5584_v27 = vrot.slane %v5582_v22, 5  ;;  %v5264_v22 = vld [vmem:[#allocation3 + $0x84] sm:$0xf] }
 0x38c   : > { %v5569_v36 = vor.u32 %v5568_v29, %v5565_v32  ;;  %v4613_v38 = vadd.f32 %v11580_v53, %v4574_v2  ;;  %v4572_v40 = vmul.f32 %v11575_v39, %v4498_v24  ;;  %v5039_v41 = vsel %vm10100_vm12, %v5031_v5, %v5038_v20  ;;  %v4501_v34 = vpop.f32.mrf.mxu1  ;;  %v5394_v20 = vld [vmem:[#allocation3 + $0x60] sm:$0xf] }
 0x38d   : > { %v5262_v42 = vsel %vm11085_vm10, %v5040_v30, %v5261_v28  ;;  %v5021_v44 = vor.u32 %v5019_v10, %v5018_v1  ;;  %v5023_v50 = vrot.slane %v5018_v1, 4  ;;  %5260 = vst.msk [vmem:[#allocation3 + $0x7c] sm:$0xf] %vm4655_vm6, %v5039_v41  ;;  %v5579_v31 = vor.u32 %v5578_v19, %v5574_v14  ;;  %v5271_v10 = vld [vmem:[#allocation3 + $0x90] sm:$0xf] }
 0x38e   : > { %5263 = vst [vmem:[#allocation3 + $0x80] sm:$0x1] %v5262_v42  ;;  %v5570_v51 = vrot.slane %v5569_v36, 4  ;;  %v4645_v60 = vmax.f32 %v4613_v38, 0.0  ;;  %v4611_v52 = vadd.f32 %v11580_v53, %v4572_v40  ;;  %v5587_v57 = vshrl.u32 %v5391_v48, 16 }
 0x38f   : > { %v5022_v56 = vsel %vm10100_vm12, %v5014_v7, %v5021_v44  ;;  %v5255_v32 = vsel %vm11085_vm10, %v5023_v50, %v5254_v33  ;;  %v5590_v58 = vshll.u32 %v5391_v48, 16  ;;  %v5580_v61 = vrot.slane %v5579_v31, 4  ;;  %v5326_v46 = vld [vmem:[#allocation3 + $0x78] sm:$0xf]  ;;  %v5395_v36 = vld [vmem:[#allocation3 + $0x64] sm:$0xf] }
 0x390   : > { %5253 = vst.msk [vmem:[#allocation3 + $0x70] sm:$0xf] %vm4655_vm6, %v5022_v56  ;;  %5256 = vst [vmem:[#allocation3 + $0x74] sm:$0x1] %v5255_v32  ;;  %v5575_v43 = vsel %vm10113_vm13, %v5570_v51, %v5574_v14  ;;  %v9656_v3 = vpack.c.bf16 %v4645_v60, %v4645_v60  ;;  %v4643_v0 = vmax.f32 %v4611_v52, 0.0  ;;  %v5589_v5 = vrot.slane %v5587_v57, 4 }
 0x391   : > { %5826 = vrot.lane.b32.xlu0 %v5575_v43, %s9951_s20  ;;  %v5592_v6 = vrot.slane %v5590_v58, 5  ;;  %v5596_v7 = vshll.u32 %v5392_v47, 16  ;;  %v5600_v8 = vshrl.u32 %v5392_v47, 16  ;;  %v5585_v45 = vsel %vm10113_vm13, %v5580_v61, %v5584_v27  ;;  %5358 = vst.msk [vmem:[#allocation4 + $0x50] sm:$0xf] %vm4655_vm6, %v5326_v46 }
 0x392   : > { %v5059_v9 = vshrl.u32 %v9656_v3, 16  ;;  %v5062_v62 = vshll.u32 %v9656_v3, 16  ;;  %v9654_v63 = vpack.c.bf16 %v4643_v0, %v4643_v0  ;;  %5828 = vrot.lane.b32.xlu1 %v5585_v45, %s9951_s20  ;;  %v4575_v16 = vmul.f32 %v9752_v59, %v11575_v39  ;;  %v5396_v50 = vld [vmem:[#allocation3 + $0x68] sm:$0x1]  ;;  %v5324_v31 = vld [vmem:[#allocation3 + $0x6c] sm:$0xf] }
 0x393   : > { %v5593_v35 = vor.u32 %v5592_v6, %v5589_v5  ;;  %v5598_v15 = vrot.slane %v5596_v7, 5  ;;  %v4573_v17 = vmul.f32 %v11575_v39, %v4501_v34  ;;  %v5602_v21 = vrot.slane %v5600_v8, 4  ;;  %5356 = vst.msk [vmem:[#allocation4 + $0x48] sm:$0xf] %vm4655_vm6, %v5324_v31  ;;  %v5397_v0 = vld [vmem:[#allocation3 + $0x6c] sm:$0xf] }
 0x394   : > { %v11775_v4 = vrot.slane %v5059_v9, 7  ;;  %v5042_v49 = vshrl.u32 %v9654_v63, 16  ;;  %v5045_v26 = vshll.u32 %v9654_v63, 16  ;;  %v4614_v24 = vadd.f32 %v11580_v53, %v4575_v16  ;;  %v5327_v57 = vld [vmem:[#allocation3 + $0x7c] sm:$0xf] }
 0x395   : > { %v5594_v23 = vrot.slane %v5593_v35, 4  ;;  %v4612_v25 = vadd.f32 %v11580_v53, %v4573_v17  ;;  %v5606_v28 = vshll.u32 %v5393_v11, 16  ;;  %v5603_v2 = vor.u32 %v5602_v21, %v5598_v15  ;;  %5359 = vst.msk [vmem:[#allocation4 + $0x54] sm:$0xf] %vm4655_vm6, %v5327_v57  ;;  %v5275_v35 = vld [vmem:[#allocation3 + $0x98] sm:$0x1] }
 0x396   : > { %v5064_v29 = vor.u32 %v5062_v62, %v11775_v4  ;;  %v5065_v14 = vrot.slane %v11775_v4, 4  ;;  %v11782_v39 = vrot.slane %v5042_v49, 7  ;;  %v4646_v1 = vmax.f32 %v4614_v24, 0.0  ;;  %v9755_v27 = vpop.f32.mrf.mxu1  ;;  %v11802_v62 = vld [vmem:[%s13039_s2] ss:$0 sm:$0xff] }
 0x397   : > { %v5599_v30 = vsel %vm10113_vm13, %v5594_v23, %v5598_v15  ;;  %v4644_v19 = vmax.f32 %v4612_v25, 0.0  ;;  %v5608_v33 = vrot.slane %v5606_v28, 5  ;;  %v5604_v48 = vrot.slane %v5603_v2, 4  ;;  %v5325_v32 = vld [vmem:[#allocation3 + $0x70] sm:$0xf] }
 0x398   : > { %v5272_v53 = vsel %vm11596_vm7, %v5064_v29, %v5271_v10  ;;  %v5047_v38 = vor.u32 %v5045_v26, %v11782_v39  ;;  %v5048_v40 = vrot.slane %v11782_v39, 4  ;;  %5830 = vrot.lane.b32.xlu0 %v5599_v30, %s9951_s20  ;;  %v9657_v59 = vpack.c.bf16 %v4646_v1, %v4646_v1  ;;  %v4514_v51 = vpop.f32.mrf.mxu1  ;;  %5357 = vst.msk [vmem:[#allocation4 + $0x4c] sm:$0xf] %vm4655_vm6, %v5325_v32  ;;  %v5268_v15 = vld [vmem:[#allocation3 + $0x8c] sm:$0x1] }
 0x399   : > { %5273 = vst [vmem:[#allocation3 + $0x90] sm:$0xf] %v5272_v53  ;;  %v9655_v41 = vpack.c.bf16 %v4644_v19, %v4644_v19  ;;  %v5611_v42 = vshrl.u32 %v5394_v20, 16  ;;  %v5614_v44 = vshll.u32 %v5394_v20, 16  ;;  %v5609_v52 = vsel %vm10113_vm13, %v5604_v48, %v5608_v33  ;;  %v11809_v29 = vld [vmem:[%s13040_s3] ss:$0 sm:$0xff] }
 0x39a   : > { %v5265_v60 = vsel %vm11596_vm7, %v5047_v38, %v5264_v22  ;;  %v5620_v47 = vshll.u32 %v5395_v36, 16  ;;  %v5624_v56 = vshrl.u32 %v5395_v36, 16  ;;  %v5067_v58 = vshrl.u32 %v9657_v59, 16  ;;  %5832 = vrot.lane.b32.xlu1 %v5609_v52, %s9951_s20  ;;  %v9756_v11 = vpop.f32.mrf.mxu1  ;;  %v5398_v22 = vld [vmem:[#allocation3 + $0x70] sm:$0xf] }
 0x39b   : > { %5266 = vst [vmem:[#allocation3 + $0x84] sm:$0xf] %v5265_v60  ;;  %v5070_v43 = vshll.u32 %v9657_v59, 16  ;;  %v5050_v61 = vshrl.u32 %v9655_v41, 16  ;;  %v5053_v3 = vshll.u32 %v9655_v41, 16  ;;  %v5613_v34 = vrot.slane %v5611_v42, 4 }
 0x39c   : > { %v5616_v5 = vrot.slane %v5614_v44, 5  ;;  %v5622_v6 = vrot.slane %v5620_v47, 5  ;;  %v5626_v7 = vrot.slane %v5624_v56, 4  ;;  %v5069_v8 = vrot.slane %v5067_v58, 7  ;;  %v4517_v19 = vpop.f32.mrf.mxu1 }
 0x39d   : > { %v5052_v45 = vrot.slane %v5050_v61, 7  ;;  %v5630_v9 = vshll.u32 %v5396_v50, 16  ;;  %v4578_v63 = vmul.f32 %v11802_v62, %v9755_v27  ;;  %v4576_v46 = vmul.f32 %v11802_v62, %v4514_v51  ;;  %v5399_v27 = vld [vmem:[#allocation3 + $0x74] sm:$0x1] }
 0x39e   : > { %v5617_v16 = vor.u32 %v5616_v5, %v5613_v34  ;;  %v5627_v17 = vor.u32 %v5626_v7, %v5622_v6  ;;  %v5635_v49 = vshrl.u32 %v5397_v0, 16  ;;  %v5072_v26 = vor.u32 %v5070_v43, %v5069_v8  ;;  %v5400_v43 = vld [vmem:[#allocation3 + $0x78] sm:$0xf] }
 0x39f   : > { %v5074_v21 = vrot.slane %v5069_v8, 4  ;;  %v5055_v10 = vor.u32 %v5053_v3, %v5052_v45  ;;  %v5057_v23 = vrot.slane %v5052_v45, 4  ;;  %v5632_v28 = vrot.slane %v5630_v9, 5  ;;  %v5285_v9 = vld [vmem:[#allocation3 + $0xa8] sm:$0xf] }
 0x3a0   : > { %v5618_v24 = vrot.slane %v5617_v16, 4  ;;  %v5628_v25 = vrot.slane %v5627_v17, 4  ;;  %v4617_v39 = vadd.f32 %v11809_v29, %v4578_v63  ;;  %v5073_v2 = vsel %vm10100_vm12, %v5065_v14, %v5072_v26  ;;  %v5330_v59 = vld [vmem:[#allocation3 + $0x90] sm:$0xf]  ;;  %v5278_v26 = vld [vmem:[#allocation3 + $0x9c] sm:$0xf] }
 0x3a1   : > { %v5276_v20 = vsel %vm11085_vm10, %v5074_v21, %v5275_v35  ;;  %v5056_v30 = vsel %vm10100_vm12, %v5048_v40, %v5055_v10  ;;  %v5269_v1 = vsel %vm11085_vm10, %v5057_v23, %v5268_v15  ;;  %5274 = vst.msk [vmem:[#allocation3 + $0x94] sm:$0xf] %vm4655_vm6, %v5073_v2  ;;  %v4615_v36 = vadd.f32 %v11809_v29, %v4576_v46 }
 0x3a2   : > { %5277 = vst [vmem:[#allocation3 + $0x98] sm:$0x1] %v5276_v20  ;;  %5267 = vst.msk [vmem:[#allocation3 + $0x88] sm:$0xf] %vm4655_vm6, %v5056_v30  ;;  %v5623_v4 = vsel %vm10113_vm13, %v5618_v24, %v5622_v6  ;;  %v5633_v14 = vsel %vm10113_vm13, %v5628_v25, %v5632_v28  ;;  %v4649_v33 = vmax.f32 %v4617_v39, 0.0  ;;  %v5637_v53 = vrot.slane %v5635_v49, 4 }
 0x3a3   : > { %5270 = vst [vmem:[#allocation3 + $0x8c] sm:$0x1] %v5269_v1  ;;  %5834 = vrot.lane.b32.xlu0 %v5623_v4, %s9951_s20  ;;  %5836 = vrot.lane.b32.xlu1 %v5633_v14, %s9951_s20  ;;  %v5638_v38 = vshll.u32 %v5397_v0, 16  ;;  %v5644_v40 = vshll.u32 %v5398_v22, 16  ;;  %v5648_v48 = vshrl.u32 %v5398_v22, 16  ;;  %v4647_v42 = vmax.f32 %v4615_v36, 0.0 }
 0x3a4   : > { %v9660_v41 = vpack.c.bf16 %v4649_v33, %v4649_v33  ;;  %v4579_v44 = vmul.f32 %v11802_v62, %v9756_v11  ;;  %v4577_v50 = vmul.f32 %v11802_v62, %v4517_v19  ;;  %5362 = vst.msk [vmem:[#allocation4 + $0x60] sm:$0xf] %vm4655_vm6, %v5330_v59  ;;  %v5654_v52 = vshll.u32 %v5399_v27, 16  ;;  %v5328_v47 = vld [vmem:[#allocation3 + $0x84] sm:$0xf] }
 0x3a5   : > { %v5640_v51 = vrot.slane %v5638_v38, 5  ;;  %v5646_v31 = vrot.slane %v5644_v40, 5  ;;  %v5650_v60 = vrot.slane %v5648_v48, 4  ;;  %v9658_v57 = vpack.c.bf16 %v4647_v42, %v4647_v42  ;;  %5360 = vst.msk [vmem:[#allocation4 + $0x58] sm:$0xf] %vm4655_vm6, %v5328_v47 }
 0x3a6   : > { %v5093_v56 = vshrl.u32 %v9660_v41, 16  ;;  %v5096_v32 = vshll.u32 %v9660_v41, 16  ;;  %v4618_v58 = vadd.f32 %v11809_v29, %v4579_v44  ;;  %v4616_v3 = vadd.f32 %v11809_v29, %v4577_v50  ;;  %v9759_v45 = vpop.f32.mrf.mxu1  ;;  %v5401_v24 = vld [vmem:[#allocation3 + $0x7c] sm:$0xf]  ;;  %v5402_v20 = vld [vmem:[#allocation3 + $0x80] sm:$0x1] }
 0x3a7   : > { %v5641_v61 = vor.u32 %v5640_v51, %v5637_v53  ;;  %v5651_v0 = vor.u32 %v5650_v60, %v5646_v31  ;;  %v5656_v34 = vrot.slane %v5654_v52, 5  ;;  %v5076_v6 = vshrl.u32 %v9658_v57, 16  ;;  %v5289_v19 = vld [vmem:[#allocation3 + $0xb0] sm:$0x1] }
 0x3a8   : > { %v5095_v5 = vrot.slane %v5093_v56, 7  ;;  %v5079_v7 = vshll.u32 %v9658_v57, 16  ;;  %v4650_v8 = vmax.f32 %v4618_v58, 0.0  ;;  %v4648_v11 = vmax.f32 %v4616_v3, 0.0  ;;  %v4530_v30 = vpop.f32.mrf.mxu1  ;;  %v5331_v44 = vld [vmem:[#allocation3 + $0x94] sm:$0xf] }
 0x3a9   : > { %v5642_v63 = vrot.slane %v5641_v61, 4  ;;  %v5652_v35 = vrot.slane %v5651_v0, 4  ;;  %v5659_v15 = vshrl.u32 %v5400_v43, 16  ;;  %v5078_v46 = vrot.slane %v5076_v6, 7  ;;  %v5329_v40 = vld [vmem:[#allocation3 + $0x88] sm:$0xf] }
 0x3aa   : > { %v5098_v16 = vor.u32 %v5096_v32, %v5095_v5  ;;  %v5099_v17 = vrot.slane %v5095_v5, 4  ;;  %v9661_v49 = vpack.c.bf16 %v4650_v8, %v4650_v8  ;;  %v9659_v10 = vpack.c.bf16 %v4648_v11, %v4648_v11  ;;  %5361 = vst.msk [vmem:[#allocation4 + $0x5c] sm:$0xf] %vm4655_vm6, %v5329_v40  ;;  %v9760_v47 = vpop.f32.mrf.mxu1  ;;  %5363 = vst.msk [vmem:[#allocation4 + $0x64] sm:$0xf] %vm4655_vm6, %v5331_v44 }
 0x3ab   : > { %v5647_v21 = vsel %vm10113_vm13, %v5642_v63, %v5646_v31  ;;  %v5657_v23 = vsel %vm10113_vm13, %v5652_v35, %v5656_v34  ;;  %v5661_v25 = vrot.slane %v5659_v15, 4  ;;  %v5081_v39 = vor.u32 %v5079_v7, %v5078_v46  ;;  %v5282_v31 = vld [vmem:[#allocation3 + $0xa4] sm:$0x1]  ;;  %v5404_v5 = vld [vmem:[#allocation3 + $0x88] sm:$0xf] }
 0x3ac   : > { %v5286_v28 = vsel %vm11596_vm7, %v5098_v16, %v5285_v9  ;;  %v5082_v22 = vrot.slane %v5078_v46, 4  ;;  %5838 = vrot.lane.b32.xlu0 %v5647_v21, %s9951_s20  ;;  %v5101_v2 = vshrl.u32 %v9661_v49, 16  ;;  %5840 = vrot.lane.b32.xlu1 %v5657_v23, %s9951_s20  ;;  %v5104_v1 = vshll.u32 %v9661_v49, 16  ;;  %v4533_v15 = vpop.f32.mrf.mxu1  ;;  %v5299_v40 = vld [vmem:[#allocation3 + $0xc0] sm:$0xf] }
 0x3ad   : > { %5287 = vst [vmem:[#allocation3 + $0xa8] sm:$0xf] %v5286_v28  ;;  %v5084_v4 = vshrl.u32 %v9659_v10, 16  ;;  %v5087_v14 = vshll.u32 %v9659_v10, 16  ;;  %v5662_v33 = vshll.u32 %v5400_v43, 16  ;;  %v5279_v36 = vsel %vm11596_vm7, %v5081_v39, %v5278_v26 }
 0x3ae   : > { %v5103_v27 = vrot.slane %v5101_v2, 7  ;;  %v5668_v53 = vshll.u32 %v5401_v24, 16  ;;  %v5672_v38 = vshrl.u32 %v5401_v24, 16  ;;  %5280 = vst [vmem:[#allocation3 + $0x9c] sm:$0xf] %v5279_v36  ;;  %v5678_v41 = vshll.u32 %v5402_v20, 16 }
 0x3af   : > { %v5086_v48 = vrot.slane %v5084_v4, 7  ;;  %v5664_v59 = vrot.slane %v5662_v33, 5  ;;  %v4582_v42 = vmul.f32 %v11802_v62, %v9759_v45  ;;  %v5403_v43 = vld [vmem:[#allocation3 + $0x84] sm:$0xf]  ;;  %v4580_v45 = vmul.f32 %v11802_v62, %v4530_v30  ;;  %v5406_v20 = vld [vmem:[#allocation3 + $0x90] sm:$0xf] }
 0x3b0   : > { %v5106_v50 = vor.u32 %v5104_v1, %v5103_v27  ;;  %v5108_v51 = vrot.slane %v5103_v27, 4  ;;  %v5670_v60 = vrot.slane %v5668_v53, 5  ;;  %v5674_v52 = vrot.slane %v5672_v38, 4 }
 0x3b1   : > { %v5089_v56 = vor.u32 %v5087_v14, %v5086_v48  ;;  %v5091_v32 = vrot.slane %v5086_v48, 4  ;;  %v5665_v57 = vor.u32 %v5664_v59, %v5661_v25  ;;  %v5680_v58 = vrot.slane %v5678_v41, 5  ;;  %v5405_v25 = vld [vmem:[#allocation3 + $0x8c] sm:$0x1] }
 0x3b2   : > { %v5107_v61 = vsel %vm10100_vm12, %v5099_v17, %v5106_v50  ;;  %v5290_v3 = vsel %vm11085_vm10, %v5108_v51, %v5289_v19  ;;  %v5675_v0 = vor.u32 %v5674_v52, %v5670_v60  ;;  %v4621_v34 = vadd.f32 %v11809_v29, %v4582_v42  ;;  %v5407_v50 = vld [vmem:[#allocation3 + $0x94] sm:$0xf] }
 0x3b3   : > { %5288 = vst.msk [vmem:[#allocation3 + $0xac] sm:$0xf] %vm4655_vm6, %v5107_v61  ;;  %5291 = vst [vmem:[#allocation3 + $0xb0] sm:$0x1] %v5290_v3  ;;  %v5090_v6 = vsel %vm10100_vm12, %v5082_v22, %v5089_v56  ;;  %v5283_v7 = vsel %vm11085_vm10, %v5091_v32, %v5282_v31  ;;  %v5666_v8 = vrot.slane %v5665_v57, 4  ;;  %v5683_v11 = vshrl.u32 %v5403_v43, 16 }
 0x3b4   : > { %5281 = vst.msk [vmem:[#allocation3 + $0xa0] sm:$0xf] %vm4655_vm6, %v5090_v6  ;;  %5284 = vst [vmem:[#allocation3 + $0xa4] sm:$0x1] %v5283_v7  ;;  %v5676_v9 = vrot.slane %v5675_v0, 4  ;;  %v4653_v63 = vmax.f32 %v4621_v34, 0.0  ;;  %v4619_v17 = vadd.f32 %v11809_v29, %v4580_v45  ;;  %v4583_v22 = vmul.f32 %v11802_v62, %v9760_v47 }
 0x3b5   : > { %v5686_v35 = vshll.u32 %v5403_v43, 16  ;;  %v5671_v16 = vsel %vm10113_vm13, %v5666_v8, %v5670_v60  ;;  %v5692_v46 = vshll.u32 %v5404_v5, 16  ;;  %v5696_v49 = vshrl.u32 %v5404_v5, 16  ;;  %v5334_v26 = vld [vmem:[#allocation3 + $0xa8] sm:$0xf] }
 0x3b6   : > { %5842 = vrot.lane.b32.xlu0 %v5671_v16, %s9951_s20  ;;  %v5681_v21 = vsel %vm10113_vm13, %v5676_v9, %v5680_v58  ;;  %v9664_v10 = vpack.c.bf16 %v4653_v63, %v4653_v63  ;;  %v5685_v23 = vrot.slane %v5683_v11, 4  ;;  %5366 = vst.msk [vmem:[#allocation4 + $0x70] sm:$0xf] %vm4655_vm6, %v5334_v26  ;;  %v4651_v28 = vmax.f32 %v4619_v17, 0.0  ;;  %v5332_v30 = vld [vmem:[#allocation3 + $0x9c] sm:$0xf] }
 0x3b7   : > { %v5688_v24 = vrot.slane %v5686_v35, 5  ;;  %5844 = vrot.lane.b32.xlu1 %v5681_v21, %s9951_s20  ;;  %v5694_v39 = vrot.slane %v5692_v46, 5  ;;  %v4581_v2 = vmul.f32 %v11802_v62, %v4533_v15  ;;  %v5698_v14 = vrot.slane %v5696_v49, 4  ;;  %5364 = vst.msk [vmem:[#allocation4 + $0x68] sm:$0xf] %vm4655_vm6, %v5332_v30 }
 0x3b8   : > { %v5127_v1 = vshrl.u32 %v9664_v10, 16  ;;  %v5130_v19 = vshll.u32 %v9664_v10, 16  ;;  %v9662_v33 = vpack.c.bf16 %v4651_v28, %v4651_v28  ;;  %v4622_v36 = vadd.f32 %v11809_v29, %v4583_v22  ;;  %v5292_v56 = vld [vmem:[#allocation3 + $0xb4] sm:$0xf]  ;;  %v5408_v0 = vld [vmem:[#allocation3 + $0x98] sm:$0x1] }
 0x3b9   : > { %v5689_v4 = vor.u32 %v5688_v24, %v5685_v23  ;;  %v4620_v27 = vadd.f32 %v11809_v29, %v4581_v2  ;;  %v5702_v53 = vshll.u32 %v5405_v25, 16  ;;  %v5699_v59 = vor.u32 %v5698_v14, %v5694_v39  ;;  %v5409_v8 = vld [vmem:[#allocation3 + $0x9c] sm:$0xf]  ;;  %v5303_v26 = vld [vmem:[#allocation3 + $0xc8] sm:$0x1] }
 0x3ba   : > { %v5129_v38 = vrot.slane %v5127_v1, 7  ;;  %v5707_v41 = vshrl.u32 %v5406_v20, 16  ;;  %v5110_v62 = vshrl.u32 %v9662_v33, 16  ;;  %v4654_v42 = vmax.f32 %v4622_v36, 0.0  ;;  %v5335_v49 = vld [vmem:[#allocation3 + $0xac] sm:$0xf] }
 0x3bb   : > { %v5690_v48 = vrot.slane %v5689_v4, 4  ;;  %v4652_v44 = vmax.f32 %v4620_v27, 0.0  ;;  %v5113_v31 = vshll.u32 %v9662_v33, 16  ;;  %v5700_v52 = vrot.slane %v5699_v59, 4  ;;  %v5333_v35 = vld [vmem:[#allocation3 + $0xa0] sm:$0xf] }
 0x3bc   : > { %v5132_v51 = vor.u32 %v5130_v19, %v5129_v38  ;;  %v5112_v47 = vrot.slane %v5110_v62, 7  ;;  %v9665_v29 = vpack.c.bf16 %v4654_v42, %v4654_v42  ;;  %v5704_v57 = vrot.slane %v5702_v53, 5  ;;  %5365 = vst.msk [vmem:[#allocation4 + $0x6c] sm:$0xf] %vm4655_vm6, %v5333_v35  ;;  %5367 = vst.msk [vmem:[#allocation4 + $0x74] sm:$0xf] %vm4655_vm6, %v5335_v49 }
 0x3bd   : > { %v5695_v60 = vsel %vm10113_vm13, %v5690_v48, %v5694_v39  ;;  %v9663_v32 = vpack.c.bf16 %v4652_v44, %v4652_v44  ;;  %v5709_v43 = vrot.slane %v5707_v41, 4  ;;  %v5710_v61 = vshll.u32 %v5406_v20, 16  ;;  %v5410_v19 = vld [vmem:[#allocation3 + $0xa0] sm:$0xf]  ;;  %v5412_v27 = vld [vmem:[#allocation3 + $0xa8] sm:$0xf] }
 0x3be   : > { %5846 = vrot.lane.b32.xlu0 %v5695_v60, %s9951_s20  ;;  %v5300_v58 = vsel %vm11596_vm7, %v5132_v51, %v5299_v40  ;;  %v5716_v3 = vshll.u32 %v5407_v50, 16  ;;  %v5133_v34 = vrot.slane %v5129_v38, 4  ;;  %v5115_v5 = vor.u32 %v5113_v31, %v5112_v47  ;;  %v5413_v53 = vld [vmem:[#allocation3 + $0xac] sm:$0xf]  ;;  %v5411_v41 = vld [vmem:[#allocation3 + $0xa4] sm:$0x1] }
 0x3bf   : > { %5301 = vst [vmem:[#allocation3 + $0xc0] sm:$0xf] %v5300_v58  ;;  %v5135_v6 = vshrl.u32 %v9665_v29, 16  ;;  %v5138_v7 = vshll.u32 %v9665_v29, 16  ;;  %v5118_v45 = vshrl.u32 %v9663_v32, 16  ;;  %v5121_v9 = vshll.u32 %v9663_v32, 16 }
 0x3c0   : > { %v5705_v63 = vsel %vm10113_vm13, %v5700_v52, %v5704_v57  ;;  %v5712_v11 = vrot.slane %v5710_v61, 5  ;;  %v5293_v15 = vsel %vm11596_vm7, %v5115_v5, %v5292_v56  ;;  %v5718_v17 = vrot.slane %v5716_v3, 5  ;;  %v5414_v52 = vld [vmem:[#allocation3 + $0xb0] sm:$0x1] }
 0x3c1   : > { %v5137_v16 = vrot.slane %v5135_v6, 7  ;;  %5848 = vrot.lane.b32.xlu1 %v5705_v63, %s9951_s20  ;;  %v5720_v46 = vshrl.u32 %v5407_v50, 16  ;;  %5294 = vst [vmem:[#allocation3 + $0xb4] sm:$0xf] %v5293_v15  ;;  %v5120_v21 = vrot.slane %v5118_v45, 7  ;;  %v5726_v23 = vshll.u32 %v5408_v0, 16 }
 0x3c2   : > { %v5713_v10 = vor.u32 %v5712_v11, %v5709_v43  ;;  %v5731_v24 = vshrl.u32 %v5409_v8, 16  ;;  %v5734_v22 = vshll.u32 %v5409_v8, 16  ;;  %v5116_v2 = vrot.slane %v5112_v47, 4  ;;  %v5803_v47 = vpop.permute.xlu0 %5802 }
 0x3c3   : > { %v5140_v25 = vor.u32 %v5138_v7, %v5137_v16  ;;  %v5142_v28 = vrot.slane %v5137_v16, 4  ;;  %v5722_v39 = vrot.slane %v5720_v46, 4  ;;  %v5123_v20 = vor.u32 %v5121_v9, %v5120_v21  ;;  %v5805_v7 = vpop.permute.xlu1 %5804  ;;  %5899 = vst.msk [vmem:[#allocation4] sm:$0xf] %vm5898_vm4, %v5803_v47  ;;  %v5938_v47 = vld [vmem:[#allocation3 + $0x1c] sm:$0xf] }
 0x3c4   : > { %v5125_v30 = vrot.slane %v5120_v21, 4  ;;  %v5714_v1 = vrot.slane %v5713_v10, 4  ;;  %v5733_v36 = vrot.slane %v5731_v24, 4  ;;  %v5736_v59 = vrot.slane %v5734_v22, 5  ;;  %5900 = vst.msk [vmem:[#allocation4 + $0x4] sm:$0xf] %vm5898_vm4, %v5805_v7 }
 0x3c5   : > { %v5141_v4 = vsel %vm10100_vm12, %v5133_v34, %v5140_v25  ;;  %v5304_v14 = vsel %vm11085_vm10, %v5142_v28, %v5303_v26  ;;  %v5723_v33 = vor.u32 %v5722_v39, %v5718_v17  ;;  %v5124_v38 = vsel %vm10100_vm12, %v5116_v2, %v5123_v20  ;;  %v5932_v39 = vld [vmem:[#allocation3 + $0x4] sm:$0xf] }
 0x3c6   : > { %5302 = vst.msk [vmem:[#allocation3 + $0xc4] sm:$0xf] %vm4655_vm6, %v5141_v4  ;;  %5305 = vst [vmem:[#allocation3 + $0xc8] sm:$0x1] %v5304_v14  ;;  %v5297_v40 = vsel %vm11085_vm10, %v5125_v30, %v5296_v18  ;;  %v5719_v48 = vsel %vm10113_vm13, %v5714_v1, %v5718_v17  ;;  %v5728_v42 = vrot.slane %v5726_v23, 5  ;;  %v5740_v44 = vshll.u32 %v5410_v19, 16 }
 0x3c7   : > { %5295 = vst.msk [vmem:[#allocation3 + $0xb8] sm:$0xf] %vm4655_vm6, %v5124_v38  ;;  %5298 = vst [vmem:[#allocation3 + $0xbc] sm:$0x1] %v5297_v40  ;;  %5850 = vrot.lane.b32.xlu0 %v5719_v48, %s9951_s20  ;;  %v5724_v62 = vrot.slane %v5723_v33, 4  ;;  %v5744_v50 = vshrl.u32 %v5410_v19, 16  ;;  %v5737_v51 = vor.u32 %v5736_v59, %v5733_v36 }
 0x3c8   : > { %v5755_v55 = vshrl.u32 %v5412_v27, 16  ;;  %v5758_v31 = vshll.u32 %v5412_v27, 16  ;;  %v5764_v60 = vshll.u32 %v5413_v53, 16  ;;  %v5742_v29 = vrot.slane %v5740_v44, 5  ;;  %v5415_v58 = vld [vmem:[#allocation3 + $0xb4] sm:$0xf] }
 0x3c9   : > { %v5729_v56 = vsel %vm10113_vm13, %v5724_v62, %v5728_v42  ;;  %v5746_v32 = vrot.slane %v5744_v50, 4  ;;  %v5750_v57 = vshll.u32 %v5411_v41, 16  ;;  %v5738_v43 = vrot.slane %v5737_v51, 4  ;;  %v5336_v8 = vld [vmem:[#allocation3 + $0xb4] sm:$0xf] }
 0x3ca   : > { %5852 = vrot.lane.b32.xlu1 %v5729_v56, %s9951_s20  ;;  %v5757_v61 = vrot.slane %v5755_v55, 4  ;;  %v5760_v3 = vrot.slane %v5758_v31, 5  ;;  %v5766_v0 = vrot.slane %v5764_v60, 5  ;;  %v5768_v5 = vshrl.u32 %v5413_v53, 16  ;;  %5368 = vst.msk [vmem:[#allocation4 + $0x78] sm:$0xf] %vm4655_vm6, %v5336_v8 }
 0x3cb   : > { %v5747_v34 = vor.u32 %v5746_v32, %v5742_v29  ;;  %v5774_v6 = vshll.u32 %v5414_v52, 16  ;;  %v5743_v45 = vsel %vm10113_vm13, %v5738_v43, %v5742_v29  ;;  %v5779_v63 = vshrl.u32 %v5415_v58, 16  ;;  %v5931_v17 = vld [vmem:[#allocation3] sm:$0xe]  ;;  %v5933_v53 = vld [vmem:[#allocation3 + $0x8] sm:$0x1] }
 0x3cc   : > { %v5761_v9 = vor.u32 %v5760_v3, %v5757_v61  ;;  %v5782_v11 = vshll.u32 %v5415_v58, 16  ;;  %5854 = vrot.lane.b32.xlu0 %v5743_v45, %s9951_s20  ;;  %v5752_v15 = vrot.slane %v5750_v57, 5  ;;  %v5770_v16 = vrot.slane %v5768_v5, 4  ;;  %v5935_v41 = vld [vmem:[#allocation3 + $0x10] sm:$0xf] }
 0x3cd   : > { %v5748_v35 = vrot.slane %v5747_v34, 4  ;;  %v5781_v26 = vrot.slane %v5779_v63, 4  ;;  %v5807_v10 = vpop.permute.xlu0 %5806  ;;  %v5776_v2 = vrot.slane %v5774_v6, 5  ;;  %v9493_v36 = vrot.slane %v5931_v17, 9  ;;  %v5934_v60 = vld [vmem:[#allocation3 + $0xc] sm:$0xe] }
 0x3ce   : > { %v5762_v46 = vrot.slane %v5761_v9, 4  ;;  %v5416_v49 = vld [vmem:[#allocation3 + $0xb8] sm:$0xf]  ;;  %v5784_v21 = vrot.slane %v5782_v11, 5  ;;  %v5771_v24 = vor.u32 %v5770_v16, %v5766_v0  ;;  %5901 = vst.msk [vmem:[#allocation4 + $0x8] sm:$0xf] %vm5898_vm4, %v5807_v10 }
 0x3cf   : > { %v5753_v23 = vsel %vm10113_vm13, %v5748_v35, %v5752_v15  ;;  %v5788_v25 = vshll.u32 %v5416_v49, 16  ;;  %v5792_v28 = vshrl.u32 %v5416_v49, 16  ;;  %v5417_v18 = vld [vmem:[#allocation3 + $0xbc] sm:$0x1]  ;;  %v5337_v30 = vld [vmem:[#allocation3 + $0xb8] sm:$0xf] }
 0x3d0   : > { %5856 = vrot.lane.b32.xlu1 %v5753_v23, %s9951_s20  ;;  %v5767_v22 = vsel %vm10113_vm13, %v5762_v46, %v5766_v0  ;;  %v5785_v20 = vor.u32 %v5784_v21, %v5781_v26  ;;  %v5772_v1 = vrot.slane %v5771_v24, 4  ;;  %v5798_v14 = vshll.u32 %v5417_v18, 16  ;;  %5369 = vst.msk [vmem:[#allocation4 + $0x7c] sm:$0xf] %vm4655_vm6, %v5337_v30  ;;  %v5936_v57 = vld [vmem:[#allocation3 + $0x14] sm:$0x1] }
 0x3d1   : > { %5858 = vrot.lane.b32.xlu0 %v5767_v22, %s9951_s20  ;;  %v5790_v19 = vrot.slane %v5788_v25, 5  ;;  %v5794_v4 = vrot.slane %v5792_v28, 4  ;;  %v6029_v27 = vrot.slane %v5932_v39, 5  ;;  %v6032_v50 = vrot.slane %v5933_v53, 5  ;;  %v5937_v43 = vld [vmem:[#allocation3 + $0x18] sm:$0xe] }
 0x3d2   : > { %v5786_v33 = vrot.slane %v5785_v20, 4  ;;  %v5777_v38 = vsel %vm10113_vm13, %v5772_v1, %v5776_v2  ;;  %v5800_v42 = vrot.slane %v5798_v14, 5  ;;  %v6036_v52 = vrot.slane %v5935_v41, 5  ;;  %v5941_v0 = vld [vmem:[#allocation3 + $0x28] sm:$0xf] }
 0x3d3   : > { %v5795_v40 = vor.u32 %v5794_v4, %v5790_v19  ;;  %v6031_v44 = vrot.slane %v6029_v27, 4  ;;  %v6030_v51 = vsel %vm10471_vm1, %v9493_v36, %v6029_v27  ;;  %v9494_v29 = vrot.slane %v5934_v60, 9  ;;  %v5939_v6 = vld [vmem:[#allocation3 + $0x20] sm:$0x1]  ;;  %v5940_v45 = vld [vmem:[#allocation3 + $0x24] sm:$0xe] }
 0x3d4   : > { %5860 = vrot.lane.b32.xlu1 %v5777_v38, %s9951_s20  ;;  %v5791_v48 = vsel %vm10113_vm13, %v5786_v33, %v5790_v19  ;;  %v5809_v59 = vpop.permute.xlu1 %5808  ;;  %v6038_v58 = vrot.slane %v6036_v52, 4  ;;  %v6043_v61 = vrot.slane %v5938_v47, 5  ;;  %v6039_v34 = vrot.slane %v5936_v57, 5  ;;  %v5944_v11 = vld [vmem:[#allocation3 + $0x34] sm:$0xf] }
 0x3d5   : > { %5862 = vrot.lane.b32.xlu0 %v5791_v48, %s9951_s20  ;;  %v5796_v62 = vrot.slane %v5795_v40, 4  ;;  %5902 = vst.msk [vmem:[#allocation4 + $0xc] sm:$0xf] %vm5898_vm4, %v5809_v59  ;;  %v6033_v56 = vsel %vm10471_vm1, %v6031_v44, %v6032_v50  ;;  %v6037_v3 = vsel %vm10471_vm1, %v9494_v29, %v6036_v52  ;;  %v9495_v5 = vrot.slane %v5937_v43, 9  ;;  %v5942_v16 = vld [vmem:[#allocation3 + $0x2c] sm:$0x1] }
 0x3d6   : > { %v5811_v55 = vpop.permute.xlu0 %5810  ;;  %v6040_v7 = vsel %vm10471_vm1, %v6038_v58, %v6039_v34  ;;  %v6045_v8 = vrot.slane %v6043_v61, 4  ;;  %v6050_v9 = vrot.slane %v5941_v0, 5  ;;  %v6046_v35 = vrot.slane %v5939_v6, 5  ;;  %v5943_v49 = vld [vmem:[#allocation3 + $0x30] sm:$0xe] }
 0x3d7   : > { %v5801_v31 = vsel %vm10113_vm13, %v5796_v62, %v5800_v42  ;;  %5903 = vst.msk [vmem:[#allocation4 + $0x10] sm:$0xf] %vm5898_vm4, %v5811_v55  ;;  %v6044_v63 = vsel %vm10471_vm1, %v9495_v5, %v6043_v61  ;;  %v9496_v15 = vrot.slane %v5940_v45, 9  ;;  %v6057_v26 = vrot.slane %v5944_v11, 5  ;;  %v5947_v23 = vld [vmem:[#allocation3 + $0x40] sm:$0xf] }
 0x3d8   : > { %5864 = vrot.lane.b32.xlu1 %v5801_v31, %s9951_s20  ;;  %v6047_v17 = vsel %vm10471_vm1, %v6045_v8, %v6046_v35  ;;  %v6052_v46 = vrot.slane %v6050_v9, 4  ;;  %v6053_v24 = vrot.slane %v5942_v16, 5  ;;  %v9497_v25 = vrot.slane %v5943_v49, 9  ;;  %v5945_v18 = vld [vmem:[#allocation3 + $0x38] sm:$0x1]  ;;  %s9958_s20 = smov 40  }
 0x3d9   : > { %6139 = vrot.lane.b32.xlu0 %v6030_v51, %s9953_s22  ;;  %v6051_v21 = vsel %vm10471_vm1, %v9496_v15, %v6050_v9  ;;  %v6059_v22 = vrot.slane %v6057_v26, 4  ;;  %v5946_v2 = vld [vmem:[#allocation3 + $0x3c] sm:$0xe]  ;;  %v6064_v20 = vrot.slane %v5947_v23, 5  ;;  %v5950_v1 = vld [vmem:[#allocation3 + $0x4c] sm:$0xf] }
 0x3da   : > { %v5813_v32 = vpop.permute.xlu1 %5812  ;;  %v6054_v39 = vsel %vm10471_vm1, %v6052_v46, %v6053_v24  ;;  %v6058_v30 = vsel %vm10471_vm1, %v9497_v25, %v6057_v26  ;;  %v6060_v19 = vrot.slane %v5945_v18, 5  ;;  %v9498_v4 = vrot.slane %v5946_v2, 9  ;;  %v5948_v14 = vld [vmem:[#allocation3 + $0x44] sm:$0x1]  ;;  %v5949_v27 = vld [vmem:[#allocation3 + $0x48] sm:$0xe] }
 0x3db   : > { %5904 = vst.msk [vmem:[#allocation4 + $0x14] sm:$0xf] %vm5898_vm4, %v5813_v32  ;;  %v6066_v36 = vrot.slane %v6064_v20, 4  ;;  %v6071_v53 = vrot.slane %v5950_v1, 5  ;;  %v5953_v40 = vld [vmem:[#allocation3 + $0x58] sm:$0xf] }
 0x3dc   : > { %6141 = vrot.lane.b32.xlu1 %v6033_v56, %s9953_s22  ;;  %v6061_v33 = vsel %vm10471_vm1, %v6059_v22, %v6060_v19  ;;  %v6065_v38 = vsel %vm10471_vm1, %v9498_v4, %v6064_v20  ;;  %v6067_v48 = vrot.slane %v5948_v14, 5  ;;  %v9499_v41 = vrot.slane %v5949_v27, 9  ;;  %v5951_v62 = vld [vmem:[#allocation3 + $0x50] sm:$0x1]  ;;  %v5952_v50 = vld [vmem:[#allocation3 + $0x54] sm:$0xe] }
 0x3dd   : > { %6143 = vrot.lane.b32.xlu0 %v6037_v3, %s9953_s22  ;;  %v6073_v44 = vrot.slane %v6071_v53, 4  ;;  %v6078_v51 = vrot.slane %v5953_v40, 5  ;;  %v5956_v31 = vld [vmem:[#allocation3 + $0x64] sm:$0xf]  ;;  %v6074_v60 = vrot.slane %v5951_v62, 5  ;;  %v9500_v47 = vrot.slane %v5952_v50, 9 }
 0x3de   : > { %v6068_v42 = vsel %vm10471_vm1, %v6066_v36, %v6067_v48  ;;  %v6072_v55 = vsel %vm10471_vm1, %v9499_v41, %v6071_v53  ;;  %v5954_v56 = vld [vmem:[#allocation3 + $0x5c] sm:$0x1]  ;;  %v5955_v57 = vld [vmem:[#allocation3 + $0x60] sm:$0xe]  ;;  %v6085_v58 = vrot.slane %v5956_v31, 5  ;;  %vm6235_vm6 = vcmask 191616  }
 0x3df   : > { %v6075_v29 = vsel %vm10471_vm1, %v6073_v44, %v6074_v60  ;;  %v6080_v32 = vrot.slane %v6078_v51, 4  ;;  %v6079_v43 = vsel %vm10471_vm1, %v9500_v47, %v6078_v51  ;;  %v5959_v61 = vld [vmem:[#allocation3 + $0x70] sm:$0xf]  ;;  %v6081_v3 = vrot.slane %v5954_v56, 5  ;;  %v5957_v34 = vld [vmem:[#allocation3 + $0x68] sm:$0x1] }
 0x3e0   : > { %6145 = vrot.lane.b32.xlu1 %v6040_v7, %s9953_s22  ;;  %v9501_v0 = vrot.slane %v5955_v57, 9  ;;  %v6087_v6 = vrot.slane %v6085_v58, 4  ;;  %v5958_v7 = vld [vmem:[#allocation3 + $0x6c] sm:$0xe]  ;;  %v6092_v8 = vrot.slane %v5959_v61, 5  ;;  %v6088_v11 = vrot.slane %v5957_v34, 5 }
 0x3e1   : > { %6147 = vrot.lane.b32.xlu0 %v6044_v63, %s9953_s22  ;;  %v6082_v5 = vsel %vm10471_vm1, %v6080_v32, %v6081_v3  ;;  %v5962_v63 = vld [vmem:[#allocation3 + $0x7c] sm:$0xf]  ;;  %v9502_v15 = vrot.slane %v5958_v7, 9  ;;  %v5960_v16 = vld [vmem:[#allocation3 + $0x74] sm:$0x1]  ;;  %vm8648_vm12 = vcmask 1043456  }
 0x3e2   : > { %v6086_v9 = vsel %vm10471_vm1, %v9501_v0, %v6085_v58  ;;  %v6094_v46 = vrot.slane %v6092_v8, 4  ;;  %v5961_v49 = vld [vmem:[#allocation3 + $0x78] sm:$0xe]  ;;  %v6099_v26 = vrot.slane %v5962_v63, 5  ;;  %v6095_v23 = vrot.slane %v5960_v16, 5 }
 0x3e3   : > { %v5815_v10 = vpop.permute.xlu0 %5814  ;;  %v9503_v24 = vrot.slane %v5961_v49, 9  ;;  %v5963_v25 = vld [vmem:[#allocation3 + $0x80] sm:$0x1]  ;;  %v5968_v20 = vld [vmem:[#allocation3 + $0x94] sm:$0xf] }
 0x3e4   : > { %6149 = vrot.lane.b32.xlu1 %v6047_v17, %s9953_s22  ;;  %5905 = vst.msk [vmem:[#allocation4 + $0x18] sm:$0xf] %vm5898_vm4, %v5815_v10  ;;  %v6089_v17 = vsel %vm10471_vm1, %v6087_v6, %v6088_v11  ;;  %v5965_v10 = vld [vmem:[#allocation3 + $0x88] sm:$0xf]  ;;  %v6101_v18 = vrot.slane %v6099_v26, 4  ;;  %v6113_v27 = vrot.slane %v5968_v20, 5 }
 0x3e5   : > { %6151 = vrot.lane.b32.xlu0 %v6051_v21, %s9953_s22  ;;  %v6093_v21 = vsel %vm10471_vm1, %v9502_v15, %v6092_v8  ;;  %v6106_v22 = vrot.slane %v5965_v10, 5  ;;  %v6100_v2 = vsel %vm10471_vm1, %v9503_v24, %v6099_v26  ;;  %v5966_v19 = vld [vmem:[#allocation3 + $0x8c] sm:$0x1]  ;;  %v5967_v36 = vld [vmem:[#allocation3 + $0x90] sm:$0xe] }
 0x3e6   : > { %v5817_v28 = vpop.permute.xlu1 %5816  ;;  %v6109_v48 = vrot.slane %v5966_v19, 5  ;;  %v5969_v41 = vld [vmem:[#allocation3 + $0x98] sm:$0x1]  ;;  %v5970_v44 = vld [vmem:[#allocation3 + $0x9c] sm:$0xe] }
 0x3e7   : > { %5906 = vst.msk [vmem:[#allocation4 + $0x1c] sm:$0xf] %vm5898_vm4, %v5817_v28  ;;  %v6096_v28 = vsel %vm10471_vm1, %v6094_v46, %v6095_v23  ;;  %v6116_v31 = vrot.slane %v5969_v41, 5  ;;  %v5972_v47 = vld [vmem:[#allocation3 + $0xa4] sm:$0x1] }
 0x3e8   : > { %6153 = vrot.lane.b32.xlu1 %v6054_v39, %s9953_s22  ;;  %v5964_v39 = vld [vmem:[#allocation3 + $0x84] sm:$0xe]  ;;  %v5973_v32 = vld [vmem:[#allocation3 + $0xa8] sm:$0xe]  ;;  %v6123_v3 = vrot.slane %v5972_v47, 5 }
 0x3e9   : > { %6155 = vrot.lane.b32.xlu0 %v6058_v30, %s9953_s22  ;;  %v6102_v30 = vrot.slane %v5963_v25, 5  ;;  %v9504_v1 = vrot.slane %v5964_v39, 9  ;;  %v9507_v0 = vrot.slane %v5973_v32, 9  ;;  %v5975_v34 = vld [vmem:[#allocation3 + $0xb0] sm:$0x1] }
 0x3ea   : > { %v5976_v7 = vld [vmem:[#allocation3 + $0xb4] sm:$0xe]  ;;  %v5978_v11 = vld [vmem:[#allocation3 + $0xbc] sm:$0x1]  ;;  %v6269_v10 = vld [vmem:[#allocation3 + $0x10] sm:$0xf] }
 0x3eb   : > { %v6103_v14 = vsel %vm10471_vm1, %v6101_v18, %v6102_v30  ;;  %v6107_v53 = vsel %vm10471_vm1, %v9504_v1, %v6106_v22  ;;  %v9508_v63 = vrot.slane %v5976_v7, 9  ;;  %v6137_v49 = vrot.slane %v5978_v11, 5  ;;  %v6270_v23 = vld [vmem:[#allocation3 + $0x18] sm:$0xf]  ;;  %v6272_v18 = vld [vmem:[#allocation3 + $0x24] sm:$0xf] }
 0x3ec   : > { %6157 = vrot.lane.b32.xlu1 %v6061_v33, %s9953_s22  ;;  %v6108_v33 = vrot.slane %v6106_v22, 4  ;;  %v6273_v39 = vld [vmem:[#allocation3 + $0x28] sm:$0xf]  ;;  %v6274_v22 = vld [vmem:[#allocation3 + $0x30] sm:$0xf] }
 0x3ed   : > { %6159 = vrot.lane.b32.xlu0 %v6065_v38, %s9953_s22  ;;  %v5971_v38 = vld [vmem:[#allocation3 + $0xa0] sm:$0xf]  ;;  %v6276_v30 = vld [vmem:[#allocation3 + $0x3c] sm:$0xf]  ;;  %v6462_v41 = vld [vmem:[#allocation3 + $0x10] sm:$0xf] }
 0x3ee   : > { %v5819_v59 = vpop.permute.xlu0 %5818  ;;  %v6110_v62 = vsel %vm10471_vm1, %v6108_v33, %v6109_v48  ;;  %v6120_v50 = vrot.slane %v5971_v38, 5  ;;  %v6277_v19 = vld [vmem:[#allocation3 + $0x40] sm:$0xf]  ;;  %v6279_v33 = vld [vmem:[#allocation3 + $0x4c] sm:$0xf] }
 0x3ef   : > { %5907 = vst.msk [vmem:[#allocation4 + $0x20] sm:$0xf] %vm5898_vm4, %v5819_v59  ;;  %v9505_v59 = vrot.slane %v5967_v36, 9  ;;  %v6280_v36 = vld [vmem:[#allocation3 + $0x54] sm:$0xf] }
 0x3f0   : > { %6161 = vrot.lane.b32.xlu1 %v6068_v42, %s9953_s22  ;;  %v6115_v42 = vrot.slane %v6113_v27, 4  ;;  %v6282_v38 = vld [vmem:[#allocation3 + $0x60] sm:$0xf]  ;;  %v6283_v48 = vld [vmem:[#allocation3 + $0x64] sm:$0xf] }
 0x3f1   : > { %6163 = vrot.lane.b32.xlu0 %v6072_v55, %s9953_s22  ;;  %v5821_v52 = vpop.permute.xlu1 %5820  ;;  %v6114_v51 = vsel %vm10471_vm1, %v9505_v59, %v6113_v27  ;;  %v5974_v55 = vld [vmem:[#allocation3 + $0xac] sm:$0xf]  ;;  %v6286_v47 = vld [vmem:[#allocation3 + $0x78] sm:$0xf]  ;;  %v6289_v11 = vld [vmem:[#allocation3 + $0x88] sm:$0xf] }
 0x3f2   : > { %5908 = vst.msk [vmem:[#allocation4 + $0x24] sm:$0xf] %vm5898_vm4, %v5821_v52  ;;  %v9506_v52 = vrot.slane %v5970_v44, 9  ;;  %v6117_v56 = vsel %vm10471_vm1, %v6115_v42, %v6116_v31  ;;  %v6127_v57 = vrot.slane %v5974_v55, 5  ;;  %v6284_v59 = vld [vmem:[#allocation3 + $0x6c] sm:$0xf] }
 0x3f3   : > { %v6519_v55 = vshll.u32 %v6462_v41, 16  ;;  %v6523_v31 = vshrl.u32 %v6462_v41, 16 }
 0x3f4   : > { %6165 = vrot.lane.b32.xlu1 %v6075_v29, %s9953_s22  ;;  %v6122_v29 = vrot.slane %v6120_v50, 4  ;;  %v6121_v58 = vsel %vm10471_vm1, %v9506_v52, %v6120_v50  ;;  %v6129_v6 = vrot.slane %v6127_v57, 4  ;;  %v6464_v50 = vld [vmem:[#allocation3 + $0x18] sm:$0xf] }
 0x3f5   : > { %6167 = vrot.lane.b32.xlu0 %v6079_v43, %s9953_s22  ;;  %v5977_v43 = vld [vmem:[#allocation3 + $0xb8] sm:$0xf]  ;;  %v6534_v32 = vshrl.u32 %v6464_v50, 16 }
 0x3f6   : > { %v6134_v8 = vrot.slane %v5977_v43, 5  ;;  %v6287_v43 = vld [vmem:[#allocation3 + $0x7c] sm:$0xf] }
 0x3f7   : > { %v6536_v7 = vrot.slane %v6534_v32, 4 }
 0x3f8   : > { %v5823_v45 = vpop.permute.xlu0 %5822  ;;  %6169 = vrot.lane.b32.xlu1 %v6082_v5, %s9953_s22  ;;  %v6124_v5 = vsel %vm10471_vm1, %v6122_v29, %v6123_v3  ;;  %v6136_v15 = vrot.slane %v6134_v8, 4  ;;  %v6135_v16 = vsel %vm10471_vm1, %v9508_v63, %v6134_v8  ;;  %v6525_v3 = vrot.slane %v6523_v31, 4 }
 0x3f9   : > { %5909 = vst.msk [vmem:[#allocation4 + $0x28] sm:$0xf] %vm5898_vm4, %v5823_v45  ;;  %6171 = vrot.lane.b32.xlu0 %v6086_v9, %s9953_s22  ;;  %v6128_v45 = vsel %vm10471_vm1, %v9507_v0, %v6127_v57  ;;  %v6130_v9 = vrot.slane %v5975_v34, 5  ;;  %v6537_v57 = vshll.u32 %v6464_v50, 16  ;;  %v7025_v50 = vld [vmem:[#allocation3 + $0x18] sm:$0xe] }
 0x3fa   : > { %v5825_v35 = vpop.permute.xlu1 %5824  ;;  %v6138_v26 = vsel %vm10471_vm1, %v6136_v15, %v6137_v49 }
 0x3fb   : > { %5910 = vst.msk [vmem:[#allocation4 + $0x2c] sm:$0xf] %vm5898_vm4, %v5825_v35  ;;  %v6131_v35 = vsel %vm10471_vm1, %v6129_v6, %v6130_v9  ;;  %v6539_v8 = vrot.slane %v6537_v57, 5  ;;  %v6463_v9 = vld [vmem:[#allocation3 + $0x14] sm:$0x1]  ;;  %v9510_v57 = vrot.slane %v7025_v50, 9 }
 0x3fc   : > { %6173 = vrot.lane.b32.xlu1 %v6089_v17, %s9953_s22 }
 0x3fd   : > { %6175 = vrot.lane.b32.xlu0 %v6093_v21, %s9953_s22  ;;  %v6268_v21 = vld [vmem:[#allocation3 + $0xc] sm:$0xf]  ;;  %v6540_v49 = vor.u32 %v6539_v8, %v6536_v7 }
 0x400   : > { %6177 = vrot.lane.b32.xlu1 %v6096_v28, %s9953_s22  ;;  %v6271_v28 = vld [vmem:[#allocation3 + $0x1c] sm:$0xf] }
 0x401   : > { %6179 = vrot.lane.b32.xlu0 %v6100_v2, %s9953_s22  ;;  %v6275_v2 = vld [vmem:[#allocation3 + $0x34] sm:$0xf] }
 0x403   : > { %v5827_v4 = vpop.permute.xlu0 %5826 }
 0x404   : > { %5911 = vst.msk [vmem:[#allocation4 + $0x30] sm:$0xf] %vm5898_vm4, %v5827_v4  ;;  %6181 = vrot.lane.b32.xlu1 %v6103_v14, %s9953_s22  ;;  %v5829_v40 = vpop.permute.xlu1 %5828  ;;  %v6278_v4 = vld [vmem:[#allocation3 + $0x48] sm:$0xf] }
 0x405   : > { %6183 = vrot.lane.b32.xlu0 %v6107_v53, %s9953_s22  ;;  %5912 = vst.msk [vmem:[#allocation4 + $0x34] sm:$0xf] %vm5898_vm4, %v5829_v40  ;;  %v6281_v53 = vld [vmem:[#allocation3 + $0x58] sm:$0xf]  ;;  %v6461_v40 = vld [vmem:[#allocation3 + $0xc] sm:$0xf] }
 0x406   : > { %v6513_v42 = vshll.u32 %v6461_v40, 16 }
 0x408   : > { %6185 = vrot.lane.b32.xlu1 %v6110_v62, %s9953_s22  ;;  %v6510_v62 = vshrl.u32 %v6461_v40, 16  ;;  %v6515_v29 = vrot.slane %v6513_v42, 5  ;;  %v7553_v40 = vld [vmem:[#allocation3 + $0x18] sm:$0xf] }
 0x409   : > { %6187 = vrot.lane.b32.xlu0 %v6114_v51, %s9953_s22  ;;  %v6285_v51 = vld [vmem:[#allocation3 + $0x70] sm:$0xf] }
 0x40a   : > { %v5831_v60 = vpop.permute.xlu0 %5830 }
 0x40b   : > { %5913 = vst.msk [vmem:[#allocation4 + $0x38] sm:$0xf] %vm5898_vm4, %v5831_v60  ;;  %v6465_v60 = vld [vmem:[#allocation3 + $0x1c] sm:$0xf] }
 0x40c   : > { %6189 = vrot.lane.b32.xlu1 %v6117_v56, %s9953_s22  ;;  %v5833_v61 = vpop.permute.xlu1 %5832  ;;  %v6512_v56 = vrot.slane %v6510_v62, 4  ;;  %v6543_v0 = vshll.u32 %v6465_v60, 16  ;;  %v6547_v34 = vshrl.u32 %v6465_v60, 16  ;;  %v7602_v60 = vshrl.u32 %v7553_v40, 16 }
 0x40d   : > { %6191 = vrot.lane.b32.xlu0 %v6121_v58, %s9953_s22  ;;  %5914 = vst.msk [vmem:[#allocation4 + $0x3c] sm:$0xf] %vm5898_vm4, %v5833_v61  ;;  %v6521_v61 = vrot.slane %v6519_v55, 5 }
 0x40e   : > { %v6516_v6 = vor.u32 %v6515_v29, %v6512_v56  ;;  %v6545_v15 = vrot.slane %v6543_v0, 5  ;;  %v7027_v56 = vld [vmem:[#allocation3 + $0x20] sm:$0x1]  ;;  %v7557_v0 = vld [vmem:[#allocation3 + $0x28] sm:$0xf]  ;;  %v7604_v8 = vrot.slane %v7602_v60, 4 }
 0x40f   : > { %v7130_v7 = vrot.slane %v7027_v56, 5  ;;  %v8114_v56 = vld [vmem:[#allocation3 + $0x18] sm:$0xe] }
 0x410   : > { %6193 = vrot.lane.b32.xlu1 %v6124_v5, %s9953_s22  ;;  %v6288_v5 = vld [vmem:[#allocation3 + $0x84] sm:$0xf] }
 0x411   : > { %6195 = vrot.lane.b32.xlu0 %v6128_v45, %s9953_s22 }
 0x414   : > { %6197 = vrot.lane.b32.xlu1 %v6131_v35, %s9953_s22  ;;  %v6526_v35 = vor.u32 %v6525_v3, %v6521_v61 }
 0x415   : > { %v5835_v17 = vpop.permute.xlu0 %5834  ;;  %v5837_v46 = vpop.permute.xlu1 %5836  ;;  %6199 = vrot.lane.b32.xlu0 %v6135_v16, %s9953_s22  ;;  %v6549_v16 = vrot.slane %v6547_v34, 4 }
 0x416   : > { %5915 = vst.msk [vmem:[#allocation4 + $0x40] sm:$0xf] %vm5898_vm4, %v5835_v17  ;;  %5916 = vst.msk [vmem:[#allocation4 + $0x44] sm:$0xf] %vm5898_vm4, %v5837_v46  ;;  %v6290_v17 = vld [vmem:[#allocation3 + $0x90] sm:$0xf] }
 0x417   : > { %v6517_v46 = vrot.slane %v6516_v6, 4 }
 0x418   : > { %6201 = vrot.lane.b32.xlu1 %v6138_v26, %s9953_s22  ;;  %v6529_v26 = vshll.u32 %v6463_v9, 16  ;;  %s9959_s22 = smov 48  }
 0x419   : > { %6332 = vrot.lane.b32.xlu0 %v6268_v21, %s9955_s24 }
 0x41c   : > { %6334 = vrot.lane.b32.xlu1 %v6269_v10, %s9955_s24  ;;  %v6466_v10 = vld [vmem:[#allocation3 + $0x20] sm:$0x1] }
 0x41d   : > { %6336 = vrot.lane.b32.xlu0 %v6270_v23, %s9955_s24 }
 0x41e   : > { %v5839_v24 = vpop.permute.xlu0 %5838  ;;  %v5841_v25 = vpop.permute.xlu1 %5840 }
 0x41f   : > { %5917 = vst.msk [vmem:[#allocation4 + $0x48] sm:$0xf] %vm5898_vm4, %v5839_v24  ;;  %5918 = vst.msk [vmem:[#allocation4 + $0x4c] sm:$0xf] %vm5898_vm4, %v5841_v25  ;;  %v6291_v24 = vld [vmem:[#allocation3 + $0x94] sm:$0xf] }
 0x420   : > { %6338 = vrot.lane.b32.xlu1 %v6271_v28, %s9955_s24  ;;  %v6527_v25 = vrot.slane %v6526_v35, 4  ;;  %v6550_v28 = vor.u32 %v6549_v16, %v6545_v15  ;;  %v7639_v35 = vshrl.u32 %v7557_v0, 16 }
 0x421   : > { %6340 = vrot.lane.b32.xlu0 %v6272_v18, %s9955_s24  ;;  %v7023_v18 = vld [vmem:[#allocation3 + $0x10] sm:$0xf] }
 0x424   : > { %6342 = vrot.lane.b32.xlu1 %v6273_v39, %s9955_s24  ;;  %v6522_v39 = vsel %vm10113_vm13, %v6517_v46, %v6521_v61 }
 0x425   : > { %6344 = vrot.lane.b32.xlu0 %v6274_v22, %s9955_s24  ;;  %v6541_v22 = vrot.slane %v6540_v49, 4 }
 0x428   : > { %v5843_v20 = vpop.permute.xlu0 %5842  ;;  %6346 = vrot.lane.b32.xlu1 %v6275_v2, %s9955_s24  ;;  %v6531_v2 = vrot.slane %v6529_v26, 5  ;;  %v7360_v26 = vld [vmem:[#allocation3 + $0x18] sm:$0xf] }
 0x429   : > { %5919 = vst.msk [vmem:[#allocation4 + $0x50] sm:$0xf] %vm5898_vm4, %v5843_v20  ;;  %v5845_v1 = vpop.permute.xlu1 %5844  ;;  %6348 = vrot.lane.b32.xlu0 %v6276_v30, %s9955_s24  ;;  %v6553_v20 = vshll.u32 %v6466_v10, 16  ;;  %v9886_v10 = vld [vmem:[%s13041_s4 + $0x20] ss:$0 sps:$4 sm:$0xff]  }
 0x42a   : > { %5920 = vst.msk [vmem:[#allocation4 + $0x54] sm:$0xf] %vm5898_vm4, %v5845_v1  ;;  %v7120_v1 = vrot.slane %v7023_v18, 5  ;;  %9845 = vmatprep.subr.msk.bf16.mxu1 %vm8648_vm12, %v9886_v10 }
 0x42c   : > { %6350 = vrot.lane.b32.xlu1 %v6277_v19, %s9955_s24  ;;  %v7122_v41 = vrot.slane %v7120_v1, 4 }
 0x42d   : > { %6352 = vrot.lane.b32.xlu0 %v6278_v4, %s9955_s24  ;;  %v6532_v4 = vsel %vm10113_vm13, %v6527_v25, %v6531_v2 }
 0x430   : > { %v5847_v14 = vpop.permute.xlu0 %5846  ;;  %6354 = vrot.lane.b32.xlu1 %v6279_v33, %s9955_s24  ;;  %v7022_v33 = vld [vmem:[#allocation3 + $0xc] sm:$0xe] }
 0x431   : > { %5921 = vst.msk [vmem:[#allocation4 + $0x58] sm:$0xf] %vm5898_vm4, %v5847_v14  ;;  %6356 = vrot.lane.b32.xlu0 %v6280_v36, %s9955_s24  ;;  %v6551_v14 = vrot.slane %v6550_v28, 4  ;;  %v7026_v36 = vld [vmem:[#allocation3 + $0x1c] sm:$0xf]  ;;  %v7641_v28 = vrot.slane %v7639_v35, 4 }
 0x432   : > { %v7127_v62 = vrot.slane %v7026_v36, 5 }
 0x433   : > { %v5849_v27 = vpop.permute.xlu1 %5848 }
 0x434   : > { %5922 = vst.msk [vmem:[#allocation4 + $0x5c] sm:$0xf] %vm5898_vm4, %v5849_v27  ;;  %6358 = vrot.lane.b32.xlu1 %v6281_v53, %s9955_s24  ;;  %v6546_v27 = vsel %vm10113_vm13, %v6541_v22, %v6545_v15  ;;  %v6555_v53 = vrot.slane %v6553_v20, 5  ;;  %v7128_v6 = vsel %vm10471_vm1, %v9510_v57, %v7127_v62  ;;  %v7558_v20 = vld [vmem:[#allocation3 + $0x2c] sm:$0x1] }
 0x435   : > { %6360 = vrot.lane.b32.xlu0 %v6282_v38, %s9955_s24  ;;  %v7024_v38 = vld [vmem:[#allocation3 + $0x14] sm:$0x1] }
 0x436   : > { %v7123_v31 = vrot.slane %v7024_v38, 5 }
 0x438   : > { %6362 = vrot.lane.b32.xlu1 %v6283_v48, %s9955_s24  ;;  %v7124_v32 = vsel %vm10471_vm1, %v7122_v41, %v7123_v31  ;;  %v8115_v41 = vld [vmem:[#allocation3 + $0x1c] sm:$0xf] }
 0x439   : > { %v5851_v44 = vpop.permute.xlu0 %5850  ;;  %6364 = vrot.lane.b32.xlu0 %v6284_v59, %s9955_s24  ;;  %v9509_v59 = vrot.slane %v7022_v33, 9  ;;  %v9887_v33 = vld [vmem:[%s13041_s4 + $0x18] sm:$0xff]   ;;  %v9888_v31 = vld [vmem:[%s13041_s4 + $0x10] sm:$0xff]  }
 0x43a   : > { %5923 = vst.msk [vmem:[#allocation4 + $0x60] sm:$0xf] %vm5898_vm4, %v5851_v44  ;;  %v6556_v44 = vsel %vm10113_vm13, %v6551_v14, %v6555_v53  ;;  %v6467_v14 = vld [vmem:[#allocation3 + $0x24] sm:$0xf]  ;;  %v7645_v53 = vshll.u32 %v7558_v20, 16 }
 0x43b   : > { %v7121_v55 = vsel %vm10471_vm1, %v9509_v59, %v7120_v1  ;;  %v7362_v1 = vld [vmem:[#allocation3 + $0x24] sm:$0xf]  ;;  %v6561_v50 = vshll.u32 %v6467_v14, 16 }
 0x43c   : > { %v5853_v52 = vpop.permute.xlu1 %5852  ;;  %6366 = vrot.lane.b32.xlu1 %v6285_v51, %s9955_s24  ;;  %v7554_v51 = vld [vmem:[#allocation3 + $0x1c] sm:$0xf] }
 0x43d   : > { %5924 = vst.msk [vmem:[#allocation4 + $0x64] sm:$0xf] %vm5898_vm4, %v5853_v52  ;;  %6368 = vrot.lane.b32.xlu0 %v6286_v47, %s9955_s24  ;;  %v7605_v52 = vshll.u32 %v7553_v40, 16  ;;  %v7556_v47 = vld [vmem:[#allocation3 + $0x24] sm:$0xf]  ;;  %v7611_v61 = vshll.u32 %v7554_v51, 16 }
 0x43e   : > { %v5855_v58 = vpop.permute.xlu0 %5854  ;;  %v7615_v3 = vshrl.u32 %v7554_v51, 16  ;;  %v7626_v34 = vshrl.u32 %v7556_v47, 16  ;;  %v7363_v40 = vld [vmem:[#allocation3 + $0x28] sm:$0xf] }
 0x43f   : > { %5925 = vst.msk [vmem:[#allocation4 + $0x68] sm:$0xf] %vm5898_vm4, %v5855_v58  ;;  %v7129_v58 = vrot.slane %v7127_v62, 4  ;;  %v7613_v16 = vrot.slane %v7611_v61, 5  ;;  %v8118_v61 = vld [vmem:[#allocation3 + $0x28] sm:$0xf] }
 0x440   : > { %6370 = vrot.lane.b32.xlu1 %v6287_v43, %s9955_s24  ;;  %v7628_v46 = vrot.slane %v7626_v34, 4 }
 0x441   : > { %6372 = vrot.lane.b32.xlu0 %v6288_v5, %s9955_s24  ;;  %v7629_v5 = vshll.u32 %v7556_v47, 16  ;;  %v7647_v47 = vrot.slane %v7645_v53, 5 }
 0x442   : > { %v5857_v45 = vpop.permute.xlu1 %5856 }
 0x443   : > { %5926 = vst.msk [vmem:[#allocation4 + $0x6c] sm:$0xf] %vm5898_vm4, %v5857_v45  ;;  %v5859_v63 = vpop.permute.xlu0 %5858  ;;  %v7607_v45 = vrot.slane %v7605_v52, 5  ;;  %v7631_v49 = vrot.slane %v7629_v5, 5  ;;  %v6563_v5 = vrot.slane %v6561_v50, 5  ;;  %v9912_v50 = vld [vmem:[%s10069_s18 + $0x18] sm:$0xff] }
 0x444   : > { %5927 = vst.msk [vmem:[#allocation4 + $0x70] sm:$0xf] %vm5898_vm4, %v5859_v63  ;;  %6374 = vrot.lane.b32.xlu1 %v6289_v11, %s9955_s24  ;;  %v7131_v63 = vsel %vm10471_vm1, %v7129_v58, %v7130_v7  ;;  %v7635_v11 = vshll.u32 %v7557_v0, 16 }
 0x445   : > { %6376 = vrot.lane.b32.xlu0 %v6290_v17, %s9955_s24  ;;  %v7617_v17 = vrot.slane %v7615_v3, 4  ;;  %v7632_v2 = vor.u32 %v7631_v49, %v7628_v46  ;;  %v8117_v46 = vld [vmem:[#allocation3 + $0x24] sm:$0xe] }
 0x446   : > { %v5861_v21 = vpop.permute.xlu1 %5860  ;;  %v12110_v25 = vrot.slane %v7635_v11, 5 }
 0x447   : > { %5928 = vst.msk [vmem:[#allocation4 + $0x74] sm:$0xf] %vm5898_vm4, %v5861_v21  ;;  %v5863_v23 = vpop.permute.xlu0 %5862  ;;  %v7608_v21 = vor.u32 %v7607_v45, %v7604_v8  ;;  %v7618_v22 = vor.u32 %v7617_v17, %v7613_v16  ;;  %v7633_v59 = vrot.slane %v7632_v2, 4  ;;  %v9525_v45 = vrot.slane %v8114_v56, 9 }
 0x448   : > { %5929 = vst.msk [vmem:[#allocation4 + $0x78] sm:$0xf] %vm5898_vm4, %v5863_v23  ;;  %6378 = vrot.lane.b32.xlu1 %v6291_v24, %s9955_s24  ;;  %v7555_v24 = vld [vmem:[#allocation3 + $0x20] sm:$0x1] }
 0x449   : > { %6893 = vrot.lane.b32.xlu0 %v6522_v39, %s9957_s12  ;;  %v7361_v39 = vld [vmem:[#allocation3 + $0x1c] sm:$0xf]  ;;  %v7638_v58 = vsel %vm10113_vm13, %v7633_v59, %v12110_v25 }
 0x44a   : > { %v5865_v30 = vpop.permute.xlu1 %5864 }
 0x44b   : > { %5930 = vst.msk [vmem:[#allocation4 + $0x7c] sm:$0xf] %vm5898_vm4, %v5865_v30  ;;  %v6140_v19 = vpop.permute.xlu0 %6139  ;;  %v8650_v30 = vsel %vm8648_vm12, %v9886_v10, 0 }
 0x44c   : > { %6236 = vst.msk [vmem:[#allocation4] sm:$0xf] %vm6235_vm6, %v6140_v19  ;;  %6895 = vrot.lane.b32.xlu1 %v6532_v4, %s9957_s12  ;;  %v7609_v19 = vrot.slane %v7608_v21, 4  ;;  %9762 = vmatpush3.bf16.msra.mxu1 %v8650_v30  ;;  %v7621_v4 = vshll.u32 %v7555_v24, 16  ;;  %v9526_v30 = vrot.slane %v8117_v46, 9 }
 0x44d   : > { %6897 = vrot.lane.b32.xlu0 %v6546_v27, %s9957_s12  ;;  %v7642_v27 = vor.u32 %v7641_v28, %v12110_v25  ;;  %9763 = vmatprep.subr.bf16.mxu1 %v9887_v33 }
 0x44e   : > { %v6142_v48 = vpop.permute.xlu1 %6141  ;;  %v7614_v62 = vsel %vm10113_vm13, %v7609_v19, %v7613_v16  ;;  %v7623_v51 = vrot.slane %v7621_v4, 5  ;;  %v8219_v16 = vrot.slane %v8118_v61, 5 }
 0x44f   : > { %6237 = vst.msk [vmem:[#allocation4 + $0x4] sm:$0xf] %vm6235_vm6, %v6142_v48  ;;  %v6144_v42 = vpop.permute.xlu0 %6143  ;;  %v7619_v48 = vrot.slane %v7618_v22, 4  ;;  %v7643_v52 = vrot.slane %v7642_v27, 4  ;;  %v8891_v22 = vld [vmem:[%s13044_s7] sm:$0x3] }
 0x450   : > { %6238 = vst.msk [vmem:[#allocation4 + $0x8] sm:$0xf] %vm6235_vm6, %v6144_v42  ;;  %6899 = vrot.lane.b32.xlu1 %v6556_v44, %s9957_s12  ;;  %v6468_v42 = vld [vmem:[#allocation3 + $0x28] sm:$0xf]  ;;  %v6558_v44 = vshrl.u32 %v6467_v14, 16  ;;  %9764 = vmatpush3.bf16.msra.mxu1 %v9887_v33  ;;  %v8942_v19 = vsel %vm4380_vm2, %v8891_v22, 0  ;;  %v8220_v53 = vsel %vm10471_vm1, %v9526_v30, %v8219_v16 }
 0x451   : > { %7230 = vrot.lane.b32.xlu0 %v7121_v55, %s9958_s20  ;;  %v6470_v55 = vld [vmem:[#allocation3 + $0x30] sm:$0xf]  ;;  %v7624_v57 = vsel %vm10113_vm13, %v7619_v48, %v7623_v51  ;;  %v6567_v3 = vshll.u32 %v6468_v42, 16  ;;  %v6571_v0 = vshrl.u32 %v6468_v42, 16  ;;  %9765 = vmatprep.subr.bf16.mxu1 %v9888_v31  ;;  %v7648_v11 = vsel %vm10113_vm13, %v7643_v52, %v7647_v47 }
 0x452   : > { %v6146_v29 = vpop.permute.xlu1 %6145  ;;  %v6560_v34 = vrot.slane %v6558_v44, 4  ;;  %v6582_v7 = vshrl.u32 %v6470_v55, 16  ;;  %v6585_v8 = vshll.u32 %v6470_v55, 16  ;;  %9846 = vmatprep.subr.msk.bf16.mxu0 %vm4380_vm2, %v8891_v22  ;;  %v8221_v14 = vrot.slane %v8219_v16, 4  ;;  %v9911_v44 = vld [vmem:[%s10069_s18 + $0x10] sm:$0xff] }
 0x453   : > { %6239 = vst.msk [vmem:[#allocation4 + $0xc] sm:$0xf] %vm6235_vm6, %v6146_v29  ;;  %v6148_v43 = vpop.permute.xlu0 %6147  ;;  %v8212_v29 = vrot.slane %v8115_v41, 5  ;;  %v6569_v49 = vrot.slane %v6567_v3, 5  ;;  %9804 = vmatpush3.bf16.msra.mxu0 %v8942_v19  ;;  %v9909_v41 = vld [vmem:[%s10069_s18] sm:$0xff]  ;;  %v516_v51 = vpack.c.bf16 %v9912_v50, %v9911_v44  ;;  %vm7326_vm2 = vcmask 388416  }
 0x454   : > { %6240 = vst.msk [vmem:[#allocation4 + $0x10] sm:$0xf] %vm6235_vm6, %v6148_v43  ;;  %7232 = vrot.lane.b32.xlu1 %v7124_v32, %s9958_s20  ;;  %v8116_v43 = vld [vmem:[#allocation3 + $0x20] sm:$0x1]  ;;  %9766 = vmatpush3.bf16.msra.mxu1 %v9888_v31  ;;  %v6564_v24 = vor.u32 %v6563_v5, %v6560_v34  ;;  %v6584_v25 = vrot.slane %v6582_v7, 4  ;;  %v6587_v28 = vrot.slane %v6585_v8, 5 }
 0x455   : > { %7234 = vrot.lane.b32.xlu0 %v7128_v6, %s9958_s20  ;;  %v6471_v6 = vld [vmem:[#allocation3 + $0x34] sm:$0xf]  ;;  %v8214_v35 = vrot.slane %v8212_v29, 4  ;;  %v6472_v31 = vld [vmem:[#allocation3 + $0x38] sm:$0x1] }
 0x456   : > { %v6150_v9 = vpop.permute.xlu1 %6149  ;;  %v6591_v21 = vshll.u32 %v6471_v6, 16  ;;  %v6595_v10 = vshrl.u32 %v6471_v6, 16  ;;  %v6588_v48 = vor.u32 %v6587_v28, %v6584_v25  ;;  %v7028_v6 = vld [vmem:[#allocation3 + $0x24] sm:$0xe]  ;;  %v7032_v7 = vld [vmem:[#allocation3 + $0x34] sm:$0xf] }
 0x457   : > { %6241 = vst.msk [vmem:[#allocation4 + $0x14] sm:$0xf] %vm6235_vm6, %v6150_v9  ;;  %v6152_v15 = vpop.permute.xlu0 %6151  ;;  %v9889_v9 = vld [vmem:[%s13041_s4 + $0x8] sm:$0xff]   ;;  %v7141_v16 = vrot.slane %v7032_v7, 5  ;;  %v7562_v25 = vld [vmem:[#allocation3 + $0x3c] sm:$0xf] }
 0x458   : > { %6242 = vst.msk [vmem:[#allocation4 + $0x18] sm:$0xf] %vm6235_vm6, %v6152_v15  ;;  %7236 = vrot.lane.b32.xlu1 %v7131_v63, %s9958_s20  ;;  %v8215_v15 = vrot.slane %v8116_v43, 5  ;;  %9767 = vmatprep.subr.bf16.mxu1 %v9889_v9  ;;  %v6597_v27 = vrot.slane %v6595_v10, 4  ;;  %v6601_v43 = vshll.u32 %v6472_v31, 16 }
 0x459   : > { %7424 = vrot.lane.b32.xlu0 %v7360_v26, %s9959_s22  ;;  %v6573_v26 = vrot.slane %v6571_v0, 4  ;;  %9768 = vmatpush3.bf16.msra.mxu1 %v9889_v9  ;;  %v7030_v9 = vld [vmem:[#allocation3 + $0x2c] sm:$0x1]  ;;  %v7033_v28 = vld [vmem:[#allocation3 + $0x38] sm:$0x1] }
 0x45a   : > { %v6154_v23 = vpop.permute.xlu1 %6153  ;;  %v8216_v20 = vsel %vm10471_vm1, %v8214_v35, %v8215_v15  ;;  %v9511_v35 = vrot.slane %v7028_v6, 9  ;;  %v7137_v10 = vrot.slane %v7030_v9, 5  ;;  %v7563_v19 = vld [vmem:[#allocation3 + $0x40] sm:$0xf] }
 0x45b   : > { %6243 = vst.msk [vmem:[#allocation4 + $0x1c] sm:$0xf] %vm6235_vm6, %v6154_v23  ;;  %v6156_v18 = vpop.permute.xlu0 %6155  ;;  %v8213_v23 = vsel %vm10471_vm1, %v9525_v45, %v8212_v29  ;;  %v6574_v33 = vor.u32 %v6573_v26, %v6569_v49  ;;  %v7029_v29 = vld [vmem:[#allocation3 + $0x28] sm:$0xf]  ;;  %v6603_v45 = vrot.slane %v6601_v43, 5 }
 0x45c   : > { %6244 = vst.msk [vmem:[#allocation4 + $0x20] sm:$0xf] %vm6235_vm6, %v6156_v18  ;;  %7426 = vrot.lane.b32.xlu1 %v7361_v39, %s9959_s22  ;;  %v8119_v18 = vld [vmem:[#allocation3 + $0x2c] sm:$0x1]  ;;  %v7134_v3 = vrot.slane %v7029_v29, 5 }
 0x45d   : > { %7428 = vrot.lane.b32.xlu0 %v7362_v1, %s9959_s22  ;;  %v9890_v39 = vld [vmem:[%s13041_s4] sm:$0xff]   ;;  %v6575_v47 = vrot.slane %v6574_v33, 4  ;;  %v7560_v26 = vld [vmem:[#allocation3 + $0x34] sm:$0xf]  ;;  %v7366_v43 = vld [vmem:[#allocation3 + $0x3c] sm:$0xf] }
 0x45e   : > { %v6158_v36 = vpop.permute.xlu1 %6157  ;;  %v6469_v1 = vld [vmem:[#allocation3 + $0x2c] sm:$0x1]  ;;  %9769 = vmatprep.subr.bf16.mxu1 %v9890_v39  ;;  %v7136_v15 = vrot.slane %v7134_v3, 4  ;;  %v7659_v30 = vshll.u32 %v7560_v26, 16  ;;  %v7365_v29 = vld [vmem:[#allocation3 + $0x34] sm:$0xf] }
 0x45f   : > { %6245 = vst.msk [vmem:[#allocation4 + $0x24] sm:$0xf] %vm6235_vm6, %v6158_v36  ;;  %v6160_v38 = vpop.permute.xlu0 %6159  ;;  %v6593_v36 = vrot.slane %v6591_v21, 5  ;;  %9770 = vmatpush3.bf16.msra.mxu1 %v9890_v39  ;;  %v6577_v59 = vshll.u32 %v6469_v1, 16  ;;  %v7135_v21 = vsel %vm10471_vm1, %v9511_v35, %v7134_v3  ;;  %v7663_v1 = vshrl.u32 %v7560_v26, 16 }
 0x460   : > { %6246 = vst.msk [vmem:[#allocation4 + $0x28] sm:$0xf] %vm6235_vm6, %v6160_v38  ;;  %7430 = vrot.lane.b32.xlu1 %v7363_v40, %s9959_s22  ;;  %v8222_v38 = vrot.slane %v8119_v18, 5  ;;  %v6565_v40 = vrot.slane %v6564_v24, 4  ;;  %v7138_v39 = vsel %vm10471_vm1, %v7136_v15, %v7137_v10  ;;  %v6474_v35 = vld [vmem:[#allocation3 + $0x40] sm:$0xf] }
 0x461   : > { %7985 = vrot.lane.b32.xlu0 %v7614_v62, %s9960_s16  ;;  %v9910_v62 = vld [vmem:[%s10069_s18 + $0x8] sm:$0xff]  ;;  %v6598_v56 = vor.u32 %v6597_v27, %v6593_v36 }
 0x462   : > { %v6162_v60 = vpop.permute.xlu1 %6161  ;;  %v515_v42 = vpack.c.bf16 %v9910_v62, %v9909_v41  ;;  %v8223_v52 = vsel %vm10471_vm1, %v8221_v14, %v8222_v38  ;;  %v7677_v14 = vshll.u32 %v7562_v25, 16  ;;  %v7661_v62 = vrot.slane %v7659_v30, 5  ;;  %v8120_v10 = vld [vmem:[#allocation3 + $0x30] sm:$0xe] }
 0x463   : > { %6247 = vst.msk [vmem:[#allocation4 + $0x2c] sm:$0xf] %vm6235_vm6, %v6162_v60  ;;  %v6164_v32 = vpop.permute.xlu0 %6163  ;;  %v6599_v5 = vrot.slane %v6598_v56, 4 }
 0x464   : > { %6248 = vst.msk [vmem:[#allocation4 + $0x30] sm:$0xf] %vm6235_vm6, %v6164_v32  ;;  %7987 = vrot.lane.b32.xlu1 %v7624_v57, %s9960_s16  ;;  %9805 = vmatprep.mubr.msk.bf16.mxu0 %vm8892_vm9, %v515_v42  ;;  %v6570_v32 = vsel %vm10113_vm13, %v6565_v40, %v6569_v49  ;;  %v6589_v57 = vrot.slane %v6588_v48, 4  ;;  %v7031_v49 = vld [vmem:[#allocation3 + $0x30] sm:$0xe]  ;;  %v7683_v48 = vshll.u32 %v7563_v19, 16 }
 0x465   : > { %7989 = vrot.lane.b32.xlu0 %v7638_v58, %s9960_s16  ;;  %9806 = vmatmul.mubr.msk.bf16.vlgmr.msra.gmra.mxu0 %vm8892_vm9, %v516_v51  ;;  %v6579_v58 = vrot.slane %v6577_v59, 5  ;;  %v6604_v46 = vsel %vm10113_vm13, %v6599_v5, %v6603_v45  ;;  %v9512_v22 = vrot.slane %v7031_v49, 9  ;;  %v7687_v59 = vshrl.u32 %v7563_v19, 16  ;;  %v7364_v51 = vld [vmem:[#allocation3 + $0x30] sm:$0xf] }
 0x466   : > { %v6166_v63 = vpop.permute.xlu1 %6165  ;;  %v6594_v8 = vsel %vm10113_vm13, %v6589_v57, %v6593_v36  ;;  %v7144_v36 = vrot.slane %v7033_v28, 5  ;;  %v7665_v42 = vrot.slane %v7663_v1, 4  ;;  %v7679_v50 = vrot.slane %v7677_v14, 5  ;;  %v6477_v1 = vld [vmem:[#allocation3 + $0x4c] sm:$0xf] }
 0x467   : > { %6249 = vst.msk [vmem:[#allocation4 + $0x34] sm:$0xf] %vm6235_vm6, %v6166_v63  ;;  %v6168_v17 = vpop.permute.xlu0 %6167  ;;  %v6580_v34 = vsel %vm10113_vm13, %v6575_v47, %v6579_v58  ;;  %v7559_v63 = vld [vmem:[#allocation3 + $0x30] sm:$0xf]  ;;  %v7142_v33 = vsel %vm10471_vm1, %v9512_v22, %v7141_v16  ;;  %v7689_v47 = vrot.slane %v7687_v59, 4  ;;  %v6615_v22 = vshll.u32 %v6474_v35, 16 }
 0x468   : > { %6250 = vst.msk [vmem:[#allocation4 + $0x38] sm:$0xf] %vm6235_vm6, %v6168_v17  ;;  %7991 = vrot.lane.b32.xlu1 %v7648_v11, %s9960_s16  ;;  %v7653_v24 = vshll.u32 %v7559_v63, 16  ;;  %v7564_v58 = vld [vmem:[#allocation3 + $0x44] sm:$0x1]  ;;  %v9527_v14 = vrot.slane %v8120_v10, 9 }
 0x469   : > { %8322 = vrot.lane.b32.xlu0 %v8213_v23, %s9961_s25  ;;  %v7650_v23 = vshrl.u32 %v7559_v63, 16  ;;  %v7693_v6 = vshll.u32 %v7564_v58, 16  ;;  %v8121_v63 = vld [vmem:[#allocation3 + $0x34] sm:$0xf]  ;;  %v6617_v59 = vrot.slane %v6615_v22, 5 }
 0x46a   : > { %v6170_v2 = vpop.permute.xlu1 %6169  ;;  %v7034_v22 = vld [vmem:[#allocation3 + $0x3c] sm:$0xe] }
 0x46b   : > { %6251 = vst.msk [vmem:[#allocation4 + $0x3c] sm:$0xf] %vm6235_vm6, %v6170_v2  ;;  %v6172_v4 = vpop.permute.xlu0 %6171  ;;  %v7143_v2 = vrot.slane %v7141_v16, 4  ;;  %v7652_v27 = vrot.slane %v7650_v23, 4  ;;  %v8226_v23 = vrot.slane %v8121_v63, 5 }
 0x46c   : > { %6252 = vst.msk [vmem:[#allocation4 + $0x40] sm:$0xf] %vm6235_vm6, %v6172_v4  ;;  %8324 = vrot.lane.b32.xlu1 %v8216_v20, %s9961_s25  ;;  %v7674_v4 = vshrl.u32 %v7562_v25, 16 }
 0x46d   : > { %8326 = vrot.lane.b32.xlu0 %v8220_v53, %s9961_s25  ;;  %v7655_v53 = vrot.slane %v7653_v24, 5  ;;  %v7145_v40 = vsel %vm10471_vm1, %v7143_v2, %v7144_v36  ;;  %v6619_v2 = vshrl.u32 %v6474_v35, 16  ;;  %v6478_v35 = vld [vmem:[#allocation3 + $0x50] sm:$0x1] }
 0x46e   : > { %v6174_v55 = vpop.permute.xlu1 %6173  ;;  %v7676_v44 = vrot.slane %v7674_v4, 4 }
 0x46f   : > { %6253 = vst.msk [vmem:[#allocation4 + $0x44] sm:$0xf] %vm6235_vm6, %v6174_v55  ;;  %v6176_v60 = vpop.permute.xlu0 %6175  ;;  %v7656_v55 = vor.u32 %v7655_v53, %v7652_v27  ;;  %v8228_v27 = vrot.slane %v8226_v23, 4 }
 0x470   : > { %6254 = vst.msk [vmem:[#allocation4 + $0x48] sm:$0xf] %vm6235_vm6, %v6176_v60  ;;  %8328 = vrot.lane.b32.xlu1 %v8223_v52, %s9961_s25  ;;  %v7561_v60 = vld [vmem:[#allocation3 + $0x38] sm:$0x1]  ;;  %v7685_v52 = vrot.slane %v7683_v48, 5  ;;  %v7680_v57 = vor.u32 %v7679_v50, %v7676_v44  ;;  %v8227_v44 = vsel %vm10471_vm1, %v9527_v14, %v8226_v23  ;;  %v6649_v23 = vshll.u32 %v6478_v35, 16 }
 0x471   : > { %6901 = vrot.lane.b32.xlu0 %v6570_v32, %s9957_s12  ;;  %v7666_v32 = vor.u32 %v7665_v42, %v7661_v62  ;;  %v7669_v3 = vshll.u32 %v7561_v60, 16  ;;  %v8123_v48 = vld [vmem:[#allocation3 + $0x3c] sm:$0xe]  ;;  %v6643_v42 = vshrl.u32 %v6477_v1, 16  ;;  %v9513_v14 = vrot.slane %v7034_v22, 9 }
 0x472   : > { %v6178_v61 = vpop.permute.xlu1 %6177  ;;  %v7690_v5 = vor.u32 %v7689_v47, %v7685_v52  ;;  %v7681_v9 = vrot.slane %v7680_v57, 4  ;;  %v8125_v47 = vld [vmem:[#allocation3 + $0x44] sm:$0x1] }
 0x473   : > { %6255 = vst.msk [vmem:[#allocation4 + $0x4c] sm:$0xf] %vm6235_vm6, %v6178_v61  ;;  %v6180_v0 = vpop.permute.xlu0 %6179  ;;  %v7657_v61 = vrot.slane %v7656_v55, 4  ;;  %v7667_v45 = vrot.slane %v7666_v32, 4 }
 0x474   : > { %6256 = vst.msk [vmem:[#allocation4 + $0x50] sm:$0xf] %vm6235_vm6, %v6180_v0  ;;  %6903 = vrot.lane.b32.xlu1 %v6580_v34, %s9957_s12  ;;  %v6473_v0 = vld [vmem:[#allocation3 + $0x3c] sm:$0xf]  ;;  %v7691_v26 = vrot.slane %v7690_v5, 4  ;;  %v7686_v28 = vsel %vm10113_vm13, %v7681_v9, %v7685_v52  ;;  %v9528_v52 = vrot.slane %v8123_v48, 9 }
 0x475   : > { %6905 = vrot.lane.b32.xlu0 %v6594_v8, %s9957_s12  ;;  %v7367_v8 = vld [vmem:[#allocation3 + $0x40] sm:$0xf]  ;;  %v6606_v15 = vshrl.u32 %v6473_v0, 16  ;;  %v6609_v16 = vshll.u32 %v6473_v0, 16 }
 0x476   : > { %v6182_v11 = vpop.permute.xlu1 %6181  ;;  %v9916_v9 = vld [vmem:[%s10069_s18 + $0x38] sm:$0xff] }
 0x477   : > { %6257 = vst.msk [vmem:[#allocation4 + $0x54] sm:$0xf] %vm6235_vm6, %v6182_v11  ;;  %v6184_v17 = vpop.permute.xlu0 %6183  ;;  %v7662_v11 = vsel %vm10113_vm13, %v7657_v61, %v7661_v62  ;;  %v6611_v30 = vrot.slane %v6609_v16, 5  ;;  %v6639_v62 = vshll.u32 %v6477_v1, 16  ;;  %v7036_v1 = vld [vmem:[#allocation3 + $0x44] sm:$0x1] }
 0x478   : > { %6258 = vst.msk [vmem:[#allocation4 + $0x58] sm:$0xf] %vm6235_vm6, %v6184_v17  ;;  %6907 = vrot.lane.b32.xlu1 %v6604_v46, %s9957_s12  ;;  %v7671_v17 = vrot.slane %v7669_v3, 5  ;;  %v6476_v46 = vld [vmem:[#allocation3 + $0x48] sm:$0xf] }
 0x479   : > { %7238 = vrot.lane.b32.xlu0 %v7135_v21, %s9958_s20  ;;  %v7695_v21 = vrot.slane %v7693_v6, 5  ;;  %v6630_v19 = vshrl.u32 %v6476_v46, 16  ;;  %v6633_v4 = vshll.u32 %v6476_v46, 16  ;;  %v6641_v58 = vrot.slane %v6639_v62, 5  ;;  %v9913_v6 = vld [vmem:[%s10069_s18 + $0x20] sm:$0xff] }
 0x47a   : > { %v6186_v18 = vpop.permute.xlu1 %6185  ;;  %v7672_v25 = vsel %vm10113_vm13, %v7667_v45, %v7671_v17  ;;  %v9915_v45 = vld [vmem:[%s10069_s18 + $0x30] sm:$0xff] }
 0x47b   : > { %6259 = vst.msk [vmem:[#allocation4 + $0x5c] sm:$0xf] %vm6235_vm6, %v6186_v18  ;;  %v6188_v20 = vpop.permute.xlu0 %6187  ;;  %v8122_v18 = vld [vmem:[#allocation3 + $0x38] sm:$0x1]  ;;  %v7696_v36 = vsel %vm10113_vm13, %v7691_v26, %v7695_v21  ;;  %v6635_v55 = vrot.slane %v6633_v4, 5  ;;  %v518_v63 = vpack.c.bf16 %v9916_v9, %v9915_v45 }
 0x47c   : > { %6260 = vst.msk [vmem:[#allocation4 + $0x60] sm:$0xf] %vm6235_vm6, %v6188_v20  ;;  %7240 = vrot.lane.b32.xlu1 %v7138_v39, %s9958_s20  ;;  %v8124_v39 = vld [vmem:[#allocation3 + $0x40] sm:$0xf]  ;;  %v6608_v20 = vrot.slane %v6606_v15, 4  ;;  %v8229_v53 = vrot.slane %v8122_v18, 5 }
 0x47d   : > { %7242 = vrot.lane.b32.xlu0 %v7142_v33, %s9958_s20 }
 0x47e   : > { %v6190_v38 = vpop.permute.xlu1 %6189  ;;  %v6612_v50 = vor.u32 %v6611_v30, %v6608_v20  ;;  %v8230_v60 = vsel %vm10471_vm1, %v8228_v27, %v8229_v53  ;;  %v6651_v30 = vrot.slane %v6649_v23, 5  ;;  %v7370_v23 = vld [vmem:[#allocation3 + $0x54] sm:$0xf] }
 0x47f   : > { %6261 = vst.msk [vmem:[#allocation4 + $0x64] sm:$0xf] %vm6235_vm6, %v6190_v38  ;;  %v6192_v41 = vpop.permute.xlu0 %6191  ;;  %v8233_v38 = vrot.slane %v8124_v39, 5 }
 0x480   : > { %6262 = vst.msk [vmem:[#allocation4 + $0x68] sm:$0xf] %vm6235_vm6, %v6192_v41  ;;  %7244 = vrot.lane.b32.xlu1 %v7145_v40, %s9958_s20  ;;  %v6621_v41 = vrot.slane %v6619_v2, 4  ;;  %v6613_v3 = vrot.slane %v6612_v50, 4  ;;  %v7038_v2 = vld [vmem:[#allocation3 + $0x4c] sm:$0xf] }
 0x481   : > { %7432 = vrot.lane.b32.xlu0 %v7364_v51, %s9959_s22  ;;  %v6632_v51 = vrot.slane %v6630_v19, 4  ;;  %v8235_v32 = vrot.slane %v8233_v38, 4  ;;  %v8234_v61 = vsel %vm10471_vm1, %v9528_v52, %v8233_v38  ;;  %v7565_v19 = vld [vmem:[#allocation3 + $0x48] sm:$0xf] }
 0x482   : > { %v6194_v31 = vpop.permute.xlu1 %6193  ;;  %v6622_v57 = vor.u32 %v6621_v41, %v6617_v59  ;;  %v6618_v26 = vsel %vm10113_vm13, %v6613_v3, %v6617_v59  ;;  %v7037_v38 = vld [vmem:[#allocation3 + $0x48] sm:$0xe]  ;;  %v7151_v59 = vrot.slane %v7036_v1, 5  ;;  %v7698_v41 = vshrl.u32 %v7565_v19, 16 }
 0x483   : > { %6263 = vst.msk [vmem:[#allocation4 + $0x6c] sm:$0xf] %vm6235_vm6, %v6194_v31  ;;  %v6196_v56 = vpop.permute.xlu0 %6195  ;;  %v6636_v0 = vor.u32 %v6635_v55, %v6632_v51  ;;  %v7701_v62 = vshll.u32 %v7565_v19, 16  ;;  %v9514_v55 = vrot.slane %v7037_v38, 9  ;;  %v8127_v19 = vld [vmem:[#allocation3 + $0x4c] sm:$0xf] }
 0x484   : > { %6264 = vst.msk [vmem:[#allocation4 + $0x70] sm:$0xf] %vm6235_vm6, %v6196_v56  ;;  %7434 = vrot.lane.b32.xlu1 %v7365_v29, %s9959_s22  ;;  %v6475_v56 = vld [vmem:[#allocation3 + $0x44] sm:$0x1]  ;;  %v6623_v17 = vrot.slane %v6622_v57, 4 }
 0x485   : > { %7436 = vrot.lane.b32.xlu0 %v7366_v43, %s9959_s22  ;;  %v6645_v43 = vrot.slane %v6643_v42, 4  ;;  %v6625_v5 = vshll.u32 %v6475_v56, 16  ;;  %v6637_v21 = vrot.slane %v6636_v0, 4  ;;  %v7568_v42 = vld [vmem:[#allocation3 + $0x54] sm:$0xf] }
 0x486   : > { %v6198_v34 = vpop.permute.xlu1 %6197  ;;  %v7569_v56 = vld [vmem:[#allocation3 + $0x58] sm:$0xf] }
 0x487   : > { %6265 = vst.msk [vmem:[#allocation4 + $0x74] sm:$0xf] %vm6235_vm6, %v6198_v34  ;;  %v6200_v7 = vpop.permute.xlu0 %6199  ;;  %v8236_v34 = vrot.slane %v8125_v47, 5  ;;  %v6646_v46 = vor.u32 %v6645_v43, %v6641_v58  ;;  %v6627_v10 = vrot.slane %v6625_v5, 5  ;;  %v6642_v20 = vsel %vm10113_vm13, %v6637_v21, %v6641_v58 }
 0x488   : > { %6266 = vst.msk [vmem:[#allocation4 + $0x78] sm:$0xf] %vm6235_vm6, %v6200_v7  ;;  %7438 = vrot.lane.b32.xlu1 %v7367_v8, %s9959_s22  ;;  %v9914_v7 = vld [vmem:[%s10069_s18 + $0x28] sm:$0xff]  ;;  %v7700_v43 = vrot.slane %v7698_v41, 4  ;;  %v7735_v5 = vshrl.u32 %v7569_v56, 16  ;;  %v8240_v41 = vrot.slane %v8127_v19, 5 }
 0x489   : > { %7993 = vrot.lane.b32.xlu0 %v7662_v11, %s9960_s16  ;;  %v517_v8 = vpack.c.bf16 %v9914_v7, %v9913_v6  ;;  %v8237_v16 = vsel %vm10471_vm1, %v8235_v32, %v8236_v34  ;;  %v6628_v18 = vsel %vm10113_vm13, %v6623_v17, %v6627_v10  ;;  %v6647_v39 = vrot.slane %v6646_v46, 4  ;;  %v7570_v10 = vld [vmem:[#allocation3 + $0x5c] sm:$0x1] }
 0x48a   : > { %v6202_v49 = vpop.permute.xlu1 %6201  ;;  %v7725_v32 = vshll.u32 %v7568_v42, 16  ;;  %v7731_v34 = vshll.u32 %v7569_v56, 16  ;;  %v7737_v17 = vrot.slane %v7735_v5, 4  ;;  %v7741_v22 = vshll.u32 %v7570_v10, 16 }
 0x48b   : > { %6267 = vst.msk [vmem:[#allocation4 + $0x7c] sm:$0xf] %vm6235_vm6, %v6202_v49  ;;  %v6333_v24 = vpop.permute.xlu0 %6332  ;;  %v7035_v49 = vld [vmem:[#allocation3 + $0x40] sm:$0xf]  ;;  %9809 = vmatprep.mubr.msk.bf16.mxu0 %vm8892_vm9, %v517_v8  ;;  %v6652_v53 = vsel %vm10113_vm13, %v6647_v39, %v6651_v30 }
 0x48c   : > { %6429 = vst.msk [vmem:[#allocation4] sm:$0xf] %vm6428_vm3, %v6333_v24  ;;  %7995 = vrot.lane.b32.xlu1 %v7672_v25, %s9960_s16  ;;  %9810 = vmatmul.mubr.msk.bf16.gmra.mxu0 %vm8892_vm9, %v518_v63  ;;  %v7148_v25 = vrot.slane %v7035_v49, 5  ;;  %v7727_v9 = vrot.slane %v7725_v32, 5  ;;  %v7368_v63 = vld [vmem:[#allocation3 + $0x48] sm:$0xf] }
 0x48d   : > { %7997 = vrot.lane.b32.xlu0 %v7686_v28, %s9960_s16  ;;  %v7369_v49 = vld [vmem:[#allocation3 + $0x4c] sm:$0xf] }
 0x48e   : > { %v6335_v33 = vpop.permute.xlu1 %6334  ;;  %v7149_v48 = vsel %vm10471_vm1, %v9513_v14, %v7148_v25  ;;  %v6480_v14 = vld [vmem:[#allocation3 + $0x58] sm:$0xf] }
 0x48f   : > { %6430 = vst.msk [vmem:[#allocation4 + $0x4] sm:$0xf] %vm6428_vm3, %v6335_v33  ;;  %v6337_v40 = vpop.permute.xlu0 %6336  ;;  %v7150_v33 = vrot.slane %v7148_v25, 4 }
 0x490   : > { %6431 = vst.msk [vmem:[#allocation4 + $0x8] sm:$0xf] %vm6428_vm3, %v6337_v40  ;;  %7999 = vrot.lane.b32.xlu1 %v7696_v36, %s9960_s16  ;;  %v7155_v36 = vrot.slane %v7038_v2, 5  ;;  %v7566_v40 = vld [vmem:[#allocation3 + $0x4c] sm:$0xf] }
 0x491   : > { %8330 = vrot.lane.b32.xlu0 %v8227_v44, %s9961_s25  ;;  %v7039_v44 = vld [vmem:[#allocation3 + $0x50] sm:$0x1]  ;;  %v7152_v51 = vsel %vm10471_vm1, %v7150_v33, %v7151_v59  ;;  %v7707_v52 = vshll.u32 %v7566_v40, 16  ;;  %v7711_v47 = vshrl.u32 %v7566_v40, 16  ;;  %v8126_v59 = vld [vmem:[#allocation3 + $0x48] sm:$0xe] }
 0x492   : > { %v6339_v31 = vpop.permute.xlu1 %6338  ;;  %v7156_v57 = vsel %vm10471_vm1, %v9514_v55, %v7155_v36  ;;  %v7158_v58 = vrot.slane %v7039_v44, 5  ;;  %v6663_v55 = vshll.u32 %v6480_v14, 16  ;;  %v9529_v32 = vrot.slane %v8126_v59, 9 }
 0x493   : > { %6432 = vst.msk [vmem:[#allocation4 + $0xc] sm:$0xf] %vm6428_vm3, %v6339_v31  ;;  %v6341_v29 = vpop.permute.xlu0 %6340  ;;  %v7157_v31 = vrot.slane %v7155_v36, 4  ;;  %v7709_v7 = vrot.slane %v7707_v52, 5  ;;  %v7713_v8 = vrot.slane %v7711_v47, 4 }
 0x494   : > { %6433 = vst.msk [vmem:[#allocation4 + $0x10] sm:$0xf] %vm6428_vm3, %v6341_v29  ;;  %8332 = vrot.lane.b32.xlu1 %v8230_v60, %s9961_s25  ;;  %v7722_v29 = vshrl.u32 %v7568_v42, 16  ;;  %v6483_v47 = vld [vmem:[#allocation3 + $0x64] sm:$0xf]  ;;  %v6665_v5 = vrot.slane %v6663_v55, 5 }
 0x495   : > { %8334 = vrot.lane.b32.xlu0 %v8234_v61, %s9961_s25  ;;  %v7703_v61 = vrot.slane %v7701_v62, 5  ;;  %v7159_v0 = vsel %vm10471_vm1, %v7157_v31, %v7158_v58  ;;  %v6667_v31 = vshrl.u32 %v6480_v14, 16  ;;  %v6484_v14 = vld [vmem:[#allocation3 + $0x68] sm:$0x1]  ;;  %v7040_v55 = vld [vmem:[#allocation3 + $0x54] sm:$0xe] }
 0x496   : > { %v6343_v11 = vpop.permute.xlu1 %6342  ;;  %v7724_v45 = vrot.slane %v7722_v29, 4 }
 0x497   : > { %6434 = vst.msk [vmem:[#allocation4 + $0x14] sm:$0xf] %vm6428_vm3, %v6343_v11  ;;  %v6345_v15 = vpop.permute.xlu0 %6344  ;;  %v7704_v11 = vor.u32 %v7703_v61, %v7700_v43  ;;  %v8242_v43 = vrot.slane %v8240_v41, 4 }
 0x498   : > { %6435 = vst.msk [vmem:[#allocation4 + $0x18] sm:$0xf] %vm6428_vm3, %v6345_v15  ;;  %8336 = vrot.lane.b32.xlu1 %v8237_v16, %s9961_s25  ;;  %v7567_v15 = vld [vmem:[#allocation3 + $0x50] sm:$0x1]  ;;  %v7733_v16 = vrot.slane %v7731_v34, 5  ;;  %v7728_v21 = vor.u32 %v7727_v9, %v7724_v45  ;;  %v8241_v45 = vsel %vm10471_vm1, %v9529_v32, %v8240_v41  ;;  %v6697_v41 = vshll.u32 %v6484_v14, 16 }
 0x499   : > { %6909 = vrot.lane.b32.xlu0 %v6618_v26, %s9957_s12  ;;  %v7714_v26 = vor.u32 %v7713_v8, %v7709_v7  ;;  %v7717_v25 = vshll.u32 %v7567_v15, 16  ;;  %v8129_v34 = vld [vmem:[#allocation3 + $0x54] sm:$0xe]  ;;  %v6691_v8 = vshrl.u32 %v6483_v47, 16  ;;  %v9515_v32 = vrot.slane %v7040_v55, 9 }
 0x49a   : > { %v6347_v24 = vpop.permute.xlu1 %6346  ;;  %v7738_v39 = vor.u32 %v7737_v17, %v7733_v16  ;;  %v7729_v1 = vrot.slane %v7728_v21, 4  ;;  %v8131_v17 = vld [vmem:[#allocation3 + $0x5c] sm:$0x1] }
 0x49b   : > { %6436 = vst.msk [vmem:[#allocation4 + $0x1c] sm:$0xf] %vm6428_vm3, %v6347_v24  ;;  %v6349_v28 = vpop.permute.xlu0 %6348  ;;  %v7705_v24 = vrot.slane %v7704_v11, 4  ;;  %v7715_v30 = vrot.slane %v7714_v26, 4 }
 0x49c   : > { %6437 = vst.msk [vmem:[#allocation4 + $0x20] sm:$0xf] %vm6428_vm3, %v6349_v28  ;;  %6911 = vrot.lane.b32.xlu1 %v6628_v18, %s9957_s12  ;;  %v6479_v28 = vld [vmem:[#allocation3 + $0x54] sm:$0xf]  ;;  %v7739_v40 = vrot.slane %v7738_v39, 4  ;;  %v7734_v44 = vsel %vm10113_vm13, %v7729_v1, %v7733_v16  ;;  %v9530_v16 = vrot.slane %v8129_v34, 9 }
 0x49d   : > { %6913 = vrot.lane.b32.xlu0 %v6642_v20, %s9957_s12  ;;  %v7371_v20 = vld [vmem:[#allocation3 + $0x58] sm:$0xf]  ;;  %v6654_v33 = vshrl.u32 %v6479_v28, 16  ;;  %v6657_v36 = vshll.u32 %v6479_v28, 16  ;;  %v9920_v1 = vld [vmem:[%s10069_s18 + $0x58] sm:$0xff] }
 0x49e   : > { %v6351_v4 = vpop.permute.xlu1 %6350 }
 0x49f   : > { %6438 = vst.msk [vmem:[#allocation4 + $0x24] sm:$0xf] %vm6428_vm3, %v6351_v4  ;;  %v6353_v27 = vpop.permute.xlu0 %6352  ;;  %v7710_v4 = vsel %vm10113_vm13, %v7705_v24, %v7709_v7  ;;  %v6659_v52 = vrot.slane %v6657_v36, 5  ;;  %v6687_v7 = vshll.u32 %v6483_v47, 16  ;;  %v7042_v47 = vld [vmem:[#allocation3 + $0x5c] sm:$0x1] }
 0x4a0   : > { %6439 = vst.msk [vmem:[#allocation4 + $0x28] sm:$0xf] %vm6428_vm3, %v6353_v27  ;;  %6915 = vrot.lane.b32.xlu1 %v6652_v53, %s9957_s12  ;;  %v7719_v27 = vrot.slane %v7717_v25, 5  ;;  %v6482_v53 = vld [vmem:[#allocation3 + $0x60] sm:$0xf] }
 0x4a1   : > { %7246 = vrot.lane.b32.xlu0 %v7149_v48, %s9958_s20  ;;  %v7743_v48 = vrot.slane %v7741_v22, 5  ;;  %v6678_v56 = vshrl.u32 %v6482_v53, 16  ;;  %v6681_v29 = vshll.u32 %v6482_v53, 16  ;;  %v6689_v10 = vrot.slane %v6687_v7, 5  ;;  %v9917_v22 = vld [vmem:[%s10069_s18 + $0x40] sm:$0xff] }
 0x4a2   : > { %v6355_v50 = vpop.permute.xlu1 %6354  ;;  %v7720_v42 = vsel %vm10113_vm13, %v7715_v30, %v7719_v27  ;;  %v9919_v30 = vld [vmem:[%s10069_s18 + $0x50] sm:$0xff] }
 0x4a3   : > { %6440 = vst.msk [vmem:[#allocation4 + $0x2c] sm:$0xf] %vm6428_vm3, %v6355_v50  ;;  %v6357_v60 = vpop.permute.xlu0 %6356  ;;  %v8128_v50 = vld [vmem:[#allocation3 + $0x50] sm:$0x1]  ;;  %v7744_v58 = vsel %vm10113_vm13, %v7739_v40, %v7743_v48  ;;  %v6683_v11 = vrot.slane %v6681_v29, 5  ;;  %v520_v19 = vpack.c.bf16 %v9920_v1, %v9919_v30 }
 0x4a4   : > { %6441 = vst.msk [vmem:[#allocation4 + $0x30] sm:$0xf] %vm6428_vm3, %v6357_v60  ;;  %7248 = vrot.lane.b32.xlu1 %v7152_v51, %s9958_s20  ;;  %v8130_v51 = vld [vmem:[#allocation3 + $0x58] sm:$0xf]  ;;  %v6656_v60 = vrot.slane %v6654_v33, 4  ;;  %v8243_v61 = vrot.slane %v8128_v50, 5 }
 0x4a5   : > { %7250 = vrot.lane.b32.xlu0 %v7156_v57, %s9958_s20 }
 0x4a6   : > { %v6359_v3 = vpop.permute.xlu1 %6358  ;;  %v6660_v9 = vor.u32 %v6659_v52, %v6656_v60  ;;  %v8244_v15 = vsel %vm10471_vm1, %v8242_v43, %v8243_v61  ;;  %v7044_v60 = vld [vmem:[#allocation3 + $0x64] sm:$0xf]  ;;  %v6699_v52 = vrot.slane %v6697_v41, 5  ;;  %v7043_v61 = vld [vmem:[#allocation3 + $0x60] sm:$0xe] }
 0x4a7   : > { %6442 = vst.msk [vmem:[#allocation4 + $0x34] sm:$0xf] %vm6428_vm3, %v6359_v3  ;;  %v6361_v6 = vpop.permute.xlu0 %6360  ;;  %v8247_v3 = vrot.slane %v8130_v51, 5  ;;  %v7374_v41 = vld [vmem:[#allocation3 + $0x6c] sm:$0xf] }
 0x4a8   : > { %6443 = vst.msk [vmem:[#allocation4 + $0x38] sm:$0xf] %vm6428_vm3, %v6361_v6  ;;  %7252 = vrot.lane.b32.xlu1 %v7159_v0, %s9958_s20  ;;  %v6669_v6 = vrot.slane %v6667_v31, 4  ;;  %v6661_v25 = vrot.slane %v6660_v9, 4 }
 0x4a9   : > { %7440 = vrot.lane.b32.xlu0 %v7368_v63, %s9959_s22  ;;  %v6680_v63 = vrot.slane %v6678_v56, 4  ;;  %v8249_v26 = vrot.slane %v8247_v3, 4  ;;  %v8248_v24 = vsel %vm10471_vm1, %v9530_v16, %v8247_v3  ;;  %v7571_v56 = vld [vmem:[#allocation3 + $0x60] sm:$0xf]  ;;  %v7169_v3 = vrot.slane %v7044_v60, 5 }
 0x4aa   : > { %v6363_v35 = vpop.permute.xlu1 %6362  ;;  %v6670_v21 = vor.u32 %v6669_v6, %v6665_v5  ;;  %v6666_v40 = vsel %vm10113_vm13, %v6661_v25, %v6665_v5  ;;  %v7165_v5 = vrot.slane %v7042_v47, 5  ;;  %v7746_v6 = vshrl.u32 %v7571_v56, 16  ;;  %v7375_v60 = vld [vmem:[#allocation3 + $0x70] sm:$0xf] }
 0x4ab   : > { %6444 = vst.msk [vmem:[#allocation4 + $0x3c] sm:$0xf] %vm6428_vm3, %v6363_v35  ;;  %v6365_v46 = vpop.permute.xlu0 %6364  ;;  %v6684_v28 = vor.u32 %v6683_v11, %v6680_v63  ;;  %v7749_v7 = vshll.u32 %v7571_v56, 16  ;;  %v9516_v63 = vrot.slane %v7043_v61, 9  ;;  %v7045_v11 = vld [vmem:[#allocation3 + $0x68] sm:$0x1] }
 0x4ac   : > { %6445 = vst.msk [vmem:[#allocation4 + $0x40] sm:$0xf] %vm6428_vm3, %v6365_v46  ;;  %7442 = vrot.lane.b32.xlu1 %v7369_v49, %s9959_s22  ;;  %v6481_v46 = vld [vmem:[#allocation3 + $0x5c] sm:$0x1]  ;;  %v6671_v27 = vrot.slane %v6670_v21, 4  ;;  %v7171_v16 = vrot.slane %v7169_v3, 4 }
 0x4ad   : > { %7444 = vrot.lane.b32.xlu0 %v7370_v23, %s9959_s22  ;;  %v6693_v23 = vrot.slane %v6691_v8, 4  ;;  %v6673_v39 = vshll.u32 %v6481_v46, 16  ;;  %v6685_v48 = vrot.slane %v6684_v28, 4  ;;  %v7574_v8 = vld [vmem:[#allocation3 + $0x6c] sm:$0xf]  ;;  %v7170_v21 = vsel %vm10471_vm1, %v9516_v63, %v7169_v3 }
 0x4ae   : > { %v6367_v18 = vpop.permute.xlu1 %6366  ;;  %v7575_v46 = vld [vmem:[#allocation3 + $0x70] sm:$0xf]  ;;  %v8133_v56 = vld [vmem:[#allocation3 + $0x64] sm:$0xf]  ;;  %v6488_v61 = vld [vmem:[#allocation3 + $0x78] sm:$0xf] }
 0x4af   : > { %6446 = vst.msk [vmem:[#allocation4 + $0x44] sm:$0xf] %vm6428_vm3, %v6367_v18  ;;  %v6369_v2 = vpop.permute.xlu0 %6368  ;;  %v8250_v18 = vrot.slane %v8131_v17, 5  ;;  %v6694_v53 = vor.u32 %v6693_v23, %v6689_v10  ;;  %v6675_v59 = vrot.slane %v6673_v39, 5  ;;  %v6690_v31 = vsel %vm10113_vm13, %v6685_v48, %v6689_v10  ;;  %v8136_v63 = vld [vmem:[#allocation3 + $0x70] sm:$0xf] }
 0x4b0   : > { %6447 = vst.msk [vmem:[#allocation4 + $0x48] sm:$0xf] %vm6428_vm3, %v6369_v2  ;;  %7446 = vrot.lane.b32.xlu1 %v7371_v20, %s9959_s22  ;;  %v9918_v2 = vld [vmem:[%s10069_s18 + $0x48] sm:$0xff]  ;;  %v7748_v10 = vrot.slane %v7746_v6, 4  ;;  %v7751_v23 = vrot.slane %v7749_v7, 5  ;;  %v7783_v39 = vshrl.u32 %v7575_v46, 16 }
 0x4b1   : > { %8001 = vrot.lane.b32.xlu0 %v7710_v4, %s9960_s16  ;;  %v519_v20 = vpack.c.bf16 %v9918_v2, %v9917_v22  ;;  %v8251_v36 = vsel %vm10471_vm1, %v8249_v26, %v8250_v18  ;;  %v6676_v50 = vsel %vm10113_vm13, %v6671_v27, %v6675_v59  ;;  %v6695_v51 = vrot.slane %v6694_v53, 4  ;;  %v7576_v59 = vld [vmem:[#allocation3 + $0x74] sm:$0x1] }
 0x4b2   : > { %v6371_v38 = vpop.permute.xlu1 %6370  ;;  %v7773_v26 = vshll.u32 %v7574_v8, 16  ;;  %v7779_v18 = vshll.u32 %v7575_v46, 16  ;;  %v7785_v27 = vrot.slane %v7783_v39, 4  ;;  %v7789_v55 = vshll.u32 %v7576_v59, 16 }
 0x4b3   : > { %6448 = vst.msk [vmem:[#allocation4 + $0x4c] sm:$0xf] %vm6428_vm3, %v6371_v38  ;;  %v6373_v62 = vpop.permute.xlu0 %6372  ;;  %v7041_v38 = vld [vmem:[#allocation3 + $0x58] sm:$0xf]  ;;  %9813 = vmatprep.mubr.msk.bf16.mxu0 %vm8892_vm9, %v519_v20  ;;  %v6700_v43 = vsel %vm10113_vm13, %v6695_v51, %v6699_v52  ;;  %v8254_v6 = vrot.slane %v8133_v56, 5  ;;  %v6726_v46 = vshrl.u32 %v6488_v61, 16 }
 0x4b4   : > { %6449 = vst.msk [vmem:[#allocation4 + $0x50] sm:$0xf] %vm6428_vm3, %v6373_v62  ;;  %8003 = vrot.lane.b32.xlu1 %v7720_v42, %s9960_s16  ;;  %9814 = vmatmul.mubr.msk.bf16.gmra.mxu0 %vm8892_vm9, %v520_v19  ;;  %v7162_v42 = vrot.slane %v7041_v38, 5  ;;  %v7775_v1 = vrot.slane %v7773_v26, 5  ;;  %v7372_v19 = vld [vmem:[#allocation3 + $0x60] sm:$0xf] }
 0x4b5   : > { %8005 = vrot.lane.b32.xlu0 %v7734_v44, %s9960_s16  ;;  %v7373_v38 = vld [vmem:[#allocation3 + $0x64] sm:$0xf] }
 0x4b6   : > { %v6375_v57 = vpop.permute.xlu1 %6374  ;;  %v7163_v34 = vsel %vm10471_vm1, %v9515_v32, %v7162_v42  ;;  %v6486_v32 = vld [vmem:[#allocation3 + $0x70] sm:$0xf] }
 0x4b7   : > { %6450 = vst.msk [vmem:[#allocation4 + $0x54] sm:$0xf] %vm6428_vm3, %v6375_v57  ;;  %v6377_v0 = vpop.permute.xlu0 %6376  ;;  %v7164_v57 = vrot.slane %v7162_v42, 4 }
 0x4b8   : > { %6451 = vst.msk [vmem:[#allocation4 + $0x58] sm:$0xf] %vm6428_vm3, %v6377_v0  ;;  %8007 = vrot.lane.b32.xlu1 %v7744_v58, %s9960_s16  ;;  %v7572_v0 = vld [vmem:[#allocation3 + $0x64] sm:$0xf] }
 0x4b9   : > { %8338 = vrot.lane.b32.xlu0 %v8241_v45, %s9961_s25  ;;  %v7166_v9 = vsel %vm10471_vm1, %v7164_v57, %v7165_v5  ;;  %v7759_v17 = vshrl.u32 %v7572_v0, 16  ;;  %v8132_v5 = vld [vmem:[#allocation3 + $0x60] sm:$0xe] }
 0x4ba   : > { %v6379_v35 = vpop.permute.xlu1 %6378  ;;  %v9531_v26 = vrot.slane %v8132_v5, 9 }
 0x4bb   : > { %6452 = vst.msk [vmem:[#allocation4 + $0x5c] sm:$0xf] %vm6428_vm3, %v6379_v35  ;;  %v6894_v49 = vpop.permute.xlu0 %6893  ;;  %v7755_v35 = vshll.u32 %v7572_v0, 16  ;;  %v7761_v20 = vrot.slane %v7759_v17, 4  ;;  %v6489_v17 = vld [vmem:[#allocation3 + $0x7c] sm:$0xf] }
 0x4bc   : > { %6990 = vst.msk [vmem:[#allocation4] sm:$0xf] %vm6989_vm5, %v6894_v49  ;;  %8340 = vrot.lane.b32.xlu1 %v8244_v15, %s9961_s25  ;;  %v7770_v49 = vshrl.u32 %v7574_v8, 16 }
 0x4bd   : > { %8342 = vrot.lane.b32.xlu0 %v8248_v24, %s9961_s25  ;;  %v7172_v24 = vrot.slane %v7045_v11, 5  ;;  %v7757_v28 = vrot.slane %v7755_v35, 5  ;;  %v6711_v11 = vshll.u32 %v6486_v32, 16  ;;  %v6715_v35 = vshrl.u32 %v6486_v32, 16 }
 0x4be   : > { %v6896_v4 = vpop.permute.xlu1 %6895  ;;  %v7772_v30 = vrot.slane %v7770_v49, 4  ;;  %v6729_v49 = vshll.u32 %v6488_v61, 16 }
 0x4bf   : > { %6991 = vst.msk [vmem:[#allocation4 + $0x4] sm:$0xf] %vm6989_vm5, %v6896_v4  ;;  %v6898_v33 = vpop.permute.xlu0 %6897  ;;  %v7173_v2 = vsel %vm10471_vm1, %v7171_v16, %v7172_v24  ;;  %v7752_v4 = vor.u32 %v7751_v23, %v7748_v10  ;;  %v8256_v23 = vrot.slane %v8254_v6, 4  ;;  %v6713_v39 = vrot.slane %v6711_v11, 5 }
 0x4c0   : > { %6992 = vst.msk [vmem:[#allocation4 + $0x8] sm:$0xf] %vm6989_vm5, %v6898_v33  ;;  %8344 = vrot.lane.b32.xlu1 %v8251_v36, %s9961_s25  ;;  %v7573_v33 = vld [vmem:[#allocation3 + $0x68] sm:$0x1]  ;;  %v7781_v36 = vrot.slane %v7779_v18, 5  ;;  %v7776_v48 = vor.u32 %v7775_v1, %v7772_v30  ;;  %v8255_v30 = vsel %vm10471_vm1, %v9531_v26, %v8254_v6 }
 0x4c1   : > { %6917 = vrot.lane.b32.xlu0 %v6666_v40, %s9957_s12  ;;  %v7762_v40 = vor.u32 %v7761_v20, %v7757_v28  ;;  %v7765_v42 = vshll.u32 %v7573_v33, 16  ;;  %v8135_v18 = vld [vmem:[#allocation3 + $0x6c] sm:$0xe]  ;;  %v6739_v20 = vshrl.u32 %v6489_v17, 16  ;;  %v7577_v26 = vld [vmem:[#allocation3 + $0x78] sm:$0xf] }
 0x4c2   : > { %v6900_v62 = vpop.permute.xlu1 %6899  ;;  %v7786_v51 = vor.u32 %v7785_v27, %v7781_v36  ;;  %v7777_v47 = vrot.slane %v7776_v48, 4  ;;  %v9532_v27 = vrot.slane %v8135_v18, 9  ;;  %v7049_v18 = vld [vmem:[#allocation3 + $0x78] sm:$0xe] }
 0x4c3   : > { %6993 = vst.msk [vmem:[#allocation4 + $0xc] sm:$0xf] %vm6989_vm5, %v6900_v62  ;;  %v7231_v44 = vpop.permute.xlu0 %7230  ;;  %v7753_v62 = vrot.slane %v7752_v4, 4  ;;  %v7763_v52 = vrot.slane %v7762_v40, 4  ;;  %v6731_v4 = vrot.slane %v6729_v49, 5 }
 0x4c4   : > { %7327 = vst.msk [vmem:[#allocation4] sm:$0xf] %vm7326_vm2, %v7231_v44  ;;  %6919 = vrot.lane.b32.xlu1 %v6676_v50, %s9957_s12  ;;  %v6485_v44 = vld [vmem:[#allocation3 + $0x6c] sm:$0xf]  ;;  %v7787_v0 = vrot.slane %v7786_v51, 4 }
 0x4c5   : > { %6921 = vrot.lane.b32.xlu0 %v6690_v31, %s9957_s12  ;;  %v6702_v57 = vshrl.u32 %v6485_v44, 16  ;;  %v7048_v49 = vld [vmem:[#allocation3 + $0x74] sm:$0x1] }
 0x4c6   : > { %v7233_v29 = vpop.permute.xlu1 %7232 }
 0x4c7   : > { %7328 = vst.msk [vmem:[#allocation4 + $0x4] sm:$0xf] %vm7326_vm2, %v7233_v29  ;;  %v7235_v58 = vpop.permute.xlu0 %7234  ;;  %v7758_v29 = vsel %vm10113_vm13, %v7753_v62, %v7757_v28 }
 0x4c8   : > { %7329 = vst.msk [vmem:[#allocation4 + $0x8] sm:$0xf] %vm7326_vm2, %v7235_v58  ;;  %6923 = vrot.lane.b32.xlu1 %v6700_v43, %s9957_s12  ;;  %v6705_v58 = vshll.u32 %v6485_v44, 16  ;;  %v7767_v43 = vrot.slane %v7765_v42, 5 }
 0x4c9   : > { %7254 = vrot.lane.b32.xlu0 %v7163_v34, %s9958_s20  ;;  %v7791_v34 = vrot.slane %v7789_v55, 5  ;;  %v9921_v55 = vld [vmem:[%s10069_s18 + $0x60] sm:$0xff] }
 0x4ca   : > { %v7237_v45 = vpop.permute.xlu1 %7236  ;;  %v7768_v8 = vsel %vm10113_vm13, %v7763_v52, %v7767_v43  ;;  %v6707_v16 = vrot.slane %v6705_v58, 5  ;;  %v9923_v52 = vld [vmem:[%s10069_s18 + $0x70] sm:$0xff] }
 0x4cb   : > { %7330 = vst.msk [vmem:[#allocation4 + $0xc] sm:$0xf] %vm7326_vm2, %v7237_v45  ;;  %v7425_v15 = vpop.permute.xlu0 %7424  ;;  %v7782_v45 = vsel %vm10113_vm13, %v7777_v47, %v7781_v36  ;;  %v7792_v10 = vsel %vm10113_vm13, %v7787_v0, %v7791_v34  ;;  %v9924_v47 = vld [vmem:[%s10069_s18 + $0x78] sm:$0xff]  ;;  %v7047_v0 = vld [vmem:[#allocation3 + $0x70] sm:$0xf] }
 0x4cc   : > { %7521 = vst.msk [vmem:[#allocation4] sm:$0xf] %vm7520_vm11, %v7425_v15  ;;  %7256 = vrot.lane.b32.xlu1 %v7166_v9, %s9958_s20  ;;  %v8134_v9 = vld [vmem:[#allocation3 + $0x68] sm:$0x1]  ;;  %v6704_v15 = vrot.slane %v6702_v57, 4  ;;  %v522_v56 = vpack.c.bf16 %v9924_v47, %v9923_v52 }
 0x4cd   : > { %7258 = vrot.lane.b32.xlu0 %v7170_v21, %s9958_s20  ;;  %v8257_v24 = vrot.slane %v8134_v9, 5  ;;  %v6490_v57 = vld [vmem:[#allocation3 + $0x80] sm:$0x1]  ;;  %v7176_v9 = vrot.slane %v7047_v0, 5 }
 0x4ce   : > { %v7427_v25 = vpop.permute.xlu1 %7426  ;;  %v6708_v1 = vor.u32 %v6707_v16, %v6704_v15  ;;  %v7046_v15 = vld [vmem:[#allocation3 + $0x6c] sm:$0xe]  ;;  %v7050_v16 = vld [vmem:[#allocation3 + $0x7c] sm:$0xf] }
 0x4cf   : > { %7522 = vst.msk [vmem:[#allocation4 + $0x4] sm:$0xf] %vm7520_vm11, %v7427_v25  ;;  %v7429_v22 = vpop.permute.xlu0 %7428  ;;  %v8261_v25 = vrot.slane %v8136_v63, 5  ;;  %v8258_v36 = vsel %vm10471_vm1, %v8256_v23, %v8257_v24  ;;  %v7178_v23 = vrot.slane %v7176_v9, 4  ;;  %v7183_v24 = vrot.slane %v7050_v16, 5 }
 0x4d0   : > { %7523 = vst.msk [vmem:[#allocation4 + $0x8] sm:$0xf] %vm7520_vm11, %v7429_v22  ;;  %7260 = vrot.lane.b32.xlu1 %v7173_v2, %s9958_s20  ;;  %v6717_v22 = vrot.slane %v6715_v35, 4  ;;  %v6735_v2 = vshll.u32 %v6489_v17, 16  ;;  %v6709_v44 = vrot.slane %v6708_v1, 4 }
 0x4d1   : > { %7448 = vrot.lane.b32.xlu0 %v7372_v19, %s9959_s22  ;;  %v6728_v19 = vrot.slane %v6726_v46, 4  ;;  %v8263_v40 = vrot.slane %v8261_v25, 4  ;;  %v8262_v62 = vsel %vm10471_vm1, %v9532_v27, %v8261_v25  ;;  %v7580_v1 = vld [vmem:[#allocation3 + $0x84] sm:$0xf] }
 0x4d2   : > { %v7431_v14 = vpop.permute.xlu1 %7430  ;;  %v6718_v48 = vor.u32 %v6717_v22, %v6713_v39  ;;  %v6737_v59 = vrot.slane %v6735_v2, 5  ;;  %v6714_v34 = vsel %vm10113_vm13, %v6709_v44, %v6713_v39  ;;  %v7578_v39 = vld [vmem:[#allocation3 + $0x7c] sm:$0xf]  ;;  %v7179_v2 = vrot.slane %v7048_v49, 5 }
 0x4d3   : > { %7524 = vst.msk [vmem:[#allocation4 + $0xc] sm:$0xf] %vm7520_vm11, %v7431_v14  ;;  %v7986_v53 = vpop.permute.xlu0 %7985  ;;  %v8137_v14 = vld [vmem:[#allocation3 + $0x74] sm:$0x1] }
 0x4d4   : > { %8082 = vst.msk [vmem:[#allocation4] sm:$0xf] %vm8081_vm14, %v7986_v53  ;;  %7450 = vrot.lane.b32.xlu1 %v7373_v38, %s9959_s22  ;;  %v6487_v53 = vld [vmem:[#allocation3 + $0x74] sm:$0x1]  ;;  %v8264_v42 = vrot.slane %v8137_v14, 5  ;;  %v6719_v61 = vrot.slane %v6718_v48, 4  ;;  %v7180_v14 = vsel %vm10471_vm1, %v7178_v23, %v7179_v2 }
 0x4d5   : > { %7452 = vrot.lane.b32.xlu0 %v7374_v41, %s9959_s22  ;;  %v6741_v41 = vrot.slane %v6739_v20, 4  ;;  %v6721_v51 = vshll.u32 %v6487_v53, 16  ;;  %v7794_v20 = vshrl.u32 %v7577_v26, 16  ;;  %v7803_v53 = vshll.u32 %v7578_v39, 16 }
 0x4d6   : > { %v7988_v50 = vpop.permute.xlu1 %7987  ;;  %v8265_v43 = vsel %vm10471_vm1, %v8263_v40, %v8264_v42  ;;  %v7581_v40 = vld [vmem:[#allocation3 + $0x88] sm:$0xf]  ;;  %v7818_v48 = vshrl.u32 %v7580_v1, 16 }
 0x4d7   : > { %8083 = vst.msk [vmem:[#allocation4 + $0x4] sm:$0xf] %vm8081_vm14, %v7988_v50  ;;  %v7990_v31 = vpop.permute.xlu0 %7989  ;;  %v6732_v50 = vor.u32 %v6731_v4, %v6728_v19  ;;  %v6723_v6 = vrot.slane %v6721_v51, 5  ;;  %v7051_v19 = vld [vmem:[#allocation3 + $0x80] sm:$0x1]  ;;  %v7796_v42 = vrot.slane %v7794_v20, 4 }
 0x4d8   : > { %8084 = vst.msk [vmem:[#allocation4 + $0x8] sm:$0xf] %vm8081_vm14, %v7990_v31  ;;  %7454 = vrot.lane.b32.xlu1 %v7375_v60, %s9959_s22  ;;  %v9922_v31 = vld [vmem:[%s10069_s18 + $0x68] sm:$0xff]  ;;  %v7805_v52 = vrot.slane %v7803_v53, 5 }
 0x4d9   : > { %8009 = vrot.lane.b32.xlu0 %v7758_v29, %s9960_s16  ;;  %v521_v60 = vpack.c.bf16 %v9922_v31, %v9921_v55  ;;  %v6733_v5 = vrot.slane %v6732_v50, 4  ;;  %v6724_v11 = vsel %vm10113_vm13, %v6719_v61, %v6723_v6  ;;  %v7827_v55 = vshll.u32 %v7581_v40, 16 }
 0x4da   : > { %v7992_v3 = vpop.permute.xlu1 %7991  ;;  %v7831_v31 = vshrl.u32 %v7581_v40, 16 }
 0x4db   : > { %8085 = vst.msk [vmem:[#allocation4 + $0xc] sm:$0xf] %vm8081_vm14, %v7992_v3  ;;  %v8323_v7 = vpop.permute.xlu0 %8322  ;;  %v6742_v3 = vor.u32 %v6741_v41, %v6737_v59  ;;  %9817 = vmatprep.mubr.msk.bf16.mxu0 %vm8892_vm9, %v521_v60  ;;  %v6738_v17 = vsel %vm10113_vm13, %v6733_v5, %v6737_v59  ;;  %v7821_v59 = vshll.u32 %v7580_v1, 16  ;;  %v7829_v61 = vrot.slane %v7827_v55, 5 }
 0x4dc   : > { %8419 = vst.msk [vmem:[#allocation4] sm:$0xf] %vm8418_vm15, %v8323_v7  ;;  %8011 = vrot.lane.b32.xlu1 %v7768_v8, %s9960_s16  ;;  %v6745_v7 = vshll.u32 %v6490_v57, 16  ;;  %9818 = vmatmul.mubr.msk.bf16.gmra.mxu0 %vm8892_vm9, %v522_v56  ;;  %v7820_v56 = vrot.slane %v7818_v48, 4 }
 0x4dd   : > { %8013 = vrot.lane.b32.xlu0 %v7782_v45, %s9960_s16  ;;  %v6743_v35 = vrot.slane %v6742_v3, 4  ;;  %v7833_v3 = vrot.slane %v7831_v31, 4 }
 0x4de   : > { %v8325_v21 = vpop.permute.xlu1 %8324  ;;  %v6747_v46 = vrot.slane %v6745_v7, 5  ;;  %v7582_v7 = vld [vmem:[#allocation3 + $0x8c] sm:$0x1] }
 0x4df   : > { %8420 = vst.msk [vmem:[#allocation4 + $0x4] sm:$0xf] %vm8418_vm15, %v8325_v21  ;;  %v8327_v28 = vpop.permute.xlu0 %8326 }
 0x4e0   : > { %8421 = vst.msk [vmem:[#allocation4 + $0x8] sm:$0xf] %vm8418_vm15, %v8327_v28  ;;  %8015 = vrot.lane.b32.xlu1 %v7792_v10, %s9960_s16  ;;  %v9517_v10 = vrot.slane %v7046_v15, 9  ;;  %v6748_v28 = vsel %vm10113_vm13, %v6743_v35, %v6747_v46  ;;  %v7834_v35 = vor.u32 %v7833_v3, %v7829_v61  ;;  %v7837_v15 = vshll.u32 %v7582_v7, 16 }
 0x4e1   : > { %8346 = vrot.lane.b32.xlu0 %v8255_v30, %s9961_s25  ;;  %v7797_v30 = vshll.u32 %v7577_v26, 16  ;;  %v8139_v26 = vld [vmem:[#allocation3 + $0x7c] sm:$0xf] }
 0x4e2   : > { %v8329_v33 = vpop.permute.xlu1 %8328  ;;  %v7177_v22 = vsel %vm10471_vm1, %v9517_v10, %v7176_v9  ;;  %v6492_v10 = vld [vmem:[#allocation3 + $0x88] sm:$0xf]  ;;  %v7839_v2 = vrot.slane %v7837_v15, 5  ;;  %v8268_v20 = vrot.slane %v8139_v26, 5  ;;  %v9928_v26 = vld [vmem:[%s10069_s18 + $0x98] sm:$0xff] }
 0x4e3   : > { %8422 = vst.msk [vmem:[#allocation4 + $0xc] sm:$0xf] %vm8418_vm15, %v8329_v33  ;;  %v6902_v38 = vpop.permute.xlu0 %6901  ;;  %v9518_v33 = vrot.slane %v7049_v18, 9  ;;  %v7799_v44 = vrot.slane %v7797_v30, 5  ;;  %v6494_v18 = vld [vmem:[#allocation3 + $0x90] sm:$0xf] }
 0x4e4   : > { %6994 = vst.msk [vmem:[#allocation4 + $0x10] sm:$0xf] %vm6989_vm5, %v6902_v38  ;;  %8348 = vrot.lane.b32.xlu1 %v8258_v36, %s9961_s25  ;;  %v7185_v36 = vrot.slane %v7183_v24, 4  ;;  %v7807_v38 = vshrl.u32 %v7578_v39, 16  ;;  %v8140_v30 = vld [vmem:[#allocation3 + $0x80] sm:$0x1] }
 0x4e5   : > { %8350 = vrot.lane.b32.xlu0 %v8262_v62, %s9961_s25  ;;  %v7184_v41 = vsel %vm10471_vm1, %v9518_v33, %v7183_v24  ;;  %v7186_v62 = vrot.slane %v7051_v19, 5  ;;  %v7800_v57 = vor.u32 %v7799_v44, %v7796_v42  ;;  %v6759_v33 = vshll.u32 %v6492_v10, 16 }
 0x4e6   : > { %v6904_v29 = vpop.permute.xlu1 %6903  ;;  %v9891_v32 = vld [vmem:[#allocation4] sm:$0xff]   ;;  %v7809_v47 = vrot.slane %v7807_v38, 4  ;;  %v6774_v40 = vshrl.u32 %v6494_v18, 16  ;;  %v6777_v48 = vshll.u32 %v6494_v18, 16 }
 0x4e7   : > { %6995 = vst.msk [vmem:[#allocation4 + $0x14] sm:$0xf] %vm6989_vm5, %v6904_v29  ;;  %v6906_v58 = vpop.permute.xlu0 %6905  ;;  %9771 = vmatprep.mubr.msk.bf16.mxu1 %vm8599_vm8, %v9891_v32  ;;  %v7187_v51 = vsel %vm10471_vm1, %v7185_v36, %v7186_v62  ;;  %v7823_v29 = vrot.slane %v7821_v59, 5  ;;  %v7376_v32 = vld [vmem:[#allocation3 + $0x78] sm:$0xf]  ;;  %v6763_v36 = vshrl.u32 %v6492_v10, 16 }
 0x4e8   : > { %6996 = vst.msk [vmem:[#allocation4 + $0x18] sm:$0xf] %vm6989_vm5, %v6906_v58  ;;  %8352 = vrot.lane.b32.xlu1 %v8265_v43, %s9961_s25  ;;  %v7579_v43 = vld [vmem:[#allocation3 + $0x80] sm:$0x1]  ;;  %v7810_v5 = vor.u32 %v7809_v47, %v7805_v52  ;;  %v4717_v59 = vld [vmem:[#allocation3 + $0xcc] sm:$0x1] }
 0x4e9   : > { %6925 = vrot.lane.b32.xlu0 %v6714_v34, %s9957_s12  ;;  %v7377_v34 = vld [vmem:[#allocation3 + $0x7c] sm:$0xf]  ;;  %v7824_v6 = vor.u32 %v7823_v29, %v7820_v56  ;;  %v7813_v9 = vshll.u32 %v7579_v43, 16  ;;  %v4718_v62 = vsel %vm11085_vm10, 0, %v4717_v59  ;;  %v6765_v47 = vrot.slane %v6763_v36, 4 }
 0x4ea   : > { %v6908_v8 = vpop.permute.xlu1 %6907  ;;  %v9892_v45 = vld [vmem:[#allocation4 + $0x8] sm:$0xff]   ;;  %v7811_v46 = vrot.slane %v7810_v5, 4  ;;  %4719 = vst [vmem:[#allocation3 + $0xcc] sm:$0x1] %v4718_v62 }
 0x4eb   : > { %6997 = vst.msk [vmem:[#allocation4 + $0x1c] sm:$0xf] %vm6989_vm5, %v6908_v8  ;;  %v7239_v63 = vpop.permute.xlu0 %7238  ;;  %9772 = vmatmul.mubr.msk.bf16.vlgmr.msra.gmra.mxu1 %vm8599_vm8, %v9892_v45  ;;  %v7378_v8 = vld [vmem:[#allocation3 + $0x84] sm:$0xf]  ;;  %v7801_v45 = vrot.slane %v7800_v57, 4  ;;  %v7825_v49 = vrot.slane %v7824_v6, 4 }
 0x4ec   : > { %7331 = vst.msk [vmem:[#allocation4 + $0x10] sm:$0xf] %vm7326_vm2, %v7239_v63  ;;  %6927 = vrot.lane.b32.xlu1 %v6724_v11, %s9957_s12  ;;  %v6491_v63 = vld [vmem:[#allocation3 + $0x84] sm:$0xf]  ;;  %v6776_v57 = vrot.slane %v6774_v40, 4 }
 0x4ed   : > { %6929 = vrot.lane.b32.xlu0 %v6738_v17, %s9957_s12  ;;  %v7379_v17 = vld [vmem:[#allocation3 + $0x88] sm:$0xf]  ;;  %v6750_v23 = vshrl.u32 %v6491_v63, 16  ;;  %v6753_v24 = vshll.u32 %v6491_v63, 16 }
 0x4ee   : > { %v7241_v21 = vpop.permute.xlu1 %7240 }
 0x4ef   : > { %7332 = vst.msk [vmem:[#allocation4 + $0x14] sm:$0xf] %vm7326_vm2, %v7241_v21  ;;  %v7243_v25 = vpop.permute.xlu0 %7242  ;;  %v7806_v21 = vsel %vm10113_vm13, %v7801_v45, %v7805_v52  ;;  %v6752_v53 = vrot.slane %v6750_v23, 4  ;;  %v6755_v38 = vrot.slane %v6753_v24, 5  ;;  %v6761_v52 = vrot.slane %v6759_v33, 5 }
 0x4f0   : > { %7333 = vst.msk [vmem:[#allocation4 + $0x18] sm:$0xf] %vm7326_vm2, %v7243_v25  ;;  %6931 = vrot.lane.b32.xlu1 %v6748_v28, %s9957_s12  ;;  %v7815_v25 = vrot.slane %v7813_v9, 5  ;;  %v8138_v28 = vld [vmem:[#allocation3 + $0x78] sm:$0xe] }
 0x4f1   : > { %7262 = vrot.lane.b32.xlu0 %v7177_v22, %s9958_s20  ;;  %v7835_v22 = vrot.slane %v7834_v35, 4  ;;  %v6766_v7 = vor.u32 %v6765_v47, %v6761_v52  ;;  %v6496_v24 = vld [vmem:[#allocation3 + $0x98] sm:$0x1] }
 0x4f2   : > { %v7245_v4 = vpop.permute.xlu1 %7244  ;;  %v7816_v19 = vsel %vm10113_vm13, %v7811_v46, %v7815_v25 }
 0x4f3   : > { %7334 = vst.msk [vmem:[#allocation4 + $0x1c] sm:$0xf] %vm7326_vm2, %v7245_v4  ;;  %v7433_v27 = vpop.permute.xlu0 %7432  ;;  %v7830_v4 = vsel %vm10113_vm13, %v7825_v49, %v7829_v61  ;;  %v7840_v44 = vsel %vm10113_vm13, %v7835_v22, %v7839_v2  ;;  %v9927_v49 = vld [vmem:[%s10069_s18 + $0x90] sm:$0xff]  ;;  %v6767_v18 = vrot.slane %v6766_v7, 4 }
 0x4f4   : > { %7525 = vst.msk [vmem:[#allocation4 + $0x10] sm:$0xf] %vm7520_vm11, %v7433_v27  ;;  %7264 = vrot.lane.b32.xlu1 %v7180_v14, %s9958_s20  ;;  %v8142_v14 = vld [vmem:[#allocation3 + $0x88] sm:$0xf]  ;;  %v6495_v27 = vld [vmem:[#allocation3 + $0x94] sm:$0xf] }
 0x4f5   : > { %7266 = vrot.lane.b32.xlu0 %v7184_v41, %s9958_s20  ;;  %v9533_v41 = vrot.slane %v8138_v28, 9  ;;  %v8275_v55 = vrot.slane %v8142_v14, 5  ;;  %v6783_v56 = vshll.u32 %v6495_v27, 16  ;;  %v6787_v29 = vshrl.u32 %v6495_v27, 16 }
 0x4f6   : > { %v7435_v50 = vpop.permute.xlu1 %7434 }
 0x4f7   : > { %7526 = vst.msk [vmem:[#allocation4 + $0x14] sm:$0xf] %vm7520_vm11, %v7435_v50  ;;  %v7437_v60 = vpop.permute.xlu0 %7436  ;;  %v8270_v50 = vrot.slane %v8268_v20, 4  ;;  %v8269_v54 = vsel %vm10471_vm1, %v9533_v41, %v8268_v20  ;;  %v8277_v6 = vrot.slane %v8275_v55, 4  ;;  %v6789_v45 = vrot.slane %v6787_v29, 4 }
 0x4f8   : > { %7527 = vst.msk [vmem:[#allocation4 + $0x18] sm:$0xf] %vm7520_vm11, %v7437_v60  ;;  %7268 = vrot.lane.b32.xlu1 %v7187_v51, %s9958_s20  ;;  %v8271_v51 = vrot.slane %v8140_v30, 5  ;;  %v8141_v60 = vld [vmem:[#allocation3 + $0x84] sm:$0xe] }
 0x4f9   : > { %7456 = vrot.lane.b32.xlu0 %v7376_v32, %s9959_s22  ;;  %v6756_v32 = vor.u32 %v6755_v38, %v6752_v53  ;;  %v9534_v3 = vrot.slane %v8141_v60, 9  ;;  %v7053_v20 = vld [vmem:[#allocation3 + $0x88] sm:$0xf]  ;;  %v4772_v30 = vld [vmem:[#allocation3 + $0xd4] sm:$0x1] }
 0x4fa   : > { %v7439_v58 = vpop.permute.xlu1 %7438  ;;  %v8272_v61 = vsel %vm10471_vm1, %v8270_v50, %v8271_v51  ;;  %v7052_v38 = vld [vmem:[#allocation3 + $0x84] sm:$0xe]  ;;  %v7190_v40 = vrot.slane %v7053_v20, 5  ;;  %v7583_v41 = vld [vmem:[#allocation3 + $0x90] sm:$0xf] }
 0x4fb   : > { %7528 = vst.msk [vmem:[#allocation4 + $0x1c] sm:$0xf] %vm7520_vm11, %v7439_v58  ;;  %v7994_v0 = vpop.permute.xlu0 %7993  ;;  %v6779_v58 = vrot.slane %v6777_v48, 5  ;;  %v8276_v9 = vsel %vm10471_vm1, %v9534_v3, %v8275_v55  ;;  %v6757_v63 = vrot.slane %v6756_v32, 4  ;;  %v7056_v48 = vld [vmem:[#allocation3 + $0x94] sm:$0xf] }
 0x4fc   : > { %8086 = vst.msk [vmem:[#allocation4 + $0x10] sm:$0xf] %vm8081_vm14, %v7994_v0  ;;  %7458 = vrot.lane.b32.xlu1 %v7377_v34, %s9959_s22  ;;  %v8143_v0 = vld [vmem:[#allocation3 + $0x8c] sm:$0x1]  ;;  %v7055_v50 = vld [vmem:[#allocation3 + $0x90] sm:$0xe] }
 0x4fd   : > { %7460 = vrot.lane.b32.xlu0 %v7378_v8, %s9959_s22  ;;  %v6493_v34 = vld [vmem:[#allocation3 + $0x8c] sm:$0x1]  ;;  %v6785_v8 = vrot.slane %v6783_v56, 5  ;;  %v8278_v35 = vrot.slane %v8143_v0, 5  ;;  %v6762_v22 = vsel %vm10113_vm13, %v6757_v63, %v6761_v52  ;;  %v7197_v51 = vrot.slane %v7056_v48, 5 }
 0x4fe   : > { %v7996_v11 = vpop.permute.xlu1 %7995  ;;  %v6769_v15 = vshll.u32 %v6493_v34, 16  ;;  %v7192_v60 = vrot.slane %v7190_v40, 4  ;;  %v7057_v52 = vld [vmem:[#allocation3 + $0x98] sm:$0x1]  ;;  %v7584_v56 = vld [vmem:[#allocation3 + $0x94] sm:$0xf] }
 0x4ff   : > { %8087 = vst.msk [vmem:[#allocation4 + $0x14] sm:$0xf] %vm8081_vm14, %v7996_v11  ;;  %v7998_v16 = vpop.permute.xlu0 %7997  ;;  %v6780_v11 = vor.u32 %v6779_v58, %v6776_v57  ;;  %v8279_v28 = vsel %vm10471_vm1, %v8277_v6, %v8278_v35  ;;  %v7842_v29 = vshrl.u32 %v7583_v41, 16  ;;  %v9520_v57 = vrot.slane %v7055_v50, 9  ;;  %v7586_v58 = vld [vmem:[#allocation3 + $0x9c] sm:$0xf] }
 0x500   : > { %8088 = vst.msk [vmem:[#allocation4 + $0x18] sm:$0xf] %vm8081_vm14, %v7998_v16  ;;  %7462 = vrot.lane.b32.xlu1 %v7379_v17, %s9959_s22  ;;  %v9925_v16 = vld [vmem:[%s10069_s18 + $0x80] sm:$0xff]  ;;  %v9926_v17 = vld [vmem:[%s10069_s18 + $0x88] sm:$0xff]  ;;  %v7200_v3 = vrot.slane %v7057_v52, 5  ;;  %v7851_v6 = vshll.u32 %v7584_v56, 16 }
 0x501   : > { %8017 = vrot.lane.b32.xlu0 %v7806_v21, %s9960_s16  ;;  %v523_v46 = vpack.c.bf16 %v9926_v17, %v9925_v16  ;;  %v524_v21 = vpack.c.bf16 %v9928_v26, %v9927_v49  ;;  %v6781_v2 = vrot.slane %v6780_v11, 4  ;;  %v7855_v7 = vshrl.u32 %v7584_v56, 16 }
 0x502   : > { %v8000_v39 = vpop.permute.xlu1 %7999  ;;  %v7866_v63 = vshrl.u32 %v7586_v58, 16  ;;  %v7869_v11 = vshll.u32 %v7586_v58, 16  ;;  %v7853_v17 = vrot.slane %v7851_v6, 5 }
 0x503   : > { %8089 = vst.msk [vmem:[#allocation4 + $0x1c] sm:$0xf] %vm8081_vm14, %v8000_v39  ;;  %v8331_v1 = vpop.permute.xlu0 %8330  ;;  %v6790_v39 = vor.u32 %v6789_v45, %v6785_v8  ;;  %9821 = vmatprep.mubr.msk.bf16.mxu0 %vm8892_vm9, %v523_v46  ;;  %v6786_v12 = vsel %vm10113_vm13, %v6781_v2, %v6785_v8  ;;  %v7844_v8 = vrot.slane %v7842_v29, 4  ;;  %v7857_v46 = vrot.slane %v7855_v7, 4 }
 0x504   : > { %8423 = vst.msk [vmem:[#allocation4 + $0x10] sm:$0xf] %vm8418_vm15, %v8331_v1  ;;  %8019 = vrot.lane.b32.xlu1 %v7816_v19, %s9960_s16  ;;  %v6771_v1 = vrot.slane %v6769_v15, 5  ;;  %v6793_v19 = vshll.u32 %v6496_v24, 16  ;;  %9822 = vmatmul.mubr.msk.bf16.gmra.mxu0 %vm8892_vm9, %v524_v21  ;;  %v7380_v21 = vld [vmem:[#allocation3 + $0x90] sm:$0xf] }
 0x505   : > { %8021 = vrot.lane.b32.xlu0 %v7830_v4, %s9960_s16  ;;  %v4773_v4 = vsel %vm11483_vm0, 0, %v4772_v30  ;;  %v6791_v53 = vrot.slane %v6790_v39, 4  ;;  %v7871_v24 = vrot.slane %v7869_v11, 5  ;;  %v7381_v39 = vld [vmem:[#allocation3 + $0x94] sm:$0xf] }
 0x506   : > { %v8333_v42 = vpop.permute.xlu1 %8332  ;;  %4774 = vst [vmem:[#allocation3 + $0xd4] sm:$0x1] %v4773_v4  ;;  %v6772_v27 = vsel %vm10113_vm13, %v6767_v18, %v6771_v1  ;;  %v6795_v59 = vrot.slane %v6793_v19, 5  ;;  %v7382_v30 = vld [vmem:[#allocation3 + $0x9c] sm:$0xf] }
 0x507   : > { %8424 = vst.msk [vmem:[#allocation4 + $0x14] sm:$0xf] %vm8418_vm15, %v8333_v42  ;;  %v8335_v31 = vpop.permute.xlu0 %8334  ;;  %v9519_v42 = vrot.slane %v7052_v38, 9 }
 0x508   : > { %8425 = vst.msk [vmem:[#allocation4 + $0x18] sm:$0xf] %vm8418_vm15, %v8335_v31  ;;  %8023 = vrot.lane.b32.xlu1 %v7840_v44, %s9960_s16  ;;  %v7054_v44 = vld [vmem:[#allocation3 + $0x8c] sm:$0x1]  ;;  %v6796_v31 = vsel %vm10113_vm13, %v6791_v53, %v6795_v59 }
 0x509   : > { %8354 = vrot.lane.b32.xlu0 %v8269_v54, %s9961_s25  ;;  %v7191_v47 = vsel %vm10471_vm1, %v9519_v42, %v7190_v40  ;;  %v7845_v54 = vshll.u32 %v7583_v41, 16  ;;  %v7193_v32 = vrot.slane %v7054_v44, 5 }
 0x50a   : > { %v8337_v43 = vpop.permute.xlu1 %8336 }
 0x50b   : > { %8426 = vst.msk [vmem:[#allocation4 + $0x1c] sm:$0xf] %vm8418_vm15, %v8337_v43  ;;  %v6910_v5 = vpop.permute.xlu0 %6909  ;;  %v7194_v34 = vsel %vm10471_vm1, %v7192_v60, %v7193_v32  ;;  %v7847_v45 = vrot.slane %v7845_v54, 5  ;;  %v8148_v60 = vld [vmem:[#allocation3 + $0xa0] sm:$0xf] }
 0x50c   : > { %6998 = vst.msk [vmem:[#allocation4 + $0x20] sm:$0xf] %vm6989_vm5, %v6910_v5  ;;  %8356 = vrot.lane.b32.xlu1 %v8272_v61, %s9961_s25  ;;  %v7199_v61 = vrot.slane %v7197_v51, 4  ;;  %v7198_v5 = vsel %vm10471_vm1, %v9520_v57, %v7197_v51  ;;  %v8144_v51 = vld [vmem:[#allocation3 + $0x90] sm:$0xe] }
 0x50d   : > { %8358 = vrot.lane.b32.xlu0 %v8276_v9, %s9961_s25  ;;  %v7587_v9 = vld [vmem:[#allocation3 + $0xa0] sm:$0xf]  ;;  %v9535_v29 = vrot.slane %v8144_v51, 9  ;;  %v8146_v54 = vld [vmem:[#allocation3 + $0x98] sm:$0x1] }
 0x50e   : > { %v6912_v10 = vpop.permute.xlu1 %6911  ;;  %v9893_v23 = vld [vmem:[#allocation4 + $0x10] sm:$0xff]   ;;  %v7201_v15 = vsel %vm10471_vm1, %v7199_v61, %v7200_v3  ;;  %v7875_v49 = vshll.u32 %v7587_v9, 16  ;;  %v7879_v26 = vshrl.u32 %v7587_v9, 16  ;;  %v8147_v32 = vld [vmem:[#allocation3 + $0x9c] sm:$0xe]  ;;  %v8289_v61 = vrot.slane %v8148_v60, 5 }
 0x50f   : > { %6999 = vst.msk [vmem:[#allocation4 + $0x24] sm:$0xf] %vm6989_vm5, %v6912_v10  ;;  %v6914_v25 = vpop.permute.xlu0 %6913  ;;  %9775 = vmatprep.mubr.msk.bf16.mxu1 %vm8599_vm8, %v9893_v23  ;;  %v7848_v10 = vor.u32 %v7847_v45, %v7844_v8  ;;  %v7868_v23 = vrot.slane %v7866_v63, 4  ;;  %v6498_v3 = vld [vmem:[#allocation3 + $0xa0] sm:$0xf]  ;;  %v8285_v6 = vrot.slane %v8146_v54, 5 }
 0x510   : > { %7000 = vst.msk [vmem:[#allocation4 + $0x28] sm:$0xf] %vm6989_vm5, %v6914_v25  ;;  %8360 = vrot.lane.b32.xlu1 %v8279_v28, %s9961_s25  ;;  %v7585_v28 = vld [vmem:[#allocation3 + $0x98] sm:$0x1]  ;;  %v7877_v2 = vrot.slane %v7875_v49, 5  ;;  %v7881_v20 = vrot.slane %v7879_v26, 4 }
 0x511   : > { %6933 = vrot.lane.b32.xlu0 %v6762_v22, %s9957_s12  ;;  %v7858_v22 = vor.u32 %v7857_v46, %v7853_v17  ;;  %v7849_v1 = vrot.slane %v7848_v10, 4  ;;  %v7872_v19 = vor.u32 %v7871_v24, %v7868_v23  ;;  %v7861_v4 = vshll.u32 %v7585_v28, 16  ;;  %v6500_v8 = vld [vmem:[#allocation3 + $0xa8] sm:$0xf]  ;;  %v8149_v9 = vld [vmem:[#allocation3 + $0xa4] sm:$0x1] }
 0x512   : > { %v6916_v14 = vpop.permute.xlu1 %6915  ;;  %v9894_v33 = vld [vmem:[#allocation4 + $0x18] sm:$0xff]   ;;  %v7882_v38 = vor.u32 %v7881_v20, %v7877_v2  ;;  %v9536_v7 = vrot.slane %v8147_v32, 9  ;;  %v6807_v63 = vshll.u32 %v6498_v3, 16  ;;  %v6811_v11 = vshrl.u32 %v6498_v3, 16  ;;  %v6501_v26 = vld [vmem:[#allocation3 + $0xac] sm:$0xf] }
 0x513   : > { %7001 = vst.msk [vmem:[#allocation4 + $0x2c] sm:$0xf] %vm6989_vm5, %v6916_v14  ;;  %v7247_v36 = vpop.permute.xlu0 %7246  ;;  %9776 = vmatmul.mubr.msk.bf16.gmra.mxu1 %vm8599_vm8, %v9894_v33  ;;  %v7588_v33 = vld [vmem:[#allocation3 + $0xa4] sm:$0x1]  ;;  %v7859_v53 = vrot.slane %v7858_v22, 4  ;;  %v7854_v40 = vsel %vm10113_vm13, %v7849_v1, %v7853_v17  ;;  %v7873_v48 = vrot.slane %v7872_v19, 4 }
 0x514   : > { %7335 = vst.msk [vmem:[#allocation4 + $0x20] sm:$0xf] %vm7326_vm2, %v7247_v36  ;;  %6935 = vrot.lane.b32.xlu1 %v6772_v27, %s9957_s12  ;;  %v7383_v27 = vld [vmem:[#allocation3 + $0xa0] sm:$0xf]  ;;  %v7863_v59 = vrot.slane %v7861_v4, 5  ;;  %v7885_v41 = vshll.u32 %v7588_v33, 16 }
 0x515   : > { %6937 = vrot.lane.b32.xlu0 %v6786_v12, %s9957_s12  ;;  %v8145_v12 = vld [vmem:[#allocation3 + $0x94] sm:$0xf]  ;;  %v7883_v50 = vrot.slane %v7882_v38, 4  ;;  %v8291_v17 = vrot.slane %v8289_v61, 4  ;;  %v6825_v10 = vshll.u32 %v6500_v8, 16  ;;  %v8292_v23 = vrot.slane %v8149_v9, 5 }
 0x516   : > { %v7249_v62 = vpop.permute.xlu1 %7248  ;;  %v7864_v44 = vsel %vm10113_vm13, %v7859_v53, %v7863_v59  ;;  %v7887_v52 = vrot.slane %v7885_v41, 5  ;;  %v6809_v28 = vrot.slane %v6807_v63, 5  ;;  %v6835_v20 = vshrl.u32 %v6501_v26, 16  ;;  %v6293_v38 = vld [vmem:[#allocation3 + $0xa0] sm:$0xf]  ;;  %v9930_v59 = vld [vmem:[%s10069_s18 + $0xa8] sm:$0xff] }
 0x517   : > { %7336 = vst.msk [vmem:[#allocation4 + $0x24] sm:$0xf] %vm7326_vm2, %v7249_v62  ;;  %v7251_v55 = vpop.permute.xlu0 %7250  ;;  %v8293_v22 = vsel %vm10471_vm1, %v8291_v17, %v8292_v23  ;;  %v6827_v4 = vrot.slane %v6825_v10, 5  ;;  %v7589_v63 = vld [vmem:[#allocation3 + $0xa8] sm:$0xf] }
 0x518   : > { %7337 = vst.msk [vmem:[#allocation4 + $0x28] sm:$0xf] %vm7326_vm2, %v7251_v55  ;;  %6939 = vrot.lane.b32.xlu1 %v6796_v31, %s9957_s12  ;;  %v8282_v55 = vrot.slane %v8145_v12, 5  ;;  %v7878_v31 = vsel %vm10113_vm13, %v7873_v48, %v7877_v2  ;;  %v7888_v58 = vsel %vm10113_vm13, %v7883_v50, %v7887_v52  ;;  %v6831_v2 = vshll.u32 %v6501_v26, 16  ;;  %v9929_v12 = vld [vmem:[%s10069_s18 + $0xa0] sm:$0xff] }
 0x519   : > { %7270 = vrot.lane.b32.xlu0 %v7191_v47, %s9958_s20  ;;  %v6497_v47 = vld [vmem:[#allocation3 + $0x9c] sm:$0xf]  ;;  %v6837_v48 = vrot.slane %v6835_v20, 4  ;;  %v525_v41 = vpack.c.bf16 %v9930_v59, %v9929_v12  ;;  %v6294_v50 = vld [vmem:[#allocation3 + $0xa8] sm:$0xf]  ;;  %v7890_v23 = vshrl.u32 %v7589_v63, 16 }
 0x51a   : > { %v7253_v43 = vpop.permute.xlu1 %7252  ;;  %v6502_v52 = vld [vmem:[#allocation3 + $0xb0] sm:$0x1] }
 0x51b   : > { %7338 = vst.msk [vmem:[#allocation4 + $0x2c] sm:$0xf] %vm7326_vm2, %v7253_v43  ;;  %v7441_v0 = vpop.permute.xlu0 %7440  ;;  %v8284_v43 = vrot.slane %v8282_v55, 4  ;;  %9825 = vmatprep.mubr.msk.bf16.mxu0 %vm8892_vm9, %v525_v41 }
 0x51c   : > { %7529 = vst.msk [vmem:[#allocation4 + $0x20] sm:$0xf] %vm7520_vm11, %v7441_v0  ;;  %7272 = vrot.lane.b32.xlu1 %v7194_v34, %s9958_s20  ;;  %v8283_v0 = vsel %vm10471_vm1, %v9535_v29, %v8282_v55  ;;  %v6798_v34 = vshrl.u32 %v6497_v47, 16 }
 0x51d   : > { %7274 = vrot.lane.b32.xlu0 %v7198_v5, %s9958_s20  ;;  %v6801_v5 = vshll.u32 %v6497_v47, 16 }
 0x51e   : > { %v7443_v35 = vpop.permute.xlu1 %7442  ;;  %v6800_v46 = vrot.slane %v6798_v34, 4 }
 0x51f   : > { %7530 = vst.msk [vmem:[#allocation4 + $0x24] sm:$0xf] %vm7520_vm11, %v7443_v35  ;;  %v7445_v16 = vpop.permute.xlu0 %7444  ;;  %v6803_v49 = vrot.slane %v6801_v5, 5 }
 0x520   : > { %7531 = vst.msk [vmem:[#allocation4 + $0x28] sm:$0xf] %vm7520_vm11, %v7445_v16  ;;  %7276 = vrot.lane.b32.xlu1 %v7201_v15, %s9958_s20  ;;  %v8286_v15 = vsel %vm10471_vm1, %v8284_v43, %v8285_v6  ;;  %v8290_v16 = vsel %vm10471_vm1, %v9536_v7, %v8289_v61  ;;  %v6841_v61 = vshll.u32 %v6502_v52, 16  ;;  %v7058_v6 = vld [vmem:[#allocation3 + $0x9c] sm:$0xe] }
 0x521   : > { %7464 = vrot.lane.b32.xlu0 %v7380_v21, %s9959_s22  ;;  %v6822_v21 = vshrl.u32 %v6500_v8, 16  ;;  %v6804_v1 = vor.u32 %v6803_v49, %v6800_v46 }
 0x522   : > { %v7447_v25 = vpop.permute.xlu1 %7446  ;;  %v6843_v9 = vrot.slane %v6841_v61, 5 }
 0x523   : > { %7532 = vst.msk [vmem:[#allocation4 + $0x2c] sm:$0xf] %vm7520_vm11, %v7447_v25  ;;  %v8002_v18 = vpop.permute.xlu0 %8001  ;;  %v6824_v19 = vrot.slane %v6822_v21, 4  ;;  %v6805_v51 = vrot.slane %v6804_v1, 4  ;;  %v7590_v21 = vld [vmem:[#allocation3 + $0xac] sm:$0xf] }
 0x524   : > { %8090 = vst.msk [vmem:[#allocation4 + $0x20] sm:$0xf] %vm8081_vm14, %v8002_v18  ;;  %7466 = vrot.lane.b32.xlu1 %v7381_v39, %s9959_s22  ;;  %v6813_v18 = vrot.slane %v6811_v11, 4 }
 0x525   : > { %7468 = vrot.lane.b32.xlu0 %v7382_v30, %s9959_s22  ;;  %v6292_v30 = vld [vmem:[#allocation3 + $0x9c] sm:$0xf]  ;;  %v6828_v55 = vor.u32 %v6827_v4, %v6824_v19  ;;  %v6810_v32 = vsel %vm10113_vm13, %v6805_v51, %v6809_v28  ;;  %v7903_v4 = vshrl.u32 %v7590_v21, 16 }
 0x526   : > { %v8004_v14 = vpop.permute.xlu1 %8003 }
 0x527   : > { %8091 = vst.msk [vmem:[#allocation4 + $0x24] sm:$0xf] %vm8081_vm14, %v8004_v14  ;;  %v8006_v36 = vpop.permute.xlu0 %8005  ;;  %v7905_v41 = vrot.slane %v7903_v4, 4 }
 0x528   : > { %8092 = vst.msk [vmem:[#allocation4 + $0x28] sm:$0xf] %vm8081_vm14, %v8006_v36  ;;  %7470 = vrot.lane.b32.xlu1 %v7383_v27, %s9959_s22  ;;  %v6499_v36 = vld [vmem:[#allocation3 + $0xa4] sm:$0x1]  ;;  %v6814_v27 = vor.u32 %v6813_v18, %v6809_v28  ;;  %v7592_v18 = vld [vmem:[#allocation3 + $0xb4] sm:$0xf] }
 0x529   : > { %8025 = vrot.lane.b32.xlu0 %v7854_v40, %s9960_s16  ;;  %v6833_v40 = vrot.slane %v6831_v2, 5  ;;  %v7899_v2 = vshll.u32 %v7590_v21, 16  ;;  %v6503_v21 = vld [vmem:[#allocation3 + $0xb4] sm:$0xf] }
 0x52a   : > { %v8008_v62 = vpop.permute.xlu1 %8007  ;;  %v6815_v29 = vrot.slane %v6814_v27, 4  ;;  %v7914_v27 = vshrl.u32 %v7592_v18, 16 }
 0x52b   : > { %8093 = vst.msk [vmem:[#allocation4 + $0x2c] sm:$0xf] %vm8081_vm14, %v8008_v62  ;;  %v8339_v42 = vpop.permute.xlu0 %8338  ;;  %v9931_v62 = vld [vmem:[%s10069_s18 + $0xb0] sm:$0xff]  ;;  %v6838_v54 = vor.u32 %v6837_v48, %v6833_v40  ;;  %v7901_v48 = vrot.slane %v7899_v2, 5 }
 0x52c   : > { %8427 = vst.msk [vmem:[#allocation4 + $0x20] sm:$0xf] %vm8418_vm15, %v8339_v42  ;;  %8027 = vrot.lane.b32.xlu1 %v7864_v44, %s9960_s16  ;;  %v9932_v42 = vld [vmem:[%s10069_s18 + $0xb8] sm:$0xff]  ;;  %v7916_v51 = vrot.slane %v7914_v27, 4 }
 0x52d   : > { %8029 = vrot.lane.b32.xlu0 %v7878_v31, %s9960_s16  ;;  %v526_v44 = vpack.c.bf16 %v9932_v42, %v9931_v62  ;;  %v6817_v31 = vshll.u32 %v6499_v36, 16  ;;  %v6839_v5 = vrot.slane %v6838_v54, 4  ;;  %v7593_v36 = vld [vmem:[#allocation3 + $0xb8] sm:$0xf] }
 0x52e   : > { %v8341_v56 = vpop.permute.xlu1 %8340  ;;  %v7923_v62 = vshll.u32 %v7593_v36, 16  ;;  %v7927_v42 = vshrl.u32 %v7593_v36, 16  ;;  %v6506_v36 = vld [vmem:[#allocation3 + $0xc0] sm:$0xf] }
 0x52f   : > { %8428 = vst.msk [vmem:[#allocation4 + $0x24] sm:$0xf] %vm8418_vm15, %v8341_v56  ;;  %v8343_v57 = vpop.permute.xlu0 %8342  ;;  %9826 = vmatmul.mubr.msk.bf16.gmra.mxu0 %vm8892_vm9, %v526_v44  ;;  %v6295_v56 = vld [vmem:[#allocation3 + $0xac] sm:$0xf]  ;;  %v6819_v43 = vrot.slane %v6817_v31, 5  ;;  %v6844_v46 = vsel %vm10113_vm13, %v6839_v5, %v6843_v9 }
 0x530   : > { %8429 = vst.msk [vmem:[#allocation4 + $0x28] sm:$0xf] %vm8418_vm15, %v8343_v57  ;;  %8031 = vrot.lane.b32.xlu1 %v7888_v58, %s9960_s16  ;;  %v6829_v57 = vrot.slane %v6828_v55, 4  ;;  %v7059_v58 = vld [vmem:[#allocation3 + $0xa0] sm:$0xf]  ;;  %v7929_v54 = vrot.slane %v7927_v42, 4 }
 0x531   : > { %8362 = vrot.lane.b32.xlu0 %v8283_v0, %s9961_s25  ;;  %v6820_v34 = vsel %vm10113_vm13, %v6815_v29, %v6819_v43  ;;  %v7204_v7 = vrot.slane %v7059_v58, 5  ;;  %v7384_v44 = vld [vmem:[#allocation3 + $0xa8] sm:$0xf]  ;;  %v7925_v29 = vrot.slane %v7923_v62, 5 }
 0x532   : > { %v8345_v45 = vpop.permute.xlu1 %8344  ;;  %v6834_v8 = vsel %vm10113_vm13, %v6829_v57, %v6833_v40 }
 0x533   : > { %8430 = vst.msk [vmem:[#allocation4 + $0x2c] sm:$0xf] %vm8418_vm15, %v8345_v45  ;;  %v6918_v35 = vpop.permute.xlu0 %6917  ;;  %v7062_v45 = vld [vmem:[#allocation3 + $0xac] sm:$0xf]  ;;  %v7206_v49 = vrot.slane %v7204_v7, 4 }
 0x534   : > { %7002 = vst.msk [vmem:[#allocation4 + $0x30] sm:$0xf] %vm6989_vm5, %v6918_v35  ;;  %8364 = vrot.lane.b32.xlu1 %v8286_v15, %s9961_s25  ;;  %v9521_v35 = vrot.slane %v7058_v6, 9  ;;  %v7060_v15 = vld [vmem:[#allocation3 + $0xa4] sm:$0x1]  ;;  %v7211_v26 = vrot.slane %v7062_v45, 5  ;;  %v7930_v6 = vor.u32 %v7929_v54, %v7925_v29 }
 0x535   : > { %8366 = vrot.lane.b32.xlu0 %v8290_v16, %s9961_s25  ;;  %v7061_v16 = vld [vmem:[#allocation3 + $0xa8] sm:$0xe] }
 0x536   : > { %v6920_v24 = vpop.permute.xlu1 %6919  ;;  %v9895_v25 = vld [vmem:[#allocation4 + $0x20] sm:$0xff]   ;;  %v7205_v10 = vsel %vm10471_vm1, %v9521_v35, %v7204_v7  ;;  %v9522_v28 = vrot.slane %v7061_v16, 9  ;;  %v7213_v19 = vrot.slane %v7211_v26, 4  ;;  %v8151_v7 = vld [vmem:[#allocation3 + $0xac] sm:$0xf] }
 0x537   : > { %7003 = vst.msk [vmem:[#allocation4 + $0x34] sm:$0xf] %vm6989_vm5, %v6920_v24  ;;  %v6922_v39 = vpop.permute.xlu0 %6921  ;;  %9779 = vmatprep.mubr.msk.bf16.mxu1 %vm8599_vm8, %v9895_v25  ;;  %v7893_v24 = vshll.u32 %v7589_v63, 16  ;;  %v7207_v25 = vrot.slane %v7060_v15, 5  ;;  %v8150_v35 = vld [vmem:[#allocation3 + $0xa8] sm:$0xe] }
 0x538   : > { %7004 = vst.msk [vmem:[#allocation4 + $0x38] sm:$0xf] %vm6989_vm5, %v6922_v39  ;;  %8368 = vrot.lane.b32.xlu1 %v8293_v22, %s9961_s25  ;;  %v7063_v22 = vld [vmem:[#allocation3 + $0xb0] sm:$0x1]  ;;  %v7212_v1 = vsel %vm10471_vm1, %v9522_v28, %v7211_v26  ;;  %v8296_v15 = vrot.slane %v8151_v7, 5  ;;  %v9537_v28 = vrot.slane %v8150_v35, 9 }
 0x539   : > { %6380 = vrot.lane.b32.xlu0 %v6292_v30, %s9955_s24  ;;  %v7208_v30 = vsel %vm10471_vm1, %v7206_v49, %v7207_v25  ;;  %v8154_v49 = vld [vmem:[#allocation3 + $0xb8] sm:$0xf] }
 0x53a   : > { %v6924_v14 = vpop.permute.xlu1 %6923  ;;  %v9896_v33 = vld [vmem:[#allocation4 + $0x28] sm:$0xff]   ;;  %v8297_v4 = vsel %vm10471_vm1, %v9537_v28, %v8296_v15 }
 0x53b   : > { %7005 = vst.msk [vmem:[#allocation4 + $0x3c] sm:$0xf] %vm6989_vm5, %v6924_v14  ;;  %v7255_v53 = vpop.permute.xlu0 %7254  ;;  %9780 = vmatmul.mubr.msk.bf16.gmra.mxu1 %vm8599_vm8, %v9896_v33  ;;  %v7892_v14 = vrot.slane %v7890_v23, 4  ;;  %v7895_v33 = vrot.slane %v7893_v24, 5  ;;  %v8152_v23 = vld [vmem:[#allocation3 + $0xb0] sm:$0x1] }
 0x53c   : > { %7339 = vst.msk [vmem:[#allocation4 + $0x30] sm:$0xf] %vm7326_vm2, %v7255_v53  ;;  %6382 = vrot.lane.b32.xlu1 %v6293_v38, %s9955_s24  ;;  %v7917_v53 = vshll.u32 %v7592_v18, 16  ;;  %v7214_v38 = vrot.slane %v7063_v22, 5  ;;  %v8153_v24 = vld [vmem:[#allocation3 + $0xb4] sm:$0xe] }
 0x53d   : > { %6384 = vrot.lane.b32.xlu0 %v6294_v50, %s9955_s24  ;;  %v7896_v50 = vor.u32 %v7895_v33, %v7892_v14  ;;  %v8303_v22 = vrot.slane %v8154_v49, 5  ;;  %v8299_v14 = vrot.slane %v8152_v23, 5  ;;  %v9538_v33 = vrot.slane %v8153_v24, 9  ;;  %v6299_v23 = vld [vmem:[#allocation3 + $0xc4] sm:$0xf] }
 0x53e   : > { %v7257_v60 = vpop.permute.xlu1 %7256  ;;  %v7215_v59 = vsel %vm10471_vm1, %v7213_v19, %v7214_v38  ;;  %v7919_v55 = vrot.slane %v7917_v53, 5  ;;  %v6849_v19 = vshll.u32 %v6503_v21, 16 }
 0x53f   : > { %7340 = vst.msk [vmem:[#allocation4 + $0x34] sm:$0xf] %vm7326_vm2, %v7257_v60  ;;  %v7259_v47 = vpop.permute.xlu0 %7258  ;;  %v7591_v60 = vld [vmem:[#allocation3 + $0xb0] sm:$0x1]  ;;  %v7897_v57 = vrot.slane %v7896_v50, 4  ;;  %v8304_v38 = vsel %vm10471_vm1, %v9538_v33, %v8303_v22 }
 0x540   : > { %7341 = vst.msk [vmem:[#allocation4 + $0x38] sm:$0xf] %vm7326_vm2, %v7259_v47  ;;  %6386 = vrot.lane.b32.xlu1 %v6295_v56, %s9955_s24  ;;  %v7385_v47 = vld [vmem:[#allocation3 + $0xac] sm:$0xf]  ;;  %v7906_v56 = vor.u32 %v7905_v41, %v7901_v48  ;;  %v7920_v58 = vor.u32 %v7919_v55, %v7916_v51  ;;  %v7909_v43 = vshll.u32 %v7591_v60, 16  ;;  %v8305_v41 = vrot.slane %v8303_v22, 4 }
 0x541   : > { %6941 = vrot.lane.b32.xlu0 %v6810_v32, %s9957_s12  ;;  %v7386_v32 = vld [vmem:[#allocation3 + $0xb4] sm:$0xf]  ;;  %v6851_v42 = vrot.slane %v6849_v19, 5  ;;  %v6507_v50 = vld [vmem:[#allocation3 + $0xc4] sm:$0xf]  ;;  %v6870_v51 = vshrl.u32 %v6506_v36, 16 }
 0x542   : > { %v7261_v3 = vpop.permute.xlu1 %7260  ;;  %v7907_v5 = vrot.slane %v7906_v56, 4  ;;  %v7921_v45 = vrot.slane %v7920_v58, 4  ;;  %v7911_v9 = vrot.slane %v7909_v43, 5  ;;  %v6873_v55 = vshll.u32 %v6506_v36, 16  ;;  %v9934_v60 = vld [vmem:[%s10069_s18 + $0xc8] sm:$0xff]  ;;  %v9936_v56 = vld [vmem:[%s10069_s18 + $0xd8] sm:$0xff] }
 0x543   : > { %7342 = vst.msk [vmem:[#allocation4 + $0x3c] sm:$0xf] %vm7326_vm2, %v7261_v3  ;;  %v7449_v0 = vpop.permute.xlu0 %7448  ;;  %v7594_v3 = vld [vmem:[#allocation3 + $0xbc] sm:$0x1]  ;;  %v7068_v36 = vld [vmem:[#allocation3 + $0xc4] sm:$0xf] }
 0x544   : > { %7533 = vst.msk [vmem:[#allocation4 + $0x30] sm:$0xf] %vm7520_vm11, %v7449_v0  ;;  %6943 = vrot.lane.b32.xlu1 %v6820_v34, %s9957_s12  ;;  %v7387_v34 = vld [vmem:[#allocation3 + $0xb8] sm:$0xf]  ;;  %v7933_v63 = vshll.u32 %v7594_v3, 16  ;;  %v7926_v26 = vsel %vm10113_vm13, %v7921_v45, %v7925_v29  ;;  %v6879_v3 = vshll.u32 %v6507_v50, 16 }
 0x545   : > { %6945 = vrot.lane.b32.xlu0 %v6834_v8, %s9957_s12  ;;  %v7902_v8 = vsel %vm10113_vm13, %v7897_v57, %v7901_v48  ;;  %v8155_v48 = vld [vmem:[#allocation3 + $0xbc] sm:$0x1]  ;;  %v6875_v7 = vrot.slane %v6873_v55, 5 }
 0x546   : > { %v7451_v11 = vpop.permute.xlu1 %7450  ;;  %v8306_v54 = vrot.slane %v8155_v48, 5  ;;  %v6505_v45 = vld [vmem:[#allocation3 + $0xbc] sm:$0x1]  ;;  %v6881_v35 = vrot.slane %v6879_v3, 5 }
 0x547   : > { %7534 = vst.msk [vmem:[#allocation4 + $0x34] sm:$0xf] %vm7520_vm11, %v7451_v11  ;;  %v7453_v17 = vpop.permute.xlu0 %7452  ;;  %v6865_v49 = vshll.u32 %v6505_v45, 16  ;;  %v7066_v48 = vld [vmem:[#allocation3 + $0xbc] sm:$0x1] }
 0x548   : > { %7535 = vst.msk [vmem:[#allocation4 + $0x38] sm:$0xf] %vm7520_vm11, %v7453_v17  ;;  %6947 = vrot.lane.b32.xlu1 %v6844_v46, %s9957_s12  ;;  %v7912_v17 = vsel %vm10113_vm13, %v7907_v5, %v7911_v9  ;;  %v7931_v46 = vrot.slane %v7930_v6, 4  ;;  %v8307_v43 = vsel %vm10471_vm1, %v8305_v41, %v8306_v54  ;;  %v6872_v6 = vrot.slane %v6870_v51, 4  ;;  %v7596_v51 = vld [vmem:[#allocation3 + $0xc4] sm:$0xf] }
 0x549   : > { %7278 = vrot.lane.b32.xlu0 %v7205_v10, %s9958_s20  ;;  %v7935_v10 = vrot.slane %v7933_v63, 5  ;;  %v6297_v63 = vld [vmem:[#allocation3 + $0xb8] sm:$0xf]  ;;  %v6867_v22 = vrot.slane %v6865_v49, 5  ;;  %v7951_v3 = vshrl.u32 %v7596_v51, 16 }
 0x54a   : > { %v7455_v39 = vpop.permute.xlu1 %7454 }
 0x54b   : > { %7536 = vst.msk [vmem:[#allocation4 + $0x3c] sm:$0xf] %vm7520_vm11, %v7455_v39  ;;  %v8010_v20 = vpop.permute.xlu0 %8009  ;;  %v8298_v39 = vrot.slane %v8296_v15, 4 }
 0x54c   : > { %8094 = vst.msk [vmem:[#allocation4 + $0x30] sm:$0xf] %vm8081_vm14, %v8010_v20  ;;  %7280 = vrot.lane.b32.xlu1 %v7208_v30, %s9958_s20  ;;  %v7936_v20 = vsel %vm10113_vm13, %v7931_v46, %v7935_v10  ;;  %v6504_v30 = vld [vmem:[#allocation3 + $0xb8] sm:$0xf]  ;;  %v6876_v46 = vor.u32 %v6875_v7, %v6872_v6 }
 0x54d   : > { %7282 = vrot.lane.b32.xlu0 %v7212_v1, %s9958_s20  ;;  %v6846_v1 = vshrl.u32 %v6503_v21, 16  ;;  %v8300_v53 = vsel %vm10471_vm1, %v8298_v39, %v8299_v14  ;;  %v6508_v21 = vld [vmem:[#allocation3 + $0xc8] sm:$0x1]  ;;  %v7065_v39 = vld [vmem:[#allocation3 + $0xb8] sm:$0xf] }
 0x54e   : > { %v8012_v40 = vpop.permute.xlu1 %8011  ;;  %v7218_v14 = vrot.slane %v7065_v39, 5 }
 0x54f   : > { %8095 = vst.msk [vmem:[#allocation4 + $0x34] sm:$0xf] %vm8081_vm14, %v8012_v40  ;;  %v8014_v12 = vpop.permute.xlu0 %8013  ;;  %v6848_v62 = vrot.slane %v6846_v1, 4 }
 0x550   : > { %8096 = vst.msk [vmem:[#allocation4 + $0x38] sm:$0xf] %vm8081_vm14, %v8014_v12  ;;  %7284 = vrot.lane.b32.xlu1 %v7215_v59, %s9958_s20  ;;  %v6855_v12 = vshll.u32 %v6504_v30, 16  ;;  %v7220_v41 = vrot.slane %v7218_v14, 4 }
 0x551   : > { %7472 = vrot.lane.b32.xlu0 %v7384_v44, %s9959_s22  ;;  %v6859_v44 = vshrl.u32 %v6504_v30, 16  ;;  %v6852_v5 = vor.u32 %v6851_v42, %v6848_v62  ;;  %v7067_v62 = vld [vmem:[#allocation3 + $0xc0] sm:$0xe]  ;;  %v7225_v42 = vrot.slane %v7068_v36, 5 }
 0x552   : > { %v8016_v31 = vpop.permute.xlu1 %8015  ;;  %v6857_v57 = vrot.slane %v6855_v12, 5 }
 0x553   : > { %8097 = vst.msk [vmem:[#allocation4 + $0x3c] sm:$0xf] %vm8081_vm14, %v8016_v31  ;;  %v8347_v52 = vpop.permute.xlu0 %8346  ;;  %v9933_v31 = vld [vmem:[%s10069_s18 + $0xc0] sm:$0xff] }
 0x554   : > { %8431 = vst.msk [vmem:[#allocation4 + $0x30] sm:$0xf] %vm8418_vm15, %v8347_v52  ;;  %7474 = vrot.lane.b32.xlu1 %v7385_v47, %s9959_s22  ;;  %v527_v52 = vpack.c.bf16 %v9934_v60, %v9933_v31  ;;  %v9935_v47 = vld [vmem:[%s10069_s18 + $0xd0] sm:$0xff]  ;;  %v7221_v60 = vrot.slane %v7066_v48, 5 }
 0x555   : > { %7476 = vrot.lane.b32.xlu0 %v7386_v32, %s9959_s22  ;;  %v528_v29 = vpack.c.bf16 %v9936_v56, %v9935_v47  ;;  %v9524_v56 = vrot.slane %v7067_v62, 9  ;;  %v8160_v62 = vld [vmem:[#allocation3 + $0xd0] sm:$0xf] }
 0x556   : > { %v8349_v61 = vpop.permute.xlu1 %8348  ;;  %9829 = vmatprep.mubr.msk.bf16.mxu0 %vm8892_vm9, %v527_v52  ;;  %v7069_v52 = vld [vmem:[#allocation3 + $0xc8] sm:$0x1] }
 0x557   : > { %8432 = vst.msk [vmem:[#allocation4 + $0x34] sm:$0xf] %vm8418_vm15, %v8349_v61  ;;  %v8351_v0 = vpop.permute.xlu0 %8350  ;;  %v6861_v61 = vrot.slane %v6859_v44, 4  ;;  %9830 = vmatmul.mubr.msk.bf16.gmra.mxu0 %vm8892_vm9, %v528_v29  ;;  %v7598_v44 = vld [vmem:[#allocation3 + $0xcc] sm:$0xf]  ;;  %v7228_v6 = vrot.slane %v7069_v52, 5 }
 0x558   : > { %8433 = vst.msk [vmem:[#allocation4 + $0x38] sm:$0xf] %vm8418_vm15, %v8351_v0  ;;  %7478 = vrot.lane.b32.xlu1 %v7387_v34, %s9959_s22  ;;  %v6883_v0 = vshrl.u32 %v6507_v50, 16  ;;  %v6296_v34 = vld [vmem:[#allocation3 + $0xb4] sm:$0xf]  ;;  %v7962_v54 = vshrl.u32 %v7598_v44, 16 }
 0x559   : > { %8033 = vrot.lane.b32.xlu0 %v7902_v8, %s9960_s16  ;;  %v7599_v29 = vld [vmem:[#allocation3 + $0xd0] sm:$0xf] }
 0x55a   : > { %v8353_v11 = vpop.permute.xlu1 %8352  ;;  %v6885_v15 = vrot.slane %v6883_v0, 4  ;;  %v7226_v0 = vsel %vm10471_vm1, %v9524_v56, %v7225_v42  ;;  %v7971_v7 = vshll.u32 %v7599_v29, 16  ;;  %v9940_v56 = vld [vmem:[%s10069_s18 + $0xf8] sm:$0xff] }
 0x55b   : > { %8434 = vst.msk [vmem:[#allocation4 + $0x3c] sm:$0xf] %vm8418_vm15, %v8353_v11  ;;  %v6926_v16 = vpop.permute.xlu0 %6925  ;;  %v6862_v11 = vor.u32 %v6861_v61, %v6857_v57  ;;  %v7947_v61 = vshll.u32 %v7596_v51, 16 }
 0x55c   : > { %7006 = vst.msk [vmem:[#allocation4 + $0x40] sm:$0xf] %vm6989_vm5, %v6926_v16  ;;  %8035 = vrot.lane.b32.xlu1 %v7912_v17, %s9960_s16  ;;  %v6298_v16 = vld [vmem:[#allocation3 + $0xc0] sm:$0xf]  ;;  %v6853_v17 = vrot.slane %v6852_v5, 4  ;;  %v7973_v49 = vrot.slane %v7971_v7, 5 }
 0x55d   : > { %8037 = vrot.lane.b32.xlu0 %v7926_v26, %s9960_s16  ;;  %v6863_v24 = vrot.slane %v6862_v11, 4 }
 0x55e   : > { %v6928_v25 = vpop.permute.xlu1 %6927  ;;  %v9897_v18 = vld [vmem:[#allocation4 + $0x30] sm:$0xff]   ;;  %v6858_v28 = vsel %vm10113_vm13, %v6853_v17, %v6857_v57  ;;  %v7388_v17 = vld [vmem:[#allocation3 + $0xc0] sm:$0xf] }
 0x55f   : > { %7007 = vst.msk [vmem:[#allocation4 + $0x44] sm:$0xf] %vm6989_vm5, %v6928_v25  ;;  %v6930_v2 = vpop.permute.xlu0 %6929  ;;  %9783 = vmatprep.mubr.msk.bf16.mxu1 %vm8599_vm8, %v9897_v18  ;;  %v6886_v25 = vor.u32 %v6885_v15, %v6881_v35  ;;  %v6877_v18 = vrot.slane %v6876_v46, 4  ;;  %v6868_v1 = vsel %vm10113_vm13, %v6863_v24, %v6867_v22  ;;  %v7949_v15 = vrot.slane %v7947_v61, 5  ;;  %v8161_v61 = vld [vmem:[#allocation3 + $0xd4] sm:$0x1] }
 0x560   : > { %7008 = vst.msk [vmem:[#allocation4 + $0x48] sm:$0xf] %vm6989_vm5, %v6930_v2  ;;  %8039 = vrot.lane.b32.xlu1 %v7936_v20, %s9960_s16  ;;  %v6889_v2 = vshll.u32 %v6508_v21, 16  ;;  %v8320_v7 = vrot.slane %v8161_v61, 5 }
 0x561   : > { %8370 = vrot.lane.b32.xlu0 %v8297_v4, %s9961_s25  ;;  %v6887_v19 = vrot.slane %v6886_v25, 4  ;;  %v7064_v4 = vld [vmem:[#allocation3 + $0xb4] sm:$0xe]  ;;  %v6882_v33 = vsel %vm10113_vm13, %v6877_v18, %v6881_v35  ;;  %v7600_v25 = vld [vmem:[#allocation3 + $0xd4] sm:$0x1] }
 0x562   : > { %v6932_v27 = vpop.permute.xlu1 %6931  ;;  %v9898_v40 = vld [vmem:[#allocation4 + $0x38] sm:$0xff]   ;;  %v7389_v18 = vld [vmem:[#allocation3 + $0xc4] sm:$0xf] }
 0x563   : > { %7009 = vst.msk [vmem:[#allocation4 + $0x4c] sm:$0xf] %vm6989_vm5, %v6932_v27  ;;  %v7263_v59 = vpop.permute.xlu0 %7262  ;;  %9784 = vmatmul.mubr.msk.bf16.gmra.mxu1 %vm8599_vm8, %v9898_v40  ;;  %v6891_v27 = vrot.slane %v6889_v2, 5  ;;  %v9523_v40 = vrot.slane %v7064_v4, 9  ;;  %v7391_v2 = vld [vmem:[#allocation3 + $0xd0] sm:$0xf] }
 0x564   : > { %7343 = vst.msk [vmem:[#allocation4 + $0x40] sm:$0xf] %vm7326_vm2, %v7263_v59  ;;  %8372 = vrot.lane.b32.xlu1 %v8300_v53, %s9961_s25  ;;  %v7595_v53 = vld [vmem:[#allocation3 + $0xc0] sm:$0xf] }
 0x565   : > { %8374 = vrot.lane.b32.xlu0 %v8304_v38, %s9961_s25  ;;  %v6892_v59 = vsel %vm10113_vm13, %v6887_v19, %v6891_v27  ;;  %v7219_v50 = vsel %vm10471_vm1, %v9523_v40, %v7218_v14  ;;  %v7938_v55 = vshrl.u32 %v7595_v53, 16  ;;  %v7941_v31 = vshll.u32 %v7595_v53, 16  ;;  %v8157_v53 = vld [vmem:[#allocation3 + $0xc4] sm:$0xf] }
 0x566   : > { %v7265_v32 = vpop.permute.xlu1 %7264  ;;  %v8310_v51 = vrot.slane %v8157_v53, 5 }
 0x567   : > { %7344 = vst.msk [vmem:[#allocation4 + $0x44] sm:$0xf] %vm7326_vm2, %v7265_v32  ;;  %v7267_v58 = vpop.permute.xlu0 %7266  ;;  %v7965_v32 = vshll.u32 %v7598_v44, 16  ;;  %v7943_v5 = vrot.slane %v7941_v31, 5  ;;  %v9937_v31 = vld [vmem:[%s10069_s18 + $0xe0] sm:$0xff] }
 0x568   : > { %7345 = vst.msk [vmem:[#allocation4 + $0x48] sm:$0xf] %vm7326_vm2, %v7267_v58  ;;  %8376 = vrot.lane.b32.xlu1 %v8307_v43, %s9961_s25  ;;  %v7222_v58 = vsel %vm10471_vm1, %v7220_v41, %v7221_v60  ;;  %v7227_v43 = vrot.slane %v7225_v42, 4  ;;  %v9938_v60 = vld [vmem:[%s10069_s18 + $0xe8] sm:$0xff] }
 0x569   : > { %6388 = vrot.lane.b32.xlu0 %v6296_v34, %s9955_s24  ;;  %v7940_v34 = vrot.slane %v7938_v55, 4  ;;  %v8159_v55 = vld [vmem:[#allocation3 + $0xcc] sm:$0xe]  ;;  %v529_v52 = vpack.c.bf16 %v9938_v60, %v9937_v31 }
 0x56a   : > { %v7269_v8 = vpop.permute.xlu1 %7268  ;;  %v7229_v35 = vsel %vm10471_vm1, %v7227_v43, %v7228_v6  ;;  %v8158_v43 = vld [vmem:[#allocation3 + $0xc8] sm:$0x1] }
 0x56b   : > { %7346 = vst.msk [vmem:[#allocation4 + $0x4c] sm:$0xf] %vm7326_vm2, %v7269_v8  ;;  %v7457_v9 = vpop.permute.xlu0 %7456  ;;  %v7975_v8 = vshrl.u32 %v7599_v29, 16  ;;  %v7944_v46 = vor.u32 %v7943_v5, %v7940_v34  ;;  %9833 = vmatprep.mubr.msk.bf16.mxu0 %vm8892_vm9, %v529_v52  ;;  %v8312_v34 = vrot.slane %v8310_v51, 4  ;;  %v8313_v5 = vrot.slane %v8158_v43, 5 }
 0x56c   : > { %7537 = vst.msk [vmem:[#allocation4 + $0x40] sm:$0xf] %vm7520_vm11, %v7457_v9  ;;  %6390 = vrot.lane.b32.xlu1 %v6297_v63, %s9955_s24  ;;  %v7964_v9 = vrot.slane %v7962_v54, 4  ;;  %v7967_v63 = vrot.slane %v7965_v32, 5  ;;  %v8317_v32 = vrot.slane %v8160_v62, 5 }
 0x56d   : > { %6392 = vrot.lane.b32.xlu0 %v6298_v16, %s9955_s24  ;;  %v7953_v16 = vrot.slane %v7951_v3, 4  ;;  %v7945_v22 = vrot.slane %v7944_v46, 4  ;;  %v9540_v3 = vrot.slane %v8159_v55, 9 }
 0x56e   : > { %v7459_v26 = vpop.permute.xlu1 %7458  ;;  %v7968_v24 = vor.u32 %v7967_v63, %v7964_v9  ;;  %v8319_v6 = vrot.slane %v8317_v32, 4  ;;  %v8314_v63 = vsel %vm10471_vm1, %v8312_v34, %v8313_v5 }
 0x56f   : > { %7538 = vst.msk [vmem:[#allocation4 + $0x44] sm:$0xf] %vm7520_vm11, %v7459_v26  ;;  %v7461_v10 = vpop.permute.xlu0 %7460  ;;  %v7977_v26 = vrot.slane %v7975_v8, 4  ;;  %v7954_v39 = vor.u32 %v7953_v16, %v7949_v15  ;;  %v7950_v27 = vsel %vm10113_vm13, %v7945_v22, %v7949_v15  ;;  %v12769_v22 = vld [vmem:[%s13042_s5] ss:$0 sm:$0xff] }
 0x570   : > { %7539 = vst.msk [vmem:[#allocation4 + $0x48] sm:$0xf] %vm7520_vm11, %v7461_v10  ;;  %6394 = vrot.lane.b32.xlu1 %v6299_v23, %s9955_s24  ;;  %v7390_v10 = vld [vmem:[#allocation3 + $0xcc] sm:$0xf]  ;;  %v7597_v23 = vld [vmem:[#allocation3 + $0xc8] sm:$0x1] }
 0x571   : > { %6949 = vrot.lane.b32.xlu0 %v6858_v28, %s9957_s12  ;;  %v7969_v14 = vrot.slane %v7968_v24, 4  ;;  %v7955_v36 = vrot.slane %v7954_v39, 4  ;;  %v12761_v24 = vld [vmem:[%s13045_s8] ss:$0 sm:$0xff] }
 0x572   : > { %v7463_v20 = vpop.permute.xlu1 %7462 }
 0x573   : > { %7540 = vst.msk [vmem:[#allocation4 + $0x4c] sm:$0xf] %vm7520_vm11, %v7463_v20  ;;  %v8018_v30 = vpop.permute.xlu0 %8017  ;;  %v7957_v20 = vshll.u32 %v7597_v23, 16 }
 0x574   : > { %8098 = vst.msk [vmem:[#allocation4 + $0x40] sm:$0xf] %vm8081_vm14, %v8018_v30  ;;  %6951 = vrot.lane.b32.xlu1 %v6868_v1, %s9957_s12  ;;  %v7978_v30 = vor.u32 %v7977_v26, %v7973_v49  ;;  %v7981_v1 = vshll.u32 %v7600_v25, 16 }
 0x575   : > { %6953 = vrot.lane.b32.xlu0 %v6882_v33, %s9957_s12 }
 0x576   : > { %v8020_v38 = vpop.permute.xlu1 %8019  ;;  %v7979_v40 = vrot.slane %v7978_v30, 4  ;;  %v7983_v48 = vrot.slane %v7981_v1, 5 }
 0x577   : > { %8099 = vst.msk [vmem:[#allocation4 + $0x44] sm:$0xf] %vm8081_vm14, %v8020_v38  ;;  %v8022_v12 = vpop.permute.xlu0 %8021  ;;  %v7959_v38 = vrot.slane %v7957_v20, 5 }
 0x578   : > { %8100 = vst.msk [vmem:[#allocation4 + $0x48] sm:$0xf] %vm8081_vm14, %v8022_v12  ;;  %6955 = vrot.lane.b32.xlu1 %v6892_v59, %s9957_s12  ;;  %v7974_v59 = vsel %vm10113_vm13, %v7969_v14, %v7973_v49  ;;  %v7984_v54 = vsel %vm10113_vm13, %v7979_v40, %v7983_v48  ;;  %v9807_v49 = vpop.f32.mrf.mxu0 }
 0x579   : > { %7286 = vrot.lane.b32.xlu0 %v7219_v50, %s9958_s20  ;;  %v7960_v44 = vsel %vm10113_vm13, %v7955_v36, %v7959_v38  ;;  %v8156_v50 = vld [vmem:[#allocation3 + $0xc0] sm:$0xe]  ;;  %vm9247_vm13 = vcmask 64512  }
 0x57a   : > { %v8024_v47 = vpop.permute.xlu1 %8023 }
 0x57b   : > { %8101 = vst.msk [vmem:[#allocation4 + $0x4c] sm:$0xf] %vm8081_vm14, %v8024_v47  ;;  %v8355_v57 = vpop.permute.xlu0 %8354  ;;  %v9939_v47 = vld [vmem:[%s10069_s18 + $0xf0] sm:$0xff] }
 0x57c   : > { %8435 = vst.msk [vmem:[#allocation4 + $0x40] sm:$0xf] %vm8418_vm15, %v8355_v57  ;;  %7288 = vrot.lane.b32.xlu1 %v7222_v58, %s9958_s20  ;;  %v530_v29 = vpack.c.bf16 %v9940_v56, %v9939_v47  ;;  %v9539_v58 = vrot.slane %v8156_v50, 9 }
 0x57d   : > { %7290 = vrot.lane.b32.xlu0 %v7226_v0, %s9958_s20 }
 0x57e   : > { %v8357_v45 = vpop.permute.xlu1 %8356  ;;  %9834 = vmatmul.mubr.msk.bf16.gmra.mxu0 %vm8892_vm9, %v530_v29  ;;  %v8311_v13 = vsel %vm10471_vm1, %v9539_v58, %v8310_v51 }
 0x57f   : > { %8436 = vst.msk [vmem:[#allocation4 + $0x44] sm:$0xf] %vm8418_vm15, %v8357_v45  ;;  %v8359_v11 = vpop.permute.xlu0 %8358  ;;  %v8318_v45 = vsel %vm10471_vm1, %v9540_v3, %v8317_v32 }
 0x580   : > { %8437 = vst.msk [vmem:[#allocation4 + $0x48] sm:$0xf] %vm8418_vm15, %v8359_v11  ;;  %7292 = vrot.lane.b32.xlu1 %v7229_v35, %s9958_s20  ;;  %v8321_v11 = vsel %vm10471_vm1, %v8319_v6, %v8320_v7 }
 0x581   : > { %7480 = vrot.lane.b32.xlu0 %v7388_v17, %s9959_s22 }
 0x582   : > { %v8361_v21 = vpop.permute.xlu1 %8360 }
 0x583   : > { %8438 = vst.msk [vmem:[#allocation4 + $0x4c] sm:$0xf] %vm8418_vm15, %v8361_v21  ;;  %v6934_v28 = vpop.permute.xlu0 %6933 }
 0x584   : > { %7010 = vst.msk [vmem:[#allocation4 + $0x50] sm:$0xf] %vm6989_vm5, %v6934_v28  ;;  %7482 = vrot.lane.b32.xlu1 %v7389_v18, %s9959_s22  ;;  %v9114_v18 = vmul.f32 %v9807_v49, %v12761_v24 }
 0x585   : > { %7484 = vrot.lane.b32.xlu0 %v7390_v10, %s9959_s22  ;;  %v8978_v10 = vpop.f32.mrf.mxu0 }
 0x586   : > { %v6936_v19 = vpop.permute.xlu1 %6935  ;;  %v9899_v4 = vld [vmem:[#allocation4 + $0x40] sm:$0xff]   ;;  %v9112_v30 = vmul.f32 %v12761_v24, %v8978_v10 }
 0x587   : > { %7011 = vst.msk [vmem:[#allocation4 + $0x54] sm:$0xf] %vm6989_vm5, %v6936_v19  ;;  %v6938_v33 = vpop.permute.xlu0 %6937  ;;  %9787 = vmatprep.mubr.msk.bf16.mxu1 %vm8599_vm8, %v9899_v4  ;;  %v9808_v28 = vpop.f32.mrf.mxu0  ;;  %v12782_v4 = vld [vmem:[%s13043_s6] ss:$0 sm:$0xff] }
 0x588   : > { %7012 = vst.msk [vmem:[#allocation4 + $0x58] sm:$0xf] %vm6989_vm5, %v6938_v33  ;;  %7486 = vrot.lane.b32.xlu1 %v7391_v2, %s9959_s22  ;;  %v12774_v2 = vld [vmem:[%s13046_s9] ss:$0 sm:$0xff]  ;;  %v9115_v36 = vmul.f32 %v9808_v28, %v12761_v24 }
 0x589   : > { %8041 = vrot.lane.b32.xlu0 %v7950_v27, %s9960_s16  ;;  %v8981_v1 = vpop.f32.mrf.mxu0  ;;  %v9153_v33 = vadd.f32 %v12774_v2, %v9114_v18 }
 0x58a   : > { %v6940_v12 = vpop.permute.xlu1 %6939  ;;  %v9900_v41 = vld [vmem:[#allocation4 + $0x48] sm:$0xff]   ;;  %v9113_v40 = vmul.f32 %v12761_v24, %v8981_v1  ;;  %v9154_v51 = vadd.f32 %v12774_v2, %v9115_v36 }
 0x58b   : > { %7013 = vst.msk [vmem:[#allocation4 + $0x5c] sm:$0xf] %vm6989_vm5, %v6940_v12  ;;  %v7271_v42 = vpop.permute.xlu0 %7270  ;;  %9788 = vmatmul.mubr.msk.bf16.gmra.mxu1 %vm8599_vm8, %v9900_v41  ;;  %v9151_v41 = vadd.f32 %v12774_v2, %v9112_v30 }
 0x58c   : > { %7347 = vst.msk [vmem:[#allocation4 + $0x50] sm:$0xf] %vm7326_vm2, %v7271_v42  ;;  %8043 = vrot.lane.b32.xlu1 %v7960_v44, %s9960_s16  ;;  %v9152_v60 = vadd.f32 %v12774_v2, %v9113_v40 }
 0x58d   : > { %8045 = vrot.lane.b32.xlu0 %v7974_v59, %s9960_s16 }
 0x58e   : > { %v7273_v57 = vpop.permute.xlu1 %7272 }
 0x58f   : > { %7348 = vst.msk [vmem:[#allocation4 + $0x54] sm:$0xf] %vm7326_vm2, %v7273_v57  ;;  %v7275_v0 = vpop.permute.xlu0 %7274 }
 0x590   : > { %7349 = vst.msk [vmem:[#allocation4 + $0x58] sm:$0xf] %vm7326_vm2, %v7275_v0  ;;  %8047 = vrot.lane.b32.xlu1 %v7984_v54, %s9960_s16 }
 0x591   : > { %8378 = vrot.lane.b32.xlu0 %v8311_v13, %s9961_s25 }
 0x592   : > { %v7277_v8 = vpop.permute.xlu1 %7276 }
 0x593   : > { %7350 = vst.msk [vmem:[#allocation4 + $0x5c] sm:$0xf] %vm7326_vm2, %v7277_v8  ;;  %v7465_v9 = vpop.permute.xlu0 %7464 }
 0x594   : > { %7541 = vst.msk [vmem:[#allocation4 + $0x50] sm:$0xf] %vm7520_vm11, %v7465_v9  ;;  %8380 = vrot.lane.b32.xlu1 %v8314_v63, %s9961_s25 }
 0x595   : > { %8382 = vrot.lane.b32.xlu0 %v8318_v45, %s9961_s25 }
 0x596   : > { %v7467_v35 = vpop.permute.xlu1 %7466 }
 0x597   : > { %7542 = vst.msk [vmem:[#allocation4 + $0x54] sm:$0xf] %vm7520_vm11, %v7467_v35  ;;  %v7469_v15 = vpop.permute.xlu0 %7468  ;;  %v9811_v35 = vpop.f32.mrf.mxu0 }
 0x598   : > { %7543 = vst.msk [vmem:[#allocation4 + $0x58] sm:$0xf] %vm7520_vm11, %v7469_v15  ;;  %8384 = vrot.lane.b32.xlu1 %v8321_v11, %s9961_s25 }
 0x59a   : > { %v7471_v16 = vpop.permute.xlu1 %7470 }
 0x59b   : > { %7544 = vst.msk [vmem:[#allocation4 + $0x5c] sm:$0xf] %vm7520_vm11, %v7471_v16  ;;  %v8026_v17 = vpop.permute.xlu0 %8025 }
 0x59c   : > { %8102 = vst.msk [vmem:[#allocation4 + $0x50] sm:$0xf] %vm8081_vm14, %v8026_v17  ;;  %v8994_v17 = vpop.f32.mrf.mxu0 }
 0x59e   : > { %v8028_v46 = vpop.permute.xlu1 %8027  ;;  %v9812_v49 = vpop.f32.mrf.mxu0 }
 0x59f   : > { %8103 = vst.msk [vmem:[#allocation4 + $0x54] sm:$0xf] %vm8081_vm14, %v8028_v46  ;;  %v8030_v37 = vpop.permute.xlu0 %8029 }
 0x5a0   : > { %8104 = vst.msk [vmem:[#allocation4 + $0x58] sm:$0xf] %vm8081_vm14, %v8030_v37 }
 0x5a2   : > { %v8032_v26 = vpop.permute.xlu1 %8031 }
 0x5a3   : > { %8105 = vst.msk [vmem:[#allocation4 + $0x5c] sm:$0xf] %vm8081_vm14, %v8032_v26  ;;  %v8363_v21 = vpop.permute.xlu0 %8362  ;;  %v9118_v26 = vmul.f32 %v9811_v35, %v12761_v24 }
 0x5a4   : > { %8439 = vst.msk [vmem:[#allocation4 + $0x50] sm:$0xf] %vm8418_vm15, %v8363_v21 }
 0x5a6   : > { %v8365_v23 = vpop.permute.xlu1 %8364 }
 0x5a7   : > { %8440 = vst.msk [vmem:[#allocation4 + $0x54] sm:$0xf] %vm8418_vm15, %v8365_v23  ;;  %v8367_v25 = vpop.permute.xlu0 %8366  ;;  %v9116_v23 = vmul.f32 %v12761_v24, %v8994_v17 }
 0x5a8   : > { %8441 = vst.msk [vmem:[#allocation4 + $0x58] sm:$0xf] %vm8418_vm15, %v8367_v25  ;;  %v8997_v25 = vpop.f32.mrf.mxu0 }
 0x5aa   : > { %v8369_v39 = vpop.permute.xlu1 %8368 }
 0x5ab   : > { %8442 = vst.msk [vmem:[#allocation4 + $0x5c] sm:$0xf] %vm8418_vm15, %v8369_v39  ;;  %v6381_v20 = vpop.permute.xlu0 %6380  ;;  %v9773_v19 = vpop.f32.mrf.mxu1  ;;  %v9157_v39 = vadd.f32 %v12774_v2, %v9118_v26 }
 0x5ac   : > { %6453 = vst.msk [vmem:[#allocation4 + $0x60] sm:$0xf] %vm6428_vm3, %v6381_v20  ;;  %v8822_v14 = vmul.f32 %v9773_v19, %v12769_v22  ;;  %v9119_v20 = vmul.f32 %v9812_v49, %v12761_v24  ;;  %v9117_v19 = vmul.f32 %v12761_v24, %v8997_v25 }
 0x5ad   : > { %v8686_v53 = vpop.f32.mrf.mxu1 }
 0x5ae   : > { %v6383_v27 = vpop.permute.xlu1 %6382  ;;  %v9901_v38 = vld [vmem:[#allocation4 + $0x50] sm:$0xff]   ;;  %v8861_v48 = vadd.f32 %v12782_v4, %v8822_v14  ;;  %v8820_v59 = vmul.f32 %v12769_v22, %v8686_v53 }
 0x5af   : > { %6454 = vst.msk [vmem:[#allocation4 + $0x64] sm:$0xf] %vm6428_vm3, %v6383_v27  ;;  %v6385_v12 = vpop.permute.xlu0 %6384  ;;  %v9774_v62 = vpop.f32.mrf.mxu1  ;;  %9791 = vmatprep.mubr.msk.bf16.mxu1 %vm8599_vm8, %v9901_v38  ;;  %v9155_v27 = vadd.f32 %v12774_v2, %v9116_v23 }
 0x5b0   : > { %6455 = vst.msk [vmem:[#allocation4 + $0x68] sm:$0xf] %vm6428_vm3, %v6385_v12  ;;  %v9185_v42 = vadd.f32 %v9153_v33, %v8861_v48  ;;  %v8859_v44 = vadd.f32 %v12782_v4, %v8820_v59  ;;  %v8823_v50 = vmul.f32 %v9774_v62, %v12769_v22  ;;  %v9158_v12 = vadd.f32 %v12774_v2, %v9119_v20 }
 0x5b1   : > { %v8689_v31 = vpop.f32.mrf.mxu1  ;;  %v9156_v62 = vadd.f32 %v12774_v2, %v9117_v19 }
 0x5b2   : > { %v6387_v55 = vpop.permute.xlu1 %6386  ;;  %v9902_v52 = vld [vmem:[#allocation4 + $0x58] sm:$0xff]   ;;  %v9217_v47 = vmax.f32 %v9185_v42, 0.0  ;;  %v9183_v56 = vadd.f32 %v9151_v41, %v8859_v44  ;;  %v8862_v29 = vadd.f32 %v12782_v4, %v8823_v50  ;;  %v8821_v32 = vmul.f32 %v12769_v22, %v8689_v31 }
 0x5b3   : > { %6456 = vst.msk [vmem:[#allocation4 + $0x6c] sm:$0xf] %vm6428_vm3, %v6387_v55  ;;  %v6942_v54 = vpop.permute.xlu0 %6941  ;;  %9792 = vmatmul.mubr.msk.bf16.gmra.mxu1 %vm8599_vm8, %v9902_v52 }
 0x5b4   : > { %7014 = vst.msk [vmem:[#allocation4 + $0x60] sm:$0xf] %vm6989_vm5, %v6942_v54  ;;  %v9215_v57 = vmax.f32 %v9183_v56, 0.0  ;;  %v9186_v58 = vadd.f32 %v9154_v51, %v8862_v29  ;;  %v8860_v43 = vadd.f32 %v12782_v4, %v8821_v32 }
 0x5b5   : > { %9250 = vst.msk [vmem:[%s12802_s21 + $0x10] sm:$0xff] %vm9247_vm13, %v9217_v47 }
 0x5b6   : > { %v6944_v61 = vpop.permute.xlu1 %6943  ;;  %9248 = vst.msk [vmem:[%s12802_s21] sm:$0xff] %vm9247_vm13, %v9215_v57  ;;  %v9218_v3 = vmax.f32 %v9186_v58, 0.0  ;;  %v9184_v0 = vadd.f32 %v9152_v60, %v8860_v43 }
 0x5b7   : > { %7015 = vst.msk [vmem:[#allocation4 + $0x64] sm:$0xf] %vm6989_vm5, %v6944_v61  ;;  %v6946_v34 = vpop.permute.xlu0 %6945 }
 0x5b8   : > { %7016 = vst.msk [vmem:[#allocation4 + $0x68] sm:$0xf] %vm6989_vm5, %v6946_v34  ;;  %v9216_v13 = vmax.f32 %v9184_v0, 0.0 }
 0x5b9   : > { %9251 = vst.msk [vmem:[%s12802_s21 + $0x18] sm:$0xff] %vm9247_vm13, %v9218_v3 }
 0x5ba   : > { %v6948_v5 = vpop.permute.xlu1 %6947  ;;  %9249 = vst.msk [vmem:[%s12802_s21 + $0x8] sm:$0xff] %vm9247_vm13, %v9216_v13 }
 0x5bb   : > { %7017 = vst.msk [vmem:[#allocation4 + $0x6c] sm:$0xf] %vm6989_vm5, %v6948_v5  ;;  %v7279_v6 = vpop.permute.xlu0 %7278 }
 0x5bc   : > { %7351 = vst.msk [vmem:[#allocation4 + $0x60] sm:$0xf] %vm7326_vm2, %v7279_v6 }
 0x5be   : > { %v7281_v7 = vpop.permute.xlu1 %7280 }
 0x5bf   : > { %7352 = vst.msk [vmem:[#allocation4 + $0x64] sm:$0xf] %vm7326_vm2, %v7281_v7  ;;  %v7283_v8 = vpop.permute.xlu0 %7282  ;;  %v9815_v7 = vpop.f32.mrf.mxu0 }
 0x5c0   : > { %7353 = vst.msk [vmem:[#allocation4 + $0x68] sm:$0xf] %vm7326_vm2, %v7283_v8 }
 0x5c2   : > { %v7285_v45 = vpop.permute.xlu1 %7284 }
 0x5c3   : > { %7354 = vst.msk [vmem:[#allocation4 + $0x6c] sm:$0xf] %vm7326_vm2, %v7285_v45  ;;  %v7473_v9 = vpop.permute.xlu0 %7472 }
 0x5c4   : > { %7545 = vst.msk [vmem:[#allocation4 + $0x60] sm:$0xf] %vm7520_vm11, %v7473_v9  ;;  %v9010_v9 = vpop.f32.mrf.mxu0 }
 0x5c6   : > { %v7475_v63 = vpop.permute.xlu1 %7474  ;;  %v9816_v35 = vpop.f32.mrf.mxu0 }
 0x5c7   : > { %7546 = vst.msk [vmem:[#allocation4 + $0x64] sm:$0xf] %vm7520_vm11, %v7475_v63  ;;  %v7477_v11 = vpop.permute.xlu0 %7476 }
 0x5c8   : > { %7547 = vst.msk [vmem:[#allocation4 + $0x68] sm:$0xf] %vm7520_vm11, %v7477_v11 }
 0x5ca   : > { %v7479_v15 = vpop.permute.xlu1 %7478 }
 0x5cb   : > { %7548 = vst.msk [vmem:[#allocation4 + $0x6c] sm:$0xf] %vm7520_vm11, %v7479_v15  ;;  %v8034_v16 = vpop.permute.xlu0 %8033  ;;  %v9122_v15 = vmul.f32 %v9815_v7, %v12761_v24 }
 0x5cc   : > { %8106 = vst.msk [vmem:[#allocation4 + $0x60] sm:$0xf] %vm8081_vm14, %v8034_v16 }
 0x5ce   : > { %v8036_v46 = vpop.permute.xlu1 %8035 }
 0x5cf   : > { %8107 = vst.msk [vmem:[#allocation4 + $0x64] sm:$0xf] %vm8081_vm14, %v8036_v46  ;;  %v8038_v37 = vpop.permute.xlu0 %8037  ;;  %v9120_v46 = vmul.f32 %v12761_v24, %v9010_v9 }
 0x5d0   : > { %8108 = vst.msk [vmem:[#allocation4 + $0x68] sm:$0xf] %vm8081_vm14, %v8038_v37  ;;  %v9013_v37 = vpop.f32.mrf.mxu0 }
 0x5d2   : > { %v8040_v21 = vpop.permute.xlu1 %8039 }
 0x5d3   : > { %8109 = vst.msk [vmem:[#allocation4 + $0x6c] sm:$0xf] %vm8081_vm14, %v8040_v21  ;;  %v8371_v10 = vpop.permute.xlu0 %8370  ;;  %v9777_v28 = vpop.f32.mrf.mxu1  ;;  %v9161_v21 = vadd.f32 %v12774_v2, %v9122_v15 }
 0x5d4   : > { %8443 = vst.msk [vmem:[#allocation4 + $0x60] sm:$0xf] %vm8418_vm15, %v8371_v10  ;;  %v8826_v18 = vmul.f32 %v9777_v28, %v12769_v22  ;;  %v9123_v10 = vmul.f32 %v9816_v35, %v12761_v24  ;;  %v9121_v28 = vmul.f32 %v12761_v24, %v9013_v37 }
 0x5d5   : > { %v8702_v1 = vpop.f32.mrf.mxu1 }
 0x5d6   : > { %v8373_v30 = vpop.permute.xlu1 %8372  ;;  %v8865_v14 = vadd.f32 %v12782_v4, %v8826_v18  ;;  %v8824_v36 = vmul.f32 %v12769_v22, %v8702_v1 }
 0x5d7   : > { %8444 = vst.msk [vmem:[#allocation4 + $0x64] sm:$0xf] %vm8418_vm15, %v8373_v30  ;;  %v8375_v33 = vpop.permute.xlu0 %8374  ;;  %v9778_v53 = vpop.f32.mrf.mxu1  ;;  %v9159_v30 = vadd.f32 %v12774_v2, %v9120_v46 }
 0x5d8   : > { %8445 = vst.msk [vmem:[#allocation4 + $0x68] sm:$0xf] %vm8418_vm15, %v8375_v33  ;;  %v9189_v38 = vadd.f32 %v9157_v39, %v8865_v14  ;;  %v8863_v40 = vadd.f32 %v12782_v4, %v8824_v36  ;;  %v8827_v48 = vmul.f32 %v9778_v53, %v12769_v22  ;;  %v9162_v36 = vadd.f32 %v12774_v2, %v9123_v10 }
 0x5d9   : > { %v8705_v41 = vpop.f32.mrf.mxu1 }
 0x5da   : > { %v8377_v59 = vpop.permute.xlu1 %8376  ;;  %v9221_v42 = vmax.f32 %v9189_v38, 0.0  ;;  %v9187_v44 = vadd.f32 %v9155_v27, %v8863_v40  ;;  %v8866_v50 = vadd.f32 %v12782_v4, %v8827_v48  ;;  %v8825_v55 = vmul.f32 %v12769_v22, %v8705_v41 }
 0x5db   : > { %8446 = vst.msk [vmem:[#allocation4 + $0x6c] sm:$0xf] %vm8418_vm15, %v8377_v59  ;;  %v6389_v51 = vpop.permute.xlu0 %6388  ;;  %v9160_v38 = vadd.f32 %v12774_v2, %v9121_v28 }
 0x5dc   : > { %6457 = vst.msk [vmem:[#allocation4 + $0x70] sm:$0xf] %vm6428_vm3, %v6389_v51  ;;  %v9219_v31 = vmax.f32 %v9187_v44, 0.0  ;;  %v9190_v60 = vadd.f32 %v9158_v12, %v8866_v50  ;;  %v8864_v52 = vadd.f32 %v12782_v4, %v8825_v55 }
 0x5dd   : > { %9254 = vst.msk [vmem:[%s12802_s21 + $0x30] sm:$0xff] %vm9247_vm13, %v9221_v42 }
 0x5de   : > { %v6391_v47 = vpop.permute.xlu1 %6390  ;;  %v9903_v56 = vld [vmem:[#allocation4 + $0x60] sm:$0xff]   ;;  %9252 = vst.msk [vmem:[%s12802_s21 + $0x20] sm:$0xff] %vm9247_vm13, %v9219_v31  ;;  %v9222_v29 = vmax.f32 %v9190_v60, 0.0  ;;  %v9188_v54 = vadd.f32 %v9156_v62, %v8864_v52 }
 0x5df   : > { %6458 = vst.msk [vmem:[#allocation4 + $0x74] sm:$0xf] %vm6428_vm3, %v6391_v47  ;;  %v6393_v32 = vpop.permute.xlu0 %6392  ;;  %9795 = vmatprep.mubr.msk.bf16.mxu1 %vm8599_vm8, %v9903_v56 }
 0x5e0   : > { %6459 = vst.msk [vmem:[#allocation4 + $0x78] sm:$0xf] %vm6428_vm3, %v6393_v32  ;;  %v9220_v57 = vmax.f32 %v9188_v54, 0.0 }
 0x5e1   : > { %9255 = vst.msk [vmem:[%s12802_s21 + $0x38] sm:$0xff] %vm9247_vm13, %v9222_v29  ;;  %v9819_v29 = vpop.f32.mrf.mxu0 }
 0x5e2   : > { %v6395_v58 = vpop.permute.xlu1 %6394  ;;  %v9904_v43 = vld [vmem:[#allocation4 + $0x68] sm:$0xff]   ;;  %9253 = vst.msk [vmem:[%s12802_s21 + $0x28] sm:$0xff] %vm9247_vm13, %v9220_v57  ;;  %v9126_v57 = vmul.f32 %v9819_v29, %v12761_v24 }
 0x5e3   : > { %6460 = vst.msk [vmem:[#allocation4 + $0x7c] sm:$0xf] %vm6428_vm3, %v6395_v58  ;;  %v6950_v61 = vpop.permute.xlu0 %6949  ;;  %9796 = vmatmul.mubr.msk.bf16.gmra.mxu1 %vm8599_vm8, %v9904_v43  ;;  %v9026_v54 = vpop.f32.mrf.mxu0 }
 0x5e4   : > { %7018 = vst.msk [vmem:[#allocation4 + $0x70] sm:$0xf] %vm6989_vm5, %v6950_v61  ;;  %v9124_v58 = vmul.f32 %v12761_v24, %v9026_v54 }
 0x5e5   : > { %v9820_v32 = vpop.f32.mrf.mxu0 }
 0x5e6   : > { %v6952_v3 = vpop.permute.xlu1 %6951 }
 0x5e7   : > { %7019 = vst.msk [vmem:[#allocation4 + $0x74] sm:$0xf] %vm6989_vm5, %v6952_v3  ;;  %v6954_v0 = vpop.permute.xlu0 %6953  ;;  %v9029_v43 = vpop.f32.mrf.mxu0 }
 0x5e8   : > { %7020 = vst.msk [vmem:[#allocation4 + $0x78] sm:$0xf] %vm6989_vm5, %v6954_v0  ;;  %v9165_v0 = vadd.f32 %v12774_v2, %v9126_v57 }
 0x5ea   : > { %v6956_v34 = vpop.permute.xlu1 %6955 }
 0x5eb   : > { %7021 = vst.msk [vmem:[#allocation4 + $0x7c] sm:$0xf] %vm6989_vm5, %v6956_v34  ;;  %v7287_v13 = vpop.permute.xlu0 %7286  ;;  %v9127_v34 = vmul.f32 %v9820_v32, %v12761_v24 }
 0x5ec   : > { %7355 = vst.msk [vmem:[#allocation4 + $0x70] sm:$0xf] %vm7326_vm2, %v7287_v13 }
 0x5ed   : > { %v9166_v35 = vadd.f32 %v12774_v2, %v9127_v34 }
 0x5ee   : > { %v7289_v5 = vpop.permute.xlu1 %7288 }
 0x5ef   : > { %7356 = vst.msk [vmem:[#allocation4 + $0x74] sm:$0xf] %vm7326_vm2, %v7289_v5  ;;  %v7291_v6 = vpop.permute.xlu0 %7290  ;;  %v9125_v5 = vmul.f32 %v12761_v24, %v9029_v43 }
 0x5f0   : > { %7357 = vst.msk [vmem:[#allocation4 + $0x78] sm:$0xf] %vm7326_vm2, %v7291_v6 }
 0x5f2   : > { %v7293_v8 = vpop.permute.xlu1 %7292 }
 0x5f3   : > { %7358 = vst.msk [vmem:[#allocation4 + $0x7c] sm:$0xf] %vm7326_vm2, %v7293_v8  ;;  %v7481_v45 = vpop.permute.xlu0 %7480  ;;  %v9163_v8 = vadd.f32 %v12774_v2, %v9124_v58 }
 0x5f4   : > { %7549 = vst.msk [vmem:[#allocation4 + $0x70] sm:$0xf] %vm7520_vm11, %v7481_v45 }
 0x5f6   : > { %v7483_v63 = vpop.permute.xlu1 %7482 }
 0x5f7   : > { %7550 = vst.msk [vmem:[#allocation4 + $0x74] sm:$0xf] %vm7520_vm11, %v7483_v63  ;;  %v7485_v11 = vpop.permute.xlu0 %7484 }
 0x5f8   : > { %7551 = vst.msk [vmem:[#allocation4 + $0x78] sm:$0xf] %vm7520_vm11, %v7485_v11 }
 0x5fa   : > { %v7487_v16 = vpop.permute.xlu1 %7486 }
 0x5fb   : > { %7552 = vst.msk [vmem:[#allocation4 + $0x7c] sm:$0xf] %vm7520_vm11, %v7487_v16  ;;  %v8042_v17 = vpop.permute.xlu0 %8041  ;;  %v9781_v49 = vpop.f32.mrf.mxu1  ;;  %v9164_v16 = vadd.f32 %v12774_v2, %v9125_v5 }
 0x5fc   : > { %8110 = vst.msk [vmem:[#allocation4 + $0x70] sm:$0xf] %vm8081_vm14, %v8042_v17  ;;  %v8830_v26 = vmul.f32 %v9781_v49, %v12769_v22 }
 0x5fd   : > { %v8718_v25 = vpop.f32.mrf.mxu1 }
 0x5fe   : > { %v8044_v23 = vpop.permute.xlu1 %8043  ;;  %v8869_v18 = vadd.f32 %v12782_v4, %v8830_v26  ;;  %v8828_v20 = vmul.f32 %v12769_v22, %v8718_v25 }
 0x5ff   : > { %8111 = vst.msk [vmem:[#allocation4 + $0x74] sm:$0xf] %vm8081_vm14, %v8044_v23  ;;  %v8046_v39 = vpop.permute.xlu0 %8045  ;;  %v9782_v1 = vpop.f32.mrf.mxu1 }
 0x600   : > { %8112 = vst.msk [vmem:[#allocation4 + $0x78] sm:$0xf] %vm8081_vm14, %v8046_v39  ;;  %v9193_v19 = vadd.f32 %v9161_v21, %v8869_v18  ;;  %v8867_v14 = vadd.f32 %v12782_v4, %v8828_v20  ;;  %v8831_v33 = vmul.f32 %v9782_v1, %v12769_v22  ;;  %v9823_v18 = vpop.f32.mrf.mxu0 }
 0x601   : > { %v8721_v53 = vpop.f32.mrf.mxu1 }
 0x602   : > { %v8048_v27 = vpop.permute.xlu1 %8047  ;;  %v9225_v40 = vmax.f32 %v9193_v19, 0.0  ;;  %v9191_v48 = vadd.f32 %v9159_v30, %v8867_v14  ;;  %v8870_v12 = vadd.f32 %v12782_v4, %v8831_v33  ;;  %v8829_v41 = vmul.f32 %v12769_v22, %v8721_v53  ;;  %v9042_v39 = vpop.f32.mrf.mxu0 }
 0x603   : > { %8113 = vst.msk [vmem:[#allocation4 + $0x7c] sm:$0xf] %vm8081_vm14, %v8048_v27  ;;  %v8379_v59 = vpop.permute.xlu0 %8378  ;;  %v9130_v30 = vmul.f32 %v9823_v18, %v12761_v24  ;;  %v9128_v1 = vmul.f32 %v12761_v24, %v9042_v39 }
 0x604   : > { %8447 = vst.msk [vmem:[#allocation4 + $0x70] sm:$0xf] %vm8418_vm15, %v8379_v59  ;;  %v9223_v62 = vmax.f32 %v9191_v48, 0.0  ;;  %v9194_v42 = vadd.f32 %v9162_v36, %v8870_v12  ;;  %v8868_v44 = vadd.f32 %v12782_v4, %v8829_v41  ;;  %v9824_v20 = vpop.f32.mrf.mxu0 }
 0x605   : > { %9258 = vst.msk [vmem:[%s12802_s21 + $0x50] sm:$0xff] %vm9247_vm13, %v9225_v40  ;;  %v9169_v36 = vadd.f32 %v12774_v2, %v9130_v30  ;;  %v9131_v27 = vmul.f32 %v9824_v20, %v12761_v24  ;;  %v9167_v12 = vadd.f32 %v12774_v2, %v9128_v1 }
 0x606   : > { %v8381_v50 = vpop.permute.xlu1 %8380  ;;  %9256 = vst.msk [vmem:[%s12802_s21 + $0x40] sm:$0xff] %vm9247_vm13, %v9223_v62  ;;  %v9226_v51 = vmax.f32 %v9194_v42, 0.0  ;;  %v9192_v55 = vadd.f32 %v9160_v38, %v8868_v44  ;;  %v9045_v19 = vpop.f32.mrf.mxu0 }
 0x607   : > { %8448 = vst.msk [vmem:[#allocation4 + $0x74] sm:$0xf] %vm8418_vm15, %v8381_v50  ;;  %v8383_v31 = vpop.permute.xlu0 %8382  ;;  %v9129_v38 = vmul.f32 %v12761_v24, %v9045_v19  ;;  %v9170_v44 = vadd.f32 %v12774_v2, %v9131_v27 }
 0x608   : > { %8449 = vst.msk [vmem:[#allocation4 + $0x78] sm:$0xf] %vm8418_vm15, %v8383_v31  ;;  %v9224_v60 = vmax.f32 %v9192_v55, 0.0  ;;  %v9827_v58 = vpop.f32.mrf.mxu0 }
 0x609   : > { %9259 = vst.msk [vmem:[%s12802_s21 + $0x58] sm:$0xff] %vm9247_vm13, %v9226_v51  ;;  %v9168_v51 = vadd.f32 %v12774_v2, %v9129_v38 }
 0x60a   : > { %v8385_v52 = vpop.permute.xlu1 %8384  ;;  %9257 = vst.msk [vmem:[%s12802_s21 + $0x48] sm:$0xff] %vm9247_vm13, %v9224_v60  ;;  %v9058_v43 = vpop.f32.mrf.mxu0 }
 0x60b   : > { %8450 = vst.msk [vmem:[#allocation4 + $0x7c] sm:$0xf] %vm8418_vm15, %v8385_v52 }
 0x60e   : > { %v9905_v47 = vld [vmem:[#allocation4 + $0x70] sm:$0xff]  }
 0x60f   : > { %9799 = vmatprep.mubr.msk.bf16.mxu1 %vm8599_vm8, %v9905_v47 }
 0x612   : > { %v9906_v56 = vld [vmem:[#allocation4 + $0x78] sm:$0xff]  }
 0x613   : > { %9800 = vmatmul.mubr.msk.bf16.gmra.mxu1 %vm8599_vm8, %v9906_v56 }
 0x623   : > { %v9785_v61 = vpop.f32.mrf.mxu1 }
 0x624   : > { %v8834_v3 = vmul.f32 %v9785_v61, %v12769_v22  ;;  %v9828_v61 = vpop.f32.mrf.mxu0 }
 0x625   : > { %v8734_v13 = vpop.f32.mrf.mxu1 }
 0x626   : > { %v8873_v6 = vadd.f32 %v12782_v4, %v8834_v3  ;;  %v8832_v7 = vmul.f32 %v12769_v22, %v8734_v13  ;;  %v9134_v3 = vmul.f32 %v9827_v58, %v12761_v24  ;;  %v9061_v34 = vpop.f32.mrf.mxu0 }
 0x627   : > { %v9786_v45 = vpop.f32.mrf.mxu1 }
 0x628   : > { %v9197_v9 = vadd.f32 %v9165_v0, %v8873_v6  ;;  %v8871_v63 = vadd.f32 %v12782_v4, %v8832_v7  ;;  %v8835_v11 = vmul.f32 %v9786_v45, %v12769_v22  ;;  %v9132_v0 = vmul.f32 %v12761_v24, %v9058_v43  ;;  %v9831_v1 = vpop.f32.mrf.mxu0 }
 0x629   : > { %v8737_v15 = vpop.f32.mrf.mxu1  ;;  %v9173_v6 = vadd.f32 %v12774_v2, %v9134_v3  ;;  %v9135_v7 = vmul.f32 %v9828_v61, %v12761_v24  ;;  %v9133_v45 = vmul.f32 %v12761_v24, %v9061_v34 }
 0x62a   : > { %v9229_v17 = vmax.f32 %v9197_v9, 0.0  ;;  %v9195_v46 = vadd.f32 %v9163_v8, %v8871_v63  ;;  %v8874_v37 = vadd.f32 %v12782_v4, %v8835_v11  ;;  %v8833_v49 = vmul.f32 %v12769_v22, %v8737_v15  ;;  %v9074_v19 = vpop.f32.mrf.mxu0 }
 0x62b   : > { %v9171_v11 = vadd.f32 %v12774_v2, %v9132_v0 }
 0x62c   : > { %9262 = vst.msk [vmem:[%s12802_s21 + $0x70] sm:$0xff] %vm9247_vm13, %v9229_v17  ;;  %v9227_v26 = vmax.f32 %v9195_v46, 0.0  ;;  %v9198_v21 = vadd.f32 %v9166_v35, %v8874_v37  ;;  %v8872_v10 = vadd.f32 %v12782_v4, %v8833_v49  ;;  %v9174_v46 = vadd.f32 %v12774_v2, %v9135_v7 }
 0x62d   : > { %v9172_v49 = vadd.f32 %v12774_v2, %v9133_v45 }
 0x62e   : > { %9260 = vst.msk [vmem:[%s12802_s21 + $0x60] sm:$0xff] %vm9247_vm13, %v9227_v26  ;;  %v9230_v23 = vmax.f32 %v9198_v21, 0.0  ;;  %v9196_v25 = vadd.f32 %v9164_v16, %v8872_v10 }
 0x630   : > { %9263 = vst.msk [vmem:[%s12802_s21 + $0x78] sm:$0xff] %vm9247_vm13, %v9230_v23  ;;  %v9228_v28 = vmax.f32 %v9196_v25, 0.0 }
 0x632   : > { %9261 = vst.msk [vmem:[%s12802_s21 + $0x68] sm:$0xff] %vm9247_vm13, %v9228_v28 }
 0x64b   : > { %v9789_v14 = vpop.f32.mrf.mxu1 }
 0x64c   : > { %v8838_v33 = vmul.f32 %v9789_v14, %v12769_v22  ;;  %v9832_v14 = vpop.f32.mrf.mxu0 }
 0x64d   : > { %v8750_v53 = vpop.f32.mrf.mxu1 }
 0x64e   : > { %v8877_v40 = vadd.f32 %v12782_v4, %v8838_v33  ;;  %v8836_v48 = vmul.f32 %v12769_v22, %v8750_v53  ;;  %v9138_v33 = vmul.f32 %v9831_v1, %v12761_v24  ;;  %v9077_v27 = vpop.f32.mrf.mxu0 }
 0x64f   : > { %v9790_v59 = vpop.f32.mrf.mxu1 }
 0x650   : > { %v9201_v41 = vadd.f32 %v9169_v36, %v8877_v40  ;;  %v8875_v62 = vadd.f32 %v12782_v4, %v8836_v48  ;;  %v8839_v42 = vmul.f32 %v9790_v59, %v12769_v22  ;;  %v9136_v36 = vmul.f32 %v12761_v24, %v9074_v19  ;;  %v9835_v0 = vpop.f32.mrf.mxu0 }
 0x651   : > { %v8753_v50 = vpop.f32.mrf.mxu1  ;;  %v9177_v40 = vadd.f32 %v12774_v2, %v9138_v33  ;;  %v9139_v48 = vmul.f32 %v9832_v14, %v12761_v24  ;;  %v9137_v59 = vmul.f32 %v12761_v24, %v9077_v27 }
 0x652   : > { %v9233_v55 = vmax.f32 %v9201_v41, 0.0  ;;  %v9199_v31 = vadd.f32 %v9167_v12, %v8875_v62  ;;  %v8878_v60 = vadd.f32 %v12782_v4, %v8839_v42  ;;  %v8837_v52 = vmul.f32 %v12769_v22, %v8753_v50  ;;  %v9090_v34 = vpop.f32.mrf.mxu0 }
 0x653   : > { %v9175_v42 = vadd.f32 %v12774_v2, %v9136_v36 }
 0x654   : > { %9266 = vst.msk [vmem:[%s12802_s21 + $0x90] sm:$0xff] %vm9247_vm13, %v9233_v55  ;;  %v9231_v47 = vmax.f32 %v9199_v31, 0.0  ;;  %v9202_v56 = vadd.f32 %v9170_v44, %v8878_v60  ;;  %v8876_v29 = vadd.f32 %v12782_v4, %v8837_v52  ;;  %v9178_v31 = vadd.f32 %v12774_v2, %v9139_v48 }
 0x655   : > { %v9176_v52 = vadd.f32 %v12774_v2, %v9137_v59 }
 0x656   : > { %9264 = vst.msk [vmem:[%s12802_s21 + $0x80] sm:$0xff] %vm9247_vm13, %v9231_v47  ;;  %v9234_v54 = vmax.f32 %v9202_v56, 0.0  ;;  %v9200_v32 = vadd.f32 %v9168_v51, %v8876_v29 }
 0x658   : > { %9267 = vst.msk [vmem:[%s12802_s21 + $0x98] sm:$0xff] %vm9247_vm13, %v9234_v54  ;;  %v9232_v57 = vmax.f32 %v9200_v32, 0.0 }
 0x65a   : > { %9265 = vst.msk [vmem:[%s12802_s21 + $0x88] sm:$0xff] %vm9247_vm13, %v9232_v57 }
 0x673   : > { %v9793_v13 = vpop.f32.mrf.mxu1 }
 0x674   : > { %v8842_v5 = vmul.f32 %v9793_v13, %v12769_v22  ;;  %v9142_v13 = vmul.f32 %v9835_v0, %v12761_v24 }
 0x675   : > { %v8766_v8 = vpop.f32.mrf.mxu1 }
 0x676   : > { %v8881_v9 = vadd.f32 %v12782_v4, %v8842_v5  ;;  %v8840_v63 = vmul.f32 %v12769_v22, %v8766_v8  ;;  %v9836_v5 = vpop.f32.mrf.mxu0  ;;  %v9181_v8 = vadd.f32 %v12774_v2, %v9142_v13 }
 0x677   : > { %v9794_v35 = vpop.f32.mrf.mxu1 }
 0x678   : > { %v9205_v15 = vadd.f32 %v9173_v6, %v8881_v9  ;;  %v8879_v16 = vadd.f32 %v12782_v4, %v8840_v63  ;;  %v8843_v17 = vmul.f32 %v9794_v35, %v12769_v22  ;;  %v9140_v6 = vmul.f32 %v12761_v24, %v9090_v34  ;;  %v9093_v63 = vpop.f32.mrf.mxu0 }
 0x679   : > { %v8769_v37 = vpop.f32.mrf.mxu1  ;;  %v9143_v9 = vmul.f32 %v9836_v5, %v12761_v24 }
 0x67a   : > { %v9237_v26 = vmax.f32 %v9205_v15, 0.0  ;;  %v9203_v21 = vadd.f32 %v9171_v11, %v8879_v16  ;;  %v8882_v10 = vadd.f32 %v12782_v4, %v8843_v17  ;;  %v8841_v23 = vmul.f32 %v12769_v22, %v8769_v37 }
 0x67b   : > { %v9179_v16 = vadd.f32 %v12774_v2, %v9140_v6  ;;  %v9141_v37 = vmul.f32 %v12761_v24, %v9093_v63 }
 0x67c   : > { %9270 = vst.msk [vmem:[%s12802_s21 + $0xb0] sm:$0xff] %vm9247_vm13, %v9237_v26  ;;  %v9235_v25 = vmax.f32 %v9203_v21, 0.0  ;;  %v9206_v28 = vadd.f32 %v9174_v46, %v8882_v10  ;;  %v8880_v18 = vadd.f32 %v12782_v4, %v8841_v23  ;;  %v9182_v21 = vadd.f32 %v12774_v2, %v9143_v9 }
 0x67e   : > { %9268 = vst.msk [vmem:[%s12802_s21 + $0xa0] sm:$0xff] %vm9247_vm13, %v9235_v25  ;;  %v9238_v39 = vmax.f32 %v9206_v28, 0.0  ;;  %v9204_v20 = vadd.f32 %v9172_v49, %v8880_v18 }
 0x680   : > { %9271 = vst.msk [vmem:[%s12802_s21 + $0xb8] sm:$0xff] %vm9247_vm13, %v9238_v39  ;;  %v9236_v30 = vmax.f32 %v9204_v20, 0.0  ;;  %v9180_v39 = vadd.f32 %v12774_v2, %v9141_v37 }
 0x682   : > { %9269 = vst.msk [vmem:[%s12802_s21 + $0xa8] sm:$0xff] %vm9247_vm13, %v9236_v30 }
 0x6a3   : > { %v9797_v53 = vpop.f32.mrf.mxu1 }
 0x6a4   : > { %v8846_v38 = vmul.f32 %v9797_v53, %v12769_v22 }
 0x6a5   : > { %v8782_v12 = vpop.f32.mrf.mxu1 }
 0x6a6   : > { %v8885_v41 = vadd.f32 %v12782_v4, %v8846_v38  ;;  %v8844_v62 = vmul.f32 %v12769_v22, %v8782_v12 }
 0x6a7   : > { %v9798_v44 = vpop.f32.mrf.mxu1 }
 0x6a8   : > { %v9209_v50 = vadd.f32 %v9177_v40, %v8885_v41  ;;  %v8883_v51 = vadd.f32 %v12782_v4, %v8844_v62  ;;  %v8847_v55 = vmul.f32 %v9798_v44, %v12769_v22 }
 0x6a9   : > { %v8785_v60 = vpop.f32.mrf.mxu1 }
 0x6aa   : > { %v9241_v47 = vmax.f32 %v9209_v50, 0.0  ;;  %v9207_v56 = vadd.f32 %v9175_v42, %v8883_v51  ;;  %v8886_v29 = vadd.f32 %v12782_v4, %v8847_v55  ;;  %v8845_v54 = vmul.f32 %v12769_v22, %v8785_v60 }
 0x6ac   : > { %9274 = vst.msk [vmem:[%s12802_s21 + $0xd0] sm:$0xff] %vm9247_vm13, %v9241_v47  ;;  %v9239_v32 = vmax.f32 %v9207_v56, 0.0  ;;  %v9210_v57 = vadd.f32 %v9178_v31, %v8886_v29  ;;  %v8884_v58 = vadd.f32 %v12782_v4, %v8845_v54 }
 0x6ae   : > { %9272 = vst.msk [vmem:[%s12802_s21 + $0xc0] sm:$0xff] %vm9247_vm13, %v9239_v32  ;;  %v9242_v43 = vmax.f32 %v9210_v57, 0.0  ;;  %v9208_v61 = vadd.f32 %v9176_v52, %v8884_v58 }
 0x6b0   : > { %9275 = vst.msk [vmem:[%s12802_s21 + $0xd8] sm:$0xff] %vm9247_vm13, %v9242_v43  ;;  %v9240_v3 = vmax.f32 %v9208_v61, 0.0 }
 0x6b2   : > { %9273 = vst.msk [vmem:[%s12802_s21 + $0xc8] sm:$0xff] %vm9247_vm13, %v9240_v3 }
 0x6d3   : > { %v9801_v7 = vpop.f32.mrf.mxu1 }
 0x6d4   : > { %v8850_v45 = vmul.f32 %v9801_v7, %v12769_v22 }
 0x6d5   : > { %v8798_v11 = vpop.f32.mrf.mxu1 }
 0x6d6   : > { %v8889_v35 = vadd.f32 %v12782_v4, %v8850_v45  ;;  %v8848_v15 = vmul.f32 %v12769_v22, %v8798_v11 }
 0x6d7   : > { %v9802_v17 = vpop.f32.mrf.mxu1 }
 0x6d8   : > { %v9213_v46 = vadd.f32 %v9181_v8, %v8889_v35  ;;  %v8887_v49 = vadd.f32 %v12782_v4, %v8848_v15  ;;  %v8851_v26 = vmul.f32 %v9802_v17, %v12769_v22 }
 0x6d9   : > { %v8801_v10 = vpop.f32.mrf.mxu1 }
 0x6da   : > { %v9245_v23 = vmax.f32 %v9213_v46, 0.0  ;;  %v9211_v25 = vadd.f32 %v9179_v16, %v8887_v49  ;;  %v8890_v28 = vadd.f32 %v12782_v4, %v8851_v26  ;;  %v8849_v18 = vmul.f32 %v12769_v22, %v8801_v10 }
 0x6dc   : > { %9278 = vst.msk [vmem:[%s12802_s21 + $0xf0] sm:$0xff] %vm9247_vm13, %v9245_v23  ;;  %v9243_v24 = vmax.f32 %v9211_v25, 0.0  ;;  %v9214_v20 = vadd.f32 %v9182_v21, %v8890_v28  ;;  %v8888_v30 = vadd.f32 %v12782_v4, %v8849_v18 }
 0x6de   : > { %9276 = vst.msk [vmem:[%s12802_s21 + $0xe0] sm:$0xff] %vm9247_vm13, %v9243_v24  ;;  %v9246_v1 = vmax.f32 %v9214_v20, 0.0  ;;  %v9212_v19 = vadd.f32 %v9180_v39, %v8888_v30 }
 0x6e0   : > { %9279 = vst.msk [vmem:[%s12802_s21 + $0xf8] sm:$0xff] %vm9247_vm13, %v9246_v1  ;;  %v9244_v14 = vmax.f32 %v9212_v19, 0.0 }
 0x6e2   : > { %9277 = vst.msk [vmem:[%s12802_s21 + $0xe8] sm:$0xff] %vm9247_vm13, %v9244_v14 }
 0x6e3 PF: > { %s20_s13 = sadd.s32 1, %s9947_s13  }
 0x6e4   : > { %p17_p4 = scmp.ge.s32.totalorder %s20_s13, 4  }
 0x6e6   :  { %19 = sbr.rel (!%p17_p4) target bundleno = 1 (0x1), region = 96 }

</bundles_post_ra>
